<compile_context>
chip_gen: v7x
topology: tpu7x:2x2x1
jax: 0.10.0
libtpu: 0.0.40
codegen_flags: <defaults>
</compile_context>

<pallas_src>
import functools

import jax
import jax.numpy as jnp
from jax import lax
from jax.experimental import pallas as pl
from jax.experimental.pallas import tpu as pltpu

LANE = 128


def _round_up(x, m):
    return ((x + m - 1) // m) * m


# --------------------------- kernel 1: conv1 GEMM --------------------------- #

def _matmul_bias_relu_kernel(x_ref, w_ref, b_ref, o_ref):
    acc = jnp.dot(x_ref[...], w_ref[...], preferred_element_type=jnp.float32)
    o_ref[...] = jnp.maximum(acc + b_ref[...], 0.0).astype(o_ref.dtype)


def pallas_linear_relu(x, w, b, *, tile_m, out_dtype=jnp.bfloat16):
    """relu(x @ w + b). x: (M, K) bf16, w: (K, N) bf16, b: (1, N) f32."""
    M, K = x.shape
    _, N = w.shape
    assert M % tile_m == 0, (M, tile_m)
    grid_m = M // tile_m
    return pl.pallas_call(
        _matmul_bias_relu_kernel,
        out_shape=jax.ShapeDtypeStruct((M, N), out_dtype),
        grid_spec=pltpu.PrefetchScalarGridSpec(
            num_scalar_prefetch=0,
            grid=(grid_m,),
            in_specs=[
                pl.BlockSpec((tile_m, K), lambda i: (i, 0)),
                pl.BlockSpec((K, N), lambda i: (0, 0)),
                pl.BlockSpec((1, N), lambda i: (0, 0)),
            ],
            out_specs=pl.BlockSpec((tile_m, N), lambda i: (i, 0)),
        ),
        compiler_params=pltpu.CompilerParams(
            dimension_semantics=("parallel",)),
        cost_estimate=pl.CostEstimate(
            flops=2 * M * K * N, transcendentals=0,
            bytes_accessed=int((M * K + K * N + M * N) * 2 + 4 * N)),
    )(x, w, b)


# ------------------- kernel 2: fused conv2+conv3+fc1+fc2 -------------------- #

def _fused_tail_kernel(p2_ref, w2_ref, b2_ref, w3_ref, b3_ref,
                       w1_hbm, b1_ref, wq_ref, bq_ref, o_ref,
                       w1_vmem, h2_ref, t_ref, h3_ref, sem, *, batch):
    # Start the big fc1 weight fetch now; it overlaps conv2 + conv3 compute.
    w1_copy = pltpu.make_async_copy(w1_hbm, w1_vmem, sem.at[0])
    w1_copy.start()

    # conv2 (patches pre-gathered by XLA): (B*81, 512) @ (512, 64) + bias + ReLU.
    h2 = jnp.dot(p2_ref[...], w2_ref[...], preferred_element_type=jnp.float32)
    h2_ref[...] = jnp.maximum(h2 + b2_ref[...], 0.0).astype(h2_ref.dtype)

    # conv3 (3x3, stride 1) as a shift-and-add implicit GEMM over the
    # VMEM-resident conv2 output. Rows of h2_ref are (b, ih, iw) on a 9x9 grid
    # (row = b*81 + ih*9 + iw), so kernel offset (kh, kw) is a static row shift
    # of kh*9 + kw and output (b, oh, ow) lives at row b*81 + oh*9 + ow.
    n_t = batch * 81 - 20  # covers every valid output row; extras are junk
    acc = jnp.zeros((n_t, 64), jnp.float32)
    for kh in range(3):
        for kw in range(3):
            idx = kh * 3 + kw
            shift = kh * 9 + kw
            acc = acc + jnp.dot(h2_ref[shift:shift + n_t, :],
                                w3_ref[idx * 64:(idx + 1) * 64, :],
                                preferred_element_type=jnp.float32)
    t_ref[...] = jnp.maximum(acc + b3_ref[...], 0.0)  # junk rows never read

    # Flatten the valid conv3 rows into a lane-dense (B, 49*64) slab in NHWC
    # (h, w, c) order; fc1_w was permuted to this order in prepare_params so
    # the result matches torch's x.view(B, -1) of the NCHW activation.
    for b in range(batch):
        for oh in range(7):
            for ow in range(7):
                r = b * 81 + oh * 9 + ow
                c0 = (oh * 7 + ow) * 64
                h3_ref[b:b + 1, c0:c0 + 64] = t_ref[r:r + 1, :]

    # fc1 + ReLU + fc2 (fc1_w now resident in the VMEM scratch).
    w1_copy.wait()
    h4 = jnp.dot(h3_ref[...].astype(jnp.bfloat16), w1_vmem[...],
                 preferred_element_type=jnp.float32)
    h4 = jnp.maximum(h4 + b1_ref[...], 0.0).astype(jnp.bfloat16)
    q = jnp.dot(h4, wq_ref[...], preferred_element_type=jnp.float32)
    o_ref[...] = (q + bq_ref[...]).astype(o_ref.dtype)


def pallas_fused_tail(p2, prep, *, batch):
    M2, K2 = p2.shape
    assert M2 == batch * 81 and K2 == 512, (M2, K2, batch)
    w2, b2 = prep["c2_w"], prep["c2_b"]
    w3, b3 = prep["c3_w"], prep["c3_b"]
    w1, b1 = prep["fc1_w"], prep["fc1_b"]
    wq, bq = prep["fc2_w"], prep["fc2_b"]
    n_out = wq.shape[1]
    flops = 2 * (M2 * K2 * 64 + batch * 49 * 576 * 64
                 + batch * 3136 * 512 + batch * 512 * n_out)
    bytes_accessed = int(p2.size * 2
                         + (w2.size + w3.size + w1.size + wq.size) * 2
                         + (b2.size + b3.size + b1.size + bq.size) * 4
                         + batch * n_out * 4)
    kernel = functools.partial(_fused_tail_kernel, batch=batch)
    return pl.pallas_call(
        kernel,
        out_shape=jax.ShapeDtypeStruct((batch, n_out), jnp.float32),
        grid_spec=pltpu.PrefetchScalarGridSpec(
            num_scalar_prefetch=0,
            grid=(1,),
            in_specs=[
                pl.BlockSpec((M2, K2), lambda i: (0, 0)),    # conv2 patches
                pl.BlockSpec(w2.shape, lambda i: (0, 0)),
                pl.BlockSpec(b2.shape, lambda i: (0, 0)),
                pl.BlockSpec(w3.shape, lambda i: (0, 0)),
                pl.BlockSpec(b3.shape, lambda i: (0, 0)),
                pl.BlockSpec(memory_space=pl.ANY),           # fc1_w stays in HBM
                pl.BlockSpec(b1.shape, lambda i: (0, 0)),
                pl.BlockSpec(wq.shape, lambda i: (0, 0)),
                pl.BlockSpec(bq.shape, lambda i: (0, 0)),
            ],
            out_specs=pl.BlockSpec((batch, n_out), lambda i: (0, 0)),
            scratch_shapes=[
                pltpu.VMEM(w1.shape, w1.dtype),               # fc1_w staging
                pltpu.VMEM((M2, 64), jnp.bfloat16),           # conv2 output
                pltpu.VMEM((batch * 81 - 20, 64), jnp.float32),  # conv3 (+junk)
                pltpu.VMEM((batch, 49 * 64), jnp.float32),    # flattened conv3
                pltpu.SemaphoreType.DMA((1,)),
            ],
        ),
        compiler_params=pltpu.CompilerParams(
            dimension_semantics=("arbitrary",)),
        cost_estimate=pl.CostEstimate(
            flops=flops, transcendentals=0, bytes_accessed=bytes_accessed),
    )(p2, w2, b2, w3, b3, w1, b1, wq, bq)


# ------------------------------ im2col glue --------------------------------- #

def extract_patches_nhwc(x, k, s):
    """(B, H, W, C) -> (B, OH, OW, C*k*k); feature order (C, kh, kw)."""
    return lax.conv_general_dilated_patches(
        x, (k, k), (s, s), "VALID",
        dimension_numbers=("NHWC", "HWIO", "NHWC"))


# -------------------------------- params ------------------------------------ #

def init_params(key, num_actions):
    def uniform(k, shape, fan_in):
        bound = 1.0 / float(fan_in) ** 0.5
        return jax.random.uniform(k, shape, jnp.float32, -bound, bound)

    ks = jax.random.split(key, 10)
    return {
        "conv1_w": uniform(ks[0], (32, 1, 8, 8), 1 * 8 * 8),
        "conv1_b": uniform(ks[1], (32,), 1 * 8 * 8),
        "conv2_w": uniform(ks[2], (64, 32, 4, 4), 32 * 4 * 4),
        "conv2_b": uniform(ks[3], (64,), 32 * 4 * 4),
        "conv3_w": uniform(ks[4], (64, 64, 3, 3), 64 * 3 * 3),
        "conv3_b": uniform(ks[5], (64,), 64 * 3 * 3),
        "fc1_w": uniform(ks[6], (512, 64 * 7 * 7), 64 * 7 * 7),
        "fc1_b": uniform(ks[7], (512,), 64 * 7 * 7),
        "fc2_w": uniform(ks[8], (num_actions, 512), 512),
        "fc2_b": uniform(ks[9], (num_actions,), 512),
    }


def prepare_params(params, *, dtype=jnp.bfloat16):
    """One-time (outside jit) re-layout of the PyTorch-style params."""
    def conv_w(w, out_c_pad=None):
        OC, C, kh, kw = w.shape
        if out_c_pad is not None and out_c_pad > OC:
            w = jnp.pad(w, ((0, out_c_pad - OC), (0, 0), (0, 0), (0, 0)))
        return w.reshape(w.shape[0], C * kh * kw).T.astype(dtype)

    def bias(b, n_pad=None):
        if n_pad is not None and n_pad > b.shape[0]:
            b = jnp.pad(b, (0, n_pad - b.shape[0]))
        return b.reshape(1, -1).astype(jnp.float32)

    num_actions = params["fc2_w"].shape[0]
    nq = _round_up(max(num_actions, LANE), LANE)
    # conv3 weight in (kh, kw, c_in) x OC order: matches the shift-and-add order.
    w3 = params["conv3_w"].transpose(2, 3, 1, 0).reshape(9 * 64, 64)
    # torch flattens (C=64, H=7, W=7); the kernel flattens NHWC (H, W, C).
    f1 = (params["fc1_w"].reshape(512, 64, 7, 7)
          .transpose(2, 3, 1, 0).reshape(64 * 7 * 7, 512))
    f2 = jnp.pad(params["fc2_w"].T, ((0, 0), (0, nq - num_actions)))
    return {
        "c1_w": conv_w(params["conv1_w"], out_c_pad=LANE),   # (64, 128)
        "c1_b": bias(params["conv1_b"], LANE),               # (1, 128)
        "c2_w": conv_w(params["conv2_w"]),                   # (512, 64)
        "c2_b": bias(params["conv2_b"]),                     # (1, 64)
        "c3_w": w3.astype(dtype),                            # (576, 64)
        "c3_b": bias(params["conv3_b"]),                     # (1, 64)
        "fc1_w": f1.astype(dtype),                           # (3136, 512)
        "fc1_b": bias(params["fc1_b"]),                      # (1, 512)
        "fc2_w": f2.astype(dtype),                           # (512, 128)
        "fc2_b": bias(params["fc2_b"], nq),                  # (1, 128)
    }


# -------------------------------- forward ----------------------------------- #

def jumping_q_network_forward(prep, x, *, num_actions):
    B = x.shape[0]
    x = jnp.transpose(x, (0, 2, 3, 1)).astype(jnp.bfloat16)     # NCHW -> NHWC

    # conv1: 8x8 stride 4 + ReLU. im2col in XLA, GEMM on the MXU; output
    # channels zero-padded to 128 for lane-dense stores (exact: padded weight
    # columns and biases are zero and are dropped below).
    p1 = extract_patches_nhwc(x, 8, 4)                          # (B, 20, 20, 64)
    h1 = pallas_linear_relu(p1.reshape(B * 400, 64),
                            prep["c1_w"], prep["c1_b"], tile_m=400)
    h1 = h1.reshape(B, 20, 20, LANE)[..., :32]                  # drop pad chans

    # conv2 patches only (K = 32*4*4 = 512); the conv2 GEMM, conv3, flatten and
    # fc head all run inside one fused Pallas kernel.
    p2 = extract_patches_nhwc(h1, 4, 2)                         # (B, 9, 9, 512)
    q = pallas_fused_tail(p2.reshape(B * 81, 512), prep, batch=B)
    return q[:, :num_actions]


def reference_forward(params, x):
    """Plain-JAX f32 reference mirroring the PyTorch module."""
    def conv(x, w, b, s):
        y = lax.conv_general_dilated(
            x, w, (s, s), "VALID",
            dimension_numbers=("NCHW", "OIHW", "NCHW"),
            precision=lax.Precision.HIGHEST)
        return jnp.maximum(y + b[None, :, None, None], 0.0)

    x = conv(x, params["conv1_w"], params["conv1_b"], 4)
    x = conv(x, params["conv2_w"], params["conv2_b"], 2)
    x = conv(x, params["conv3_w"], params["conv3_b"], 1)
    x = x.reshape(x.shape[0], -1)
    x = jnp.maximum(
        jnp.dot(x, params["fc1_w"].T, precision=lax.Precision.HIGHEST)
        + params["fc1_b"], 0.0)
    return (jnp.dot(x, params["fc2_w"].T, precision=lax.Precision.HIGHEST)
            + params["fc2_b"])


# --------------------------------- main -------------------------------------- #

if __name__ == "__main__":
    num_actions = 2          # jumping task: {right, jump}
    batch = 2

    key = jax.random.PRNGKey(0)
    key_p, key_x = jax.random.split(key)
    params = init_params(key_p, num_actions)
    # Architecture fixes spatial size: 84 -> 20 -> 9 -> 7 (fc expects 64*7*7).
    x = jax.random.normal(key_x, (batch, 1, 84, 84), jnp.float32)

    prep = prepare_params(params)    # one-time weight re-layout, outside jit
    fwd = jax.jit(functools.partial(jumping_q_network_forward,
                                    num_actions=num_actions))
    q = jax.block_until_ready(fwd(prep, x))
    assert q.shape == (batch, num_actions), q.shape

    # Check 1: reference with the same bf16-rounded weights/input (isolates
    # kernel math + layout/permutation/padding correctness).
    def q16(a):
        return a.astype(jnp.bfloat16).astype(jnp.float32)
    params_q = {k: (q16(v) if k.endswith("_w") else v) for k, v in params.items()}
    q_ref_q = jax.block_until_ready(reference_forward(params_q, q16(x)))
    assert jnp.allclose(q, q_ref_q, rtol=1e-2, atol=1e-2), (q, q_ref_q)

    # Check 2: full fp32 reference (looser tolerance for bf16 operands).
    q_ref = jax.block_until_ready(reference_forward(params, x))
    assert jnp.allclose(q, q_ref, rtol=5e-2, atol=5e-2), (q, q_ref)

    print("KERNEL_OK")
</pallas_src>

<mosaic_0001>
module attributes {stable_mosaic.version = 11 : i64} {
  func.func @_matmul_bias_relu_kernel(%arg0: i32, %arg1: memref<400x64xbf16, #tpu.memory_space<vmem>>, %arg2: memref<64x128xbf16, #tpu.memory_space<vmem>>, %arg3: memref<1x128xf32, #tpu.memory_space<vmem>>, %arg4: memref<400x128xbf16, #tpu.memory_space<vmem>>) attributes {dimension_semantics = [#tpu.dimension_semantics<parallel>], iteration_bounds = array<i64: 2>, scalar_prefetch = 0 : i64, scratch_operands = 0 : i64, tpu.core_type = #tpu.core_type<tc>, window_params = [{transform_indices = @transform_0, window_bounds = array<i64: 400, 64>}, {pipeline_mode = #tpu.pipeline_mode<synchronous>, transform_indices = @transform_1, window_bounds = array<i64: 64, 128>}, {pipeline_mode = #tpu.pipeline_mode<synchronous>, transform_indices = @transform_2, window_bounds = array<i64: 1, 128>}, {transform_indices = @transform_3, window_bounds = array<i64: 400, 128>}]} {
    %c0 = arith.constant 0 : index
    %c0_0 = arith.constant 0 : index
    %0 = vector.load %arg1[%c0, %c0_0] : memref<400x64xbf16, #tpu.memory_space<vmem>>, vector<400x64xbf16>
    %c0_1 = arith.constant 0 : index
    %c0_2 = arith.constant 0 : index
    %1 = vector.load %arg2[%c0_1, %c0_2] : memref<64x128xbf16, #tpu.memory_space<vmem>>, vector<64x128xbf16>
    %cst = arith.constant dense<0.000000e+00> : vector<400x128xf32>
    %2 = tpu.matmul %0, %1, %cst {dimension_numbers = #tpu.dot_dimension_numbers<[1], [0], [0], [1], [0, 0, 1, 1], [], []>} : vector<400x64xbf16>, vector<64x128xbf16>, vector<400x128xf32> -> vector<400x128xf32>
    %c0_3 = arith.constant 0 : index
    %c0_4 = arith.constant 0 : index
    %3 = vector.load %arg3[%c0_3, %c0_4] : memref<1x128xf32, #tpu.memory_space<vmem>>, vector<1x128xf32>
    %4 = vector.broadcast %3 : vector<1x128xf32> to vector<400x128xf32>
    %5 = arith.addf %2, %4 : vector<400x128xf32>
    %cst_5 = arith.constant 0.000000e+00 : f32
    %6 = vector.broadcast %cst_5 : f32 to vector<400x128xf32>
    %7 = arith.maximumf %5, %6 : vector<400x128xf32>
    %8 = arith.truncf %7 : vector<400x128xf32> to vector<400x128xbf16>
    %c0_6 = arith.constant 0 : index
    %c0_7 = arith.constant 0 : index
    %9 = vector.load %arg4[%c0_6, %c0_7] : memref<400x128xbf16, #tpu.memory_space<vmem>>, vector<400x128xbf16>
    tpu.vector_store %arg4[%c0_6, %c0_7], %8 {strides = array<i32>} : memref<400x128xbf16, #tpu.memory_space<vmem>>, vector<400x128xbf16>,
    return
  }
  func.func @transform_0(%arg0: i32) -> (i32, i32) {
    %c0_i32 = arith.constant 0 : i32
    %c0_i32_0 = arith.constant 0 : i32
    return %arg0, %c0_i32 : i32, i32
  }
  func.func @transform_1(%arg0: i32) -> (i32, i32) {
    %c0_i32 = arith.constant 0 : i32
    %c0_i32_0 = arith.constant 0 : i32
    %c0_i32_1 = arith.constant 0 : i32
    return %c0_i32, %c0_i32_0 : i32, i32
  }
  func.func @transform_2(%arg0: i32) -> (i32, i32) {
    %c0_i32 = arith.constant 0 : i32
    %c0_i32_0 = arith.constant 0 : i32
    %c0_i32_1 = arith.constant 0 : i32
    return %c0_i32, %c0_i32_0 : i32, i32
  }
  func.func @transform_3(%arg0: i32) -> (i32, i32) {
    %c0_i32 = arith.constant 0 : i32
    %c0_i32_0 = arith.constant 0 : i32
    return %arg0, %c0_i32 : i32, i32
  }
}

module attributes {stable_mosaic.version = 11 : i64} {
  func.func @_fused_tail_kernel(%arg0: i32, %arg1: memref<162x512xbf16, #tpu.memory_space<vmem>>, %arg2: memref<512x64xbf16, #tpu.memory_space<vmem>>, %arg3: memref<1x64xf32, #tpu.memory_space<vmem>>, %arg4: memref<576x64xbf16, #tpu.memory_space<vmem>>, %arg5: memref<1x64xf32, #tpu.memory_space<vmem>>, %arg6: memref<3136x512xbf16, #tpu.memory_space<any>>, %arg7: memref<1x512xf32, #tpu.memory_space<vmem>>, %arg8: memref<512x128xbf16, #tpu.memory_space<vmem>>, %arg9: memref<1x128xf32, #tpu.memory_space<vmem>>, %arg10: memref<2x128xf32, #tpu.memory_space<vmem>>, %arg11: memref<3136x512xbf16, #tpu.memory_space<vmem>>, %arg12: memref<162x64xbf16, #tpu.memory_space<vmem>>, %arg13: memref<142x64xf32, #tpu.memory_space<vmem>>, %arg14: memref<2x3136xf32, #tpu.memory_space<vmem>>, %arg15: memref<1x!tpu.dma_semaphore, #tpu.memory_space<semaphore_mem>>) attributes {dimension_semantics = [#tpu.dimension_semantics<arbitrary>], iteration_bounds = array<i64: 1>, scalar_prefetch = 0 : i64, scratch_operands = 5 : i64, tpu.core_type = #tpu.core_type<tc>, window_params = [{pipeline_mode = #tpu.pipeline_mode<synchronous>, transform_indices = @transform_0, window_bounds = array<i64: 162, 512>}, {pipeline_mode = #tpu.pipeline_mode<synchronous>, transform_indices = @transform_1, window_bounds = array<i64: 512, 64>}, {pipeline_mode = #tpu.pipeline_mode<synchronous>, transform_indices = @transform_2, window_bounds = array<i64: 1, 64>}, {pipeline_mode = #tpu.pipeline_mode<synchronous>, transform_indices = @transform_3, window_bounds = array<i64: 576, 64>}, {pipeline_mode = #tpu.pipeline_mode<synchronous>, transform_indices = @transform_4, window_bounds = array<i64: 1, 64>}, {}, {pipeline_mode = #tpu.pipeline_mode<synchronous>, transform_indices = @transform_6, window_bounds = array<i64: 1, 512>}, {pipeline_mode = #tpu.pipeline_mode<synchronous>, transform_indices = @transform_7, window_bounds = array<i64: 512, 128>}, {pipeline_mode = #tpu.pipeline_mode<synchronous>, transform_indices = @transform_8, window_bounds = array<i64: 1, 128>}, {pipeline_mode = #tpu.pipeline_mode<synchronous>, transform_indices = @transform_9, window_bounds = array<i64: 2, 128>}]} {
    %c0_i32 = arith.constant 0 : i32
    %0 = tpu.memref_slice %arg15[%c0_i32] : memref<1x!tpu.dma_semaphore, #tpu.memory_space<semaphore_mem>> -> memref<1x!tpu.dma_semaphore, #tpu.memory_space<semaphore_mem>>
    %1 = tpu.memref_squeeze %0 : memref<1x!tpu.dma_semaphore, #tpu.memory_space<semaphore_mem>> -> memref<!tpu.dma_semaphore, #tpu.memory_space<semaphore_mem>>
    tpu.enqueue_dma source(%arg6 : memref<3136x512xbf16, #tpu.memory_space<any>>) target(%arg11 : memref<3136x512xbf16, #tpu.memory_space<vmem>>) target_semaphore(%1 : memref<!tpu.dma_semaphore, #tpu.memory_space<semaphore_mem>>)
    %c0 = arith.constant 0 : index
    %c0_0 = arith.constant 0 : index
    %2 = vector.load %arg1[%c0, %c0_0] : memref<162x512xbf16, #tpu.memory_space<vmem>>, vector<162x512xbf16>
    %c0_1 = arith.constant 0 : index
    %c0_2 = arith.constant 0 : index
    %3 = vector.load %arg2[%c0_1, %c0_2] : memref<512x64xbf16, #tpu.memory_space<vmem>>, vector<512x64xbf16>
    %cst = arith.constant dense<0.000000e+00> : vector<162x64xf32>
    %4 = tpu.matmul %2, %3, %cst {dimension_numbers = #tpu.dot_dimension_numbers<[1], [0], [0], [1], [0, 0, 1, 1], [], []>} : vector<162x512xbf16>, vector<512x64xbf16>, vector<162x64xf32> -> vector<162x64xf32>
    %c0_3 = arith.constant 0 : index
    %c0_4 = arith.constant 0 : index
    %5 = vector.load %arg3[%c0_3, %c0_4] : memref<1x64xf32, #tpu.memory_space<vmem>>, vector<1x64xf32>
    %6 = vector.broadcast %5 : vector<1x64xf32> to vector<162x64xf32>
    %7 = arith.addf %4, %6 : vector<162x64xf32>
    %cst_5 = arith.constant 0.000000e+00 : f32
    %8 = vector.broadcast %cst_5 : f32 to vector<162x64xf32>
    %9 = arith.maximumf %7, %8 : vector<162x64xf32>
    %10 = arith.truncf %9 : vector<162x64xf32> to vector<162x64xbf16>
    %c0_6 = arith.constant 0 : index
    %c0_7 = arith.constant 0 : index
    %11 = vector.load %arg12[%c0_6, %c0_7] : memref<162x64xbf16, #tpu.memory_space<vmem>>, vector<162x64xbf16>
    tpu.vector_store %arg12[%c0_6, %c0_7], %10 {strides = array<i32>} : memref<162x64xbf16, #tpu.memory_space<vmem>>, vector<162x64xbf16>,
    %cst_8 = arith.constant 0.000000e+00 : f32
    %12 = vector.broadcast %cst_8 : f32 to vector<142x64xf32>
    %c0_9 = arith.constant 0 : index
    %c0_10 = arith.constant 0 : index
    %13 = vector.load %arg12[%c0_9, %c0_10] : memref<162x64xbf16, #tpu.memory_space<vmem>>, vector<142x64xbf16>
    %c0_11 = arith.constant 0 : index
    %c0_12 = arith.constant 0 : index
    %14 = vector.load %arg4[%c0_11, %c0_12] : memref<576x64xbf16, #tpu.memory_space<vmem>>, vector<64x64xbf16>
    %cst_13 = arith.constant dense<0.000000e+00> : vector<142x64xf32>
    %15 = tpu.matmul %13, %14, %cst_13 {dimension_numbers = #tpu.dot_dimension_numbers<[1], [0], [0], [1], [0, 0, 1, 1], [], []>} : vector<142x64xbf16>, vector<64x64xbf16>, vector<142x64xf32> -> vector<142x64xf32>
    %16 = arith.addf %12, %15 : vector<142x64xf32>
    %c1 = arith.constant 1 : index
    %c0_14 = arith.constant 0 : index
    %17 = vector.load %arg12[%c1, %c0_14] : memref<162x64xbf16, #tpu.memory_space<vmem>>, vector<142x64xbf16>
    %c64 = arith.constant 64 : index
    %c0_15 = arith.constant 0 : index
    %18 = vector.load %arg4[%c64, %c0_15] : memref<576x64xbf16, #tpu.memory_space<vmem>>, vector<64x64xbf16>
    %cst_16 = arith.constant dense<0.000000e+00> : vector<142x64xf32>
    %19 = tpu.matmul %17, %18, %cst_16 {dimension_numbers = #tpu.dot_dimension_numbers<[1], [0], [0], [1], [0, 0, 1, 1], [], []>} : vector<142x64xbf16>, vector<64x64xbf16>, vector<142x64xf32> -> vector<142x64xf32>
    %20 = arith.addf %16, %19 : vector<142x64xf32>
    %c2 = arith.constant 2 : index
    %c0_17 = arith.constant 0 : index
    %21 = vector.load %arg12[%c2, %c0_17] : memref<162x64xbf16, #tpu.memory_space<vmem>>, vector<142x64xbf16>
    %c128 = arith.constant 128 : index
    %c0_18 = arith.constant 0 : index
    %22 = vector.load %arg4[%c128, %c0_18] : memref<576x64xbf16, #tpu.memory_space<vmem>>, vector<64x64xbf16>
    %cst_19 = arith.constant dense<0.000000e+00> : vector<142x64xf32>
    %23 = tpu.matmul %21, %22, %cst_19 {dimension_numbers = #tpu.dot_dimension_numbers<[1], [0], [0], [1], [0, 0, 1, 1], [], []>} : vector<142x64xbf16>, vector<64x64xbf16>, vector<142x64xf32> -> vector<142x64xf32>
    %24 = arith.addf %20, %23 : vector<142x64xf32>
    %c9 = arith.constant 9 : index
    %c0_20 = arith.constant 0 : index
    %25 = vector.load %arg12[%c9, %c0_20] : memref<162x64xbf16, #tpu.memory_space<vmem>>, vector<142x64xbf16>
    %c192 = arith.constant 192 : index
    %c0_21 = arith.constant 0 : index
    %26 = vector.load %arg4[%c192, %c0_21] : memref<576x64xbf16, #tpu.memory_space<vmem>>, vector<64x64xbf16>
    %cst_22 = arith.constant dense<0.000000e+00> : vector<142x64xf32>
    %27 = tpu.matmul %25, %26, %cst_22 {dimension_numbers = #tpu.dot_dimension_numbers<[1], [0], [0], [1], [0, 0, 1, 1], [], []>} : vector<142x64xbf16>, vector<64x64xbf16>, vector<142x64xf32> -> vector<142x64xf32>
    %28 = arith.addf %24, %27 : vector<142x64xf32>
    %c10 = arith.constant 10 : index
    %c0_23 = arith.constant 0 : index
    %29 = vector.load %arg12[%c10, %c0_23] : memref<162x64xbf16, #tpu.memory_space<vmem>>, vector<142x64xbf16>
    %c256 = arith.constant 256 : index
    %c0_24 = arith.constant 0 : index
    %30 = vector.load %arg4[%c256, %c0_24] : memref<576x64xbf16, #tpu.memory_space<vmem>>, vector<64x64xbf16>
    %cst_25 = arith.constant dense<0.000000e+00> : vector<142x64xf32>
    %31 = tpu.matmul %29, %30, %cst_25 {dimension_numbers = #tpu.dot_dimension_numbers<[1], [0], [0], [1], [0, 0, 1, 1], [], []>} : vector<142x64xbf16>, vector<64x64xbf16>, vector<142x64xf32> -> vector<142x64xf32>
    %32 = arith.addf %28, %31 : vector<142x64xf32>
    %c11 = arith.constant 11 : index
    %c0_26 = arith.constant 0 : index
    %33 = vector.load %arg12[%c11, %c0_26] : memref<162x64xbf16, #tpu.memory_space<vmem>>, vector<142x64xbf16>
    %c320 = arith.constant 320 : index
    %c0_27 = arith.constant 0 : index
    %34 = vector.load %arg4[%c320, %c0_27] : memref<576x64xbf16, #tpu.memory_space<vmem>>, vector<64x64xbf16>
    %cst_28 = arith.constant dense<0.000000e+00> : vector<142x64xf32>
    %35 = tpu.matmul %33, %34, %cst_28 {dimension_numbers = #tpu.dot_dimension_numbers<[1], [0], [0], [1], [0, 0, 1, 1], [], []>} : vector<142x64xbf16>, vector<64x64xbf16>, vector<142x64xf32> -> vector<142x64xf32>
    %36 = arith.addf %32, %35 : vector<142x64xf32>
    %c18 = arith.constant 18 : index
    %c0_29 = arith.constant 0 : index
    %37 = vector.load %arg12[%c18, %c0_29] : memref<162x64xbf16, #tpu.memory_space<vmem>>, vector<142x64xbf16>
    %c384 = arith.constant 384 : index
    %c0_30 = arith.constant 0 : index
    %38 = vector.load %arg4[%c384, %c0_30] : memref<576x64xbf16, #tpu.memory_space<vmem>>, vector<64x64xbf16>
    %cst_31 = arith.constant dense<0.000000e+00> : vector<142x64xf32>
    %39 = tpu.matmul %37, %38, %cst_31 {dimension_numbers = #tpu.dot_dimension_numbers<[1], [0], [0], [1], [0, 0, 1, 1], [], []>} : vector<142x64xbf16>, vector<64x64xbf16>, vector<142x64xf32> -> vector<142x64xf32>
    %40 = arith.addf %36, %39 : vector<142x64xf32>
    %c19 = arith.constant 19 : index
    %c0_32 = arith.constant 0 : index
    %41 = vector.load %arg12[%c19, %c0_32] : memref<162x64xbf16, #tpu.memory_space<vmem>>, vector<142x64xbf16>
    %c448 = arith.constant 448 : index
    %c0_33 = arith.constant 0 : index
    %42 = vector.load %arg4[%c448, %c0_33] : memref<576x64xbf16, #tpu.memory_space<vmem>>, vector<64x64xbf16>
    %cst_34 = arith.constant dense<0.000000e+00> : vector<142x64xf32>
    %43 = tpu.matmul %41, %42, %cst_34 {dimension_numbers = #tpu.dot_dimension_numbers<[1], [0], [0], [1], [0, 0, 1, 1], [], []>} : vector<142x64xbf16>, vector<64x64xbf16>, vector<142x64xf32> -> vector<142x64xf32>
    %44 = arith.addf %40, %43 : vector<142x64xf32>
    %c20 = arith.constant 20 : index
    %c0_35 = arith.constant 0 : index
    %45 = vector.load %arg12[%c20, %c0_35] : memref<162x64xbf16, #tpu.memory_space<vmem>>, vector<142x64xbf16>
    %c512 = arith.constant 512 : index
    %c0_36 = arith.constant 0 : index
    %46 = vector.load %arg4[%c512, %c0_36] : memref<576x64xbf16, #tpu.memory_space<vmem>>, vector<64x64xbf16>
    %cst_37 = arith.constant dense<0.000000e+00> : vector<142x64xf32>
    %47 = tpu.matmul %45, %46, %cst_37 {dimension_numbers = #tpu.dot_dimension_numbers<[1], [0], [0], [1], [0, 0, 1, 1], [], []>} : vector<142x64xbf16>, vector<64x64xbf16>, vector<142x64xf32> -> vector<142x64xf32>
    %48 = arith.addf %44, %47 : vector<142x64xf32>
    %c0_38 = arith.constant 0 : index
    %c0_39 = arith.constant 0 : index
    %49 = vector.load %arg5[%c0_38, %c0_39] : memref<1x64xf32, #tpu.memory_space<vmem>>, vector<1x64xf32>
    %50 = vector.broadcast %49 : vector<1x64xf32> to vector<142x64xf32>
    %51 = arith.addf %48, %50 : vector<142x64xf32>
    %cst_40 = arith.constant 0.000000e+00 : f32
    %52 = vector.broadcast %cst_40 : f32 to vector<142x64xf32>
    %53 = arith.maximumf %51, %52 : vector<142x64xf32>
    %c0_41 = arith.constant 0 : index
    %c0_42 = arith.constant 0 : index
    %54 = vector.load %arg13[%c0_41, %c0_42] : memref<142x64xf32, #tpu.memory_space<vmem>>, vector<142x64xf32>
    tpu.vector_store %arg13[%c0_41, %c0_42], %53 {strides = array<i32>} : memref<142x64xf32, #tpu.memory_space<vmem>>, vector<142x64xf32>,
    %c0_43 = arith.constant 0 : index
    %c0_44 = arith.constant 0 : index
    %55 = vector.load %arg13[%c0_43, %c0_44] : memref<142x64xf32, #tpu.memory_space<vmem>>, vector<1x64xf32>
    %c0_45 = arith.constant 0 : index
    %c0_46 = arith.constant 0 : index
    %56 = vector.load %arg14[%c0_45, %c0_46] : memref<2x3136xf32, #tpu.memory_space<vmem>>, vector<1x64xf32>
    tpu.vector_store %arg14[%c0_45, %c0_46], %55 {strides = array<i32>} : memref<2x3136xf32, #tpu.memory_space<vmem>>, vector<1x64xf32>,
    %c1_47 = arith.constant 1 : index
    %c0_48 = arith.constant 0 : index
    %57 = vector.load %arg13[%c1_47, %c0_48] : memref<142x64xf32, #tpu.memory_space<vmem>>, vector<1x64xf32>
    %c0_49 = arith.constant 0 : index
    %c64_50 = arith.constant 64 : index
    %58 = vector.load %arg14[%c0_49, %c64_50] : memref<2x3136xf32, #tpu.memory_space<vmem>>, vector<1x64xf32>
    tpu.vector_store %arg14[%c0_49, %c64_50], %57 {strides = array<i32>} : memref<2x3136xf32, #tpu.memory_space<vmem>>, vector<1x64xf32>,
    %c2_51 = arith.constant 2 : index
    %c0_52 = arith.constant 0 : index
    %59 = vector.load %arg13[%c2_51, %c0_52] : memref<142x64xf32, #tpu.memory_space<vmem>>, vector<1x64xf32>
    %c0_53 = arith.constant 0 : index
    %c128_54 = arith.constant 128 : index
    %60 = vector.load %arg14[%c0_53, %c128_54] : memref<2x3136xf32, #tpu.memory_space<vmem>>, vector<1x64xf32>
    tpu.vector_store %arg14[%c0_53, %c128_54], %59 {strides = array<i32>} : memref<2x3136xf32, #tpu.memory_space<vmem>>, vector<1x64xf32>,
    %c3 = arith.constant 3 : index
    %c0_55 = arith.constant 0 : index
    %61 = vector.load %arg13[%c3, %c0_55] : memref<142x64xf32, #tpu.memory_space<vmem>>, vector<1x64xf32>
    %c0_56 = arith.constant 0 : index
    %c192_57 = arith.constant 192 : index
    %62 = vector.load %arg14[%c0_56, %c192_57] : memref<2x3136xf32, #tpu.memory_space<vmem>>, vector<1x64xf32>
    tpu.vector_store %arg14[%c0_56, %c192_57], %61 {strides = array<i32>} : memref<2x3136xf32, #tpu.memory_space<vmem>>, vector<1x64xf32>,
    %c4 = arith.constant 4 : index
    %c0_58 = arith.constant 0 : index
    %63 = vector.load %arg13[%c4, %c0_58] : memref<142x64xf32, #tpu.memory_space<vmem>>, vector<1x64xf32>
    %c0_59 = arith.constant 0 : index
    %c256_60 = arith.constant 256 : index
    %64 = vector.load %arg14[%c0_59, %c256_60] : memref<2x3136xf32, #tpu.memory_space<vmem>>, vector<1x64xf32>
    tpu.vector_store %arg14[%c0_59, %c256_60], %63 {strides = array<i32>} : memref<2x3136xf32, #tpu.memory_space<vmem>>, vector<1x64xf32>,
    %c5 = arith.constant 5 : index
    %c0_61 = arith.constant 0 : index
    %65 = vector.load %arg13[%c5, %c0_61] : memref<142x64xf32, #tpu.memory_space<vmem>>, vector<1x64xf32>
    %c0_62 = arith.constant 0 : index
    %c320_63 = arith.constant 320 : index
    %66 = vector.load %arg14[%c0_62, %c320_63] : memref<2x3136xf32, #tpu.memory_space<vmem>>, vector<1x64xf32>
    tpu.vector_store %arg14[%c0_62, %c320_63], %65 {strides = array<i32>} : memref<2x3136xf32, #tpu.memory_space<vmem>>, vector<1x64xf32>,
    %c6 = arith.constant 6 : index
    %c0_64 = arith.constant 0 : index
    %67 = vector.load %arg13[%c6, %c0_64] : memref<142x64xf32, #tpu.memory_space<vmem>>, vector<1x64xf32>
    %c0_65 = arith.constant 0 : index
    %c384_66 = arith.constant 384 : index
    %68 = vector.load %arg14[%c0_65, %c384_66] : memref<2x3136xf32, #tpu.memory_space<vmem>>, vector<1x64xf32>
    tpu.vector_store %arg14[%c0_65, %c384_66], %67 {strides = array<i32>} : memref<2x3136xf32, #tpu.memory_space<vmem>>, vector<1x64xf32>,
    %c9_67 = arith.constant 9 : index
    %c0_68 = arith.constant 0 : index
    %69 = vector.load %arg13[%c9_67, %c0_68] : memref<142x64xf32, #tpu.memory_space<vmem>>, vector<1x64xf32>
    %c0_69 = arith.constant 0 : index
    %c448_70 = arith.constant 448 : index
    %70 = vector.load %arg14[%c0_69, %c448_70] : memref<2x3136xf32, #tpu.memory_space<vmem>>, vector<1x64xf32>
    tpu.vector_store %arg14[%c0_69, %c448_70], %69 {strides = array<i32>} : memref<2x3136xf32, #tpu.memory_space<vmem>>, vector<1x64xf32>,
    %c10_71 = arith.constant 10 : index
    %c0_72 = arith.constant 0 : index
    %71 = vector.load %arg13[%c10_71, %c0_72] : memref<142x64xf32, #tpu.memory_space<vmem>>, vector<1x64xf32>
    %c0_73 = arith.constant 0 : index
    %c512_74 = arith.constant 512 : index
    %72 = vector.load %arg14[%c0_73, %c512_74] : memref<2x3136xf32, #tpu.memory_space<vmem>>, vector<1x64xf32>
    tpu.vector_store %arg14[%c0_73, %c512_74], %71 {strides = array<i32>} : memref<2x3136xf32, #tpu.memory_space<vmem>>, vector<1x64xf32>,
    %c11_75 = arith.constant 11 : index
    %c0_76 = arith.constant 0 : index
    %73 = vector.load %arg13[%c11_75, %c0_76] : memref<142x64xf32, #tpu.memory_space<vmem>>, vector<1x64xf32>
    %c0_77 = arith.constant 0 : index
    %c576 = arith.constant 576 : index
    %74 = vector.load %arg14[%c0_77, %c576] : memref<2x3136xf32, #tpu.memory_space<vmem>>, vector<1x64xf32>
    tpu.vector_store %arg14[%c0_77, %c576], %73 {strides = array<i32>} : memref<2x3136xf32, #tpu.memory_space<vmem>>, vector<1x64xf32>,
    %c12 = arith.constant 12 : index
    %c0_78 = arith.constant 0 : index
    %75 = vector.load %arg13[%c12, %c0_78] : memref<142x64xf32, #tpu.memory_space<vmem>>, vector<1x64xf32>
    %c0_79 = arith.constant 0 : index
    %c640 = arith.constant 640 : index
    %76 = vector.load %arg14[%c0_79, %c640] : memref<2x3136xf32, #tpu.memory_space<vmem>>, vector<1x64xf32>
    tpu.vector_store %arg14[%c0_79, %c640], %75 {strides = array<i32>} : memref<2x3136xf32, #tpu.memory_space<vmem>>, vector<1x64xf32>,
    %c13 = arith.constant 13 : index
    %c0_80 = arith.constant 0 : index
    %77 = vector.load %arg13[%c13, %c0_80] : memref<142x64xf32, #tpu.memory_space<vmem>>, vector<1x64xf32>
    %c0_81 = arith.constant 0 : index
    %c704 = arith.constant 704 : index
    %78 = vector.load %arg14[%c0_81, %c704] : memref<2x3136xf32, #tpu.memory_space<vmem>>, vector<1x64xf32>
    tpu.vector_store %arg14[%c0_81, %c704], %77 {strides = array<i32>} : memref<2x3136xf32, #tpu.memory_space<vmem>>, vector<1x64xf32>,
    %c14 = arith.constant 14 : index
    %c0_82 = arith.constant 0 : index
    %79 = vector.load %arg13[%c14, %c0_82] : memref<142x64xf32, #tpu.memory_space<vmem>>, vector<1x64xf32>
    %c0_83 = arith.constant 0 : index
    %c768 = arith.constant 768 : index
    %80 = vector.load %arg14[%c0_83, %c768] : memref<2x3136xf32, #tpu.memory_space<vmem>>, vector<1x64xf32>
    tpu.vector_store %arg14[%c0_83, %c768], %79 {strides = array<i32>} : memref<2x3136xf32, #tpu.memory_space<vmem>>, vector<1x64xf32>,
    %c15 = arith.constant 15 : index
    %c0_84 = arith.constant 0 : index
    %81 = vector.load %arg13[%c15, %c0_84] : memref<142x64xf32, #tpu.memory_space<vmem>>, vector<1x64xf32>
    %c0_85 = arith.constant 0 : index
    %c832 = arith.constant 832 : index
    %82 = vector.load %arg14[%c0_85, %c832] : memref<2x3136xf32, #tpu.memory_space<vmem>>, vector<1x64xf32>
    tpu.vector_store %arg14[%c0_85, %c832], %81 {strides = array<i32>} : memref<2x3136xf32, #tpu.memory_space<vmem>>, vector<1x64xf32>,
    %c18_86 = arith.constant 18 : index
    %c0_87 = arith.constant 0 : index
    %83 = vector.load %arg13[%c18_86, %c0_87] : memref<142x64xf32, #tpu.memory_space<vmem>>, vector<1x64xf32>
    %c0_88 = arith.constant 0 : index
    %c896 = arith.constant 896 : index
    %84 = vector.load %arg14[%c0_88, %c896] : memref<2x3136xf32, #tpu.memory_space<vmem>>, vector<1x64xf32>
    tpu.vector_store %arg14[%c0_88, %c896], %83 {strides = array<i32>} : memref<2x3136xf32, #tpu.memory_space<vmem>>, vector<1x64xf32>,
    %c19_89 = arith.constant 19 : index
    %c0_90 = arith.constant 0 : index
    %85 = vector.load %arg13[%c19_89, %c0_90] : memref<142x64xf32, #tpu.memory_space<vmem>>, vector<1x64xf32>
    %c0_91 = arith.constant 0 : index
    %c960 = arith.constant 960 : index
    %86 = vector.load %arg14[%c0_91, %c960] : memref<2x3136xf32, #tpu.memory_space<vmem>>, vector<1x64xf32>
    tpu.vector_store %arg14[%c0_91, %c960], %85 {strides = array<i32>} : memref<2x3136xf32, #tpu.memory_space<vmem>>, vector<1x64xf32>,
    %c20_92 = arith.constant 20 : index
    %c0_93 = arith.constant 0 : index
    %87 = vector.load %arg13[%c20_92, %c0_93] : memref<142x64xf32, #tpu.memory_space<vmem>>, vector<1x64xf32>
    %c0_94 = arith.constant 0 : index
    %c1024 = arith.constant 1024 : index
    %88 = vector.load %arg14[%c0_94, %c1024] : memref<2x3136xf32, #tpu.memory_space<vmem>>, vector<1x64xf32>
    tpu.vector_store %arg14[%c0_94, %c1024], %87 {strides = array<i32>} : memref<2x3136xf32, #tpu.memory_space<vmem>>, vector<1x64xf32>,
    %c21 = arith.constant 21 : index
    %c0_95 = arith.constant 0 : index
    %89 = vector.load %arg13[%c21, %c0_95] : memref<142x64xf32, #tpu.memory_space<vmem>>, vector<1x64xf32>
    %c0_96 = arith.constant 0 : index
    %c1088 = arith.constant 1088 : index
    %90 = vector.load %arg14[%c0_96, %c1088] : memref<2x3136xf32, #tpu.memory_space<vmem>>, vector<1x64xf32>
    tpu.vector_store %arg14[%c0_96, %c1088], %89 {strides = array<i32>} : memref<2x3136xf32, #tpu.memory_space<vmem>>, vector<1x64xf32>,
    %c22 = arith.constant 22 : index
    %c0_97 = arith.constant 0 : index
    %91 = vector.load %arg13[%c22, %c0_97] : memref<142x64xf32, #tpu.memory_space<vmem>>, vector<1x64xf32>
    %c0_98 = arith.constant 0 : index
    %c1152 = arith.constant 1152 : index
    %92 = vector.load %arg14[%c0_98, %c1152] : memref<2x3136xf32, #tpu.memory_space<vmem>>, vector<1x64xf32>
    tpu.vector_store %arg14[%c0_98, %c1152], %91 {strides = array<i32>} : memref<2x3136xf32, #tpu.memory_space<vmem>>, vector<1x64xf32>,
    %c23 = arith.constant 23 : index
    %c0_99 = arith.constant 0 : index
    %93 = vector.load %arg13[%c23, %c0_99] : memref<142x64xf32, #tpu.memory_space<vmem>>, vector<1x64xf32>
    %c0_100 = arith.constant 0 : index
    %c1216 = arith.constant 1216 : index
    %94 = vector.load %arg14[%c0_100, %c1216] : memref<2x3136xf32, #tpu.memory_space<vmem>>, vector<1x64xf32>
    tpu.vector_store %arg14[%c0_100, %c1216], %93 {strides = array<i32>} : memref<2x3136xf32, #tpu.memory_space<vmem>>, vector<1x64xf32>,
    %c24 = arith.constant 24 : index
    %c0_101 = arith.constant 0 : index
    %95 = vector.load %arg13[%c24, %c0_101] : memref<142x64xf32, #tpu.memory_space<vmem>>, vector<1x64xf32>
    %c0_102 = arith.constant 0 : index
    %c1280 = arith.constant 1280 : index
    %96 = vector.load %arg14[%c0_102, %c1280] : memref<2x3136xf32, #tpu.memory_space<vmem>>, vector<1x64xf32>
    tpu.vector_store %arg14[%c0_102, %c1280], %95 {strides = array<i32>} : memref<2x3136xf32, #tpu.memory_space<vmem>>, vector<1x64xf32>,
    %c27 = arith.constant 27 : index
    %c0_103 = arith.constant 0 : index
    %97 = vector.load %arg13[%c27, %c0_103] : memref<142x64xf32, #tpu.memory_space<vmem>>, vector<1x64xf32>
    %c0_104 = arith.constant 0 : index
    %c1344 = arith.constant 1344 : index
    %98 = vector.load %arg14[%c0_104, %c1344] : memref<2x3136xf32, #tpu.memory_space<vmem>>, vector<1x64xf32>
    tpu.vector_store %arg14[%c0_104, %c1344], %97 {strides = array<i32>} : memref<2x3136xf32, #tpu.memory_space<vmem>>, vector<1x64xf32>,
    %c28 = arith.constant 28 : index
    %c0_105 = arith.constant 0 : index
    %99 = vector.load %arg13[%c28, %c0_105] : memref<142x64xf32, #tpu.memory_space<vmem>>, vector<1x64xf32>
    %c0_106 = arith.constant 0 : index
    %c1408 = arith.constant 1408 : index
    %100 = vector.load %arg14[%c0_106, %c1408] : memref<2x3136xf32, #tpu.memory_space<vmem>>, vector<1x64xf32>
    tpu.vector_store %arg14[%c0_106, %c1408], %99 {strides = array<i32>} : memref<2x3136xf32, #tpu.memory_space<vmem>>, vector<1x64xf32>,
    %c29 = arith.constant 29 : index
    %c0_107 = arith.constant 0 : index
    %101 = vector.load %arg13[%c29, %c0_107] : memref<142x64xf32, #tpu.memory_space<vmem>>, vector<1x64xf32>
    %c0_108 = arith.constant 0 : index
    %c1472 = arith.constant 1472 : index
    %102 = vector.load %arg14[%c0_108, %c1472] : memref<2x3136xf32, #tpu.memory_space<vmem>>, vector<1x64xf32>
    tpu.vector_store %arg14[%c0_108, %c1472], %101 {strides = array<i32>} : memref<2x3136xf32, #tpu.memory_space<vmem>>, vector<1x64xf32>,
    %c30 = arith.constant 30 : index
    %c0_109 = arith.constant 0 : index
    %103 = vector.load %arg13[%c30, %c0_109] : memref<142x64xf32, #tpu.memory_space<vmem>>, vector<1x64xf32>
    %c0_110 = arith.constant 0 : index
    %c1536 = arith.constant 1536 : index
    %104 = vector.load %arg14[%c0_110, %c1536] : memref<2x3136xf32, #tpu.memory_space<vmem>>, vector<1x64xf32>
    tpu.vector_store %arg14[%c0_110, %c1536], %103 {strides = array<i32>} : memref<2x3136xf32, #tpu.memory_space<vmem>>, vector<1x64xf32>,
    %c31 = arith.constant 31 : index
    %c0_111 = arith.constant 0 : index
    %105 = vector.load %arg13[%c31, %c0_111] : memref<142x64xf32, #tpu.memory_space<vmem>>, vector<1x64xf32>
    %c0_112 = arith.constant 0 : index
    %c1600 = arith.constant 1600 : index
    %106 = vector.load %arg14[%c0_112, %c1600] : memref<2x3136xf32, #tpu.memory_space<vmem>>, vector<1x64xf32>
    tpu.vector_store %arg14[%c0_112, %c1600], %105 {strides = array<i32>} : memref<2x3136xf32, #tpu.memory_space<vmem>>, vector<1x64xf32>,
    %c32 = arith.constant 32 : index
    %c0_113 = arith.constant 0 : index
    %107 = vector.load %arg13[%c32, %c0_113] : memref<142x64xf32, #tpu.memory_space<vmem>>, vector<1x64xf32>
    %c0_114 = arith.constant 0 : index
    %c1664 = arith.constant 1664 : index
    %108 = vector.load %arg14[%c0_114, %c1664] : memref<2x3136xf32, #tpu.memory_space<vmem>>, vector<1x64xf32>
    tpu.vector_store %arg14[%c0_114, %c1664], %107 {strides = array<i32>} : memref<2x3136xf32, #tpu.memory_space<vmem>>, vector<1x64xf32>,
    %c33 = arith.constant 33 : index
    %c0_115 = arith.constant 0 : index
    %109 = vector.load %arg13[%c33, %c0_115] : memref<142x64xf32, #tpu.memory_space<vmem>>, vector<1x64xf32>
    %c0_116 = arith.constant 0 : index
    %c1728 = arith.constant 1728 : index
    %110 = vector.load %arg14[%c0_116, %c1728] : memref<2x3136xf32, #tpu.memory_space<vmem>>, vector<1x64xf32>
    tpu.vector_store %arg14[%c0_116, %c1728], %109 {strides = array<i32>} : memref<2x3136xf32, #tpu.memory_space<vmem>>, vector<1x64xf32>,
    %c36 = arith.constant 36 : index
    %c0_117 = arith.constant 0 : index
    %111 = vector.load %arg13[%c36, %c0_117] : memref<142x64xf32, #tpu.memory_space<vmem>>, vector<1x64xf32>
    %c0_118 = arith.constant 0 : index
    %c1792 = arith.constant 1792 : index
    %112 = vector.load %arg14[%c0_118, %c1792] : memref<2x3136xf32, #tpu.memory_space<vmem>>, vector<1x64xf32>
    tpu.vector_store %arg14[%c0_118, %c1792], %111 {strides = array<i32>} : memref<2x3136xf32, #tpu.memory_space<vmem>>, vector<1x64xf32>,
    %c37 = arith.constant 37 : index
    %c0_119 = arith.constant 0 : index
    %113 = vector.load %arg13[%c37, %c0_119] : memref<142x64xf32, #tpu.memory_space<vmem>>, vector<1x64xf32>
    %c0_120 = arith.constant 0 : index
    %c1856 = arith.constant 1856 : index
    %114 = vector.load %arg14[%c0_120, %c1856] : memref<2x3136xf32, #tpu.memory_space<vmem>>, vector<1x64xf32>
    tpu.vector_store %arg14[%c0_120, %c1856], %113 {strides = array<i32>} : memref<2x3136xf32, #tpu.memory_space<vmem>>, vector<1x64xf32>,
    %c38 = arith.constant 38 : index
    %c0_121 = arith.constant 0 : index
    %115 = vector.load %arg13[%c38, %c0_121] : memref<142x64xf32, #tpu.memory_space<vmem>>, vector<1x64xf32>
    %c0_122 = arith.constant 0 : index
    %c1920 = arith.constant 1920 : index
    %116 = vector.load %arg14[%c0_122, %c1920] : memref<2x3136xf32, #tpu.memory_space<vmem>>, vector<1x64xf32>
    tpu.vector_store %arg14[%c0_122, %c1920], %115 {strides = array<i32>} : memref<2x3136xf32, #tpu.memory_space<vmem>>, vector<1x64xf32>,
    %c39 = arith.constant 39 : index
    %c0_123 = arith.constant 0 : index
    %117 = vector.load %arg13[%c39, %c0_123] : memref<142x64xf32, #tpu.memory_space<vmem>>, vector<1x64xf32>
    %c0_124 = arith.constant 0 : index
    %c1984 = arith.constant 1984 : index
    %118 = vector.load %arg14[%c0_124, %c1984] : memref<2x3136xf32, #tpu.memory_space<vmem>>, vector<1x64xf32>
    tpu.vector_store %arg14[%c0_124, %c1984], %117 {strides = array<i32>} : memref<2x3136xf32, #tpu.memory_space<vmem>>, vector<1x64xf32>,
    %c40 = arith.constant 40 : index
    %c0_125 = arith.constant 0 : index
    %119 = vector.load %arg13[%c40, %c0_125] : memref<142x64xf32, #tpu.memory_space<vmem>>, vector<1x64xf32>
    %c0_126 = arith.constant 0 : index
    %c2048 = arith.constant 2048 : index
    %120 = vector.load %arg14[%c0_126, %c2048] : memref<2x3136xf32, #tpu.memory_space<vmem>>, vector<1x64xf32>
    tpu.vector_store %arg14[%c0_126, %c2048], %119 {strides = array<i32>} : memref<2x3136xf32, #tpu.memory_space<vmem>>, vector<1x64xf32>,
    %c41 = arith.constant 41 : index
    %c0_127 = arith.constant 0 : index
    %121 = vector.load %arg13[%c41, %c0_127] : memref<142x64xf32, #tpu.memory_space<vmem>>, vector<1x64xf32>
    %c0_128 = arith.constant 0 : index
    %c2112 = arith.constant 2112 : index
    %122 = vector.load %arg14[%c0_128, %c2112] : memref<2x3136xf32, #tpu.memory_space<vmem>>, vector<1x64xf32>
    tpu.vector_store %arg14[%c0_128, %c2112], %121 {strides = array<i32>} : memref<2x3136xf32, #tpu.memory_space<vmem>>, vector<1x64xf32>,
    %c42 = arith.constant 42 : index
    %c0_129 = arith.constant 0 : index
    %123 = vector.load %arg13[%c42, %c0_129] : memref<142x64xf32, #tpu.memory_space<vmem>>, vector<1x64xf32>
    %c0_130 = arith.constant 0 : index
    %c2176 = arith.constant 2176 : index
    %124 = vector.load %arg14[%c0_130, %c2176] : memref<2x3136xf32, #tpu.memory_space<vmem>>, vector<1x64xf32>
    tpu.vector_store %arg14[%c0_130, %c2176], %123 {strides = array<i32>} : memref<2x3136xf32, #tpu.memory_space<vmem>>, vector<1x64xf32>,
    %c45 = arith.constant 45 : index
    %c0_131 = arith.constant 0 : index
    %125 = vector.load %arg13[%c45, %c0_131] : memref<142x64xf32, #tpu.memory_space<vmem>>, vector<1x64xf32>
    %c0_132 = arith.constant 0 : index
    %c2240 = arith.constant 2240 : index
    %126 = vector.load %arg14[%c0_132, %c2240] : memref<2x3136xf32, #tpu.memory_space<vmem>>, vector<1x64xf32>
    tpu.vector_store %arg14[%c0_132, %c2240], %125 {strides = array<i32>} : memref<2x3136xf32, #tpu.memory_space<vmem>>, vector<1x64xf32>,
    %c46 = arith.constant 46 : index
    %c0_133 = arith.constant 0 : index
    %127 = vector.load %arg13[%c46, %c0_133] : memref<142x64xf32, #tpu.memory_space<vmem>>, vector<1x64xf32>
    %c0_134 = arith.constant 0 : index
    %c2304 = arith.constant 2304 : index
    %128 = vector.load %arg14[%c0_134, %c2304] : memref<2x3136xf32, #tpu.memory_space<vmem>>, vector<1x64xf32>
    tpu.vector_store %arg14[%c0_134, %c2304], %127 {strides = array<i32>} : memref<2x3136xf32, #tpu.memory_space<vmem>>, vector<1x64xf32>,
    %c47 = arith.constant 47 : index
    %c0_135 = arith.constant 0 : index
    %129 = vector.load %arg13[%c47, %c0_135] : memref<142x64xf32, #tpu.memory_space<vmem>>, vector<1x64xf32>
    %c0_136 = arith.constant 0 : index
    %c2368 = arith.constant 2368 : index
    %130 = vector.load %arg14[%c0_136, %c2368] : memref<2x3136xf32, #tpu.memory_space<vmem>>, vector<1x64xf32>
    tpu.vector_store %arg14[%c0_136, %c2368], %129 {strides = array<i32>} : memref<2x3136xf32, #tpu.memory_space<vmem>>, vector<1x64xf32>,
    %c48 = arith.constant 48 : index
    %c0_137 = arith.constant 0 : index
    %131 = vector.load %arg13[%c48, %c0_137] : memref<142x64xf32, #tpu.memory_space<vmem>>, vector<1x64xf32>
    %c0_138 = arith.constant 0 : index
    %c2432 = arith.constant 2432 : index
    %132 = vector.load %arg14[%c0_138, %c2432] : memref<2x3136xf32, #tpu.memory_space<vmem>>, vector<1x64xf32>
    tpu.vector_store %arg14[%c0_138, %c2432], %131 {strides = array<i32>} : memref<2x3136xf32, #tpu.memory_space<vmem>>, vector<1x64xf32>,
    %c49 = arith.constant 49 : index
    %c0_139 = arith.constant 0 : index
    %133 = vector.load %arg13[%c49, %c0_139] : memref<142x64xf32, #tpu.memory_space<vmem>>, vector<1x64xf32>
    %c0_140 = arith.constant 0 : index
    %c2496 = arith.constant 2496 : index
    %134 = vector.load %arg14[%c0_140, %c2496] : memref<2x3136xf32, #tpu.memory_space<vmem>>, vector<1x64xf32>
    tpu.vector_store %arg14[%c0_140, %c2496], %133 {strides = array<i32>} : memref<2x3136xf32, #tpu.memory_space<vmem>>, vector<1x64xf32>,
    %c50 = arith.constant 50 : index
    %c0_141 = arith.constant 0 : index
    %135 = vector.load %arg13[%c50, %c0_141] : memref<142x64xf32, #tpu.memory_space<vmem>>, vector<1x64xf32>
    %c0_142 = arith.constant 0 : index
    %c2560 = arith.constant 2560 : index
    %136 = vector.load %arg14[%c0_142, %c2560] : memref<2x3136xf32, #tpu.memory_space<vmem>>, vector<1x64xf32>
    tpu.vector_store %arg14[%c0_142, %c2560], %135 {strides = array<i32>} : memref<2x3136xf32, #tpu.memory_space<vmem>>, vector<1x64xf32>,
    %c51 = arith.constant 51 : index
    %c0_143 = arith.constant 0 : index
    %137 = vector.load %arg13[%c51, %c0_143] : memref<142x64xf32, #tpu.memory_space<vmem>>, vector<1x64xf32>
    %c0_144 = arith.constant 0 : index
    %c2624 = arith.constant 2624 : index
    %138 = vector.load %arg14[%c0_144, %c2624] : memref<2x3136xf32, #tpu.memory_space<vmem>>, vector<1x64xf32>
    tpu.vector_store %arg14[%c0_144, %c2624], %137 {strides = array<i32>} : memref<2x3136xf32, #tpu.memory_space<vmem>>, vector<1x64xf32>,
    %c54 = arith.constant 54 : index
    %c0_145 = arith.constant 0 : index
    %139 = vector.load %arg13[%c54, %c0_145] : memref<142x64xf32, #tpu.memory_space<vmem>>, vector<1x64xf32>
    %c0_146 = arith.constant 0 : index
    %c2688 = arith.constant 2688 : index
    %140 = vector.load %arg14[%c0_146, %c2688] : memref<2x3136xf32, #tpu.memory_space<vmem>>, vector<1x64xf32>
    tpu.vector_store %arg14[%c0_146, %c2688], %139 {strides = array<i32>} : memref<2x3136xf32, #tpu.memory_space<vmem>>, vector<1x64xf32>,
    %c55 = arith.constant 55 : index
    %c0_147 = arith.constant 0 : index
    %141 = vector.load %arg13[%c55, %c0_147] : memref<142x64xf32, #tpu.memory_space<vmem>>, vector<1x64xf32>
    %c0_148 = arith.constant 0 : index
    %c2752 = arith.constant 2752 : index
    %142 = vector.load %arg14[%c0_148, %c2752] : memref<2x3136xf32, #tpu.memory_space<vmem>>, vector<1x64xf32>
    tpu.vector_store %arg14[%c0_148, %c2752], %141 {strides = array<i32>} : memref<2x3136xf32, #tpu.memory_space<vmem>>, vector<1x64xf32>,
    %c56 = arith.constant 56 : index
    %c0_149 = arith.constant 0 : index
    %143 = vector.load %arg13[%c56, %c0_149] : memref<142x64xf32, #tpu.memory_space<vmem>>, vector<1x64xf32>
    %c0_150 = arith.constant 0 : index
    %c2816 = arith.constant 2816 : index
    %144 = vector.load %arg14[%c0_150, %c2816] : memref<2x3136xf32, #tpu.memory_space<vmem>>, vector<1x64xf32>
    tpu.vector_store %arg14[%c0_150, %c2816], %143 {strides = array<i32>} : memref<2x3136xf32, #tpu.memory_space<vmem>>, vector<1x64xf32>,
    %c57 = arith.constant 57 : index
    %c0_151 = arith.constant 0 : index
    %145 = vector.load %arg13[%c57, %c0_151] : memref<142x64xf32, #tpu.memory_space<vmem>>, vector<1x64xf32>
    %c0_152 = arith.constant 0 : index
    %c2880 = arith.constant 2880 : index
    %146 = vector.load %arg14[%c0_152, %c2880] : memref<2x3136xf32, #tpu.memory_space<vmem>>, vector<1x64xf32>
    tpu.vector_store %arg14[%c0_152, %c2880], %145 {strides = array<i32>} : memref<2x3136xf32, #tpu.memory_space<vmem>>, vector<1x64xf32>,
    %c58 = arith.constant 58 : index
    %c0_153 = arith.constant 0 : index
    %147 = vector.load %arg13[%c58, %c0_153] : memref<142x64xf32, #tpu.memory_space<vmem>>, vector<1x64xf32>
    %c0_154 = arith.constant 0 : index
    %c2944 = arith.constant 2944 : index
    %148 = vector.load %arg14[%c0_154, %c2944] : memref<2x3136xf32, #tpu.memory_space<vmem>>, vector<1x64xf32>
    tpu.vector_store %arg14[%c0_154, %c2944], %147 {strides = array<i32>} : memref<2x3136xf32, #tpu.memory_space<vmem>>, vector<1x64xf32>,
    %c59 = arith.constant 59 : index
    %c0_155 = arith.constant 0 : index
    %149 = vector.load %arg13[%c59, %c0_155] : memref<142x64xf32, #tpu.memory_space<vmem>>, vector<1x64xf32>
    %c0_156 = arith.constant 0 : index
    %c3008 = arith.constant 3008 : index
    %150 = vector.load %arg14[%c0_156, %c3008] : memref<2x3136xf32, #tpu.memory_space<vmem>>, vector<1x64xf32>
    tpu.vector_store %arg14[%c0_156, %c3008], %149 {strides = array<i32>} : memref<2x3136xf32, #tpu.memory_space<vmem>>, vector<1x64xf32>,
    %c60 = arith.constant 60 : index
    %c0_157 = arith.constant 0 : index
    %151 = vector.load %arg13[%c60, %c0_157] : memref<142x64xf32, #tpu.memory_space<vmem>>, vector<1x64xf32>
    %c0_158 = arith.constant 0 : index
    %c3072 = arith.constant 3072 : index
    %152 = vector.load %arg14[%c0_158, %c3072] : memref<2x3136xf32, #tpu.memory_space<vmem>>, vector<1x64xf32>
    tpu.vector_store %arg14[%c0_158, %c3072], %151 {strides = array<i32>} : memref<2x3136xf32, #tpu.memory_space<vmem>>, vector<1x64xf32>,
    %c81 = arith.constant 81 : index
    %c0_159 = arith.constant 0 : index
    %153 = vector.load %arg13[%c81, %c0_159] : memref<142x64xf32, #tpu.memory_space<vmem>>, vector<1x64xf32>
    %c1_160 = arith.constant 1 : index
    %c0_161 = arith.constant 0 : index
    %154 = vector.load %arg14[%c1_160, %c0_161] : memref<2x3136xf32, #tpu.memory_space<vmem>>, vector<1x64xf32>
    tpu.vector_store %arg14[%c1_160, %c0_161], %153 {strides = array<i32>} : memref<2x3136xf32, #tpu.memory_space<vmem>>, vector<1x64xf32>,
    %c82 = arith.constant 82 : index
    %c0_162 = arith.constant 0 : index
    %155 = vector.load %arg13[%c82, %c0_162] : memref<142x64xf32, #tpu.memory_space<vmem>>, vector<1x64xf32>
    %c1_163 = arith.constant 1 : index
    %c64_164 = arith.constant 64 : index
    %156 = vector.load %arg14[%c1_163, %c64_164] : memref<2x3136xf32, #tpu.memory_space<vmem>>, vector<1x64xf32>
    tpu.vector_store %arg14[%c1_163, %c64_164], %155 {strides = array<i32>} : memref<2x3136xf32, #tpu.memory_space<vmem>>, vector<1x64xf32>,
    %c83 = arith.constant 83 : index
    %c0_165 = arith.constant 0 : index
    %157 = vector.load %arg13[%c83, %c0_165] : memref<142x64xf32, #tpu.memory_space<vmem>>, vector<1x64xf32>
    %c1_166 = arith.constant 1 : index
    %c128_167 = arith.constant 128 : index
    %158 = vector.load %arg14[%c1_166, %c128_167] : memref<2x3136xf32, #tpu.memory_space<vmem>>, vector<1x64xf32>
    tpu.vector_store %arg14[%c1_166, %c128_167], %157 {strides = array<i32>} : memref<2x3136xf32, #tpu.memory_space<vmem>>, vector<1x64xf32>,
    %c84 = arith.constant 84 : index
    %c0_168 = arith.constant 0 : index
    %159 = vector.load %arg13[%c84, %c0_168] : memref<142x64xf32, #tpu.memory_space<vmem>>, vector<1x64xf32>
    %c1_169 = arith.constant 1 : index
    %c192_170 = arith.constant 192 : index
    %160 = vector.load %arg14[%c1_169, %c192_170] : memref<2x3136xf32, #tpu.memory_space<vmem>>, vector<1x64xf32>
    tpu.vector_store %arg14[%c1_169, %c192_170], %159 {strides = array<i32>} : memref<2x3136xf32, #tpu.memory_space<vmem>>, vector<1x64xf32>,
    %c85 = arith.constant 85 : index
    %c0_171 = arith.constant 0 : index
    %161 = vector.load %arg13[%c85, %c0_171] : memref<142x64xf32, #tpu.memory_space<vmem>>, vector<1x64xf32>
    %c1_172 = arith.constant 1 : index
    %c256_173 = arith.constant 256 : index
    %162 = vector.load %arg14[%c1_172, %c256_173] : memref<2x3136xf32, #tpu.memory_space<vmem>>, vector<1x64xf32>
    tpu.vector_store %arg14[%c1_172, %c256_173], %161 {strides = array<i32>} : memref<2x3136xf32, #tpu.memory_space<vmem>>, vector<1x64xf32>,
    %c86 = arith.constant 86 : index
    %c0_174 = arith.constant 0 : index
    %163 = vector.load %arg13[%c86, %c0_174] : memref<142x64xf32, #tpu.memory_space<vmem>>, vector<1x64xf32>
    %c1_175 = arith.constant 1 : index
    %c320_176 = arith.constant 320 : index
    %164 = vector.load %arg14[%c1_175, %c320_176] : memref<2x3136xf32, #tpu.memory_space<vmem>>, vector<1x64xf32>
    tpu.vector_store %arg14[%c1_175, %c320_176], %163 {strides = array<i32>} : memref<2x3136xf32, #tpu.memory_space<vmem>>, vector<1x64xf32>,
    %c87 = arith.constant 87 : index
    %c0_177 = arith.constant 0 : index
    %165 = vector.load %arg13[%c87, %c0_177] : memref<142x64xf32, #tpu.memory_space<vmem>>, vector<1x64xf32>
    %c1_178 = arith.constant 1 : index
    %c384_179 = arith.constant 384 : index
    %166 = vector.load %arg14[%c1_178, %c384_179] : memref<2x3136xf32, #tpu.memory_space<vmem>>, vector<1x64xf32>
    tpu.vector_store %arg14[%c1_178, %c384_179], %165 {strides = array<i32>} : memref<2x3136xf32, #tpu.memory_space<vmem>>, vector<1x64xf32>,
    %c90 = arith.constant 90 : index
    %c0_180 = arith.constant 0 : index
    %167 = vector.load %arg13[%c90, %c0_180] : memref<142x64xf32, #tpu.memory_space<vmem>>, vector<1x64xf32>
    %c1_181 = arith.constant 1 : index
    %c448_182 = arith.constant 448 : index
    %168 = vector.load %arg14[%c1_181, %c448_182] : memref<2x3136xf32, #tpu.memory_space<vmem>>, vector<1x64xf32>
    tpu.vector_store %arg14[%c1_181, %c448_182], %167 {strides = array<i32>} : memref<2x3136xf32, #tpu.memory_space<vmem>>, vector<1x64xf32>,
    %c91 = arith.constant 91 : index
    %c0_183 = arith.constant 0 : index
    %169 = vector.load %arg13[%c91, %c0_183] : memref<142x64xf32, #tpu.memory_space<vmem>>, vector<1x64xf32>
    %c1_184 = arith.constant 1 : index
    %c512_185 = arith.constant 512 : index
    %170 = vector.load %arg14[%c1_184, %c512_185] : memref<2x3136xf32, #tpu.memory_space<vmem>>, vector<1x64xf32>
    tpu.vector_store %arg14[%c1_184, %c512_185], %169 {strides = array<i32>} : memref<2x3136xf32, #tpu.memory_space<vmem>>, vector<1x64xf32>,
    %c92 = arith.constant 92 : index
    %c0_186 = arith.constant 0 : index
    %171 = vector.load %arg13[%c92, %c0_186] : memref<142x64xf32, #tpu.memory_space<vmem>>, vector<1x64xf32>
    %c1_187 = arith.constant 1 : index
    %c576_188 = arith.constant 576 : index
    %172 = vector.load %arg14[%c1_187, %c576_188] : memref<2x3136xf32, #tpu.memory_space<vmem>>, vector<1x64xf32>
    tpu.vector_store %arg14[%c1_187, %c576_188], %171 {strides = array<i32>} : memref<2x3136xf32, #tpu.memory_space<vmem>>, vector<1x64xf32>,
    %c93 = arith.constant 93 : index
    %c0_189 = arith.constant 0 : index
    %173 = vector.load %arg13[%c93, %c0_189] : memref<142x64xf32, #tpu.memory_space<vmem>>, vector<1x64xf32>
    %c1_190 = arith.constant 1 : index
    %c640_191 = arith.constant 640 : index
    %174 = vector.load %arg14[%c1_190, %c640_191] : memref<2x3136xf32, #tpu.memory_space<vmem>>, vector<1x64xf32>
    tpu.vector_store %arg14[%c1_190, %c640_191], %173 {strides = array<i32>} : memref<2x3136xf32, #tpu.memory_space<vmem>>, vector<1x64xf32>,
    %c94 = arith.constant 94 : index
    %c0_192 = arith.constant 0 : index
    %175 = vector.load %arg13[%c94, %c0_192] : memref<142x64xf32, #tpu.memory_space<vmem>>, vector<1x64xf32>
    %c1_193 = arith.constant 1 : index
    %c704_194 = arith.constant 704 : index
    %176 = vector.load %arg14[%c1_193, %c704_194] : memref<2x3136xf32, #tpu.memory_space<vmem>>, vector<1x64xf32>
    tpu.vector_store %arg14[%c1_193, %c704_194], %175 {strides = array<i32>} : memref<2x3136xf32, #tpu.memory_space<vmem>>, vector<1x64xf32>,
    %c95 = arith.constant 95 : index
    %c0_195 = arith.constant 0 : index
    %177 = vector.load %arg13[%c95, %c0_195] : memref<142x64xf32, #tpu.memory_space<vmem>>, vector<1x64xf32>
    %c1_196 = arith.constant 1 : index
    %c768_197 = arith.constant 768 : index
    %178 = vector.load %arg14[%c1_196, %c768_197] : memref<2x3136xf32, #tpu.memory_space<vmem>>, vector<1x64xf32>
    tpu.vector_store %arg14[%c1_196, %c768_197], %177 {strides = array<i32>} : memref<2x3136xf32, #tpu.memory_space<vmem>>, vector<1x64xf32>,
    %c96 = arith.constant 96 : index
    %c0_198 = arith.constant 0 : index
    %179 = vector.load %arg13[%c96, %c0_198] : memref<142x64xf32, #tpu.memory_space<vmem>>, vector<1x64xf32>
    %c1_199 = arith.constant 1 : index
    %c832_200 = arith.constant 832 : index
    %180 = vector.load %arg14[%c1_199, %c832_200] : memref<2x3136xf32, #tpu.memory_space<vmem>>, vector<1x64xf32>
    tpu.vector_store %arg14[%c1_199, %c832_200], %179 {strides = array<i32>} : memref<2x3136xf32, #tpu.memory_space<vmem>>, vector<1x64xf32>,
    %c99 = arith.constant 99 : index
    %c0_201 = arith.constant 0 : index
    %181 = vector.load %arg13[%c99, %c0_201] : memref<142x64xf32, #tpu.memory_space<vmem>>, vector<1x64xf32>
    %c1_202 = arith.constant 1 : index
    %c896_203 = arith.constant 896 : index
    %182 = vector.load %arg14[%c1_202, %c896_203] : memref<2x3136xf32, #tpu.memory_space<vmem>>, vector<1x64xf32>
    tpu.vector_store %arg14[%c1_202, %c896_203], %181 {strides = array<i32>} : memref<2x3136xf32, #tpu.memory_space<vmem>>, vector<1x64xf32>,
    %c100 = arith.constant 100 : index
    %c0_204 = arith.constant 0 : index
    %183 = vector.load %arg13[%c100, %c0_204] : memref<142x64xf32, #tpu.memory_space<vmem>>, vector<1x64xf32>
    %c1_205 = arith.constant 1 : index
    %c960_206 = arith.constant 960 : index
    %184 = vector.load %arg14[%c1_205, %c960_206] : memref<2x3136xf32, #tpu.memory_space<vmem>>, vector<1x64xf32>
    tpu.vector_store %arg14[%c1_205, %c960_206], %183 {strides = array<i32>} : memref<2x3136xf32, #tpu.memory_space<vmem>>, vector<1x64xf32>,
    %c101 = arith.constant 101 : index
    %c0_207 = arith.constant 0 : index
    %185 = vector.load %arg13[%c101, %c0_207] : memref<142x64xf32, #tpu.memory_space<vmem>>, vector<1x64xf32>
    %c1_208 = arith.constant 1 : index
    %c1024_209 = arith.constant 1024 : index
    %186 = vector.load %arg14[%c1_208, %c1024_209] : memref<2x3136xf32, #tpu.memory_space<vmem>>, vector<1x64xf32>
    tpu.vector_store %arg14[%c1_208, %c1024_209], %185 {strides = array<i32>} : memref<2x3136xf32, #tpu.memory_space<vmem>>, vector<1x64xf32>,
    %c102 = arith.constant 102 : index
    %c0_210 = arith.constant 0 : index
    %187 = vector.load %arg13[%c102, %c0_210] : memref<142x64xf32, #tpu.memory_space<vmem>>, vector<1x64xf32>
    %c1_211 = arith.constant 1 : index
    %c1088_212 = arith.constant 1088 : index
    %188 = vector.load %arg14[%c1_211, %c1088_212] : memref<2x3136xf32, #tpu.memory_space<vmem>>, vector<1x64xf32>
    tpu.vector_store %arg14[%c1_211, %c1088_212], %187 {strides = array<i32>} : memref<2x3136xf32, #tpu.memory_space<vmem>>, vector<1x64xf32>,
    %c103 = arith.constant 103 : index
    %c0_213 = arith.constant 0 : index
    %189 = vector.load %arg13[%c103, %c0_213] : memref<142x64xf32, #tpu.memory_space<vmem>>, vector<1x64xf32>
    %c1_214 = arith.constant 1 : index
    %c1152_215 = arith.constant 1152 : index
    %190 = vector.load %arg14[%c1_214, %c1152_215] : memref<2x3136xf32, #tpu.memory_space<vmem>>, vector<1x64xf32>
    tpu.vector_store %arg14[%c1_214, %c1152_215], %189 {strides = array<i32>} : memref<2x3136xf32, #tpu.memory_space<vmem>>, vector<1x64xf32>,
    %c104 = arith.constant 104 : index
    %c0_216 = arith.constant 0 : index
    %191 = vector.load %arg13[%c104, %c0_216] : memref<142x64xf32, #tpu.memory_space<vmem>>, vector<1x64xf32>
    %c1_217 = arith.constant 1 : index
    %c1216_218 = arith.constant 1216 : index
    %192 = vector.load %arg14[%c1_217, %c1216_218] : memref<2x3136xf32, #tpu.memory_space<vmem>>, vector<1x64xf32>
    tpu.vector_store %arg14[%c1_217, %c1216_218], %191 {strides = array<i32>} : memref<2x3136xf32, #tpu.memory_space<vmem>>, vector<1x64xf32>,
    %c105 = arith.constant 105 : index
    %c0_219 = arith.constant 0 : index
    %193 = vector.load %arg13[%c105, %c0_219] : memref<142x64xf32, #tpu.memory_space<vmem>>, vector<1x64xf32>
    %c1_220 = arith.constant 1 : index
    %c1280_221 = arith.constant 1280 : index
    %194 = vector.load %arg14[%c1_220, %c1280_221] : memref<2x3136xf32, #tpu.memory_space<vmem>>, vector<1x64xf32>
    tpu.vector_store %arg14[%c1_220, %c1280_221], %193 {strides = array<i32>} : memref<2x3136xf32, #tpu.memory_space<vmem>>, vector<1x64xf32>,
    %c108 = arith.constant 108 : index
    %c0_222 = arith.constant 0 : index
    %195 = vector.load %arg13[%c108, %c0_222] : memref<142x64xf32, #tpu.memory_space<vmem>>, vector<1x64xf32>
    %c1_223 = arith.constant 1 : index
    %c1344_224 = arith.constant 1344 : index
    %196 = vector.load %arg14[%c1_223, %c1344_224] : memref<2x3136xf32, #tpu.memory_space<vmem>>, vector<1x64xf32>
    tpu.vector_store %arg14[%c1_223, %c1344_224], %195 {strides = array<i32>} : memref<2x3136xf32, #tpu.memory_space<vmem>>, vector<1x64xf32>,
    %c109 = arith.constant 109 : index
    %c0_225 = arith.constant 0 : index
    %197 = vector.load %arg13[%c109, %c0_225] : memref<142x64xf32, #tpu.memory_space<vmem>>, vector<1x64xf32>
    %c1_226 = arith.constant 1 : index
    %c1408_227 = arith.constant 1408 : index
    %198 = vector.load %arg14[%c1_226, %c1408_227] : memref<2x3136xf32, #tpu.memory_space<vmem>>, vector<1x64xf32>
    tpu.vector_store %arg14[%c1_226, %c1408_227], %197 {strides = array<i32>} : memref<2x3136xf32, #tpu.memory_space<vmem>>, vector<1x64xf32>,
    %c110 = arith.constant 110 : index
    %c0_228 = arith.constant 0 : index
    %199 = vector.load %arg13[%c110, %c0_228] : memref<142x64xf32, #tpu.memory_space<vmem>>, vector<1x64xf32>
    %c1_229 = arith.constant 1 : index
    %c1472_230 = arith.constant 1472 : index
    %200 = vector.load %arg14[%c1_229, %c1472_230] : memref<2x3136xf32, #tpu.memory_space<vmem>>, vector<1x64xf32>
    tpu.vector_store %arg14[%c1_229, %c1472_230], %199 {strides = array<i32>} : memref<2x3136xf32, #tpu.memory_space<vmem>>, vector<1x64xf32>,
    %c111 = arith.constant 111 : index
    %c0_231 = arith.constant 0 : index
    %201 = vector.load %arg13[%c111, %c0_231] : memref<142x64xf32, #tpu.memory_space<vmem>>, vector<1x64xf32>
    %c1_232 = arith.constant 1 : index
    %c1536_233 = arith.constant 1536 : index
    %202 = vector.load %arg14[%c1_232, %c1536_233] : memref<2x3136xf32, #tpu.memory_space<vmem>>, vector<1x64xf32>
    tpu.vector_store %arg14[%c1_232, %c1536_233], %201 {strides = array<i32>} : memref<2x3136xf32, #tpu.memory_space<vmem>>, vector<1x64xf32>,
    %c112 = arith.constant 112 : index
    %c0_234 = arith.constant 0 : index
    %203 = vector.load %arg13[%c112, %c0_234] : memref<142x64xf32, #tpu.memory_space<vmem>>, vector<1x64xf32>
    %c1_235 = arith.constant 1 : index
    %c1600_236 = arith.constant 1600 : index
    %204 = vector.load %arg14[%c1_235, %c1600_236] : memref<2x3136xf32, #tpu.memory_space<vmem>>, vector<1x64xf32>
    tpu.vector_store %arg14[%c1_235, %c1600_236], %203 {strides = array<i32>} : memref<2x3136xf32, #tpu.memory_space<vmem>>, vector<1x64xf32>,
    %c113 = arith.constant 113 : index
    %c0_237 = arith.constant 0 : index
    %205 = vector.load %arg13[%c113, %c0_237] : memref<142x64xf32, #tpu.memory_space<vmem>>, vector<1x64xf32>
    %c1_238 = arith.constant 1 : index
    %c1664_239 = arith.constant 1664 : index
    %206 = vector.load %arg14[%c1_238, %c1664_239] : memref<2x3136xf32, #tpu.memory_space<vmem>>, vector<1x64xf32>
    tpu.vector_store %arg14[%c1_238, %c1664_239], %205 {strides = array<i32>} : memref<2x3136xf32, #tpu.memory_space<vmem>>, vector<1x64xf32>,
    %c114 = arith.constant 114 : index
    %c0_240 = arith.constant 0 : index
    %207 = vector.load %arg13[%c114, %c0_240] : memref<142x64xf32, #tpu.memory_space<vmem>>, vector<1x64xf32>
    %c1_241 = arith.constant 1 : index
    %c1728_242 = arith.constant 1728 : index
    %208 = vector.load %arg14[%c1_241, %c1728_242] : memref<2x3136xf32, #tpu.memory_space<vmem>>, vector<1x64xf32>
    tpu.vector_store %arg14[%c1_241, %c1728_242], %207 {strides = array<i32>} : memref<2x3136xf32, #tpu.memory_space<vmem>>, vector<1x64xf32>,
    %c117 = arith.constant 117 : index
    %c0_243 = arith.constant 0 : index
    %209 = vector.load %arg13[%c117, %c0_243] : memref<142x64xf32, #tpu.memory_space<vmem>>, vector<1x64xf32>
    %c1_244 = arith.constant 1 : index
    %c1792_245 = arith.constant 1792 : index
    %210 = vector.load %arg14[%c1_244, %c1792_245] : memref<2x3136xf32, #tpu.memory_space<vmem>>, vector<1x64xf32>
    tpu.vector_store %arg14[%c1_244, %c1792_245], %209 {strides = array<i32>} : memref<2x3136xf32, #tpu.memory_space<vmem>>, vector<1x64xf32>,
    %c118 = arith.constant 118 : index
    %c0_246 = arith.constant 0 : index
    %211 = vector.load %arg13[%c118, %c0_246] : memref<142x64xf32, #tpu.memory_space<vmem>>, vector<1x64xf32>
    %c1_247 = arith.constant 1 : index
    %c1856_248 = arith.constant 1856 : index
    %212 = vector.load %arg14[%c1_247, %c1856_248] : memref<2x3136xf32, #tpu.memory_space<vmem>>, vector<1x64xf32>
    tpu.vector_store %arg14[%c1_247, %c1856_248], %211 {strides = array<i32>} : memref<2x3136xf32, #tpu.memory_space<vmem>>, vector<1x64xf32>,
    %c119 = arith.constant 119 : index
    %c0_249 = arith.constant 0 : index
    %213 = vector.load %arg13[%c119, %c0_249] : memref<142x64xf32, #tpu.memory_space<vmem>>, vector<1x64xf32>
    %c1_250 = arith.constant 1 : index
    %c1920_251 = arith.constant 1920 : index
    %214 = vector.load %arg14[%c1_250, %c1920_251] : memref<2x3136xf32, #tpu.memory_space<vmem>>, vector<1x64xf32>
    tpu.vector_store %arg14[%c1_250, %c1920_251], %213 {strides = array<i32>} : memref<2x3136xf32, #tpu.memory_space<vmem>>, vector<1x64xf32>,
    %c120 = arith.constant 120 : index
    %c0_252 = arith.constant 0 : index
    %215 = vector.load %arg13[%c120, %c0_252] : memref<142x64xf32, #tpu.memory_space<vmem>>, vector<1x64xf32>
    %c1_253 = arith.constant 1 : index
    %c1984_254 = arith.constant 1984 : index
    %216 = vector.load %arg14[%c1_253, %c1984_254] : memref<2x3136xf32, #tpu.memory_space<vmem>>, vector<1x64xf32>
    tpu.vector_store %arg14[%c1_253, %c1984_254], %215 {strides = array<i32>} : memref<2x3136xf32, #tpu.memory_space<vmem>>, vector<1x64xf32>,
    %c121 = arith.constant 121 : index
    %c0_255 = arith.constant 0 : index
    %217 = vector.load %arg13[%c121, %c0_255] : memref<142x64xf32, #tpu.memory_space<vmem>>, vector<1x64xf32>
    %c1_256 = arith.constant 1 : index
    %c2048_257 = arith.constant 2048 : index
    %218 = vector.load %arg14[%c1_256, %c2048_257] : memref<2x3136xf32, #tpu.memory_space<vmem>>, vector<1x64xf32>
    tpu.vector_store %arg14[%c1_256, %c2048_257], %217 {strides = array<i32>} : memref<2x3136xf32, #tpu.memory_space<vmem>>, vector<1x64xf32>,
    %c122 = arith.constant 122 : index
    %c0_258 = arith.constant 0 : index
    %219 = vector.load %arg13[%c122, %c0_258] : memref<142x64xf32, #tpu.memory_space<vmem>>, vector<1x64xf32>
    %c1_259 = arith.constant 1 : index
    %c2112_260 = arith.constant 2112 : index
    %220 = vector.load %arg14[%c1_259, %c2112_260] : memref<2x3136xf32, #tpu.memory_space<vmem>>, vector<1x64xf32>
    tpu.vector_store %arg14[%c1_259, %c2112_260], %219 {strides = array<i32>} : memref<2x3136xf32, #tpu.memory_space<vmem>>, vector<1x64xf32>,
    %c123 = arith.constant 123 : index
    %c0_261 = arith.constant 0 : index
    %221 = vector.load %arg13[%c123, %c0_261] : memref<142x64xf32, #tpu.memory_space<vmem>>, vector<1x64xf32>
    %c1_262 = arith.constant 1 : index
    %c2176_263 = arith.constant 2176 : index
    %222 = vector.load %arg14[%c1_262, %c2176_263] : memref<2x3136xf32, #tpu.memory_space<vmem>>, vector<1x64xf32>
    tpu.vector_store %arg14[%c1_262, %c2176_263], %221 {strides = array<i32>} : memref<2x3136xf32, #tpu.memory_space<vmem>>, vector<1x64xf32>,
    %c126 = arith.constant 126 : index
    %c0_264 = arith.constant 0 : index
    %223 = vector.load %arg13[%c126, %c0_264] : memref<142x64xf32, #tpu.memory_space<vmem>>, vector<1x64xf32>
    %c1_265 = arith.constant 1 : index
    %c2240_266 = arith.constant 2240 : index
    %224 = vector.load %arg14[%c1_265, %c2240_266] : memref<2x3136xf32, #tpu.memory_space<vmem>>, vector<1x64xf32>
    tpu.vector_store %arg14[%c1_265, %c2240_266], %223 {strides = array<i32>} : memref<2x3136xf32, #tpu.memory_space<vmem>>, vector<1x64xf32>,
    %c127 = arith.constant 127 : index
    %c0_267 = arith.constant 0 : index
    %225 = vector.load %arg13[%c127, %c0_267] : memref<142x64xf32, #tpu.memory_space<vmem>>, vector<1x64xf32>
    %c1_268 = arith.constant 1 : index
    %c2304_269 = arith.constant 2304 : index
    %226 = vector.load %arg14[%c1_268, %c2304_269] : memref<2x3136xf32, #tpu.memory_space<vmem>>, vector<1x64xf32>
    tpu.vector_store %arg14[%c1_268, %c2304_269], %225 {strides = array<i32>} : memref<2x3136xf32, #tpu.memory_space<vmem>>, vector<1x64xf32>,
    %c128_270 = arith.constant 128 : index
    %c0_271 = arith.constant 0 : index
    %227 = vector.load %arg13[%c128_270, %c0_271] : memref<142x64xf32, #tpu.memory_space<vmem>>, vector<1x64xf32>
    %c1_272 = arith.constant 1 : index
    %c2368_273 = arith.constant 2368 : index
    %228 = vector.load %arg14[%c1_272, %c2368_273] : memref<2x3136xf32, #tpu.memory_space<vmem>>, vector<1x64xf32>
    tpu.vector_store %arg14[%c1_272, %c2368_273], %227 {strides = array<i32>} : memref<2x3136xf32, #tpu.memory_space<vmem>>, vector<1x64xf32>,
    %c129 = arith.constant 129 : index
    %c0_274 = arith.constant 0 : index
    %229 = vector.load %arg13[%c129, %c0_274] : memref<142x64xf32, #tpu.memory_space<vmem>>, vector<1x64xf32>
    %c1_275 = arith.constant 1 : index
    %c2432_276 = arith.constant 2432 : index
    %230 = vector.load %arg14[%c1_275, %c2432_276] : memref<2x3136xf32, #tpu.memory_space<vmem>>, vector<1x64xf32>
    tpu.vector_store %arg14[%c1_275, %c2432_276], %229 {strides = array<i32>} : memref<2x3136xf32, #tpu.memory_space<vmem>>, vector<1x64xf32>,
    %c130 = arith.constant 130 : index
    %c0_277 = arith.constant 0 : index
    %231 = vector.load %arg13[%c130, %c0_277] : memref<142x64xf32, #tpu.memory_space<vmem>>, vector<1x64xf32>
    %c1_278 = arith.constant 1 : index
    %c2496_279 = arith.constant 2496 : index
    %232 = vector.load %arg14[%c1_278, %c2496_279] : memref<2x3136xf32, #tpu.memory_space<vmem>>, vector<1x64xf32>
    tpu.vector_store %arg14[%c1_278, %c2496_279], %231 {strides = array<i32>} : memref<2x3136xf32, #tpu.memory_space<vmem>>, vector<1x64xf32>,
    %c131 = arith.constant 131 : index
    %c0_280 = arith.constant 0 : index
    %233 = vector.load %arg13[%c131, %c0_280] : memref<142x64xf32, #tpu.memory_space<vmem>>, vector<1x64xf32>
    %c1_281 = arith.constant 1 : index
    %c2560_282 = arith.constant 2560 : index
    %234 = vector.load %arg14[%c1_281, %c2560_282] : memref<2x3136xf32, #tpu.memory_space<vmem>>, vector<1x64xf32>
    tpu.vector_store %arg14[%c1_281, %c2560_282], %233 {strides = array<i32>} : memref<2x3136xf32, #tpu.memory_space<vmem>>, vector<1x64xf32>,
    %c132 = arith.constant 132 : index
    %c0_283 = arith.constant 0 : index
    %235 = vector.load %arg13[%c132, %c0_283] : memref<142x64xf32, #tpu.memory_space<vmem>>, vector<1x64xf32>
    %c1_284 = arith.constant 1 : index
    %c2624_285 = arith.constant 2624 : index
    %236 = vector.load %arg14[%c1_284, %c2624_285] : memref<2x3136xf32, #tpu.memory_space<vmem>>, vector<1x64xf32>
    tpu.vector_store %arg14[%c1_284, %c2624_285], %235 {strides = array<i32>} : memref<2x3136xf32, #tpu.memory_space<vmem>>, vector<1x64xf32>,
    %c135 = arith.constant 135 : index
    %c0_286 = arith.constant 0 : index
    %237 = vector.load %arg13[%c135, %c0_286] : memref<142x64xf32, #tpu.memory_space<vmem>>, vector<1x64xf32>
    %c1_287 = arith.constant 1 : index
    %c2688_288 = arith.constant 2688 : index
    %238 = vector.load %arg14[%c1_287, %c2688_288] : memref<2x3136xf32, #tpu.memory_space<vmem>>, vector<1x64xf32>
    tpu.vector_store %arg14[%c1_287, %c2688_288], %237 {strides = array<i32>} : memref<2x3136xf32, #tpu.memory_space<vmem>>, vector<1x64xf32>,
    %c136 = arith.constant 136 : index
    %c0_289 = arith.constant 0 : index
    %239 = vector.load %arg13[%c136, %c0_289] : memref<142x64xf32, #tpu.memory_space<vmem>>, vector<1x64xf32>
    %c1_290 = arith.constant 1 : index
    %c2752_291 = arith.constant 2752 : index
    %240 = vector.load %arg14[%c1_290, %c2752_291] : memref<2x3136xf32, #tpu.memory_space<vmem>>, vector<1x64xf32>
    tpu.vector_store %arg14[%c1_290, %c2752_291], %239 {strides = array<i32>} : memref<2x3136xf32, #tpu.memory_space<vmem>>, vector<1x64xf32>,
    %c137 = arith.constant 137 : index
    %c0_292 = arith.constant 0 : index
    %241 = vector.load %arg13[%c137, %c0_292] : memref<142x64xf32, #tpu.memory_space<vmem>>, vector<1x64xf32>
    %c1_293 = arith.constant 1 : index
    %c2816_294 = arith.constant 2816 : index
    %242 = vector.load %arg14[%c1_293, %c2816_294] : memref<2x3136xf32, #tpu.memory_space<vmem>>, vector<1x64xf32>
    tpu.vector_store %arg14[%c1_293, %c2816_294], %241 {strides = array<i32>} : memref<2x3136xf32, #tpu.memory_space<vmem>>, vector<1x64xf32>,
    %c138 = arith.constant 138 : index
    %c0_295 = arith.constant 0 : index
    %243 = vector.load %arg13[%c138, %c0_295] : memref<142x64xf32, #tpu.memory_space<vmem>>, vector<1x64xf32>
    %c1_296 = arith.constant 1 : index
    %c2880_297 = arith.constant 2880 : index
    %244 = vector.load %arg14[%c1_296, %c2880_297] : memref<2x3136xf32, #tpu.memory_space<vmem>>, vector<1x64xf32>
    tpu.vector_store %arg14[%c1_296, %c2880_297], %243 {strides = array<i32>} : memref<2x3136xf32, #tpu.memory_space<vmem>>, vector<1x64xf32>,
    %c139 = arith.constant 139 : index
    %c0_298 = arith.constant 0 : index
    %245 = vector.load %arg13[%c139, %c0_298] : memref<142x64xf32, #tpu.memory_space<vmem>>, vector<1x64xf32>
    %c1_299 = arith.constant 1 : index
    %c2944_300 = arith.constant 2944 : index
    %246 = vector.load %arg14[%c1_299, %c2944_300] : memref<2x3136xf32, #tpu.memory_space<vmem>>, vector<1x64xf32>
    tpu.vector_store %arg14[%c1_299, %c2944_300], %245 {strides = array<i32>} : memref<2x3136xf32, #tpu.memory_space<vmem>>, vector<1x64xf32>,
    %c140 = arith.constant 140 : index
    %c0_301 = arith.constant 0 : index
    %247 = vector.load %arg13[%c140, %c0_301] : memref<142x64xf32, #tpu.memory_space<vmem>>, vector<1x64xf32>
    %c1_302 = arith.constant 1 : index
    %c3008_303 = arith.constant 3008 : index
    %248 = vector.load %arg14[%c1_302, %c3008_303] : memref<2x3136xf32, #tpu.memory_space<vmem>>, vector<1x64xf32>
    tpu.vector_store %arg14[%c1_302, %c3008_303], %247 {strides = array<i32>} : memref<2x3136xf32, #tpu.memory_space<vmem>>, vector<1x64xf32>,
    %c141 = arith.constant 141 : index
    %c0_304 = arith.constant 0 : index
    %249 = vector.load %arg13[%c141, %c0_304] : memref<142x64xf32, #tpu.memory_space<vmem>>, vector<1x64xf32>
    %c1_305 = arith.constant 1 : index
    %c3072_306 = arith.constant 3072 : index
    %250 = vector.load %arg14[%c1_305, %c3072_306] : memref<2x3136xf32, #tpu.memory_space<vmem>>, vector<1x64xf32>
    tpu.vector_store %arg14[%c1_305, %c3072_306], %249 {strides = array<i32>} : memref<2x3136xf32, #tpu.memory_space<vmem>>, vector<1x64xf32>,
    %c0_i32_307 = arith.constant 0 : i32
    %251 = tpu.memref_slice %arg15[%c0_i32_307] : memref<1x!tpu.dma_semaphore, #tpu.memory_space<semaphore_mem>> -> memref<1x!tpu.dma_semaphore, #tpu.memory_space<semaphore_mem>>
    %252 = tpu.memref_squeeze %251 : memref<1x!tpu.dma_semaphore, #tpu.memory_space<semaphore_mem>> -> memref<!tpu.dma_semaphore, #tpu.memory_space<semaphore_mem>>
    tpu.wait_dma2 semaphore(%252 : memref<!tpu.dma_semaphore, #tpu.memory_space<semaphore_mem>>) src(%arg6 : memref<3136x512xbf16, #tpu.memory_space<any>>) dst(%arg11 : memref<3136x512xbf16, #tpu.memory_space<vmem>>)
    %c0_308 = arith.constant 0 : index
    %c0_309 = arith.constant 0 : index
    %253 = vector.load %arg14[%c0_308, %c0_309] : memref<2x3136xf32, #tpu.memory_space<vmem>>, vector<2x3136xf32>
    %254 = arith.truncf %253 : vector<2x3136xf32> to vector<2x3136xbf16>
    %c0_310 = arith.constant 0 : index
    %c0_311 = arith.constant 0 : index
    %255 = vector.load %arg11[%c0_310, %c0_311] : memref<3136x512xbf16, #tpu.memory_space<vmem>>, vector<3136x512xbf16>
    %cst_312 = arith.constant dense<0.000000e+00> : vector<2x512xf32>
    %256 = tpu.matmul %254, %255, %cst_312 {dimension_numbers = #tpu.dot_dimension_numbers<[1], [0], [0], [1], [0, 0, 1, 1], [], []>} : vector<2x3136xbf16>, vector<3136x512xbf16>, vector<2x512xf32> -> vector<2x512xf32>
    %c0_313 = arith.constant 0 : index
    %c0_314 = arith.constant 0 : index
    %257 = vector.load %arg7[%c0_313, %c0_314] : memref<1x512xf32, #tpu.memory_space<vmem>>, vector<1x512xf32>
    %258 = vector.broadcast %257 : vector<1x512xf32> to vector<2x512xf32>
    %259 = arith.addf %256, %258 : vector<2x512xf32>
    %cst_315 = arith.constant 0.000000e+00 : f32
    %260 = vector.broadcast %cst_315 : f32 to vector<2x512xf32>
    %261 = arith.maximumf %259, %260 : vector<2x512xf32>
    %262 = arith.truncf %261 : vector<2x512xf32> to vector<2x512xbf16>
    %c0_316 = arith.constant 0 : index
    %c0_317 = arith.constant 0 : index
    %263 = vector.load %arg8[%c0_316, %c0_317] : memref<512x128xbf16, #tpu.memory_space<vmem>>, vector<512x128xbf16>
    %cst_318 = arith.constant dense<0.000000e+00> : vector<2x128xf32>
    %264 = tpu.matmul %262, %263, %cst_318 {dimension_numbers = #tpu.dot_dimension_numbers<[1], [0], [0], [1], [0, 0, 1, 1], [], []>} : vector<2x512xbf16>, vector<512x128xbf16>, vector<2x128xf32> -> vector<2x128xf32>
    %c0_319 = arith.constant 0 : index
    %c0_320 = arith.constant 0 : index
    %265 = vector.load %arg9[%c0_319, %c0_320] : memref<1x128xf32, #tpu.memory_space<vmem>>, vector<1x128xf32>
    %266 = vector.broadcast %265 : vector<1x128xf32> to vector<2x128xf32>
    %267 = arith.addf %264, %266 : vector<2x128xf32>
    %c0_321 = arith.constant 0 : index
    %c0_322 = arith.constant 0 : index
    %268 = vector.load %arg10[%c0_321, %c0_322] : memref<2x128xf32, #tpu.memory_space<vmem>>, vector<2x128xf32>
    tpu.vector_store %arg10[%c0_321, %c0_322], %267 {strides = array<i32>} : memref<2x128xf32, #tpu.memory_space<vmem>>, vector<2x128xf32>,
    return
  }
  func.func @transform_0(%arg0: i32) -> (i32, i32) {
    %c0_i32 = arith.constant 0 : i32
    %c0_i32_0 = arith.constant 0 : i32
    %c0_i32_1 = arith.constant 0 : i32
    return %c0_i32, %c0_i32_0 : i32, i32
  }
  func.func @transform_1(%arg0: i32) -> (i32, i32) {
    %c0_i32 = arith.constant 0 : i32
    %c0_i32_0 = arith.constant 0 : i32
    %c0_i32_1 = arith.constant 0 : i32
    return %c0_i32, %c0_i32_0 : i32, i32
  }
  func.func @transform_2(%arg0: i32) -> (i32, i32) {
    %c0_i32 = arith.constant 0 : i32
    %c0_i32_0 = arith.constant 0 : i32
    %c0_i32_1 = arith.constant 0 : i32
    return %c0_i32, %c0_i32_0 : i32, i32
  }
  func.func @transform_3(%arg0: i32) -> (i32, i32) {
    %c0_i32 = arith.constant 0 : i32
    %c0_i32_0 = arith.constant 0 : i32
    %c0_i32_1 = arith.constant 0 : i32
    return %c0_i32, %c0_i32_0 : i32, i32
  }
  func.func @transform_4(%arg0: i32) -> (i32, i32) {
    %c0_i32 = arith.constant 0 : i32
    %c0_i32_0 = arith.constant 0 : i32
    %c0_i32_1 = arith.constant 0 : i32
    return %c0_i32, %c0_i32_0 : i32, i32
  }
  func.func @transform_6(%arg0: i32) -> (i32, i32) {
    %c0_i32 = arith.constant 0 : i32
    %c0_i32_0 = arith.constant 0 : i32
    %c0_i32_1 = arith.constant 0 : i32
    return %c0_i32, %c0_i32_0 : i32, i32
  }
  func.func @transform_7(%arg0: i32) -> (i32, i32) {
    %c0_i32 = arith.constant 0 : i32
    %c0_i32_0 = arith.constant 0 : i32
    %c0_i32_1 = arith.constant 0 : i32
    return %c0_i32, %c0_i32_0 : i32, i32
  }
  func.func @transform_8(%arg0: i32) -> (i32, i32) {
    %c0_i32 = arith.constant 0 : i32
    %c0_i32_0 = arith.constant 0 : i32
    %c0_i32_1 = arith.constant 0 : i32
    return %c0_i32, %c0_i32_0 : i32, i32
  }
  func.func @transform_9(%arg0: i32) -> (i32, i32) {
    %c0_i32 = arith.constant 0 : i32
    %c0_i32_0 = arith.constant 0 : i32
    %c0_i32_1 = arith.constant 0 : i32
    return %c0_i32, %c0_i32_0 : i32, i32
  }
}

</mosaic_0001>

<bundles_post_ra>
// kernel: jumping_q_network_forward.2
= control target key start
LH: loop header
LB: loop body
LE: loop exit
PB: predicated region body
PF: predicated region fallthrough
CT: control target
= control target key end

     0   :  { %s1581_s12 = smov 0   ;;  %s1809_s0 = inlined_call_operand.vmem [shape: bf16[800,64], index: 0, kind: input, shape index: {}]   ;;  %s1810_s1 = inlined_call_operand.vmem [shape: bf16[64,128], index: 1, kind: input, shape index: {}]   ;;  %s1811_s2 = inlined_call_operand.vmem [shape: f32[1,128], index: 2, kind: input, shape index: {}]   ;;  %s1812_s3 = inlined_call_operand.vmem [shape: bf16[800,128], index: 3, kind: output, shape index: {}]  }
   0x1 LB: > { %s1054_s13 = sadd.s32 4294967295, %s1557_s12   ;;  %p1058_p0 = scmp.ge.s32.totalorder %s1557_s12, 1  ;;  %s1557_s12 = sphi %s1581_s12, %s13_s12  }
   0x2   : > { %p138_p1 = scmp.lt.s32.totalorder %s1557_s12, 3 }
   0x4   : > { %p139_p2 = pnand %p1058_p0, %p138_p1 }
   0x5   : > { %v1522_v0 = vld [vmem:[%s1810_s1] sm:$0xff] (!%p139_p2)   ;;  %v1559_v1 = vmov (!%p139_p2), 0.0   ;;  %v1523_v2 = vld [vmem:[%s1810_s1 + $0x8] sm:$0xff] (!%p139_p2)   ;;  %s162_s18 = smul.u32 (!%p139_p2), 50, %s1054_s13  ;;  %vm1560_vm0 = vmmov (!%p139_p2), 0   ;;  %v1524_v3 = vld [vmem:[%s1810_s1 + $0x10] sm:$0xff] (!%p139_p2)  }
   0x6   : > { %142 = sbr.rel (%p139_p2) target bundleno = 339 (0x153), region = 32  ;;  %1396 = vmatprep.subr.bf16.mxu0 (!%p139_p2), %v1559_v1  ;;  %1504 = vmatprep.subr.bf16.mxu1 (!%p139_p2), %v1559_v1  ;;  %v1525_v4 = vld [vmem:[%s1810_s1 + $0x18] sm:$0xff] (!%p139_p2)   ;;  %vm389_vm1 = vcmask (!%p139_p2), 523264   ;;  %v1722_v30 = vld [vmem:[%s1811_s2] ss:$0 sm:$0xff] (!%p139_p2) }
   0x7   : > { %1397 = vmatpush3.bf16.msra.mxu0 (!%p139_p2), %v1522_v0  ;;  %1508 = vmatpush3.bf16.msra.mxu1 (!%p139_p2), %v1522_v0  ;;  %p163_p3 = scmp.lt.s32.totalorder (!%p139_p2), %s162_s18, 99 }
   0x8   : > { %1398 = vmatprep.subr.bf16.mxu0 (!%p139_p2), %v1559_v1  ;;  %1505 = vmatprep.subr.bf16.mxu1 (!%p139_p2), %v1559_v1 }
   0x9   : > { %1404 = vmatprep.mubr.msk.bf16.mxu0 (!%p139_p2), %vm1560_vm0, %v1559_v1  ;;  %1456 = vmatprep.mubr.msk.bf16.mxu1 (!%p139_p2), %vm1560_vm0, %v1559_v1 }
   0xb   : > { %1399 = vmatpush3.bf16.msra.mxu0 (!%p139_p2), %v1523_v2  ;;  %1509 = vmatpush3.bf16.msra.mxu1 (!%p139_p2), %v1523_v2 }
   0xc   : > { %1400 = vmatprep.subr.bf16.mxu0 (!%p139_p2), %v1559_v1  ;;  %1506 = vmatprep.subr.bf16.mxu1 (!%p139_p2), %v1559_v1 }
   0xd   : > { %s1814_s18 = smov (!%p163_p3, %s162_s18), 99 }
   0xe   : > { %s1059_s21 = sshll.u32 %s1814_s18, 2 }
   0xf   : > { %s1616_s24 = scalar_lea.vmem %s1809_s0, %s1059_s21  ;;  %1401 = vmatpush3.bf16.msra.mxu0 %v1524_v3  ;;  %1510 = vmatpush3.bf16.msra.mxu1 %v1524_v3  ;;  %s1733_s4 = scalar_lea.vmem %s1812_s3, %s1059_s21 }
  0x10   : > { %1402 = vmatprep.subr.bf16.mxu0 %v1559_v1  ;;  %1507 = vmatprep.subr.bf16.mxu1 %v1559_v1  ;;  %v1526_v5 = vld [vmem:[%s1616_s24] sm:$0xff]   ;;  %v1527_v6 = vld [vmem:[%s1616_s24 + $0x68] sm:$0xff]   ;;  %v1529_v8 = vld [vmem:[%s1616_s24 + $0x70] sm:$0xff]  }
  0x11   : > { %v1528_v7 = vld [vmem:[%s1616_s24 + $0x8] sm:$0xff]   ;;  %v1530_v9 = vld [vmem:[%s1616_s24 + $0x10] sm:$0xff]   ;;  %v1531_v10 = vld [vmem:[%s1616_s24 + $0x78] sm:$0xff]  }
  0x12   : > { %v1532_v11 = vld [vmem:[%s1616_s24 + $0x18] sm:$0xff]   ;;  %v1533_v12 = vld [vmem:[%s1616_s24 + $0x80] sm:$0xff]   ;;  %v1535_v14 = vld [vmem:[%s1616_s24 + $0x88] sm:$0xff]  }
  0x13   : > { %1403 = vmatpush3.bf16.msra.mxu0 %v1525_v4  ;;  %1511 = vmatpush3.bf16.msra.mxu1 %v1525_v4  ;;  %v1534_v13 = vld [vmem:[%s1616_s24 + $0x20] sm:$0xff]   ;;  %v1536_v15 = vld [vmem:[%s1616_s24 + $0x28] sm:$0xff]   ;;  %v1537_v16 = vld [vmem:[%s1616_s24 + $0x90] sm:$0xff]  }
  0x14   : > { %v1538_v17 = vld [vmem:[%s1616_s24 + $0x30] sm:$0xff]   ;;  %v1539_v18 = vld [vmem:[%s1616_s24 + $0x98] sm:$0xff]   ;;  %v1541_v20 = vld [vmem:[%s1616_s24 + $0xa0] sm:$0xff]  }
  0x15   : > { %v1540_v19 = vld [vmem:[%s1616_s24 + $0x38] sm:$0xff]   ;;  %v1542_v21 = vld [vmem:[%s1616_s24 + $0x40] sm:$0xff]   ;;  %v1543_v22 = vld [vmem:[%s1616_s24 + $0xa8] sm:$0xff]  }
  0x16   : > { %1405 = vmatmul.mubr.msk.bf16.vlgmr.msra.gmra.mrb[0].mxu0 %vm389_vm1, %v1526_v5  ;;  %1457 = vmatmul.mubr.msk.bf16.vlgmr.msra.gmra.mrb[0].mxu1 %vm389_vm1, %v1527_v6  ;;  %v1544_v23 = vld [vmem:[%s1616_s24 + $0x48] sm:$0xff]   ;;  %v1545_v24 = vld [vmem:[%s1616_s24 + $0xb0] sm:$0xff]   ;;  %v1547_v26 = vld [vmem:[%s1616_s24 + $0xb8] sm:$0xff]  }
  0x17   : > { %1408 = vmatprep.mubr.msk.bf16.mxu0 %vm1560_vm0, %v1559_v1  ;;  %1460 = vmatprep.mubr.msk.bf16.mxu1 %vm1560_vm0, %v1559_v1  ;;  %v1546_v25 = vld [vmem:[%s1616_s24 + $0x50] sm:$0xff]   ;;  %v1548_v27 = vld [vmem:[%s1616_s24 + $0x58] sm:$0xff]   ;;  %v1549_v28 = vld [vmem:[%s1616_s24 + $0xc0] sm:$0xff]  }
  0x18   : > { %v1550_v29 = vld [vmem:[%s1616_s24 + $0x60] sm:$0xff]  }
  0x1e   : > { %1409 = vmatmul.mubr.msk.bf16.gmra.mrb[4].mxu0 %vm389_vm1, %v1528_v7  ;;  %1461 = vmatmul.mubr.msk.bf16.gmra.mrb[4].mxu1 %vm389_vm1, %v1529_v8 }
  0x1f   : > { %1412 = vmatprep.mubr.msk.bf16.mxu0 %vm1560_vm0, %v1559_v1  ;;  %1464 = vmatprep.mubr.msk.bf16.mxu1 %vm1560_vm0, %v1559_v1 }
  0x26   : > { %1413 = vmatmul.mubr.msk.bf16.gmra.mrb[8].mxu0 %vm389_vm1, %v1530_v9  ;;  %1465 = vmatmul.mubr.msk.bf16.gmra.mrb[8].mxu1 %vm389_vm1, %v1531_v10 }
  0x27   : > { %1416 = vmatprep.mubr.msk.bf16.mxu0 %vm1560_vm0, %v1559_v1  ;;  %1468 = vmatprep.mubr.msk.bf16.mxu1 %vm1560_vm0, %v1559_v1 }
  0x2e   : > { %1417 = vmatmul.mubr.msk.bf16.gmra.mrb[12].mxu0 %vm389_vm1, %v1532_v11  ;;  %1469 = vmatmul.mubr.msk.bf16.gmra.mrb[12].mxu1 %vm389_vm1, %v1533_v12 }
  0x2f   : > { %1420 = vmatprep.mubr.msk.bf16.mxu0 %vm1560_vm0, %v1559_v1  ;;  %1472 = vmatprep.mubr.msk.bf16.mxu1 %vm1560_vm0, %v1559_v1 }
  0x36   : > { %1421 = vmatmul.mubr.msk.bf16.gmra.mrb[16].mxu0 %vm389_vm1, %v1534_v13  ;;  %1473 = vmatmul.mubr.msk.bf16.gmra.mrb[16].mxu1 %vm389_vm1, %v1535_v14 }
  0x37   : > { %1424 = vmatprep.mubr.msk.bf16.mxu0 %vm1560_vm0, %v1559_v1  ;;  %1476 = vmatprep.mubr.msk.bf16.mxu1 %vm1560_vm0, %v1559_v1 }
  0x3e   : > { %1425 = vmatmul.mubr.msk.bf16.gmra.mrb[20].mxu0 %vm389_vm1, %v1536_v15  ;;  %1477 = vmatmul.mubr.msk.bf16.gmra.mrb[20].mxu1 %vm389_vm1, %v1537_v16 }
  0x3f   : > { %1428 = vmatprep.mubr.msk.bf16.mxu0 %vm1560_vm0, %v1559_v1  ;;  %1480 = vmatprep.mubr.msk.bf16.mxu1 %vm1560_vm0, %v1559_v1 }
  0x46   : > { %1429 = vmatmul.mubr.msk.bf16.gmra.mrb[24].mxu0 %vm389_vm1, %v1538_v17  ;;  %1481 = vmatmul.mubr.msk.bf16.gmra.mrb[24].mxu1 %vm389_vm1, %v1539_v18 }
  0x47   : > { %1432 = vmatprep.mubr.msk.bf16.mxu0 %vm1560_vm0, %v1559_v1  ;;  %1484 = vmatprep.mubr.msk.bf16.mxu1 %vm1560_vm0, %v1559_v1 }
  0x4e   : > { %1433 = vmatmul.mubr.msk.bf16.gmra.mrb[28].mxu0 %vm389_vm1, %v1540_v19  ;;  %1485 = vmatmul.mubr.msk.bf16.gmra.mrb[28].mxu1 %vm389_vm1, %v1541_v20 }
  0x4f   : > { %1436 = vmatprep.mubr.msk.bf16.mxu0 %vm1560_vm0, %v1559_v1  ;;  %1488 = vmatprep.mubr.msk.bf16.mxu1 %vm1560_vm0, %v1559_v1 }
  0x56   : > { %1437 = vmatmul.mubr.msk.bf16.gmra.mrb[32].mxu0 %vm389_vm1, %v1542_v21  ;;  %1489 = vmatmul.mubr.msk.bf16.gmra.mrb[32].mxu1 %vm389_vm1, %v1543_v22 }
  0x57   : > { %1440 = vmatprep.mubr.msk.bf16.mxu0 %vm1560_vm0, %v1559_v1  ;;  %1492 = vmatprep.mubr.msk.bf16.mxu1 %vm1560_vm0, %v1559_v1 }
  0x5e   : > { %1441 = vmatmul.mubr.msk.bf16.gmra.mrb[36].mxu0 %vm389_vm1, %v1544_v23  ;;  %1493 = vmatmul.mubr.msk.bf16.gmra.mrb[36].mxu1 %vm389_vm1, %v1545_v24 }
  0x5f   : > { %1444 = vmatprep.mubr.msk.bf16.mxu0 %vm1560_vm0, %v1559_v1  ;;  %1496 = vmatprep.mubr.msk.bf16.mxu1 %vm1560_vm0, %v1559_v1 }
  0x66   : > { %1445 = vmatmul.mubr.msk.bf16.gmra.mrb[40].mxu0 %vm389_vm1, %v1546_v25  ;;  %1497 = vmatmul.mubr.msk.bf16.gmra.mrb[40].mxu1 %vm389_vm1, %v1547_v26 }
  0x67   : > { %1448 = vmatprep.mubr.msk.bf16.mxu0 %vm1560_vm0, %v1559_v1  ;;  %1500 = vmatprep.mubr.msk.bf16.mxu1 %vm1560_vm0, %v1559_v1 }
  0x6e   : > { %1449 = vmatmul.mubr.msk.bf16.gmra.mrb[44].mxu0 %vm389_vm1, %v1548_v27  ;;  %1501 = vmatmul.mubr.msk.bf16.gmra.mrb[44].mxu1 %vm389_vm1, %v1549_v28 }
  0x6f   : > { %1452 = vmatprep.mubr.msk.bf16.mxu0 %vm1560_vm0, %v1559_v1 }
  0x76   : > { %1453 = vmatmul.mubr.msk.bf16.gmra.mrb[48].mxu0 %vm389_vm1, %v1550_v29 }
  0xe9   : > { %v499_v31 = vpop.f32.mrb[0].mxu0  ;;  %v603_v32 = vpop.f32.mrb[0].mxu1 }
  0xea   : > { %v500_v33 = vadd.f32 %v1722_v30, %v499_v31  ;;  %v1406_v34 = vpop.f32.mrb[1].mxu0  ;;  %v604_v35 = vadd.f32 %v1722_v30, %v603_v32  ;;  %v1458_v36 = vpop.f32.mrb[1].mxu1 }
  0xeb   : > { %v502_v37 = vpop.f32.mrb[2].mxu0  ;;  %v606_v38 = vpop.f32.mrb[2].mxu1 }
  0xec   : > { %v503_v39 = vadd.f32 %v1722_v30, %v502_v37  ;;  %v1407_v40 = vpop.f32.mrb[3].mxu0  ;;  %v724_v41 = vmax.f32 %v604_v35, 0.0  ;;  %v607_v42 = vadd.f32 %v1722_v30, %v606_v38  ;;  %v1459_v43 = vpop.f32.mrb[3].mxu1  ;;  %v698_v44 = vmax.f32 %v500_v33, 0.0 }
  0xee   : > { %v699_v45 = vmax.f32 %v503_v39, 0.0  ;;  %v725_v46 = vmax.f32 %v607_v42, 0.0 }
  0xf0   : > { %v1221_v47 = vpack.c.bf16 %v699_v45, %v698_v44  ;;  %v1286_v48 = vpack.c.bf16 %v725_v46, %v724_v41 }
  0xf1   : > { %v507_v49 = vpop.f32.mrb[4].mxu0  ;;  %v611_v50 = vpop.f32.mrb[4].mxu1 }
  0xf2   : > { %1222 = vst [vmem:[%s1733_s4] sm:$0xff] %v1221_v47   ;;  %1355 = vst [vmem:[%s1733_s4 + $0x68] sm:$0xff] %v1286_v48   ;;  %v508_v51 = vadd.f32 %v1722_v30, %v507_v49  ;;  %v1410_v52 = vpop.f32.mrb[5].mxu0  ;;  %v612_v53 = vadd.f32 %v1722_v30, %v611_v50  ;;  %v1462_v54 = vpop.f32.mrb[5].mxu1 }
  0xf3   : > { %v510_v55 = vpop.f32.mrb[6].mxu0  ;;  %v614_v56 = vpop.f32.mrb[6].mxu1 }
  0xf4   : > { %v511_v57 = vadd.f32 %v1722_v30, %v510_v55  ;;  %v1411_v58 = vpop.f32.mrb[7].mxu0  ;;  %v726_v59 = vmax.f32 %v612_v53, 0.0  ;;  %v615_v60 = vadd.f32 %v1722_v30, %v614_v56  ;;  %v1463_v61 = vpop.f32.mrb[7].mxu1  ;;  %v700_v62 = vmax.f32 %v508_v51, 0.0 }
  0xf6   : > { %v701_v63 = vmax.f32 %v511_v57, 0.0  ;;  %v727_v0 = vmax.f32 %v615_v60, 0.0 }
  0xf8   : > { %v1226_v1 = vpack.c.bf16 %v701_v63, %v700_v62  ;;  %v1291_v2 = vpack.c.bf16 %v727_v0, %v726_v59 }
  0xf9   : > { %v515_v3 = vpop.f32.mrb[8].mxu0  ;;  %v619_v4 = vpop.f32.mrb[8].mxu1 }
  0xfa   : > { %1343 = vst [vmem:[%s1733_s4 + $0x8] sm:$0xff] %v1226_v1   ;;  %1356 = vst [vmem:[%s1733_s4 + $0x70] sm:$0xff] %v1291_v2   ;;  %v516_v5 = vadd.f32 %v1722_v30, %v515_v3  ;;  %v1414_v6 = vpop.f32.mrb[9].mxu0  ;;  %v620_v7 = vadd.f32 %v1722_v30, %v619_v4  ;;  %v1466_v8 = vpop.f32.mrb[9].mxu1 }
  0xfb   : > { %v518_v9 = vpop.f32.mrb[10].mxu0  ;;  %v622_v10 = vpop.f32.mrb[10].mxu1 }
  0xfc   : > { %v519_v11 = vadd.f32 %v1722_v30, %v518_v9  ;;  %v1415_v12 = vpop.f32.mrb[11].mxu0  ;;  %v728_v13 = vmax.f32 %v620_v7, 0.0  ;;  %v623_v14 = vadd.f32 %v1722_v30, %v622_v10  ;;  %v1467_v15 = vpop.f32.mrb[11].mxu1  ;;  %v702_v16 = vmax.f32 %v516_v5, 0.0 }
  0xfe   : > { %v703_v17 = vmax.f32 %v519_v11, 0.0  ;;  %v729_v18 = vmax.f32 %v623_v14, 0.0 }
 0x100   : > { %v1231_v19 = vpack.c.bf16 %v703_v17, %v702_v16  ;;  %v1296_v20 = vpack.c.bf16 %v729_v18, %v728_v13 }
 0x101   : > { %v523_v21 = vpop.f32.mrb[12].mxu0  ;;  %v627_v22 = vpop.f32.mrb[12].mxu1 }
 0x102   : > { %1344 = vst [vmem:[%s1733_s4 + $0x10] sm:$0xff] %v1231_v19   ;;  %1357 = vst [vmem:[%s1733_s4 + $0x78] sm:$0xff] %v1296_v20   ;;  %v524_v23 = vadd.f32 %v1722_v30, %v523_v21  ;;  %v1418_v24 = vpop.f32.mrb[13].mxu0  ;;  %v628_v25 = vadd.f32 %v1722_v30, %v627_v22  ;;  %v1470_v26 = vpop.f32.mrb[13].mxu1 }
 0x103   : > { %v526_v27 = vpop.f32.mrb[14].mxu0  ;;  %v630_v28 = vpop.f32.mrb[14].mxu1 }
 0x104   : > { %v527_v29 = vadd.f32 %v1722_v30, %v526_v27  ;;  %v1419_v31 = vpop.f32.mrb[15].mxu0  ;;  %v730_v32 = vmax.f32 %v628_v25, 0.0  ;;  %v631_v33 = vadd.f32 %v1722_v30, %v630_v28  ;;  %v1471_v34 = vpop.f32.mrb[15].mxu1  ;;  %v704_v35 = vmax.f32 %v524_v23, 0.0 }
 0x106   : > { %v705_v36 = vmax.f32 %v527_v29, 0.0  ;;  %v731_v37 = vmax.f32 %v631_v33, 0.0 }
 0x108   : > { %v1236_v38 = vpack.c.bf16 %v705_v36, %v704_v35  ;;  %v1301_v39 = vpack.c.bf16 %v731_v37, %v730_v32 }
 0x109   : > { %v531_v40 = vpop.f32.mrb[16].mxu0  ;;  %v635_v41 = vpop.f32.mrb[16].mxu1 }
 0x10a   : > { %1345 = vst [vmem:[%s1733_s4 + $0x18] sm:$0xff] %v1236_v38   ;;  %1358 = vst [vmem:[%s1733_s4 + $0x80] sm:$0xff] %v1301_v39   ;;  %v532_v42 = vadd.f32 %v1722_v30, %v531_v40  ;;  %v1422_v43 = vpop.f32.mrb[17].mxu0  ;;  %v636_v44 = vadd.f32 %v1722_v30, %v635_v41  ;;  %v1474_v45 = vpop.f32.mrb[17].mxu1 }
 0x10b   : > { %v534_v46 = vpop.f32.mrb[18].mxu0  ;;  %v638_v47 = vpop.f32.mrb[18].mxu1 }
 0x10c   : > { %v535_v48 = vadd.f32 %v1722_v30, %v534_v46  ;;  %v1423_v49 = vpop.f32.mrb[19].mxu0  ;;  %v732_v50 = vmax.f32 %v636_v44, 0.0  ;;  %v639_v51 = vadd.f32 %v1722_v30, %v638_v47  ;;  %v1475_v52 = vpop.f32.mrb[19].mxu1  ;;  %v706_v53 = vmax.f32 %v532_v42, 0.0 }
 0x10e   : > { %v707_v54 = vmax.f32 %v535_v48, 0.0  ;;  %v733_v55 = vmax.f32 %v639_v51, 0.0 }
 0x110   : > { %v1241_v56 = vpack.c.bf16 %v707_v54, %v706_v53  ;;  %v1306_v57 = vpack.c.bf16 %v733_v55, %v732_v50 }
 0x111   : > { %v539_v58 = vpop.f32.mrb[20].mxu0  ;;  %v643_v59 = vpop.f32.mrb[20].mxu1 }
 0x112   : > { %1346 = vst [vmem:[%s1733_s4 + $0x20] sm:$0xff] %v1241_v56   ;;  %1359 = vst [vmem:[%s1733_s4 + $0x88] sm:$0xff] %v1306_v57   ;;  %v540_v60 = vadd.f32 %v1722_v30, %v539_v58  ;;  %v1426_v61 = vpop.f32.mrb[21].mxu0  ;;  %v644_v62 = vadd.f32 %v1722_v30, %v643_v59  ;;  %v1478_v63 = vpop.f32.mrb[21].mxu1 }
 0x113   : > { %v542_v0 = vpop.f32.mrb[22].mxu0  ;;  %v646_v1 = vpop.f32.mrb[22].mxu1 }
 0x114   : > { %v543_v2 = vadd.f32 %v1722_v30, %v542_v0  ;;  %v1427_v3 = vpop.f32.mrb[23].mxu0  ;;  %v734_v4 = vmax.f32 %v644_v62, 0.0  ;;  %v647_v5 = vadd.f32 %v1722_v30, %v646_v1  ;;  %v1479_v6 = vpop.f32.mrb[23].mxu1  ;;  %v708_v7 = vmax.f32 %v540_v60, 0.0 }
 0x116   : > { %v709_v8 = vmax.f32 %v543_v2, 0.0  ;;  %v735_v9 = vmax.f32 %v647_v5, 0.0 }
 0x118   : > { %v1246_v10 = vpack.c.bf16 %v709_v8, %v708_v7  ;;  %v1311_v11 = vpack.c.bf16 %v735_v9, %v734_v4 }
 0x119   : > { %v547_v12 = vpop.f32.mrb[24].mxu0  ;;  %v651_v13 = vpop.f32.mrb[24].mxu1 }
 0x11a   : > { %1347 = vst [vmem:[%s1733_s4 + $0x28] sm:$0xff] %v1246_v10   ;;  %1360 = vst [vmem:[%s1733_s4 + $0x90] sm:$0xff] %v1311_v11   ;;  %v548_v14 = vadd.f32 %v1722_v30, %v547_v12  ;;  %v1430_v15 = vpop.f32.mrb[25].mxu0  ;;  %v652_v16 = vadd.f32 %v1722_v30, %v651_v13  ;;  %v1482_v17 = vpop.f32.mrb[25].mxu1 }
 0x11b   : > { %v550_v18 = vpop.f32.mrb[26].mxu0  ;;  %v654_v19 = vpop.f32.mrb[26].mxu1 }
 0x11c   : > { %v551_v20 = vadd.f32 %v1722_v30, %v550_v18  ;;  %v1431_v21 = vpop.f32.mrb[27].mxu0  ;;  %v736_v22 = vmax.f32 %v652_v16, 0.0  ;;  %v655_v23 = vadd.f32 %v1722_v30, %v654_v19  ;;  %v1483_v24 = vpop.f32.mrb[27].mxu1  ;;  %v710_v25 = vmax.f32 %v548_v14, 0.0 }
 0x11e   : > { %v711_v26 = vmax.f32 %v551_v20, 0.0  ;;  %v737_v27 = vmax.f32 %v655_v23, 0.0 }
 0x120   : > { %v1251_v28 = vpack.c.bf16 %v711_v26, %v710_v25  ;;  %v1316_v29 = vpack.c.bf16 %v737_v27, %v736_v22 }
 0x121   : > { %v555_v31 = vpop.f32.mrb[28].mxu0  ;;  %v659_v32 = vpop.f32.mrb[28].mxu1 }
 0x122   : > { %1348 = vst [vmem:[%s1733_s4 + $0x30] sm:$0xff] %v1251_v28   ;;  %1361 = vst [vmem:[%s1733_s4 + $0x98] sm:$0xff] %v1316_v29   ;;  %v556_v33 = vadd.f32 %v1722_v30, %v555_v31  ;;  %v1434_v34 = vpop.f32.mrb[29].mxu0  ;;  %v660_v35 = vadd.f32 %v1722_v30, %v659_v32  ;;  %v1486_v36 = vpop.f32.mrb[29].mxu1 }
 0x123   : > { %v558_v37 = vpop.f32.mrb[30].mxu0  ;;  %v662_v38 = vpop.f32.mrb[30].mxu1 }
 0x124   : > { %v559_v39 = vadd.f32 %v1722_v30, %v558_v37  ;;  %v1435_v40 = vpop.f32.mrb[31].mxu0  ;;  %v738_v41 = vmax.f32 %v660_v35, 0.0  ;;  %v663_v42 = vadd.f32 %v1722_v30, %v662_v38  ;;  %v1487_v43 = vpop.f32.mrb[31].mxu1  ;;  %v712_v44 = vmax.f32 %v556_v33, 0.0 }
 0x126   : > { %v713_v45 = vmax.f32 %v559_v39, 0.0  ;;  %v739_v46 = vmax.f32 %v663_v42, 0.0 }
 0x128   : > { %v1256_v47 = vpack.c.bf16 %v713_v45, %v712_v44  ;;  %v1321_v48 = vpack.c.bf16 %v739_v46, %v738_v41 }
 0x129   : > { %v563_v49 = vpop.f32.mrb[32].mxu0  ;;  %v667_v50 = vpop.f32.mrb[32].mxu1 }
 0x12a   : > { %1349 = vst [vmem:[%s1733_s4 + $0x38] sm:$0xff] %v1256_v47   ;;  %1362 = vst [vmem:[%s1733_s4 + $0xa0] sm:$0xff] %v1321_v48   ;;  %v564_v51 = vadd.f32 %v1722_v30, %v563_v49  ;;  %v1438_v52 = vpop.f32.mrb[33].mxu0  ;;  %v668_v53 = vadd.f32 %v1722_v30, %v667_v50  ;;  %v1490_v54 = vpop.f32.mrb[33].mxu1 }
 0x12b   : > { %v566_v55 = vpop.f32.mrb[34].mxu0  ;;  %v670_v56 = vpop.f32.mrb[34].mxu1 }
 0x12c   : > { %v567_v57 = vadd.f32 %v1722_v30, %v566_v55  ;;  %v1439_v58 = vpop.f32.mrb[35].mxu0  ;;  %v740_v59 = vmax.f32 %v668_v53, 0.0  ;;  %v671_v60 = vadd.f32 %v1722_v30, %v670_v56  ;;  %v1491_v61 = vpop.f32.mrb[35].mxu1  ;;  %v714_v62 = vmax.f32 %v564_v51, 0.0 }
 0x12e   : > { %v715_v63 = vmax.f32 %v567_v57, 0.0  ;;  %v741_v0 = vmax.f32 %v671_v60, 0.0 }
 0x130   : > { %v1261_v1 = vpack.c.bf16 %v715_v63, %v714_v62  ;;  %v1326_v2 = vpack.c.bf16 %v741_v0, %v740_v59 }
 0x131   : > { %v571_v3 = vpop.f32.mrb[36].mxu0  ;;  %v675_v4 = vpop.f32.mrb[36].mxu1 }
 0x132   : > { %1350 = vst [vmem:[%s1733_s4 + $0x40] sm:$0xff] %v1261_v1   ;;  %1363 = vst [vmem:[%s1733_s4 + $0xa8] sm:$0xff] %v1326_v2   ;;  %v572_v5 = vadd.f32 %v1722_v30, %v571_v3  ;;  %v1442_v6 = vpop.f32.mrb[37].mxu0  ;;  %v676_v7 = vadd.f32 %v1722_v30, %v675_v4  ;;  %v1494_v8 = vpop.f32.mrb[37].mxu1 }
 0x133   : > { %v574_v9 = vpop.f32.mrb[38].mxu0  ;;  %v678_v10 = vpop.f32.mrb[38].mxu1 }
 0x134   : > { %v575_v11 = vadd.f32 %v1722_v30, %v574_v9  ;;  %v1443_v12 = vpop.f32.mrb[39].mxu0  ;;  %v742_v13 = vmax.f32 %v676_v7, 0.0  ;;  %v679_v14 = vadd.f32 %v1722_v30, %v678_v10  ;;  %v1495_v15 = vpop.f32.mrb[39].mxu1  ;;  %v716_v16 = vmax.f32 %v572_v5, 0.0 }
 0x136   : > { %v717_v17 = vmax.f32 %v575_v11, 0.0  ;;  %v743_v18 = vmax.f32 %v679_v14, 0.0 }
 0x138   : > { %v1266_v19 = vpack.c.bf16 %v717_v17, %v716_v16  ;;  %v1331_v20 = vpack.c.bf16 %v743_v18, %v742_v13 }
 0x139   : > { %v579_v21 = vpop.f32.mrb[40].mxu0  ;;  %v683_v22 = vpop.f32.mrb[40].mxu1 }
 0x13a   : > { %1351 = vst [vmem:[%s1733_s4 + $0x48] sm:$0xff] %v1266_v19   ;;  %1364 = vst [vmem:[%s1733_s4 + $0xb0] sm:$0xff] %v1331_v20   ;;  %v580_v23 = vadd.f32 %v1722_v30, %v579_v21  ;;  %v1446_v24 = vpop.f32.mrb[41].mxu0  ;;  %v684_v25 = vadd.f32 %v1722_v30, %v683_v22  ;;  %v1498_v26 = vpop.f32.mrb[41].mxu1 }
 0x13b   : > { %v582_v27 = vpop.f32.mrb[42].mxu0  ;;  %v686_v28 = vpop.f32.mrb[42].mxu1 }
 0x13c   : > { %v583_v29 = vadd.f32 %v1722_v30, %v582_v27  ;;  %v1447_v31 = vpop.f32.mrb[43].mxu0  ;;  %v744_v32 = vmax.f32 %v684_v25, 0.0  ;;  %v687_v33 = vadd.f32 %v1722_v30, %v686_v28  ;;  %v1499_v34 = vpop.f32.mrb[43].mxu1  ;;  %v718_v35 = vmax.f32 %v580_v23, 0.0 }
 0x13e   : > { %v719_v36 = vmax.f32 %v583_v29, 0.0  ;;  %v745_v37 = vmax.f32 %v687_v33, 0.0 }
 0x140   : > { %v1271_v38 = vpack.c.bf16 %v719_v36, %v718_v35  ;;  %v1336_v39 = vpack.c.bf16 %v745_v37, %v744_v32 }
 0x141   : > { %v587_v40 = vpop.f32.mrb[44].mxu0  ;;  %v691_v41 = vpop.f32.mrb[44].mxu1 }
 0x142   : > { %1352 = vst [vmem:[%s1733_s4 + $0x50] sm:$0xff] %v1271_v38   ;;  %1365 = vst [vmem:[%s1733_s4 + $0xb8] sm:$0xff] %v1336_v39   ;;  %v588_v42 = vadd.f32 %v1722_v30, %v587_v40  ;;  %v1450_v43 = vpop.f32.mrb[45].mxu0  ;;  %v692_v44 = vadd.f32 %v1722_v30, %v691_v41  ;;  %v1502_v45 = vpop.f32.mrb[45].mxu1 }
 0x143   : > { %v590_v46 = vpop.f32.mrb[46].mxu0  ;;  %v694_v47 = vpop.f32.mrb[46].mxu1 }
 0x144   : > { %v591_v48 = vadd.f32 %v1722_v30, %v590_v46  ;;  %v1451_v49 = vpop.f32.mrb[47].mxu0  ;;  %v746_v50 = vmax.f32 %v692_v44, 0.0  ;;  %v695_v51 = vadd.f32 %v1722_v30, %v694_v47  ;;  %v1503_v52 = vpop.f32.mrb[47].mxu1  ;;  %v720_v53 = vmax.f32 %v588_v42, 0.0 }
 0x146   : > { %v721_v54 = vmax.f32 %v591_v48, 0.0  ;;  %v747_v55 = vmax.f32 %v695_v51, 0.0 }
 0x148   : > { %v1276_v56 = vpack.c.bf16 %v721_v54, %v720_v53  ;;  %v1341_v57 = vpack.c.bf16 %v747_v55, %v746_v50 }
 0x149   : > { %v595_v58 = vpop.f32.mrb[48].mxu0 }
 0x14a   : > { %1353 = vst [vmem:[%s1733_s4 + $0x58] sm:$0xff] %v1276_v56   ;;  %1366 = vst [vmem:[%s1733_s4 + $0xc0] sm:$0xff] %v1341_v57   ;;  %v596_v59 = vadd.f32 %v1722_v30, %v595_v58  ;;  %v1454_v60 = vpop.f32.mrb[49].mxu0 }
 0x14b   : > { %v598_v61 = vpop.f32.mrb[50].mxu0 }
 0x14c   : > { %v599_v62 = vadd.f32 %v1722_v30, %v598_v61  ;;  %v1455_v63 = vpop.f32.mrb[51].mxu0  ;;  %v722_v0 = vmax.f32 %v596_v59, 0.0 }
 0x14e   : > { %v723_v1 = vmax.f32 %v599_v62, 0.0 }
 0x150   : > { %v1281_v2 = vpack.c.bf16 %v723_v1, %v722_v0 }
 0x152   : > { %1354 = vst [vmem:[%s1733_s4 + $0x60] sm:$0xff] %v1281_v2  }
 0x153 PF: > { %s13_s12 = sadd.s32 1, %s1557_s12  }
 0x154   : > { %p10_p4 = scmp.ge.s32.totalorder %s13_s12, 4  }
 0x156   :  { %12 = sbr.rel (!%p10_p4) target bundleno = 1 (0x1), region = 62 }

// kernel: jumping_q_network_forward.3
= control target key start
LH: loop header
LB: loop body
LE: loop exit
PB: predicated region body
PF: predicated region fallthrough
CT: control target
= control target key end

     0   :  { %14 = vsyncpa [#allocation8], 0  ;;  %s14459_s30 = smov [#allocation2]   ;;  %s14466_s13 = smov 0   ;;  %s17709_s0 = inlined_call_operand.vmem [shape: bf16[162,512], index: 0, kind: input, shape index: {}]   ;;  %s17710_s1 = inlined_call_operand.vmem [shape: bf16[512,64], index: 1, kind: input, shape index: {}]   ;;  %s17711_s2 = inlined_call_operand.vmem [shape: f32[1,64], index: 2, kind: input, shape index: {}]   ;;  %s17712_s3 = inlined_call_operand.vmem [shape: bf16[576,64], index: 3, kind: input, shape index: {}]   ;;  %s17713_s4 = inlined_call_operand.vmem [shape: f32[1,64], index: 4, kind: input, shape index: {}]   ;;  %s17714_s5 = inlined_call_operand.vmem [shape: bf16[3136,512], index: 5, kind: input, shape index: {}]   ;;  %s17715_s6 = inlined_call_operand.vmem [shape: f32[1,512], index: 6, kind: input, shape index: {}]   ;;  %s17716_s7 = inlined_call_operand.vmem [shape: bf16[512,128], index: 7, kind: input, shape index: {}]   ;;  %s17717_s8 = inlined_call_operand.vmem [shape: f32[1,128], index: 8, kind: input, shape index: {}]   ;;  %s17718_s9 = inlined_call_operand.hbm [shape: f32[2,128], index: 9, kind: output, shape index: {}]  }
   0x1   :  { %s17725_s12 = smov %s17714_s5  ;;  %s14468_s14 = smov 0  }
   0x2 LB: > { %v52_v0 = vld [vmem:[%s14393_s12] sm:$0xf]  ;;  %v54_v1 = vld [vmem:[%s14393_s12 + $0x4] sm:$0xf]  ;;  %v56_v2 = vld [vmem:[%s14393_s12 + $0x8] sm:$0xf]  ;;  %s14401_s14 = sphi %s14468_s14, %s48_s14   ;;  %s14397_s13 = sphi %s14466_s13, %s17726_s13   ;;  %s14393_s12 = sphi %s17725_s12, %s1625_s12   ;;  %s14389_s30 = sphi %s14459_s30, %s1626_s30  }
   0x3   : > { %53 = vst [vmem:[%s14389_s30] sm:$0xf] %v52_v0  ;;  %55 = vst [vmem:[%s14389_s30 + $0x8] sm:$0xf] %v54_v1  ;;  %v58_v3 = vld [vmem:[%s14393_s12 + $0xc] sm:$0xf]  ;;  %s1620_s15 = sadd.s32 1, %s14397_s13 }
   0x4   : > { %57 = vst [vmem:[%s14389_s30 + $0x10] sm:$0xf] %v56_v2  ;;  %v60_v4 = vld [vmem:[%s14393_s12 + $0x20] sm:$0xf]  ;;  %v62_v5 = vld [vmem:[%s14393_s12 + $0x24] sm:$0xf] }
   0x5   : > { %59 = vst [vmem:[%s14389_s30 + $0x18] sm:$0xf] %v58_v3  ;;  %61 = vst [vmem:[%s14389_s30 + $0x20] sm:$0xf] %v60_v4  ;;  %v64_v6 = vld [vmem:[%s14393_s12 + $0x28] sm:$0xf] }
   0x6   : > { %63 = vst [vmem:[%s14389_s30 + $0x28] sm:$0xf] %v62_v5  ;;  %v66_v7 = vld [vmem:[%s14393_s12 + $0x2c] sm:$0xf]  ;;  %v68_v8 = vld [vmem:[%s14393_s12 + $0x40] sm:$0xf] }
   0x7   : > { %65 = vst [vmem:[%s14389_s30 + $0x30] sm:$0xf] %v64_v6  ;;  %67 = vst [vmem:[%s14389_s30 + $0x38] sm:$0xf] %v66_v7  ;;  %v70_v9 = vld [vmem:[%s14393_s12 + $0x44] sm:$0xf] }
   0x8   : > { %69 = vst [vmem:[%s14389_s30 + $0x40] sm:$0xf] %v68_v8  ;;  %v72_v10 = vld [vmem:[%s14393_s12 + $0x48] sm:$0xf]  ;;  %v74_v11 = vld [vmem:[%s14393_s12 + $0x4c] sm:$0xf] }
   0x9   : > { %71 = vst [vmem:[%s14389_s30 + $0x48] sm:$0xf] %v70_v9  ;;  %73 = vst [vmem:[%s14389_s30 + $0x50] sm:$0xf] %v72_v10  ;;  %v76_v12 = vld [vmem:[%s14393_s12 + $0x60] sm:$0xf] }
   0xa   : > { %75 = vst [vmem:[%s14389_s30 + $0x58] sm:$0xf] %v74_v11  ;;  %v78_v13 = vld [vmem:[%s14393_s12 + $0x64] sm:$0xf]  ;;  %v80_v14 = vld [vmem:[%s14393_s12 + $0x68] sm:$0xf] }
   0xb   : > { %77 = vst [vmem:[%s14389_s30 + $0x60] sm:$0xf] %v76_v12  ;;  %79 = vst [vmem:[%s14389_s30 + $0x68] sm:$0xf] %v78_v13  ;;  %v82_v15 = vld [vmem:[%s14393_s12 + $0x6c] sm:$0xf] }
   0xc   : > { %81 = vst [vmem:[%s14389_s30 + $0x70] sm:$0xf] %v80_v14  ;;  %v84_v16 = vld [vmem:[%s14393_s12 + $0x80] sm:$0xf]  ;;  %v86_v17 = vld [vmem:[%s14393_s12 + $0x84] sm:$0xf] }
   0xd   : > { %83 = vst [vmem:[%s14389_s30 + $0x78] sm:$0xf] %v82_v15  ;;  %85 = vst [vmem:[%s14389_s30 + $0x80] sm:$0xf] %v84_v16  ;;  %v88_v18 = vld [vmem:[%s14393_s12 + $0x88] sm:$0xf] }
   0xe   : > { %87 = vst [vmem:[%s14389_s30 + $0x88] sm:$0xf] %v86_v17  ;;  %v90_v19 = vld [vmem:[%s14393_s12 + $0x8c] sm:$0xf]  ;;  %v92_v20 = vld [vmem:[%s14393_s12 + $0xa0] sm:$0xf] }
   0xf   : > { %89 = vst [vmem:[%s14389_s30 + $0x90] sm:$0xf] %v88_v18  ;;  %91 = vst [vmem:[%s14389_s30 + $0x98] sm:$0xf] %v90_v19  ;;  %v94_v21 = vld [vmem:[%s14393_s12 + $0xa4] sm:$0xf] }
  0x10   : > { %93 = vst [vmem:[%s14389_s30 + $0xa0] sm:$0xf] %v92_v20  ;;  %v96_v22 = vld [vmem:[%s14393_s12 + $0xa8] sm:$0xf]  ;;  %v98_v23 = vld [vmem:[%s14393_s12 + $0xac] sm:$0xf] }
  0x11   : > { %95 = vst [vmem:[%s14389_s30 + $0xa8] sm:$0xf] %v94_v21  ;;  %97 = vst [vmem:[%s14389_s30 + $0xb0] sm:$0xf] %v96_v22  ;;  %v100_v24 = vld [vmem:[%s14393_s12 + $0xc0] sm:$0xf] }
  0x12   : > { %99 = vst [vmem:[%s14389_s30 + $0xb8] sm:$0xf] %v98_v23  ;;  %v102_v25 = vld [vmem:[%s14393_s12 + $0xc4] sm:$0xf]  ;;  %v104_v26 = vld [vmem:[%s14393_s12 + $0xc8] sm:$0xf] }
  0x13   : > { %101 = vst [vmem:[%s14389_s30 + $0xc0] sm:$0xf] %v100_v24  ;;  %103 = vst [vmem:[%s14389_s30 + $0xc8] sm:$0xf] %v102_v25  ;;  %v106_v27 = vld [vmem:[%s14393_s12 + $0xcc] sm:$0xf] }
  0x14   : > { %105 = vst [vmem:[%s14389_s30 + $0xd0] sm:$0xf] %v104_v26  ;;  %v108_v28 = vld [vmem:[%s14393_s12 + $0xe0] sm:$0xf]  ;;  %v110_v29 = vld [vmem:[%s14393_s12 + $0xe4] sm:$0xf] }
  0x15   : > { %107 = vst [vmem:[%s14389_s30 + $0xd8] sm:$0xf] %v106_v27  ;;  %109 = vst [vmem:[%s14389_s30 + $0xe0] sm:$0xf] %v108_v28  ;;  %v112_v30 = vld [vmem:[%s14393_s12 + $0xe8] sm:$0xf] }
  0x16   : > { %111 = vst [vmem:[%s14389_s30 + $0xe8] sm:$0xf] %v110_v29  ;;  %v114_v31 = vld [vmem:[%s14393_s12 + $0xec] sm:$0xf]  ;;  %v116_v32 = vld [vmem:[%s14393_s12 + $0x100] sm:$0xf] }
  0x17   : > { %113 = vst [vmem:[%s14389_s30 + $0xf0] sm:$0xf] %v112_v30  ;;  %115 = vst [vmem:[%s14389_s30 + $0xf8] sm:$0xf] %v114_v31  ;;  %v118_v33 = vld [vmem:[%s14393_s12 + $0x104] sm:$0xf] }
  0x18   : > { %117 = vst [vmem:[%s14389_s30 + $0x100] sm:$0xf] %v116_v32  ;;  %v120_v34 = vld [vmem:[%s14393_s12 + $0x108] sm:$0xf]  ;;  %v122_v35 = vld [vmem:[%s14393_s12 + $0x10c] sm:$0xf] }
  0x19   : > { %119 = vst [vmem:[%s14389_s30 + $0x108] sm:$0xf] %v118_v33  ;;  %121 = vst [vmem:[%s14389_s30 + $0x110] sm:$0xf] %v120_v34  ;;  %v124_v36 = vld [vmem:[%s14393_s12 + $0x120] sm:$0xf] }
  0x1a   : > { %123 = vst [vmem:[%s14389_s30 + $0x118] sm:$0xf] %v122_v35  ;;  %v126_v37 = vld [vmem:[%s14393_s12 + $0x124] sm:$0xf]  ;;  %v128_v38 = vld [vmem:[%s14393_s12 + $0x128] sm:$0xf] }
  0x1b   : > { %125 = vst [vmem:[%s14389_s30 + $0x120] sm:$0xf] %v124_v36  ;;  %127 = vst [vmem:[%s14389_s30 + $0x128] sm:$0xf] %v126_v37  ;;  %v130_v39 = vld [vmem:[%s14393_s12 + $0x12c] sm:$0xf] }
  0x1c   : > { %129 = vst [vmem:[%s14389_s30 + $0x130] sm:$0xf] %v128_v38  ;;  %v132_v40 = vld [vmem:[%s14393_s12 + $0x140] sm:$0xf]  ;;  %v134_v41 = vld [vmem:[%s14393_s12 + $0x144] sm:$0xf] }
  0x1d   : > { %131 = vst [vmem:[%s14389_s30 + $0x138] sm:$0xf] %v130_v39  ;;  %133 = vst [vmem:[%s14389_s30 + $0x140] sm:$0xf] %v132_v40  ;;  %v136_v42 = vld [vmem:[%s14393_s12 + $0x148] sm:$0xf] }
  0x1e   : > { %135 = vst [vmem:[%s14389_s30 + $0x148] sm:$0xf] %v134_v41  ;;  %v138_v43 = vld [vmem:[%s14393_s12 + $0x14c] sm:$0xf]  ;;  %v140_v44 = vld [vmem:[%s14393_s12 + $0x160] sm:$0xf] }
  0x1f   : > { %137 = vst [vmem:[%s14389_s30 + $0x150] sm:$0xf] %v136_v42  ;;  %139 = vst [vmem:[%s14389_s30 + $0x158] sm:$0xf] %v138_v43  ;;  %v142_v45 = vld [vmem:[%s14393_s12 + $0x164] sm:$0xf] }
  0x20   : > { %141 = vst [vmem:[%s14389_s30 + $0x160] sm:$0xf] %v140_v44  ;;  %v144_v46 = vld [vmem:[%s14393_s12 + $0x168] sm:$0xf]  ;;  %v146_v47 = vld [vmem:[%s14393_s12 + $0x16c] sm:$0xf] }
  0x21   : > { %143 = vst [vmem:[%s14389_s30 + $0x168] sm:$0xf] %v142_v45  ;;  %145 = vst [vmem:[%s14389_s30 + $0x170] sm:$0xf] %v144_v46  ;;  %v148_v48 = vld [vmem:[%s14393_s12 + $0x180] sm:$0xf] }
  0x22   : > { %147 = vst [vmem:[%s14389_s30 + $0x178] sm:$0xf] %v146_v47  ;;  %v150_v49 = vld [vmem:[%s14393_s12 + $0x184] sm:$0xf]  ;;  %v152_v50 = vld [vmem:[%s14393_s12 + $0x188] sm:$0xf] }
  0x23   : > { %149 = vst [vmem:[%s14389_s30 + $0x180] sm:$0xf] %v148_v48  ;;  %151 = vst [vmem:[%s14389_s30 + $0x188] sm:$0xf] %v150_v49  ;;  %v154_v51 = vld [vmem:[%s14393_s12 + $0x18c] sm:$0xf] }
  0x24   : > { %153 = vst [vmem:[%s14389_s30 + $0x190] sm:$0xf] %v152_v50  ;;  %v156_v52 = vld [vmem:[%s14393_s12 + $0x1a0] sm:$0xf]  ;;  %v158_v53 = vld [vmem:[%s14393_s12 + $0x1a4] sm:$0xf] }
  0x25   : > { %155 = vst [vmem:[%s14389_s30 + $0x198] sm:$0xf] %v154_v51  ;;  %157 = vst [vmem:[%s14389_s30 + $0x1a0] sm:$0xf] %v156_v52  ;;  %v160_v54 = vld [vmem:[%s14393_s12 + $0x1a8] sm:$0xf] }
  0x26   : > { %159 = vst [vmem:[%s14389_s30 + $0x1a8] sm:$0xf] %v158_v53  ;;  %v162_v55 = vld [vmem:[%s14393_s12 + $0x1ac] sm:$0xf]  ;;  %v164_v56 = vld [vmem:[%s14393_s12 + $0x1c0] sm:$0xf] }
  0x27   : > { %161 = vst [vmem:[%s14389_s30 + $0x1b0] sm:$0xf] %v160_v54  ;;  %163 = vst [vmem:[%s14389_s30 + $0x1b8] sm:$0xf] %v162_v55  ;;  %v166_v57 = vld [vmem:[%s14393_s12 + $0x1c4] sm:$0xf] }
  0x28   : > { %165 = vst [vmem:[%s14389_s30 + $0x1c0] sm:$0xf] %v164_v56  ;;  %v168_v58 = vld [vmem:[%s14393_s12 + $0x1c8] sm:$0xf]  ;;  %v170_v59 = vld [vmem:[%s14393_s12 + $0x1cc] sm:$0xf] }
  0x29   : > { %167 = vst [vmem:[%s14389_s30 + $0x1c8] sm:$0xf] %v166_v57  ;;  %169 = vst [vmem:[%s14389_s30 + $0x1d0] sm:$0xf] %v168_v58  ;;  %v172_v60 = vld [vmem:[%s14393_s12 + $0x1e0] sm:$0xf] }
  0x2a   : > { %171 = vst [vmem:[%s14389_s30 + $0x1d8] sm:$0xf] %v170_v59  ;;  %v174_v61 = vld [vmem:[%s14393_s12 + $0x1e4] sm:$0xf]  ;;  %v176_v62 = vld [vmem:[%s14393_s12 + $0x1e8] sm:$0xf] }
  0x2b   : > { %173 = vst [vmem:[%s14389_s30 + $0x1e0] sm:$0xf] %v172_v60  ;;  %175 = vst [vmem:[%s14389_s30 + $0x1e8] sm:$0xf] %v174_v61  ;;  %v178_v63 = vld [vmem:[%s14393_s12 + $0x1ec] sm:$0xf] }
  0x2c   : > { %177 = vst [vmem:[%s14389_s30 + $0x1f0] sm:$0xf] %v176_v62  ;;  %v180_v0 = vld [vmem:[%s14393_s12 + $0x200] sm:$0xf]  ;;  %v182_v1 = vld [vmem:[%s14393_s12 + $0x204] sm:$0xf] }
  0x2d   : > { %179 = vst [vmem:[%s14389_s30 + $0x1f8] sm:$0xf] %v178_v63  ;;  %181 = vst [vmem:[%s14389_s30 + $0x200] sm:$0xf] %v180_v0  ;;  %v184_v2 = vld [vmem:[%s14393_s12 + $0x208] sm:$0xf] }
  0x2e   : > { %183 = vst [vmem:[%s14389_s30 + $0x208] sm:$0xf] %v182_v1  ;;  %v186_v3 = vld [vmem:[%s14393_s12 + $0x20c] sm:$0xf]  ;;  %v188_v4 = vld [vmem:[%s14393_s12 + $0x220] sm:$0xf] }
  0x2f   : > { %185 = vst [vmem:[%s14389_s30 + $0x210] sm:$0xf] %v184_v2  ;;  %187 = vst [vmem:[%s14389_s30 + $0x218] sm:$0xf] %v186_v3  ;;  %v190_v5 = vld [vmem:[%s14393_s12 + $0x224] sm:$0xf] }
  0x30   : > { %189 = vst [vmem:[%s14389_s30 + $0x220] sm:$0xf] %v188_v4  ;;  %v192_v6 = vld [vmem:[%s14393_s12 + $0x228] sm:$0xf]  ;;  %v194_v7 = vld [vmem:[%s14393_s12 + $0x22c] sm:$0xf] }
  0x31   : > { %191 = vst [vmem:[%s14389_s30 + $0x228] sm:$0xf] %v190_v5  ;;  %193 = vst [vmem:[%s14389_s30 + $0x230] sm:$0xf] %v192_v6  ;;  %v196_v8 = vld [vmem:[%s14393_s12 + $0x240] sm:$0xf] }
  0x32   : > { %195 = vst [vmem:[%s14389_s30 + $0x238] sm:$0xf] %v194_v7  ;;  %v198_v9 = vld [vmem:[%s14393_s12 + $0x244] sm:$0xf]  ;;  %v200_v10 = vld [vmem:[%s14393_s12 + $0x248] sm:$0xf] }
  0x33   : > { %197 = vst [vmem:[%s14389_s30 + $0x240] sm:$0xf] %v196_v8  ;;  %199 = vst [vmem:[%s14389_s30 + $0x248] sm:$0xf] %v198_v9  ;;  %v202_v11 = vld [vmem:[%s14393_s12 + $0x24c] sm:$0xf] }
  0x34   : > { %201 = vst [vmem:[%s14389_s30 + $0x250] sm:$0xf] %v200_v10  ;;  %v204_v12 = vld [vmem:[%s14393_s12 + $0x260] sm:$0xf]  ;;  %v206_v13 = vld [vmem:[%s14393_s12 + $0x264] sm:$0xf] }
  0x35   : > { %203 = vst [vmem:[%s14389_s30 + $0x258] sm:$0xf] %v202_v11  ;;  %205 = vst [vmem:[%s14389_s30 + $0x260] sm:$0xf] %v204_v12  ;;  %v208_v14 = vld [vmem:[%s14393_s12 + $0x268] sm:$0xf] }
  0x36   : > { %207 = vst [vmem:[%s14389_s30 + $0x268] sm:$0xf] %v206_v13  ;;  %v210_v15 = vld [vmem:[%s14393_s12 + $0x26c] sm:$0xf]  ;;  %v212_v16 = vld [vmem:[%s14393_s12 + $0x280] sm:$0xf] }
  0x37   : > { %209 = vst [vmem:[%s14389_s30 + $0x270] sm:$0xf] %v208_v14  ;;  %211 = vst [vmem:[%s14389_s30 + $0x278] sm:$0xf] %v210_v15  ;;  %v214_v17 = vld [vmem:[%s14393_s12 + $0x284] sm:$0xf] }
  0x38   : > { %213 = vst [vmem:[%s14389_s30 + $0x280] sm:$0xf] %v212_v16  ;;  %v216_v18 = vld [vmem:[%s14393_s12 + $0x288] sm:$0xf]  ;;  %v218_v19 = vld [vmem:[%s14393_s12 + $0x28c] sm:$0xf] }
  0x39   : > { %215 = vst [vmem:[%s14389_s30 + $0x288] sm:$0xf] %v214_v17  ;;  %217 = vst [vmem:[%s14389_s30 + $0x290] sm:$0xf] %v216_v18  ;;  %v220_v20 = vld [vmem:[%s14393_s12 + $0x2a0] sm:$0xf] }
  0x3a   : > { %219 = vst [vmem:[%s14389_s30 + $0x298] sm:$0xf] %v218_v19  ;;  %v222_v21 = vld [vmem:[%s14393_s12 + $0x2a4] sm:$0xf]  ;;  %v224_v22 = vld [vmem:[%s14393_s12 + $0x2a8] sm:$0xf] }
  0x3b   : > { %221 = vst [vmem:[%s14389_s30 + $0x2a0] sm:$0xf] %v220_v20  ;;  %223 = vst [vmem:[%s14389_s30 + $0x2a8] sm:$0xf] %v222_v21  ;;  %v226_v23 = vld [vmem:[%s14393_s12 + $0x2ac] sm:$0xf] }
  0x3c   : > { %225 = vst [vmem:[%s14389_s30 + $0x2b0] sm:$0xf] %v224_v22  ;;  %v228_v24 = vld [vmem:[%s14393_s12 + $0x2c0] sm:$0xf]  ;;  %v230_v25 = vld [vmem:[%s14393_s12 + $0x2c4] sm:$0xf] }
  0x3d   : > { %227 = vst [vmem:[%s14389_s30 + $0x2b8] sm:$0xf] %v226_v23  ;;  %229 = vst [vmem:[%s14389_s30 + $0x2c0] sm:$0xf] %v228_v24  ;;  %v232_v26 = vld [vmem:[%s14393_s12 + $0x2c8] sm:$0xf] }
  0x3e   : > { %231 = vst [vmem:[%s14389_s30 + $0x2c8] sm:$0xf] %v230_v25  ;;  %v234_v27 = vld [vmem:[%s14393_s12 + $0x2cc] sm:$0xf]  ;;  %v236_v28 = vld [vmem:[%s14393_s12 + $0x2e0] sm:$0xf] }
  0x3f   : > { %233 = vst [vmem:[%s14389_s30 + $0x2d0] sm:$0xf] %v232_v26  ;;  %235 = vst [vmem:[%s14389_s30 + $0x2d8] sm:$0xf] %v234_v27  ;;  %v238_v29 = vld [vmem:[%s14393_s12 + $0x2e4] sm:$0xf] }
  0x40   : > { %237 = vst [vmem:[%s14389_s30 + $0x2e0] sm:$0xf] %v236_v28  ;;  %v240_v30 = vld [vmem:[%s14393_s12 + $0x2e8] sm:$0xf]  ;;  %v242_v31 = vld [vmem:[%s14393_s12 + $0x2ec] sm:$0xf] }
  0x41   : > { %239 = vst [vmem:[%s14389_s30 + $0x2e8] sm:$0xf] %v238_v29  ;;  %241 = vst [vmem:[%s14389_s30 + $0x2f0] sm:$0xf] %v240_v30  ;;  %v244_v32 = vld [vmem:[%s14393_s12 + $0x300] sm:$0xf] }
  0x42   : > { %243 = vst [vmem:[%s14389_s30 + $0x2f8] sm:$0xf] %v242_v31  ;;  %v246_v33 = vld [vmem:[%s14393_s12 + $0x304] sm:$0xf]  ;;  %v248_v34 = vld [vmem:[%s14393_s12 + $0x308] sm:$0xf] }
  0x43   : > { %245 = vst [vmem:[%s14389_s30 + $0x300] sm:$0xf] %v244_v32  ;;  %247 = vst [vmem:[%s14389_s30 + $0x308] sm:$0xf] %v246_v33  ;;  %v250_v35 = vld [vmem:[%s14393_s12 + $0x30c] sm:$0xf] }
  0x44   : > { %249 = vst [vmem:[%s14389_s30 + $0x310] sm:$0xf] %v248_v34  ;;  %v252_v36 = vld [vmem:[%s14393_s12 + $0x320] sm:$0xf]  ;;  %v254_v37 = vld [vmem:[%s14393_s12 + $0x324] sm:$0xf] }
  0x45   : > { %251 = vst [vmem:[%s14389_s30 + $0x318] sm:$0xf] %v250_v35  ;;  %253 = vst [vmem:[%s14389_s30 + $0x320] sm:$0xf] %v252_v36  ;;  %v256_v38 = vld [vmem:[%s14393_s12 + $0x328] sm:$0xf] }
  0x46   : > { %255 = vst [vmem:[%s14389_s30 + $0x328] sm:$0xf] %v254_v37  ;;  %v258_v39 = vld [vmem:[%s14393_s12 + $0x32c] sm:$0xf]  ;;  %v260_v40 = vld [vmem:[%s14393_s12 + $0x340] sm:$0xf] }
  0x47   : > { %257 = vst [vmem:[%s14389_s30 + $0x330] sm:$0xf] %v256_v38  ;;  %259 = vst [vmem:[%s14389_s30 + $0x338] sm:$0xf] %v258_v39  ;;  %v262_v41 = vld [vmem:[%s14393_s12 + $0x344] sm:$0xf] }
  0x48   : > { %261 = vst [vmem:[%s14389_s30 + $0x340] sm:$0xf] %v260_v40  ;;  %v264_v42 = vld [vmem:[%s14393_s12 + $0x348] sm:$0xf]  ;;  %v266_v43 = vld [vmem:[%s14393_s12 + $0x34c] sm:$0xf] }
  0x49   : > { %263 = vst [vmem:[%s14389_s30 + $0x348] sm:$0xf] %v262_v41  ;;  %265 = vst [vmem:[%s14389_s30 + $0x350] sm:$0xf] %v264_v42  ;;  %v268_v44 = vld [vmem:[%s14393_s12 + $0x360] sm:$0xf] }
  0x4a   : > { %267 = vst [vmem:[%s14389_s30 + $0x358] sm:$0xf] %v266_v43  ;;  %v270_v45 = vld [vmem:[%s14393_s12 + $0x364] sm:$0xf]  ;;  %v272_v46 = vld [vmem:[%s14393_s12 + $0x368] sm:$0xf] }
  0x4b   : > { %269 = vst [vmem:[%s14389_s30 + $0x360] sm:$0xf] %v268_v44  ;;  %271 = vst [vmem:[%s14389_s30 + $0x368] sm:$0xf] %v270_v45  ;;  %v274_v47 = vld [vmem:[%s14393_s12 + $0x36c] sm:$0xf] }
  0x4c   : > { %273 = vst [vmem:[%s14389_s30 + $0x370] sm:$0xf] %v272_v46  ;;  %v276_v48 = vld [vmem:[%s14393_s12 + $0x380] sm:$0xf]  ;;  %v278_v49 = vld [vmem:[%s14393_s12 + $0x384] sm:$0xf] }
  0x4d   : > { %275 = vst [vmem:[%s14389_s30 + $0x378] sm:$0xf] %v274_v47  ;;  %277 = vst [vmem:[%s14389_s30 + $0x380] sm:$0xf] %v276_v48  ;;  %v280_v50 = vld [vmem:[%s14393_s12 + $0x388] sm:$0xf] }
  0x4e   : > { %279 = vst [vmem:[%s14389_s30 + $0x388] sm:$0xf] %v278_v49  ;;  %v282_v51 = vld [vmem:[%s14393_s12 + $0x38c] sm:$0xf]  ;;  %v284_v52 = vld [vmem:[%s14393_s12 + $0x3a0] sm:$0xf] }
  0x4f   : > { %281 = vst [vmem:[%s14389_s30 + $0x390] sm:$0xf] %v280_v50  ;;  %283 = vst [vmem:[%s14389_s30 + $0x398] sm:$0xf] %v282_v51  ;;  %v286_v53 = vld [vmem:[%s14393_s12 + $0x3a4] sm:$0xf] }
  0x50   : > { %285 = vst [vmem:[%s14389_s30 + $0x3a0] sm:$0xf] %v284_v52  ;;  %v288_v54 = vld [vmem:[%s14393_s12 + $0x3a8] sm:$0xf]  ;;  %v290_v55 = vld [vmem:[%s14393_s12 + $0x3ac] sm:$0xf] }
  0x51   : > { %287 = vst [vmem:[%s14389_s30 + $0x3a8] sm:$0xf] %v286_v53  ;;  %289 = vst [vmem:[%s14389_s30 + $0x3b0] sm:$0xf] %v288_v54  ;;  %v292_v56 = vld [vmem:[%s14393_s12 + $0x3c0] sm:$0xf] }
  0x52   : > { %291 = vst [vmem:[%s14389_s30 + $0x3b8] sm:$0xf] %v290_v55  ;;  %v294_v57 = vld [vmem:[%s14393_s12 + $0x3c4] sm:$0xf]  ;;  %v296_v58 = vld [vmem:[%s14393_s12 + $0x3c8] sm:$0xf] }
  0x53   : > { %293 = vst [vmem:[%s14389_s30 + $0x3c0] sm:$0xf] %v292_v56  ;;  %295 = vst [vmem:[%s14389_s30 + $0x3c8] sm:$0xf] %v294_v57  ;;  %v298_v59 = vld [vmem:[%s14393_s12 + $0x3cc] sm:$0xf] }
  0x54   : > { %297 = vst [vmem:[%s14389_s30 + $0x3d0] sm:$0xf] %v296_v58  ;;  %v300_v60 = vld [vmem:[%s14393_s12 + $0x3e0] sm:$0xf]  ;;  %v302_v61 = vld [vmem:[%s14393_s12 + $0x3e4] sm:$0xf] }
  0x55   : > { %299 = vst [vmem:[%s14389_s30 + $0x3d8] sm:$0xf] %v298_v59  ;;  %301 = vst [vmem:[%s14389_s30 + $0x3e0] sm:$0xf] %v300_v60  ;;  %v304_v62 = vld [vmem:[%s14393_s12 + $0x3e8] sm:$0xf] }
  0x56   : > { %303 = vst [vmem:[%s14389_s30 + $0x3e8] sm:$0xf] %v302_v61  ;;  %v306_v63 = vld [vmem:[%s14393_s12 + $0x3ec] sm:$0xf]  ;;  %v308_v0 = vld [vmem:[%s14393_s12 + $0x400] sm:$0xf] }
  0x57   : > { %305 = vst [vmem:[%s14389_s30 + $0x3f0] sm:$0xf] %v304_v62  ;;  %307 = vst [vmem:[%s14389_s30 + $0x3f8] sm:$0xf] %v306_v63  ;;  %v310_v1 = vld [vmem:[%s14393_s12 + $0x404] sm:$0xf] }
  0x58   : > { %309 = vst [vmem:[%s14389_s30 + $0x400] sm:$0xf] %v308_v0  ;;  %v312_v2 = vld [vmem:[%s14393_s12 + $0x408] sm:$0xf]  ;;  %v314_v3 = vld [vmem:[%s14393_s12 + $0x40c] sm:$0xf] }
  0x59   : > { %311 = vst [vmem:[%s14389_s30 + $0x408] sm:$0xf] %v310_v1  ;;  %313 = vst [vmem:[%s14389_s30 + $0x410] sm:$0xf] %v312_v2  ;;  %v316_v4 = vld [vmem:[%s14393_s12 + $0x420] sm:$0xf] }
  0x5a   : > { %315 = vst [vmem:[%s14389_s30 + $0x418] sm:$0xf] %v314_v3  ;;  %v318_v5 = vld [vmem:[%s14393_s12 + $0x424] sm:$0xf]  ;;  %v320_v6 = vld [vmem:[%s14393_s12 + $0x428] sm:$0xf] }
  0x5b   : > { %317 = vst [vmem:[%s14389_s30 + $0x420] sm:$0xf] %v316_v4  ;;  %319 = vst [vmem:[%s14389_s30 + $0x428] sm:$0xf] %v318_v5  ;;  %v322_v7 = vld [vmem:[%s14393_s12 + $0x42c] sm:$0xf] }
  0x5c   : > { %321 = vst [vmem:[%s14389_s30 + $0x430] sm:$0xf] %v320_v6  ;;  %v324_v8 = vld [vmem:[%s14393_s12 + $0x440] sm:$0xf]  ;;  %v326_v9 = vld [vmem:[%s14393_s12 + $0x444] sm:$0xf] }
  0x5d   : > { %323 = vst [vmem:[%s14389_s30 + $0x438] sm:$0xf] %v322_v7  ;;  %325 = vst [vmem:[%s14389_s30 + $0x440] sm:$0xf] %v324_v8  ;;  %v328_v10 = vld [vmem:[%s14393_s12 + $0x448] sm:$0xf] }
  0x5e   : > { %327 = vst [vmem:[%s14389_s30 + $0x448] sm:$0xf] %v326_v9  ;;  %v330_v11 = vld [vmem:[%s14393_s12 + $0x44c] sm:$0xf]  ;;  %v332_v12 = vld [vmem:[%s14393_s12 + $0x460] sm:$0xf] }
  0x5f   : > { %329 = vst [vmem:[%s14389_s30 + $0x450] sm:$0xf] %v328_v10  ;;  %331 = vst [vmem:[%s14389_s30 + $0x458] sm:$0xf] %v330_v11  ;;  %v334_v13 = vld [vmem:[%s14393_s12 + $0x464] sm:$0xf] }
  0x60   : > { %333 = vst [vmem:[%s14389_s30 + $0x460] sm:$0xf] %v332_v12  ;;  %v336_v14 = vld [vmem:[%s14393_s12 + $0x468] sm:$0xf]  ;;  %v338_v15 = vld [vmem:[%s14393_s12 + $0x46c] sm:$0xf] }
  0x61   : > { %335 = vst [vmem:[%s14389_s30 + $0x468] sm:$0xf] %v334_v13  ;;  %337 = vst [vmem:[%s14389_s30 + $0x470] sm:$0xf] %v336_v14  ;;  %v340_v16 = vld [vmem:[%s14393_s12 + $0x480] sm:$0xf] }
  0x62   : > { %339 = vst [vmem:[%s14389_s30 + $0x478] sm:$0xf] %v338_v15  ;;  %v342_v17 = vld [vmem:[%s14393_s12 + $0x484] sm:$0xf]  ;;  %v344_v18 = vld [vmem:[%s14393_s12 + $0x488] sm:$0xf] }
  0x63   : > { %341 = vst [vmem:[%s14389_s30 + $0x480] sm:$0xf] %v340_v16  ;;  %343 = vst [vmem:[%s14389_s30 + $0x488] sm:$0xf] %v342_v17  ;;  %v346_v19 = vld [vmem:[%s14393_s12 + $0x48c] sm:$0xf] }
  0x64   : > { %345 = vst [vmem:[%s14389_s30 + $0x490] sm:$0xf] %v344_v18  ;;  %v348_v20 = vld [vmem:[%s14393_s12 + $0x4a0] sm:$0xf]  ;;  %v350_v21 = vld [vmem:[%s14393_s12 + $0x4a4] sm:$0xf] }
  0x65   : > { %347 = vst [vmem:[%s14389_s30 + $0x498] sm:$0xf] %v346_v19  ;;  %349 = vst [vmem:[%s14389_s30 + $0x4a0] sm:$0xf] %v348_v20  ;;  %v352_v22 = vld [vmem:[%s14393_s12 + $0x4a8] sm:$0xf] }
  0x66   : > { %351 = vst [vmem:[%s14389_s30 + $0x4a8] sm:$0xf] %v350_v21  ;;  %v354_v23 = vld [vmem:[%s14393_s12 + $0x4ac] sm:$0xf]  ;;  %v356_v24 = vld [vmem:[%s14393_s12 + $0x4c0] sm:$0xf] }
  0x67   : > { %353 = vst [vmem:[%s14389_s30 + $0x4b0] sm:$0xf] %v352_v22  ;;  %355 = vst [vmem:[%s14389_s30 + $0x4b8] sm:$0xf] %v354_v23  ;;  %v358_v25 = vld [vmem:[%s14393_s12 + $0x4c4] sm:$0xf] }
  0x68   : > { %357 = vst [vmem:[%s14389_s30 + $0x4c0] sm:$0xf] %v356_v24  ;;  %v360_v26 = vld [vmem:[%s14393_s12 + $0x4c8] sm:$0xf]  ;;  %v362_v27 = vld [vmem:[%s14393_s12 + $0x4cc] sm:$0xf] }
  0x69   : > { %359 = vst [vmem:[%s14389_s30 + $0x4c8] sm:$0xf] %v358_v25  ;;  %361 = vst [vmem:[%s14389_s30 + $0x4d0] sm:$0xf] %v360_v26  ;;  %v364_v28 = vld [vmem:[%s14393_s12 + $0x4e0] sm:$0xf] }
  0x6a   : > { %363 = vst [vmem:[%s14389_s30 + $0x4d8] sm:$0xf] %v362_v27  ;;  %v366_v29 = vld [vmem:[%s14393_s12 + $0x4e4] sm:$0xf]  ;;  %v368_v30 = vld [vmem:[%s14393_s12 + $0x4e8] sm:$0xf] }
  0x6b   : > { %365 = vst [vmem:[%s14389_s30 + $0x4e0] sm:$0xf] %v364_v28  ;;  %367 = vst [vmem:[%s14389_s30 + $0x4e8] sm:$0xf] %v366_v29  ;;  %v370_v31 = vld [vmem:[%s14393_s12 + $0x4ec] sm:$0xf] }
  0x6c   : > { %369 = vst [vmem:[%s14389_s30 + $0x4f0] sm:$0xf] %v368_v30  ;;  %v372_v32 = vld [vmem:[%s14393_s12 + $0x500] sm:$0xf]  ;;  %v374_v33 = vld [vmem:[%s14393_s12 + $0x504] sm:$0xf] }
  0x6d   : > { %371 = vst [vmem:[%s14389_s30 + $0x4f8] sm:$0xf] %v370_v31  ;;  %373 = vst [vmem:[%s14389_s30 + $0x500] sm:$0xf] %v372_v32  ;;  %v376_v34 = vld [vmem:[%s14393_s12 + $0x508] sm:$0xf] }
  0x6e   : > { %375 = vst [vmem:[%s14389_s30 + $0x508] sm:$0xf] %v374_v33  ;;  %v378_v35 = vld [vmem:[%s14393_s12 + $0x50c] sm:$0xf]  ;;  %v380_v36 = vld [vmem:[%s14393_s12 + $0x520] sm:$0xf] }
  0x6f   : > { %377 = vst [vmem:[%s14389_s30 + $0x510] sm:$0xf] %v376_v34  ;;  %379 = vst [vmem:[%s14389_s30 + $0x518] sm:$0xf] %v378_v35  ;;  %v382_v37 = vld [vmem:[%s14393_s12 + $0x524] sm:$0xf] }
  0x70   : > { %381 = vst [vmem:[%s14389_s30 + $0x520] sm:$0xf] %v380_v36  ;;  %v384_v38 = vld [vmem:[%s14393_s12 + $0x528] sm:$0xf]  ;;  %v386_v39 = vld [vmem:[%s14393_s12 + $0x52c] sm:$0xf] }
  0x71   : > { %383 = vst [vmem:[%s14389_s30 + $0x528] sm:$0xf] %v382_v37  ;;  %385 = vst [vmem:[%s14389_s30 + $0x530] sm:$0xf] %v384_v38  ;;  %v388_v40 = vld [vmem:[%s14393_s12 + $0x540] sm:$0xf] }
  0x72   : > { %387 = vst [vmem:[%s14389_s30 + $0x538] sm:$0xf] %v386_v39  ;;  %v390_v41 = vld [vmem:[%s14393_s12 + $0x544] sm:$0xf]  ;;  %v392_v42 = vld [vmem:[%s14393_s12 + $0x548] sm:$0xf] }
  0x73   : > { %389 = vst [vmem:[%s14389_s30 + $0x540] sm:$0xf] %v388_v40  ;;  %391 = vst [vmem:[%s14389_s30 + $0x548] sm:$0xf] %v390_v41  ;;  %v394_v43 = vld [vmem:[%s14393_s12 + $0x54c] sm:$0xf] }
  0x74   : > { %393 = vst [vmem:[%s14389_s30 + $0x550] sm:$0xf] %v392_v42  ;;  %v396_v44 = vld [vmem:[%s14393_s12 + $0x560] sm:$0xf]  ;;  %v398_v45 = vld [vmem:[%s14393_s12 + $0x564] sm:$0xf] }
  0x75   : > { %395 = vst [vmem:[%s14389_s30 + $0x558] sm:$0xf] %v394_v43  ;;  %397 = vst [vmem:[%s14389_s30 + $0x560] sm:$0xf] %v396_v44  ;;  %v400_v46 = vld [vmem:[%s14393_s12 + $0x568] sm:$0xf] }
  0x76   : > { %399 = vst [vmem:[%s14389_s30 + $0x568] sm:$0xf] %v398_v45  ;;  %v402_v47 = vld [vmem:[%s14393_s12 + $0x56c] sm:$0xf]  ;;  %v404_v48 = vld [vmem:[%s14393_s12 + $0x580] sm:$0xf] }
  0x77   : > { %401 = vst [vmem:[%s14389_s30 + $0x570] sm:$0xf] %v400_v46  ;;  %403 = vst [vmem:[%s14389_s30 + $0x578] sm:$0xf] %v402_v47  ;;  %v406_v49 = vld [vmem:[%s14393_s12 + $0x584] sm:$0xf] }
  0x78   : > { %405 = vst [vmem:[%s14389_s30 + $0x580] sm:$0xf] %v404_v48  ;;  %v408_v50 = vld [vmem:[%s14393_s12 + $0x588] sm:$0xf]  ;;  %v410_v51 = vld [vmem:[%s14393_s12 + $0x58c] sm:$0xf] }
  0x79   : > { %407 = vst [vmem:[%s14389_s30 + $0x588] sm:$0xf] %v406_v49  ;;  %409 = vst [vmem:[%s14389_s30 + $0x590] sm:$0xf] %v408_v50  ;;  %v412_v52 = vld [vmem:[%s14393_s12 + $0x5a0] sm:$0xf] }
  0x7a   : > { %411 = vst [vmem:[%s14389_s30 + $0x598] sm:$0xf] %v410_v51  ;;  %v414_v53 = vld [vmem:[%s14393_s12 + $0x5a4] sm:$0xf]  ;;  %v416_v54 = vld [vmem:[%s14393_s12 + $0x5a8] sm:$0xf] }
  0x7b   : > { %413 = vst [vmem:[%s14389_s30 + $0x5a0] sm:$0xf] %v412_v52  ;;  %415 = vst [vmem:[%s14389_s30 + $0x5a8] sm:$0xf] %v414_v53  ;;  %v418_v55 = vld [vmem:[%s14393_s12 + $0x5ac] sm:$0xf] }
  0x7c   : > { %417 = vst [vmem:[%s14389_s30 + $0x5b0] sm:$0xf] %v416_v54  ;;  %v420_v56 = vld [vmem:[%s14393_s12 + $0x5c0] sm:$0xf]  ;;  %v422_v57 = vld [vmem:[%s14393_s12 + $0x5c4] sm:$0xf] }
  0x7d   : > { %419 = vst [vmem:[%s14389_s30 + $0x5b8] sm:$0xf] %v418_v55  ;;  %421 = vst [vmem:[%s14389_s30 + $0x5c0] sm:$0xf] %v420_v56  ;;  %v424_v58 = vld [vmem:[%s14393_s12 + $0x5c8] sm:$0xf] }
  0x7e   : > { %423 = vst [vmem:[%s14389_s30 + $0x5c8] sm:$0xf] %v422_v57  ;;  %v426_v59 = vld [vmem:[%s14393_s12 + $0x5cc] sm:$0xf]  ;;  %v428_v60 = vld [vmem:[%s14393_s12 + $0x5e0] sm:$0xf] }
  0x7f   : > { %425 = vst [vmem:[%s14389_s30 + $0x5d0] sm:$0xf] %v424_v58  ;;  %427 = vst [vmem:[%s14389_s30 + $0x5d8] sm:$0xf] %v426_v59  ;;  %v430_v61 = vld [vmem:[%s14393_s12 + $0x5e4] sm:$0xf] }
  0x80   : > { %429 = vst [vmem:[%s14389_s30 + $0x5e0] sm:$0xf] %v428_v60  ;;  %v432_v62 = vld [vmem:[%s14393_s12 + $0x5e8] sm:$0xf]  ;;  %v434_v63 = vld [vmem:[%s14393_s12 + $0x5ec] sm:$0xf] }
  0x81   : > { %431 = vst [vmem:[%s14389_s30 + $0x5e8] sm:$0xf] %v430_v61  ;;  %433 = vst [vmem:[%s14389_s30 + $0x5f0] sm:$0xf] %v432_v62  ;;  %v436_v0 = vld [vmem:[%s14393_s12 + $0x600] sm:$0xf] }
  0x82   : > { %435 = vst [vmem:[%s14389_s30 + $0x5f8] sm:$0xf] %v434_v63  ;;  %v438_v1 = vld [vmem:[%s14393_s12 + $0x604] sm:$0xf]  ;;  %v440_v2 = vld [vmem:[%s14393_s12 + $0x608] sm:$0xf] }
  0x83   : > { %437 = vst [vmem:[%s14389_s30 + $0x600] sm:$0xf] %v436_v0  ;;  %439 = vst [vmem:[%s14389_s30 + $0x608] sm:$0xf] %v438_v1  ;;  %v442_v3 = vld [vmem:[%s14393_s12 + $0x60c] sm:$0xf] }
  0x84   : > { %441 = vst [vmem:[%s14389_s30 + $0x610] sm:$0xf] %v440_v2  ;;  %v444_v4 = vld [vmem:[%s14393_s12 + $0x620] sm:$0xf]  ;;  %v446_v5 = vld [vmem:[%s14393_s12 + $0x624] sm:$0xf] }
  0x85   : > { %443 = vst [vmem:[%s14389_s30 + $0x618] sm:$0xf] %v442_v3  ;;  %445 = vst [vmem:[%s14389_s30 + $0x620] sm:$0xf] %v444_v4  ;;  %v448_v6 = vld [vmem:[%s14393_s12 + $0x628] sm:$0xf] }
  0x86   : > { %447 = vst [vmem:[%s14389_s30 + $0x628] sm:$0xf] %v446_v5  ;;  %v450_v7 = vld [vmem:[%s14393_s12 + $0x62c] sm:$0xf]  ;;  %v452_v8 = vld [vmem:[%s14393_s12 + $0x640] sm:$0xf] }
  0x87   : > { %449 = vst [vmem:[%s14389_s30 + $0x630] sm:$0xf] %v448_v6  ;;  %451 = vst [vmem:[%s14389_s30 + $0x638] sm:$0xf] %v450_v7  ;;  %v454_v9 = vld [vmem:[%s14393_s12 + $0x644] sm:$0xf] }
  0x88   : > { %453 = vst [vmem:[%s14389_s30 + $0x640] sm:$0xf] %v452_v8  ;;  %v456_v10 = vld [vmem:[%s14393_s12 + $0x648] sm:$0xf]  ;;  %v458_v11 = vld [vmem:[%s14393_s12 + $0x64c] sm:$0xf] }
  0x89   : > { %455 = vst [vmem:[%s14389_s30 + $0x648] sm:$0xf] %v454_v9  ;;  %457 = vst [vmem:[%s14389_s30 + $0x650] sm:$0xf] %v456_v10  ;;  %v460_v12 = vld [vmem:[%s14393_s12 + $0x660] sm:$0xf] }
  0x8a   : > { %459 = vst [vmem:[%s14389_s30 + $0x658] sm:$0xf] %v458_v11  ;;  %v462_v13 = vld [vmem:[%s14393_s12 + $0x664] sm:$0xf]  ;;  %v464_v14 = vld [vmem:[%s14393_s12 + $0x668] sm:$0xf] }
  0x8b   : > { %461 = vst [vmem:[%s14389_s30 + $0x660] sm:$0xf] %v460_v12  ;;  %463 = vst [vmem:[%s14389_s30 + $0x668] sm:$0xf] %v462_v13  ;;  %v466_v15 = vld [vmem:[%s14393_s12 + $0x66c] sm:$0xf] }
  0x8c   : > { %465 = vst [vmem:[%s14389_s30 + $0x670] sm:$0xf] %v464_v14  ;;  %v468_v16 = vld [vmem:[%s14393_s12 + $0x680] sm:$0xf]  ;;  %v470_v17 = vld [vmem:[%s14393_s12 + $0x684] sm:$0xf] }
  0x8d   : > { %467 = vst [vmem:[%s14389_s30 + $0x678] sm:$0xf] %v466_v15  ;;  %469 = vst [vmem:[%s14389_s30 + $0x680] sm:$0xf] %v468_v16  ;;  %v472_v18 = vld [vmem:[%s14393_s12 + $0x688] sm:$0xf] }
  0x8e   : > { %471 = vst [vmem:[%s14389_s30 + $0x688] sm:$0xf] %v470_v17  ;;  %v474_v19 = vld [vmem:[%s14393_s12 + $0x68c] sm:$0xf]  ;;  %v476_v20 = vld [vmem:[%s14393_s12 + $0x6a0] sm:$0xf] }
  0x8f   : > { %473 = vst [vmem:[%s14389_s30 + $0x690] sm:$0xf] %v472_v18  ;;  %475 = vst [vmem:[%s14389_s30 + $0x698] sm:$0xf] %v474_v19  ;;  %v478_v21 = vld [vmem:[%s14393_s12 + $0x6a4] sm:$0xf] }
  0x90   : > { %477 = vst [vmem:[%s14389_s30 + $0x6a0] sm:$0xf] %v476_v20  ;;  %v480_v22 = vld [vmem:[%s14393_s12 + $0x6a8] sm:$0xf]  ;;  %v482_v23 = vld [vmem:[%s14393_s12 + $0x6ac] sm:$0xf] }
  0x91   : > { %479 = vst [vmem:[%s14389_s30 + $0x6a8] sm:$0xf] %v478_v21  ;;  %481 = vst [vmem:[%s14389_s30 + $0x6b0] sm:$0xf] %v480_v22  ;;  %v484_v24 = vld [vmem:[%s14393_s12 + $0x6c0] sm:$0xf] }
  0x92   : > { %483 = vst [vmem:[%s14389_s30 + $0x6b8] sm:$0xf] %v482_v23  ;;  %v486_v25 = vld [vmem:[%s14393_s12 + $0x6c4] sm:$0xf]  ;;  %v488_v26 = vld [vmem:[%s14393_s12 + $0x6c8] sm:$0xf] }
  0x93   : > { %485 = vst [vmem:[%s14389_s30 + $0x6c0] sm:$0xf] %v484_v24  ;;  %487 = vst [vmem:[%s14389_s30 + $0x6c8] sm:$0xf] %v486_v25  ;;  %v490_v27 = vld [vmem:[%s14393_s12 + $0x6cc] sm:$0xf] }
  0x94   : > { %489 = vst [vmem:[%s14389_s30 + $0x6d0] sm:$0xf] %v488_v26  ;;  %v492_v28 = vld [vmem:[%s14393_s12 + $0x6e0] sm:$0xf]  ;;  %v494_v29 = vld [vmem:[%s14393_s12 + $0x6e4] sm:$0xf] }
  0x95   : > { %491 = vst [vmem:[%s14389_s30 + $0x6d8] sm:$0xf] %v490_v27  ;;  %493 = vst [vmem:[%s14389_s30 + $0x6e0] sm:$0xf] %v492_v28  ;;  %v496_v30 = vld [vmem:[%s14393_s12 + $0x6e8] sm:$0xf] }
  0x96   : > { %495 = vst [vmem:[%s14389_s30 + $0x6e8] sm:$0xf] %v494_v29  ;;  %v498_v31 = vld [vmem:[%s14393_s12 + $0x6ec] sm:$0xf]  ;;  %v500_v32 = vld [vmem:[%s14393_s12 + $0x700] sm:$0xf] }
  0x97   : > { %497 = vst [vmem:[%s14389_s30 + $0x6f0] sm:$0xf] %v496_v30  ;;  %499 = vst [vmem:[%s14389_s30 + $0x6f8] sm:$0xf] %v498_v31  ;;  %v502_v33 = vld [vmem:[%s14393_s12 + $0x704] sm:$0xf] }
  0x98   : > { %501 = vst [vmem:[%s14389_s30 + $0x700] sm:$0xf] %v500_v32  ;;  %v504_v34 = vld [vmem:[%s14393_s12 + $0x708] sm:$0xf]  ;;  %v506_v35 = vld [vmem:[%s14393_s12 + $0x70c] sm:$0xf] }
  0x99   : > { %503 = vst [vmem:[%s14389_s30 + $0x708] sm:$0xf] %v502_v33  ;;  %505 = vst [vmem:[%s14389_s30 + $0x710] sm:$0xf] %v504_v34  ;;  %v508_v36 = vld [vmem:[%s14393_s12 + $0x720] sm:$0xf] }
  0x9a   : > { %507 = vst [vmem:[%s14389_s30 + $0x718] sm:$0xf] %v506_v35  ;;  %v510_v37 = vld [vmem:[%s14393_s12 + $0x724] sm:$0xf]  ;;  %v512_v38 = vld [vmem:[%s14393_s12 + $0x728] sm:$0xf] }
  0x9b   : > { %509 = vst [vmem:[%s14389_s30 + $0x720] sm:$0xf] %v508_v36  ;;  %511 = vst [vmem:[%s14389_s30 + $0x728] sm:$0xf] %v510_v37  ;;  %v514_v39 = vld [vmem:[%s14393_s12 + $0x72c] sm:$0xf] }
  0x9c   : > { %513 = vst [vmem:[%s14389_s30 + $0x730] sm:$0xf] %v512_v38  ;;  %v516_v40 = vld [vmem:[%s14393_s12 + $0x740] sm:$0xf]  ;;  %v518_v41 = vld [vmem:[%s14393_s12 + $0x744] sm:$0xf] }
  0x9d   : > { %515 = vst [vmem:[%s14389_s30 + $0x738] sm:$0xf] %v514_v39  ;;  %517 = vst [vmem:[%s14389_s30 + $0x740] sm:$0xf] %v516_v40  ;;  %v520_v42 = vld [vmem:[%s14393_s12 + $0x748] sm:$0xf] }
  0x9e   : > { %519 = vst [vmem:[%s14389_s30 + $0x748] sm:$0xf] %v518_v41  ;;  %v522_v43 = vld [vmem:[%s14393_s12 + $0x74c] sm:$0xf]  ;;  %v524_v44 = vld [vmem:[%s14393_s12 + $0x760] sm:$0xf] }
  0x9f   : > { %521 = vst [vmem:[%s14389_s30 + $0x750] sm:$0xf] %v520_v42  ;;  %523 = vst [vmem:[%s14389_s30 + $0x758] sm:$0xf] %v522_v43  ;;  %v526_v45 = vld [vmem:[%s14393_s12 + $0x764] sm:$0xf] }
  0xa0   : > { %525 = vst [vmem:[%s14389_s30 + $0x760] sm:$0xf] %v524_v44  ;;  %v528_v46 = vld [vmem:[%s14393_s12 + $0x768] sm:$0xf]  ;;  %v530_v47 = vld [vmem:[%s14393_s12 + $0x76c] sm:$0xf] }
  0xa1   : > { %527 = vst [vmem:[%s14389_s30 + $0x768] sm:$0xf] %v526_v45  ;;  %529 = vst [vmem:[%s14389_s30 + $0x770] sm:$0xf] %v528_v46  ;;  %v532_v48 = vld [vmem:[%s14393_s12 + $0x780] sm:$0xf] }
  0xa2   : > { %531 = vst [vmem:[%s14389_s30 + $0x778] sm:$0xf] %v530_v47  ;;  %v534_v49 = vld [vmem:[%s14393_s12 + $0x784] sm:$0xf]  ;;  %v536_v50 = vld [vmem:[%s14393_s12 + $0x788] sm:$0xf] }
  0xa3   : > { %533 = vst [vmem:[%s14389_s30 + $0x780] sm:$0xf] %v532_v48  ;;  %535 = vst [vmem:[%s14389_s30 + $0x788] sm:$0xf] %v534_v49  ;;  %v538_v51 = vld [vmem:[%s14393_s12 + $0x78c] sm:$0xf] }
  0xa4   : > { %537 = vst [vmem:[%s14389_s30 + $0x790] sm:$0xf] %v536_v50  ;;  %v540_v52 = vld [vmem:[%s14393_s12 + $0x7a0] sm:$0xf]  ;;  %v542_v53 = vld [vmem:[%s14393_s12 + $0x7a4] sm:$0xf] }
  0xa5   : > { %539 = vst [vmem:[%s14389_s30 + $0x798] sm:$0xf] %v538_v51  ;;  %541 = vst [vmem:[%s14389_s30 + $0x7a0] sm:$0xf] %v540_v52  ;;  %v544_v54 = vld [vmem:[%s14393_s12 + $0x7a8] sm:$0xf] }
  0xa6   : > { %543 = vst [vmem:[%s14389_s30 + $0x7a8] sm:$0xf] %v542_v53  ;;  %v546_v55 = vld [vmem:[%s14393_s12 + $0x7ac] sm:$0xf]  ;;  %v548_v56 = vld [vmem:[%s14393_s12 + $0x7c0] sm:$0xf] }
  0xa7   : > { %545 = vst [vmem:[%s14389_s30 + $0x7b0] sm:$0xf] %v544_v54  ;;  %547 = vst [vmem:[%s14389_s30 + $0x7b8] sm:$0xf] %v546_v55  ;;  %v550_v57 = vld [vmem:[%s14393_s12 + $0x7c4] sm:$0xf] }
  0xa8   : > { %549 = vst [vmem:[%s14389_s30 + $0x7c0] sm:$0xf] %v548_v56  ;;  %v552_v58 = vld [vmem:[%s14393_s12 + $0x7c8] sm:$0xf]  ;;  %v554_v59 = vld [vmem:[%s14393_s12 + $0x7cc] sm:$0xf] }
  0xa9   : > { %551 = vst [vmem:[%s14389_s30 + $0x7c8] sm:$0xf] %v550_v57  ;;  %553 = vst [vmem:[%s14389_s30 + $0x7d0] sm:$0xf] %v552_v58  ;;  %v556_v60 = vld [vmem:[%s14393_s12 + $0x7e0] sm:$0xf] }
  0xaa   : > { %555 = vst [vmem:[%s14389_s30 + $0x7d8] sm:$0xf] %v554_v59  ;;  %v558_v61 = vld [vmem:[%s14393_s12 + $0x7e4] sm:$0xf]  ;;  %v560_v62 = vld [vmem:[%s14393_s12 + $0x7e8] sm:$0xf] }
  0xab   : > { %557 = vst [vmem:[%s14389_s30 + $0x7e0] sm:$0xf] %v556_v60  ;;  %559 = vst [vmem:[%s14389_s30 + $0x7e8] sm:$0xf] %v558_v61  ;;  %v562_v63 = vld [vmem:[%s14393_s12 + $0x7ec] sm:$0xf] }
  0xac   : > { %561 = vst [vmem:[%s14389_s30 + $0x7f0] sm:$0xf] %v560_v62  ;;  %v564_v0 = vld [vmem:[%s14393_s12 + $0x800] sm:$0xf]  ;;  %v566_v1 = vld [vmem:[%s14393_s12 + $0x804] sm:$0xf] }
  0xad   : > { %563 = vst [vmem:[%s14389_s30 + $0x7f8] sm:$0xf] %v562_v63  ;;  %565 = vst [vmem:[%s14389_s30 + $0x800] sm:$0xf] %v564_v0  ;;  %v568_v2 = vld [vmem:[%s14393_s12 + $0x808] sm:$0xf] }
  0xae   : > { %567 = vst [vmem:[%s14389_s30 + $0x808] sm:$0xf] %v566_v1  ;;  %v570_v3 = vld [vmem:[%s14393_s12 + $0x80c] sm:$0xf]  ;;  %v572_v4 = vld [vmem:[%s14393_s12 + $0x820] sm:$0xf] }
  0xaf   : > { %569 = vst [vmem:[%s14389_s30 + $0x810] sm:$0xf] %v568_v2  ;;  %571 = vst [vmem:[%s14389_s30 + $0x818] sm:$0xf] %v570_v3  ;;  %v574_v5 = vld [vmem:[%s14393_s12 + $0x824] sm:$0xf] }
  0xb0   : > { %573 = vst [vmem:[%s14389_s30 + $0x820] sm:$0xf] %v572_v4  ;;  %v576_v6 = vld [vmem:[%s14393_s12 + $0x828] sm:$0xf]  ;;  %v578_v7 = vld [vmem:[%s14393_s12 + $0x82c] sm:$0xf] }
  0xb1   : > { %575 = vst [vmem:[%s14389_s30 + $0x828] sm:$0xf] %v574_v5  ;;  %577 = vst [vmem:[%s14389_s30 + $0x830] sm:$0xf] %v576_v6  ;;  %v580_v8 = vld [vmem:[%s14393_s12 + $0x840] sm:$0xf] }
  0xb2   : > { %579 = vst [vmem:[%s14389_s30 + $0x838] sm:$0xf] %v578_v7  ;;  %v582_v9 = vld [vmem:[%s14393_s12 + $0x844] sm:$0xf]  ;;  %v584_v10 = vld [vmem:[%s14393_s12 + $0x848] sm:$0xf] }
  0xb3   : > { %581 = vst [vmem:[%s14389_s30 + $0x840] sm:$0xf] %v580_v8  ;;  %583 = vst [vmem:[%s14389_s30 + $0x848] sm:$0xf] %v582_v9  ;;  %v586_v11 = vld [vmem:[%s14393_s12 + $0x84c] sm:$0xf] }
  0xb4   : > { %585 = vst [vmem:[%s14389_s30 + $0x850] sm:$0xf] %v584_v10  ;;  %v588_v12 = vld [vmem:[%s14393_s12 + $0x860] sm:$0xf]  ;;  %v590_v13 = vld [vmem:[%s14393_s12 + $0x864] sm:$0xf] }
  0xb5   : > { %587 = vst [vmem:[%s14389_s30 + $0x858] sm:$0xf] %v586_v11  ;;  %589 = vst [vmem:[%s14389_s30 + $0x860] sm:$0xf] %v588_v12  ;;  %v592_v14 = vld [vmem:[%s14393_s12 + $0x868] sm:$0xf] }
  0xb6   : > { %591 = vst [vmem:[%s14389_s30 + $0x868] sm:$0xf] %v590_v13  ;;  %v594_v15 = vld [vmem:[%s14393_s12 + $0x86c] sm:$0xf]  ;;  %v596_v16 = vld [vmem:[%s14393_s12 + $0x880] sm:$0xf] }
  0xb7   : > { %593 = vst [vmem:[%s14389_s30 + $0x870] sm:$0xf] %v592_v14  ;;  %595 = vst [vmem:[%s14389_s30 + $0x878] sm:$0xf] %v594_v15  ;;  %v598_v17 = vld [vmem:[%s14393_s12 + $0x884] sm:$0xf] }
  0xb8   : > { %597 = vst [vmem:[%s14389_s30 + $0x880] sm:$0xf] %v596_v16  ;;  %v600_v18 = vld [vmem:[%s14393_s12 + $0x888] sm:$0xf]  ;;  %v602_v19 = vld [vmem:[%s14393_s12 + $0x88c] sm:$0xf] }
  0xb9   : > { %599 = vst [vmem:[%s14389_s30 + $0x888] sm:$0xf] %v598_v17  ;;  %601 = vst [vmem:[%s14389_s30 + $0x890] sm:$0xf] %v600_v18  ;;  %v604_v20 = vld [vmem:[%s14393_s12 + $0x8a0] sm:$0xf] }
  0xba   : > { %603 = vst [vmem:[%s14389_s30 + $0x898] sm:$0xf] %v602_v19  ;;  %v606_v21 = vld [vmem:[%s14393_s12 + $0x8a4] sm:$0xf]  ;;  %v608_v22 = vld [vmem:[%s14393_s12 + $0x8a8] sm:$0xf] }
  0xbb   : > { %605 = vst [vmem:[%s14389_s30 + $0x8a0] sm:$0xf] %v604_v20  ;;  %607 = vst [vmem:[%s14389_s30 + $0x8a8] sm:$0xf] %v606_v21  ;;  %v610_v23 = vld [vmem:[%s14393_s12 + $0x8ac] sm:$0xf] }
  0xbc   : > { %609 = vst [vmem:[%s14389_s30 + $0x8b0] sm:$0xf] %v608_v22  ;;  %v612_v24 = vld [vmem:[%s14393_s12 + $0x8c0] sm:$0xf]  ;;  %v614_v25 = vld [vmem:[%s14393_s12 + $0x8c4] sm:$0xf] }
  0xbd   : > { %611 = vst [vmem:[%s14389_s30 + $0x8b8] sm:$0xf] %v610_v23  ;;  %613 = vst [vmem:[%s14389_s30 + $0x8c0] sm:$0xf] %v612_v24  ;;  %v616_v26 = vld [vmem:[%s14393_s12 + $0x8c8] sm:$0xf] }
  0xbe   : > { %615 = vst [vmem:[%s14389_s30 + $0x8c8] sm:$0xf] %v614_v25  ;;  %v618_v27 = vld [vmem:[%s14393_s12 + $0x8cc] sm:$0xf]  ;;  %v620_v28 = vld [vmem:[%s14393_s12 + $0x8e0] sm:$0xf] }
  0xbf   : > { %617 = vst [vmem:[%s14389_s30 + $0x8d0] sm:$0xf] %v616_v26  ;;  %619 = vst [vmem:[%s14389_s30 + $0x8d8] sm:$0xf] %v618_v27  ;;  %v622_v29 = vld [vmem:[%s14393_s12 + $0x8e4] sm:$0xf] }
  0xc0   : > { %621 = vst [vmem:[%s14389_s30 + $0x8e0] sm:$0xf] %v620_v28  ;;  %v624_v30 = vld [vmem:[%s14393_s12 + $0x8e8] sm:$0xf]  ;;  %v626_v31 = vld [vmem:[%s14393_s12 + $0x8ec] sm:$0xf] }
  0xc1   : > { %623 = vst [vmem:[%s14389_s30 + $0x8e8] sm:$0xf] %v622_v29  ;;  %625 = vst [vmem:[%s14389_s30 + $0x8f0] sm:$0xf] %v624_v30  ;;  %v628_v32 = vld [vmem:[%s14393_s12 + $0x900] sm:$0xf] }
  0xc2   : > { %627 = vst [vmem:[%s14389_s30 + $0x8f8] sm:$0xf] %v626_v31  ;;  %v630_v33 = vld [vmem:[%s14393_s12 + $0x904] sm:$0xf]  ;;  %v632_v34 = vld [vmem:[%s14393_s12 + $0x908] sm:$0xf] }
  0xc3   : > { %629 = vst [vmem:[%s14389_s30 + $0x900] sm:$0xf] %v628_v32  ;;  %631 = vst [vmem:[%s14389_s30 + $0x908] sm:$0xf] %v630_v33  ;;  %v634_v35 = vld [vmem:[%s14393_s12 + $0x90c] sm:$0xf] }
  0xc4   : > { %633 = vst [vmem:[%s14389_s30 + $0x910] sm:$0xf] %v632_v34  ;;  %v636_v36 = vld [vmem:[%s14393_s12 + $0x920] sm:$0xf]  ;;  %v638_v37 = vld [vmem:[%s14393_s12 + $0x924] sm:$0xf] }
  0xc5   : > { %635 = vst [vmem:[%s14389_s30 + $0x918] sm:$0xf] %v634_v35  ;;  %637 = vst [vmem:[%s14389_s30 + $0x920] sm:$0xf] %v636_v36  ;;  %v640_v38 = vld [vmem:[%s14393_s12 + $0x928] sm:$0xf] }
  0xc6   : > { %639 = vst [vmem:[%s14389_s30 + $0x928] sm:$0xf] %v638_v37  ;;  %v642_v39 = vld [vmem:[%s14393_s12 + $0x92c] sm:$0xf]  ;;  %v644_v40 = vld [vmem:[%s14393_s12 + $0x940] sm:$0xf] }
  0xc7   : > { %641 = vst [vmem:[%s14389_s30 + $0x930] sm:$0xf] %v640_v38  ;;  %643 = vst [vmem:[%s14389_s30 + $0x938] sm:$0xf] %v642_v39  ;;  %v646_v41 = vld [vmem:[%s14393_s12 + $0x944] sm:$0xf] }
  0xc8   : > { %645 = vst [vmem:[%s14389_s30 + $0x940] sm:$0xf] %v644_v40  ;;  %v648_v42 = vld [vmem:[%s14393_s12 + $0x948] sm:$0xf]  ;;  %v650_v43 = vld [vmem:[%s14393_s12 + $0x94c] sm:$0xf] }
  0xc9   : > { %647 = vst [vmem:[%s14389_s30 + $0x948] sm:$0xf] %v646_v41  ;;  %649 = vst [vmem:[%s14389_s30 + $0x950] sm:$0xf] %v648_v42  ;;  %v652_v44 = vld [vmem:[%s14393_s12 + $0x960] sm:$0xf] }
  0xca   : > { %651 = vst [vmem:[%s14389_s30 + $0x958] sm:$0xf] %v650_v43  ;;  %v654_v45 = vld [vmem:[%s14393_s12 + $0x964] sm:$0xf]  ;;  %v656_v46 = vld [vmem:[%s14393_s12 + $0x968] sm:$0xf] }
  0xcb   : > { %653 = vst [vmem:[%s14389_s30 + $0x960] sm:$0xf] %v652_v44  ;;  %655 = vst [vmem:[%s14389_s30 + $0x968] sm:$0xf] %v654_v45  ;;  %v658_v47 = vld [vmem:[%s14393_s12 + $0x96c] sm:$0xf] }
  0xcc   : > { %657 = vst [vmem:[%s14389_s30 + $0x970] sm:$0xf] %v656_v46  ;;  %v660_v48 = vld [vmem:[%s14393_s12 + $0x980] sm:$0xf]  ;;  %v662_v49 = vld [vmem:[%s14393_s12 + $0x984] sm:$0xf] }
  0xcd   : > { %659 = vst [vmem:[%s14389_s30 + $0x978] sm:$0xf] %v658_v47  ;;  %661 = vst [vmem:[%s14389_s30 + $0x980] sm:$0xf] %v660_v48  ;;  %v664_v50 = vld [vmem:[%s14393_s12 + $0x988] sm:$0xf] }
  0xce   : > { %663 = vst [vmem:[%s14389_s30 + $0x988] sm:$0xf] %v662_v49  ;;  %v666_v51 = vld [vmem:[%s14393_s12 + $0x98c] sm:$0xf]  ;;  %v668_v52 = vld [vmem:[%s14393_s12 + $0x9a0] sm:$0xf] }
  0xcf   : > { %665 = vst [vmem:[%s14389_s30 + $0x990] sm:$0xf] %v664_v50  ;;  %667 = vst [vmem:[%s14389_s30 + $0x998] sm:$0xf] %v666_v51  ;;  %v670_v53 = vld [vmem:[%s14393_s12 + $0x9a4] sm:$0xf] }
  0xd0   : > { %669 = vst [vmem:[%s14389_s30 + $0x9a0] sm:$0xf] %v668_v52  ;;  %v672_v54 = vld [vmem:[%s14393_s12 + $0x9a8] sm:$0xf]  ;;  %v674_v55 = vld [vmem:[%s14393_s12 + $0x9ac] sm:$0xf] }
  0xd1   : > { %671 = vst [vmem:[%s14389_s30 + $0x9a8] sm:$0xf] %v670_v53  ;;  %673 = vst [vmem:[%s14389_s30 + $0x9b0] sm:$0xf] %v672_v54  ;;  %v676_v56 = vld [vmem:[%s14393_s12 + $0x9c0] sm:$0xf] }
  0xd2   : > { %675 = vst [vmem:[%s14389_s30 + $0x9b8] sm:$0xf] %v674_v55  ;;  %v678_v57 = vld [vmem:[%s14393_s12 + $0x9c4] sm:$0xf]  ;;  %v680_v58 = vld [vmem:[%s14393_s12 + $0x9c8] sm:$0xf] }
  0xd3   : > { %677 = vst [vmem:[%s14389_s30 + $0x9c0] sm:$0xf] %v676_v56  ;;  %679 = vst [vmem:[%s14389_s30 + $0x9c8] sm:$0xf] %v678_v57  ;;  %v682_v59 = vld [vmem:[%s14393_s12 + $0x9cc] sm:$0xf] }
  0xd4   : > { %681 = vst [vmem:[%s14389_s30 + $0x9d0] sm:$0xf] %v680_v58  ;;  %v684_v60 = vld [vmem:[%s14393_s12 + $0x9e0] sm:$0xf]  ;;  %v686_v61 = vld [vmem:[%s14393_s12 + $0x9e4] sm:$0xf] }
  0xd5   : > { %683 = vst [vmem:[%s14389_s30 + $0x9d8] sm:$0xf] %v682_v59  ;;  %685 = vst [vmem:[%s14389_s30 + $0x9e0] sm:$0xf] %v684_v60  ;;  %v688_v62 = vld [vmem:[%s14393_s12 + $0x9e8] sm:$0xf] }
  0xd6   : > { %687 = vst [vmem:[%s14389_s30 + $0x9e8] sm:$0xf] %v686_v61  ;;  %v690_v63 = vld [vmem:[%s14393_s12 + $0x9ec] sm:$0xf]  ;;  %v692_v0 = vld [vmem:[%s14393_s12 + $0xa00] sm:$0xf] }
  0xd7   : > { %689 = vst [vmem:[%s14389_s30 + $0x9f0] sm:$0xf] %v688_v62  ;;  %691 = vst [vmem:[%s14389_s30 + $0x9f8] sm:$0xf] %v690_v63  ;;  %v694_v1 = vld [vmem:[%s14393_s12 + $0xa04] sm:$0xf] }
  0xd8   : > { %693 = vst [vmem:[%s14389_s30 + $0xa00] sm:$0xf] %v692_v0  ;;  %v696_v2 = vld [vmem:[%s14393_s12 + $0xa08] sm:$0xf]  ;;  %v698_v3 = vld [vmem:[%s14393_s12 + $0xa0c] sm:$0xf] }
  0xd9   : > { %695 = vst [vmem:[%s14389_s30 + $0xa08] sm:$0xf] %v694_v1  ;;  %697 = vst [vmem:[%s14389_s30 + $0xa10] sm:$0xf] %v696_v2  ;;  %v700_v4 = vld [vmem:[%s14393_s12 + $0xa20] sm:$0xf] }
  0xda   : > { %699 = vst [vmem:[%s14389_s30 + $0xa18] sm:$0xf] %v698_v3  ;;  %v702_v5 = vld [vmem:[%s14393_s12 + $0xa24] sm:$0xf]  ;;  %v704_v6 = vld [vmem:[%s14393_s12 + $0xa28] sm:$0xf] }
  0xdb   : > { %701 = vst [vmem:[%s14389_s30 + $0xa20] sm:$0xf] %v700_v4  ;;  %703 = vst [vmem:[%s14389_s30 + $0xa28] sm:$0xf] %v702_v5  ;;  %v706_v7 = vld [vmem:[%s14393_s12 + $0xa2c] sm:$0xf] }
  0xdc   : > { %705 = vst [vmem:[%s14389_s30 + $0xa30] sm:$0xf] %v704_v6  ;;  %v708_v8 = vld [vmem:[%s14393_s12 + $0xa40] sm:$0xf]  ;;  %v710_v9 = vld [vmem:[%s14393_s12 + $0xa44] sm:$0xf] }
  0xdd   : > { %707 = vst [vmem:[%s14389_s30 + $0xa38] sm:$0xf] %v706_v7  ;;  %709 = vst [vmem:[%s14389_s30 + $0xa40] sm:$0xf] %v708_v8  ;;  %v712_v10 = vld [vmem:[%s14393_s12 + $0xa48] sm:$0xf] }
  0xde   : > { %711 = vst [vmem:[%s14389_s30 + $0xa48] sm:$0xf] %v710_v9  ;;  %v714_v11 = vld [vmem:[%s14393_s12 + $0xa4c] sm:$0xf]  ;;  %v716_v12 = vld [vmem:[%s14393_s12 + $0xa60] sm:$0xf] }
  0xdf   : > { %713 = vst [vmem:[%s14389_s30 + $0xa50] sm:$0xf] %v712_v10  ;;  %715 = vst [vmem:[%s14389_s30 + $0xa58] sm:$0xf] %v714_v11  ;;  %v718_v13 = vld [vmem:[%s14393_s12 + $0xa64] sm:$0xf] }
  0xe0   : > { %717 = vst [vmem:[%s14389_s30 + $0xa60] sm:$0xf] %v716_v12  ;;  %v720_v14 = vld [vmem:[%s14393_s12 + $0xa68] sm:$0xf]  ;;  %v722_v15 = vld [vmem:[%s14393_s12 + $0xa6c] sm:$0xf] }
  0xe1   : > { %719 = vst [vmem:[%s14389_s30 + $0xa68] sm:$0xf] %v718_v13  ;;  %721 = vst [vmem:[%s14389_s30 + $0xa70] sm:$0xf] %v720_v14  ;;  %v724_v16 = vld [vmem:[%s14393_s12 + $0xa80] sm:$0xf] }
  0xe2   : > { %723 = vst [vmem:[%s14389_s30 + $0xa78] sm:$0xf] %v722_v15  ;;  %v726_v17 = vld [vmem:[%s14393_s12 + $0xa84] sm:$0xf]  ;;  %v728_v18 = vld [vmem:[%s14393_s12 + $0xa88] sm:$0xf] }
  0xe3   : > { %725 = vst [vmem:[%s14389_s30 + $0xa80] sm:$0xf] %v724_v16  ;;  %727 = vst [vmem:[%s14389_s30 + $0xa88] sm:$0xf] %v726_v17  ;;  %v730_v19 = vld [vmem:[%s14393_s12 + $0xa8c] sm:$0xf] }
  0xe4   : > { %729 = vst [vmem:[%s14389_s30 + $0xa90] sm:$0xf] %v728_v18  ;;  %v732_v20 = vld [vmem:[%s14393_s12 + $0xaa0] sm:$0xf]  ;;  %v734_v21 = vld [vmem:[%s14393_s12 + $0xaa4] sm:$0xf] }
  0xe5   : > { %731 = vst [vmem:[%s14389_s30 + $0xa98] sm:$0xf] %v730_v19  ;;  %733 = vst [vmem:[%s14389_s30 + $0xaa0] sm:$0xf] %v732_v20  ;;  %v736_v22 = vld [vmem:[%s14393_s12 + $0xaa8] sm:$0xf] }
  0xe6   : > { %735 = vst [vmem:[%s14389_s30 + $0xaa8] sm:$0xf] %v734_v21  ;;  %v738_v23 = vld [vmem:[%s14393_s12 + $0xaac] sm:$0xf]  ;;  %v740_v24 = vld [vmem:[%s14393_s12 + $0xac0] sm:$0xf] }
  0xe7   : > { %737 = vst [vmem:[%s14389_s30 + $0xab0] sm:$0xf] %v736_v22  ;;  %739 = vst [vmem:[%s14389_s30 + $0xab8] sm:$0xf] %v738_v23  ;;  %v742_v25 = vld [vmem:[%s14393_s12 + $0xac4] sm:$0xf] }
  0xe8   : > { %741 = vst [vmem:[%s14389_s30 + $0xac0] sm:$0xf] %v740_v24  ;;  %v744_v26 = vld [vmem:[%s14393_s12 + $0xac8] sm:$0xf]  ;;  %v746_v27 = vld [vmem:[%s14393_s12 + $0xacc] sm:$0xf] }
  0xe9   : > { %743 = vst [vmem:[%s14389_s30 + $0xac8] sm:$0xf] %v742_v25  ;;  %745 = vst [vmem:[%s14389_s30 + $0xad0] sm:$0xf] %v744_v26  ;;  %v748_v28 = vld [vmem:[%s14393_s12 + $0xae0] sm:$0xf] }
  0xea   : > { %747 = vst [vmem:[%s14389_s30 + $0xad8] sm:$0xf] %v746_v27  ;;  %v750_v29 = vld [vmem:[%s14393_s12 + $0xae4] sm:$0xf]  ;;  %v752_v30 = vld [vmem:[%s14393_s12 + $0xae8] sm:$0xf] }
  0xeb   : > { %749 = vst [vmem:[%s14389_s30 + $0xae0] sm:$0xf] %v748_v28  ;;  %751 = vst [vmem:[%s14389_s30 + $0xae8] sm:$0xf] %v750_v29  ;;  %v754_v31 = vld [vmem:[%s14393_s12 + $0xaec] sm:$0xf] }
  0xec   : > { %753 = vst [vmem:[%s14389_s30 + $0xaf0] sm:$0xf] %v752_v30  ;;  %v756_v32 = vld [vmem:[%s14393_s12 + $0xb00] sm:$0xf]  ;;  %v758_v33 = vld [vmem:[%s14393_s12 + $0xb04] sm:$0xf] }
  0xed   : > { %755 = vst [vmem:[%s14389_s30 + $0xaf8] sm:$0xf] %v754_v31  ;;  %757 = vst [vmem:[%s14389_s30 + $0xb00] sm:$0xf] %v756_v32  ;;  %v760_v34 = vld [vmem:[%s14393_s12 + $0xb08] sm:$0xf] }
  0xee   : > { %759 = vst [vmem:[%s14389_s30 + $0xb08] sm:$0xf] %v758_v33  ;;  %v762_v35 = vld [vmem:[%s14393_s12 + $0xb0c] sm:$0xf]  ;;  %v764_v36 = vld [vmem:[%s14393_s12 + $0xb20] sm:$0xf] }
  0xef   : > { %761 = vst [vmem:[%s14389_s30 + $0xb10] sm:$0xf] %v760_v34  ;;  %763 = vst [vmem:[%s14389_s30 + $0xb18] sm:$0xf] %v762_v35  ;;  %v766_v37 = vld [vmem:[%s14393_s12 + $0xb24] sm:$0xf] }
  0xf0   : > { %765 = vst [vmem:[%s14389_s30 + $0xb20] sm:$0xf] %v764_v36  ;;  %v768_v38 = vld [vmem:[%s14393_s12 + $0xb28] sm:$0xf]  ;;  %v770_v39 = vld [vmem:[%s14393_s12 + $0xb2c] sm:$0xf] }
  0xf1   : > { %767 = vst [vmem:[%s14389_s30 + $0xb28] sm:$0xf] %v766_v37  ;;  %769 = vst [vmem:[%s14389_s30 + $0xb30] sm:$0xf] %v768_v38  ;;  %v772_v40 = vld [vmem:[%s14393_s12 + $0xb40] sm:$0xf] }
  0xf2   : > { %771 = vst [vmem:[%s14389_s30 + $0xb38] sm:$0xf] %v770_v39  ;;  %v774_v41 = vld [vmem:[%s14393_s12 + $0xb44] sm:$0xf]  ;;  %v776_v42 = vld [vmem:[%s14393_s12 + $0xb48] sm:$0xf] }
  0xf3   : > { %773 = vst [vmem:[%s14389_s30 + $0xb40] sm:$0xf] %v772_v40  ;;  %775 = vst [vmem:[%s14389_s30 + $0xb48] sm:$0xf] %v774_v41  ;;  %v778_v43 = vld [vmem:[%s14393_s12 + $0xb4c] sm:$0xf] }
  0xf4   : > { %777 = vst [vmem:[%s14389_s30 + $0xb50] sm:$0xf] %v776_v42  ;;  %v780_v44 = vld [vmem:[%s14393_s12 + $0xb60] sm:$0xf]  ;;  %v782_v45 = vld [vmem:[%s14393_s12 + $0xb64] sm:$0xf] }
  0xf5   : > { %779 = vst [vmem:[%s14389_s30 + $0xb58] sm:$0xf] %v778_v43  ;;  %781 = vst [vmem:[%s14389_s30 + $0xb60] sm:$0xf] %v780_v44  ;;  %v784_v46 = vld [vmem:[%s14393_s12 + $0xb68] sm:$0xf] }
  0xf6   : > { %783 = vst [vmem:[%s14389_s30 + $0xb68] sm:$0xf] %v782_v45  ;;  %v786_v47 = vld [vmem:[%s14393_s12 + $0xb6c] sm:$0xf]  ;;  %v788_v48 = vld [vmem:[%s14393_s12 + $0xb80] sm:$0xf] }
  0xf7   : > { %785 = vst [vmem:[%s14389_s30 + $0xb70] sm:$0xf] %v784_v46  ;;  %787 = vst [vmem:[%s14389_s30 + $0xb78] sm:$0xf] %v786_v47  ;;  %v790_v49 = vld [vmem:[%s14393_s12 + $0xb84] sm:$0xf] }
  0xf8   : > { %789 = vst [vmem:[%s14389_s30 + $0xb80] sm:$0xf] %v788_v48  ;;  %v792_v50 = vld [vmem:[%s14393_s12 + $0xb88] sm:$0xf]  ;;  %v794_v51 = vld [vmem:[%s14393_s12 + $0xb8c] sm:$0xf] }
  0xf9   : > { %791 = vst [vmem:[%s14389_s30 + $0xb88] sm:$0xf] %v790_v49  ;;  %793 = vst [vmem:[%s14389_s30 + $0xb90] sm:$0xf] %v792_v50  ;;  %v796_v52 = vld [vmem:[%s14393_s12 + $0xba0] sm:$0xf] }
  0xfa   : > { %795 = vst [vmem:[%s14389_s30 + $0xb98] sm:$0xf] %v794_v51  ;;  %v798_v53 = vld [vmem:[%s14393_s12 + $0xba4] sm:$0xf]  ;;  %v800_v54 = vld [vmem:[%s14393_s12 + $0xba8] sm:$0xf] }
  0xfb   : > { %797 = vst [vmem:[%s14389_s30 + $0xba0] sm:$0xf] %v796_v52  ;;  %799 = vst [vmem:[%s14389_s30 + $0xba8] sm:$0xf] %v798_v53  ;;  %v802_v55 = vld [vmem:[%s14393_s12 + $0xbac] sm:$0xf] }
  0xfc   : > { %801 = vst [vmem:[%s14389_s30 + $0xbb0] sm:$0xf] %v800_v54  ;;  %v804_v56 = vld [vmem:[%s14393_s12 + $0xbc0] sm:$0xf]  ;;  %v806_v57 = vld [vmem:[%s14393_s12 + $0xbc4] sm:$0xf] }
  0xfd   : > { %803 = vst [vmem:[%s14389_s30 + $0xbb8] sm:$0xf] %v802_v55  ;;  %805 = vst [vmem:[%s14389_s30 + $0xbc0] sm:$0xf] %v804_v56  ;;  %v808_v58 = vld [vmem:[%s14393_s12 + $0xbc8] sm:$0xf] }
  0xfe   : > { %807 = vst [vmem:[%s14389_s30 + $0xbc8] sm:$0xf] %v806_v57  ;;  %v810_v59 = vld [vmem:[%s14393_s12 + $0xbcc] sm:$0xf]  ;;  %v812_v60 = vld [vmem:[%s14393_s12 + $0xbe0] sm:$0xf] }
  0xff   : > { %809 = vst [vmem:[%s14389_s30 + $0xbd0] sm:$0xf] %v808_v58  ;;  %811 = vst [vmem:[%s14389_s30 + $0xbd8] sm:$0xf] %v810_v59  ;;  %v814_v61 = vld [vmem:[%s14393_s12 + $0xbe4] sm:$0xf] }
 0x100   : > { %813 = vst [vmem:[%s14389_s30 + $0xbe0] sm:$0xf] %v812_v60  ;;  %v816_v62 = vld [vmem:[%s14393_s12 + $0xbe8] sm:$0xf]  ;;  %v818_v63 = vld [vmem:[%s14393_s12 + $0xbec] sm:$0xf] }
 0x101   : > { %815 = vst [vmem:[%s14389_s30 + $0xbe8] sm:$0xf] %v814_v61  ;;  %817 = vst [vmem:[%s14389_s30 + $0xbf0] sm:$0xf] %v816_v62  ;;  %v820_v0 = vld [vmem:[%s14393_s12 + $0xc00] sm:$0xf] }
 0x102   : > { %819 = vst [vmem:[%s14389_s30 + $0xbf8] sm:$0xf] %v818_v63  ;;  %v822_v1 = vld [vmem:[%s14393_s12 + $0xc04] sm:$0xf]  ;;  %v824_v2 = vld [vmem:[%s14393_s12 + $0xc08] sm:$0xf] }
 0x103   : > { %821 = vst [vmem:[%s14389_s30 + $0xc00] sm:$0xf] %v820_v0  ;;  %823 = vst [vmem:[%s14389_s30 + $0xc08] sm:$0xf] %v822_v1  ;;  %v826_v3 = vld [vmem:[%s14393_s12 + $0xc0c] sm:$0xf] }
 0x104   : > { %825 = vst [vmem:[%s14389_s30 + $0xc10] sm:$0xf] %v824_v2  ;;  %v828_v4 = vld [vmem:[%s14393_s12 + $0xc20] sm:$0xf]  ;;  %v830_v5 = vld [vmem:[%s14393_s12 + $0xc24] sm:$0xf] }
 0x105   : > { %827 = vst [vmem:[%s14389_s30 + $0xc18] sm:$0xf] %v826_v3  ;;  %829 = vst [vmem:[%s14389_s30 + $0xc20] sm:$0xf] %v828_v4  ;;  %v832_v6 = vld [vmem:[%s14393_s12 + $0xc28] sm:$0xf] }
 0x106   : > { %831 = vst [vmem:[%s14389_s30 + $0xc28] sm:$0xf] %v830_v5  ;;  %v834_v7 = vld [vmem:[%s14393_s12 + $0xc2c] sm:$0xf]  ;;  %v836_v8 = vld [vmem:[%s14393_s12 + $0xc40] sm:$0xf] }
 0x107   : > { %833 = vst [vmem:[%s14389_s30 + $0xc30] sm:$0xf] %v832_v6  ;;  %835 = vst [vmem:[%s14389_s30 + $0xc38] sm:$0xf] %v834_v7  ;;  %v838_v9 = vld [vmem:[%s14393_s12 + $0xc44] sm:$0xf] }
 0x108   : > { %837 = vst [vmem:[%s14389_s30 + $0xc40] sm:$0xf] %v836_v8  ;;  %v840_v10 = vld [vmem:[%s14393_s12 + $0xc48] sm:$0xf]  ;;  %v842_v11 = vld [vmem:[%s14393_s12 + $0xc4c] sm:$0xf] }
 0x109   : > { %839 = vst [vmem:[%s14389_s30 + $0xc48] sm:$0xf] %v838_v9  ;;  %841 = vst [vmem:[%s14389_s30 + $0xc50] sm:$0xf] %v840_v10  ;;  %v844_v12 = vld [vmem:[%s14393_s12 + $0xc60] sm:$0xf] }
 0x10a   : > { %843 = vst [vmem:[%s14389_s30 + $0xc58] sm:$0xf] %v842_v11  ;;  %v846_v13 = vld [vmem:[%s14393_s12 + $0xc64] sm:$0xf]  ;;  %v848_v14 = vld [vmem:[%s14393_s12 + $0xc68] sm:$0xf] }
 0x10b   : > { %845 = vst [vmem:[%s14389_s30 + $0xc60] sm:$0xf] %v844_v12  ;;  %847 = vst [vmem:[%s14389_s30 + $0xc68] sm:$0xf] %v846_v13  ;;  %v850_v15 = vld [vmem:[%s14393_s12 + $0xc6c] sm:$0xf] }
 0x10c   : > { %849 = vst [vmem:[%s14389_s30 + $0xc70] sm:$0xf] %v848_v14  ;;  %v852_v16 = vld [vmem:[%s14393_s12 + $0xc80] sm:$0xf]  ;;  %v854_v17 = vld [vmem:[%s14393_s12 + $0xc84] sm:$0xf] }
 0x10d   : > { %851 = vst [vmem:[%s14389_s30 + $0xc78] sm:$0xf] %v850_v15  ;;  %853 = vst [vmem:[%s14389_s30 + $0xc80] sm:$0xf] %v852_v16  ;;  %v856_v18 = vld [vmem:[%s14393_s12 + $0xc88] sm:$0xf] }
 0x10e   : > { %855 = vst [vmem:[%s14389_s30 + $0xc88] sm:$0xf] %v854_v17  ;;  %v858_v19 = vld [vmem:[%s14393_s12 + $0xc8c] sm:$0xf]  ;;  %v860_v20 = vld [vmem:[%s14393_s12 + $0xca0] sm:$0xf] }
 0x10f   : > { %857 = vst [vmem:[%s14389_s30 + $0xc90] sm:$0xf] %v856_v18  ;;  %859 = vst [vmem:[%s14389_s30 + $0xc98] sm:$0xf] %v858_v19  ;;  %v862_v21 = vld [vmem:[%s14393_s12 + $0xca4] sm:$0xf] }
 0x110   : > { %861 = vst [vmem:[%s14389_s30 + $0xca0] sm:$0xf] %v860_v20  ;;  %v864_v22 = vld [vmem:[%s14393_s12 + $0xca8] sm:$0xf]  ;;  %v866_v23 = vld [vmem:[%s14393_s12 + $0xcac] sm:$0xf] }
 0x111   : > { %863 = vst [vmem:[%s14389_s30 + $0xca8] sm:$0xf] %v862_v21  ;;  %865 = vst [vmem:[%s14389_s30 + $0xcb0] sm:$0xf] %v864_v22  ;;  %v868_v24 = vld [vmem:[%s14393_s12 + $0xcc0] sm:$0xf] }
 0x112   : > { %867 = vst [vmem:[%s14389_s30 + $0xcb8] sm:$0xf] %v866_v23  ;;  %v870_v25 = vld [vmem:[%s14393_s12 + $0xcc4] sm:$0xf]  ;;  %v872_v26 = vld [vmem:[%s14393_s12 + $0xcc8] sm:$0xf] }
 0x113   : > { %869 = vst [vmem:[%s14389_s30 + $0xcc0] sm:$0xf] %v868_v24  ;;  %871 = vst [vmem:[%s14389_s30 + $0xcc8] sm:$0xf] %v870_v25  ;;  %v874_v27 = vld [vmem:[%s14393_s12 + $0xccc] sm:$0xf] }
 0x114   : > { %873 = vst [vmem:[%s14389_s30 + $0xcd0] sm:$0xf] %v872_v26  ;;  %v876_v28 = vld [vmem:[%s14393_s12 + $0xce0] sm:$0xf]  ;;  %v878_v29 = vld [vmem:[%s14393_s12 + $0xce4] sm:$0xf] }
 0x115   : > { %875 = vst [vmem:[%s14389_s30 + $0xcd8] sm:$0xf] %v874_v27  ;;  %877 = vst [vmem:[%s14389_s30 + $0xce0] sm:$0xf] %v876_v28  ;;  %v880_v30 = vld [vmem:[%s14393_s12 + $0xce8] sm:$0xf] }
 0x116   : > { %879 = vst [vmem:[%s14389_s30 + $0xce8] sm:$0xf] %v878_v29  ;;  %v882_v31 = vld [vmem:[%s14393_s12 + $0xcec] sm:$0xf]  ;;  %v884_v32 = vld [vmem:[%s14393_s12 + $0xd00] sm:$0xf] }
 0x117   : > { %881 = vst [vmem:[%s14389_s30 + $0xcf0] sm:$0xf] %v880_v30  ;;  %883 = vst [vmem:[%s14389_s30 + $0xcf8] sm:$0xf] %v882_v31  ;;  %v886_v33 = vld [vmem:[%s14393_s12 + $0xd04] sm:$0xf] }
 0x118   : > { %885 = vst [vmem:[%s14389_s30 + $0xd00] sm:$0xf] %v884_v32  ;;  %v888_v34 = vld [vmem:[%s14393_s12 + $0xd08] sm:$0xf]  ;;  %v890_v35 = vld [vmem:[%s14393_s12 + $0xd0c] sm:$0xf] }
 0x119   : > { %887 = vst [vmem:[%s14389_s30 + $0xd08] sm:$0xf] %v886_v33  ;;  %889 = vst [vmem:[%s14389_s30 + $0xd10] sm:$0xf] %v888_v34  ;;  %v892_v36 = vld [vmem:[%s14393_s12 + $0xd20] sm:$0xf] }
 0x11a   : > { %891 = vst [vmem:[%s14389_s30 + $0xd18] sm:$0xf] %v890_v35  ;;  %v894_v37 = vld [vmem:[%s14393_s12 + $0xd24] sm:$0xf]  ;;  %v896_v38 = vld [vmem:[%s14393_s12 + $0xd28] sm:$0xf] }
 0x11b   : > { %893 = vst [vmem:[%s14389_s30 + $0xd20] sm:$0xf] %v892_v36  ;;  %895 = vst [vmem:[%s14389_s30 + $0xd28] sm:$0xf] %v894_v37  ;;  %v898_v39 = vld [vmem:[%s14393_s12 + $0xd2c] sm:$0xf] }
 0x11c   : > { %897 = vst [vmem:[%s14389_s30 + $0xd30] sm:$0xf] %v896_v38  ;;  %v900_v40 = vld [vmem:[%s14393_s12 + $0xd40] sm:$0xf]  ;;  %v902_v41 = vld [vmem:[%s14393_s12 + $0xd44] sm:$0xf] }
 0x11d   : > { %899 = vst [vmem:[%s14389_s30 + $0xd38] sm:$0xf] %v898_v39  ;;  %901 = vst [vmem:[%s14389_s30 + $0xd40] sm:$0xf] %v900_v40  ;;  %v904_v42 = vld [vmem:[%s14393_s12 + $0xd48] sm:$0xf] }
 0x11e   : > { %903 = vst [vmem:[%s14389_s30 + $0xd48] sm:$0xf] %v902_v41  ;;  %v906_v43 = vld [vmem:[%s14393_s12 + $0xd4c] sm:$0xf]  ;;  %v908_v44 = vld [vmem:[%s14393_s12 + $0xd60] sm:$0xf] }
 0x11f   : > { %905 = vst [vmem:[%s14389_s30 + $0xd50] sm:$0xf] %v904_v42  ;;  %907 = vst [vmem:[%s14389_s30 + $0xd58] sm:$0xf] %v906_v43  ;;  %v910_v45 = vld [vmem:[%s14393_s12 + $0xd64] sm:$0xf] }
 0x120   : > { %909 = vst [vmem:[%s14389_s30 + $0xd60] sm:$0xf] %v908_v44  ;;  %v912_v46 = vld [vmem:[%s14393_s12 + $0xd68] sm:$0xf]  ;;  %v914_v47 = vld [vmem:[%s14393_s12 + $0xd6c] sm:$0xf] }
 0x121   : > { %911 = vst [vmem:[%s14389_s30 + $0xd68] sm:$0xf] %v910_v45  ;;  %913 = vst [vmem:[%s14389_s30 + $0xd70] sm:$0xf] %v912_v46  ;;  %v916_v48 = vld [vmem:[%s14393_s12 + $0xd80] sm:$0xf] }
 0x122   : > { %915 = vst [vmem:[%s14389_s30 + $0xd78] sm:$0xf] %v914_v47  ;;  %v918_v49 = vld [vmem:[%s14393_s12 + $0xd84] sm:$0xf]  ;;  %v920_v50 = vld [vmem:[%s14393_s12 + $0xd88] sm:$0xf] }
 0x123   : > { %917 = vst [vmem:[%s14389_s30 + $0xd80] sm:$0xf] %v916_v48  ;;  %919 = vst [vmem:[%s14389_s30 + $0xd88] sm:$0xf] %v918_v49  ;;  %v922_v51 = vld [vmem:[%s14393_s12 + $0xd8c] sm:$0xf] }
 0x124   : > { %921 = vst [vmem:[%s14389_s30 + $0xd90] sm:$0xf] %v920_v50  ;;  %v924_v52 = vld [vmem:[%s14393_s12 + $0xda0] sm:$0xf]  ;;  %v926_v53 = vld [vmem:[%s14393_s12 + $0xda4] sm:$0xf] }
 0x125   : > { %923 = vst [vmem:[%s14389_s30 + $0xd98] sm:$0xf] %v922_v51  ;;  %925 = vst [vmem:[%s14389_s30 + $0xda0] sm:$0xf] %v924_v52  ;;  %v928_v54 = vld [vmem:[%s14393_s12 + $0xda8] sm:$0xf] }
 0x126   : > { %927 = vst [vmem:[%s14389_s30 + $0xda8] sm:$0xf] %v926_v53  ;;  %v930_v55 = vld [vmem:[%s14393_s12 + $0xdac] sm:$0xf]  ;;  %v932_v56 = vld [vmem:[%s14393_s12 + $0xdc0] sm:$0xf] }
 0x127   : > { %929 = vst [vmem:[%s14389_s30 + $0xdb0] sm:$0xf] %v928_v54  ;;  %931 = vst [vmem:[%s14389_s30 + $0xdb8] sm:$0xf] %v930_v55  ;;  %v934_v57 = vld [vmem:[%s14393_s12 + $0xdc4] sm:$0xf] }
 0x128   : > { %933 = vst [vmem:[%s14389_s30 + $0xdc0] sm:$0xf] %v932_v56  ;;  %v936_v58 = vld [vmem:[%s14393_s12 + $0xdc8] sm:$0xf]  ;;  %v938_v59 = vld [vmem:[%s14393_s12 + $0xdcc] sm:$0xf] }
 0x129   : > { %935 = vst [vmem:[%s14389_s30 + $0xdc8] sm:$0xf] %v934_v57  ;;  %937 = vst [vmem:[%s14389_s30 + $0xdd0] sm:$0xf] %v936_v58  ;;  %v940_v60 = vld [vmem:[%s14393_s12 + $0xde0] sm:$0xf] }
 0x12a   : > { %939 = vst [vmem:[%s14389_s30 + $0xdd8] sm:$0xf] %v938_v59  ;;  %v942_v61 = vld [vmem:[%s14393_s12 + $0xde4] sm:$0xf]  ;;  %v944_v62 = vld [vmem:[%s14393_s12 + $0xde8] sm:$0xf] }
 0x12b   : > { %941 = vst [vmem:[%s14389_s30 + $0xde0] sm:$0xf] %v940_v60  ;;  %943 = vst [vmem:[%s14389_s30 + $0xde8] sm:$0xf] %v942_v61  ;;  %v946_v63 = vld [vmem:[%s14393_s12 + $0xdec] sm:$0xf] }
 0x12c   : > { %945 = vst [vmem:[%s14389_s30 + $0xdf0] sm:$0xf] %v944_v62  ;;  %v948_v0 = vld [vmem:[%s14393_s12 + $0xe00] sm:$0xf]  ;;  %v950_v1 = vld [vmem:[%s14393_s12 + $0xe04] sm:$0xf] }
 0x12d   : > { %947 = vst [vmem:[%s14389_s30 + $0xdf8] sm:$0xf] %v946_v63  ;;  %949 = vst [vmem:[%s14389_s30 + $0xe00] sm:$0xf] %v948_v0  ;;  %v952_v2 = vld [vmem:[%s14393_s12 + $0xe08] sm:$0xf] }
 0x12e   : > { %951 = vst [vmem:[%s14389_s30 + $0xe08] sm:$0xf] %v950_v1  ;;  %v954_v3 = vld [vmem:[%s14393_s12 + $0xe0c] sm:$0xf]  ;;  %v956_v4 = vld [vmem:[%s14393_s12 + $0xe20] sm:$0xf] }
 0x12f   : > { %953 = vst [vmem:[%s14389_s30 + $0xe10] sm:$0xf] %v952_v2  ;;  %955 = vst [vmem:[%s14389_s30 + $0xe18] sm:$0xf] %v954_v3  ;;  %v958_v5 = vld [vmem:[%s14393_s12 + $0xe24] sm:$0xf] }
 0x130   : > { %957 = vst [vmem:[%s14389_s30 + $0xe20] sm:$0xf] %v956_v4  ;;  %v960_v6 = vld [vmem:[%s14393_s12 + $0xe28] sm:$0xf]  ;;  %v962_v7 = vld [vmem:[%s14393_s12 + $0xe2c] sm:$0xf] }
 0x131   : > { %959 = vst [vmem:[%s14389_s30 + $0xe28] sm:$0xf] %v958_v5  ;;  %961 = vst [vmem:[%s14389_s30 + $0xe30] sm:$0xf] %v960_v6  ;;  %v964_v8 = vld [vmem:[%s14393_s12 + $0xe40] sm:$0xf] }
 0x132   : > { %963 = vst [vmem:[%s14389_s30 + $0xe38] sm:$0xf] %v962_v7  ;;  %v966_v9 = vld [vmem:[%s14393_s12 + $0xe44] sm:$0xf]  ;;  %v968_v10 = vld [vmem:[%s14393_s12 + $0xe48] sm:$0xf] }
 0x133   : > { %965 = vst [vmem:[%s14389_s30 + $0xe40] sm:$0xf] %v964_v8  ;;  %967 = vst [vmem:[%s14389_s30 + $0xe48] sm:$0xf] %v966_v9  ;;  %v970_v11 = vld [vmem:[%s14393_s12 + $0xe4c] sm:$0xf] }
 0x134   : > { %969 = vst [vmem:[%s14389_s30 + $0xe50] sm:$0xf] %v968_v10  ;;  %v972_v12 = vld [vmem:[%s14393_s12 + $0xe60] sm:$0xf]  ;;  %v974_v13 = vld [vmem:[%s14393_s12 + $0xe64] sm:$0xf] }
 0x135   : > { %971 = vst [vmem:[%s14389_s30 + $0xe58] sm:$0xf] %v970_v11  ;;  %973 = vst [vmem:[%s14389_s30 + $0xe60] sm:$0xf] %v972_v12  ;;  %v976_v14 = vld [vmem:[%s14393_s12 + $0xe68] sm:$0xf] }
 0x136   : > { %975 = vst [vmem:[%s14389_s30 + $0xe68] sm:$0xf] %v974_v13  ;;  %v978_v15 = vld [vmem:[%s14393_s12 + $0xe6c] sm:$0xf]  ;;  %v980_v16 = vld [vmem:[%s14393_s12 + $0xe80] sm:$0xf] }
 0x137   : > { %977 = vst [vmem:[%s14389_s30 + $0xe70] sm:$0xf] %v976_v14  ;;  %979 = vst [vmem:[%s14389_s30 + $0xe78] sm:$0xf] %v978_v15  ;;  %v982_v17 = vld [vmem:[%s14393_s12 + $0xe84] sm:$0xf] }
 0x138   : > { %981 = vst [vmem:[%s14389_s30 + $0xe80] sm:$0xf] %v980_v16  ;;  %v984_v18 = vld [vmem:[%s14393_s12 + $0xe88] sm:$0xf]  ;;  %v986_v19 = vld [vmem:[%s14393_s12 + $0xe8c] sm:$0xf] }
 0x139   : > { %983 = vst [vmem:[%s14389_s30 + $0xe88] sm:$0xf] %v982_v17  ;;  %985 = vst [vmem:[%s14389_s30 + $0xe90] sm:$0xf] %v984_v18  ;;  %v988_v20 = vld [vmem:[%s14393_s12 + $0xea0] sm:$0xf] }
 0x13a   : > { %987 = vst [vmem:[%s14389_s30 + $0xe98] sm:$0xf] %v986_v19  ;;  %v990_v21 = vld [vmem:[%s14393_s12 + $0xea4] sm:$0xf]  ;;  %v992_v22 = vld [vmem:[%s14393_s12 + $0xea8] sm:$0xf] }
 0x13b   : > { %989 = vst [vmem:[%s14389_s30 + $0xea0] sm:$0xf] %v988_v20  ;;  %991 = vst [vmem:[%s14389_s30 + $0xea8] sm:$0xf] %v990_v21  ;;  %v994_v23 = vld [vmem:[%s14393_s12 + $0xeac] sm:$0xf] }
 0x13c   : > { %993 = vst [vmem:[%s14389_s30 + $0xeb0] sm:$0xf] %v992_v22  ;;  %v996_v24 = vld [vmem:[%s14393_s12 + $0xec0] sm:$0xf]  ;;  %v998_v25 = vld [vmem:[%s14393_s12 + $0xec4] sm:$0xf] }
 0x13d   : > { %995 = vst [vmem:[%s14389_s30 + $0xeb8] sm:$0xf] %v994_v23  ;;  %997 = vst [vmem:[%s14389_s30 + $0xec0] sm:$0xf] %v996_v24  ;;  %v1000_v26 = vld [vmem:[%s14393_s12 + $0xec8] sm:$0xf] }
 0x13e   : > { %999 = vst [vmem:[%s14389_s30 + $0xec8] sm:$0xf] %v998_v25  ;;  %v1002_v27 = vld [vmem:[%s14393_s12 + $0xecc] sm:$0xf]  ;;  %v1004_v28 = vld [vmem:[%s14393_s12 + $0xee0] sm:$0xf] }
 0x13f   : > { %1001 = vst [vmem:[%s14389_s30 + $0xed0] sm:$0xf] %v1000_v26  ;;  %1003 = vst [vmem:[%s14389_s30 + $0xed8] sm:$0xf] %v1002_v27  ;;  %v1006_v29 = vld [vmem:[%s14393_s12 + $0xee4] sm:$0xf] }
 0x140   : > { %1005 = vst [vmem:[%s14389_s30 + $0xee0] sm:$0xf] %v1004_v28  ;;  %v1008_v30 = vld [vmem:[%s14393_s12 + $0xee8] sm:$0xf]  ;;  %v1010_v31 = vld [vmem:[%s14393_s12 + $0xeec] sm:$0xf] }
 0x141   : > { %1007 = vst [vmem:[%s14389_s30 + $0xee8] sm:$0xf] %v1006_v29  ;;  %1009 = vst [vmem:[%s14389_s30 + $0xef0] sm:$0xf] %v1008_v30  ;;  %v1012_v32 = vld [vmem:[%s14393_s12 + $0xf00] sm:$0xf] }
 0x142   : > { %1011 = vst [vmem:[%s14389_s30 + $0xef8] sm:$0xf] %v1010_v31  ;;  %v1014_v33 = vld [vmem:[%s14393_s12 + $0xf04] sm:$0xf]  ;;  %v1016_v34 = vld [vmem:[%s14393_s12 + $0xf08] sm:$0xf] }
 0x143   : > { %1013 = vst [vmem:[%s14389_s30 + $0xf00] sm:$0xf] %v1012_v32  ;;  %1015 = vst [vmem:[%s14389_s30 + $0xf08] sm:$0xf] %v1014_v33  ;;  %v1018_v35 = vld [vmem:[%s14393_s12 + $0xf0c] sm:$0xf] }
 0x144   : > { %1017 = vst [vmem:[%s14389_s30 + $0xf10] sm:$0xf] %v1016_v34  ;;  %v1020_v36 = vld [vmem:[%s14393_s12 + $0xf20] sm:$0xf]  ;;  %v1022_v37 = vld [vmem:[%s14393_s12 + $0xf24] sm:$0xf] }
 0x145   : > { %1019 = vst [vmem:[%s14389_s30 + $0xf18] sm:$0xf] %v1018_v35  ;;  %1021 = vst [vmem:[%s14389_s30 + $0xf20] sm:$0xf] %v1020_v36  ;;  %v1024_v38 = vld [vmem:[%s14393_s12 + $0xf28] sm:$0xf] }
 0x146   : > { %1023 = vst [vmem:[%s14389_s30 + $0xf28] sm:$0xf] %v1022_v37  ;;  %v1026_v39 = vld [vmem:[%s14393_s12 + $0xf2c] sm:$0xf]  ;;  %v1028_v40 = vld [vmem:[%s14393_s12 + $0xf40] sm:$0xf] }
 0x147   : > { %1025 = vst [vmem:[%s14389_s30 + $0xf30] sm:$0xf] %v1024_v38  ;;  %1027 = vst [vmem:[%s14389_s30 + $0xf38] sm:$0xf] %v1026_v39  ;;  %v1030_v41 = vld [vmem:[%s14393_s12 + $0xf44] sm:$0xf] }
 0x148   : > { %1029 = vst [vmem:[%s14389_s30 + $0xf40] sm:$0xf] %v1028_v40  ;;  %v1032_v42 = vld [vmem:[%s14393_s12 + $0xf48] sm:$0xf]  ;;  %v1034_v43 = vld [vmem:[%s14393_s12 + $0xf4c] sm:$0xf] }
 0x149   : > { %1031 = vst [vmem:[%s14389_s30 + $0xf48] sm:$0xf] %v1030_v41  ;;  %1033 = vst [vmem:[%s14389_s30 + $0xf50] sm:$0xf] %v1032_v42  ;;  %v1036_v44 = vld [vmem:[%s14393_s12 + $0xf60] sm:$0xf] }
 0x14a   : > { %1035 = vst [vmem:[%s14389_s30 + $0xf58] sm:$0xf] %v1034_v43  ;;  %v1038_v45 = vld [vmem:[%s14393_s12 + $0xf64] sm:$0xf]  ;;  %v1040_v46 = vld [vmem:[%s14393_s12 + $0xf68] sm:$0xf] }
 0x14b   : > { %1037 = vst [vmem:[%s14389_s30 + $0xf60] sm:$0xf] %v1036_v44  ;;  %1039 = vst [vmem:[%s14389_s30 + $0xf68] sm:$0xf] %v1038_v45  ;;  %v1042_v47 = vld [vmem:[%s14393_s12 + $0xf6c] sm:$0xf] }
 0x14c   : > { %1041 = vst [vmem:[%s14389_s30 + $0xf70] sm:$0xf] %v1040_v46  ;;  %v1044_v48 = vld [vmem:[%s14393_s12 + $0xf80] sm:$0xf]  ;;  %v1046_v49 = vld [vmem:[%s14393_s12 + $0xf84] sm:$0xf] }
 0x14d   : > { %1043 = vst [vmem:[%s14389_s30 + $0xf78] sm:$0xf] %v1042_v47  ;;  %1045 = vst [vmem:[%s14389_s30 + $0xf80] sm:$0xf] %v1044_v48  ;;  %v1048_v50 = vld [vmem:[%s14393_s12 + $0xf88] sm:$0xf] }
 0x14e   : > { %1047 = vst [vmem:[%s14389_s30 + $0xf88] sm:$0xf] %v1046_v49  ;;  %v1050_v51 = vld [vmem:[%s14393_s12 + $0xf8c] sm:$0xf]  ;;  %v1052_v52 = vld [vmem:[%s14393_s12 + $0xfa0] sm:$0xf] }
 0x14f   : > { %1049 = vst [vmem:[%s14389_s30 + $0xf90] sm:$0xf] %v1048_v50  ;;  %1051 = vst [vmem:[%s14389_s30 + $0xf98] sm:$0xf] %v1050_v51  ;;  %v1054_v53 = vld [vmem:[%s14393_s12 + $0xfa4] sm:$0xf] }
 0x150   : > { %1053 = vst [vmem:[%s14389_s30 + $0xfa0] sm:$0xf] %v1052_v52  ;;  %v1056_v54 = vld [vmem:[%s14393_s12 + $0xfa8] sm:$0xf]  ;;  %v1058_v55 = vld [vmem:[%s14393_s12 + $0xfac] sm:$0xf] }
 0x151   : > { %1055 = vst [vmem:[%s14389_s30 + $0xfa8] sm:$0xf] %v1054_v53  ;;  %1057 = vst [vmem:[%s14389_s30 + $0xfb0] sm:$0xf] %v1056_v54  ;;  %v1060_v56 = vld [vmem:[%s14393_s12 + $0xfc0] sm:$0xf] }
 0x152   : > { %1059 = vst [vmem:[%s14389_s30 + $0xfb8] sm:$0xf] %v1058_v55  ;;  %v1062_v57 = vld [vmem:[%s14393_s12 + $0xfc4] sm:$0xf]  ;;  %v1064_v58 = vld [vmem:[%s14393_s12 + $0xfc8] sm:$0xf] }
 0x153   : > { %1061 = vst [vmem:[%s14389_s30 + $0xfc0] sm:$0xf] %v1060_v56  ;;  %1063 = vst [vmem:[%s14389_s30 + $0xfc8] sm:$0xf] %v1062_v57  ;;  %v1066_v59 = vld [vmem:[%s14393_s12 + $0xfcc] sm:$0xf] }
 0x154   : > { %1065 = vst [vmem:[%s14389_s30 + $0xfd0] sm:$0xf] %v1064_v58  ;;  %v1068_v60 = vld [vmem:[%s14393_s12 + $0xfe0] sm:$0xf]  ;;  %v1070_v61 = vld [vmem:[%s14393_s12 + $0xfe4] sm:$0xf] }
 0x155   : > { %1067 = vst [vmem:[%s14389_s30 + $0xfd8] sm:$0xf] %v1066_v59  ;;  %1069 = vst [vmem:[%s14389_s30 + $0xfe0] sm:$0xf] %v1068_v60  ;;  %v1072_v62 = vld [vmem:[%s14393_s12 + $0xfe8] sm:$0xf] }
 0x156   : > { %1071 = vst [vmem:[%s14389_s30 + $0xfe8] sm:$0xf] %v1070_v61  ;;  %v1074_v63 = vld [vmem:[%s14393_s12 + $0xfec] sm:$0xf]  ;;  %v1076_v0 = vld [vmem:[%s14393_s12 + $0x1000] sm:$0xf] }
 0x157   : > { %1073 = vst [vmem:[%s14389_s30 + $0xff0] sm:$0xf] %v1072_v62  ;;  %1075 = vst [vmem:[%s14389_s30 + $0xff8] sm:$0xf] %v1074_v63  ;;  %v1078_v1 = vld [vmem:[%s14393_s12 + $0x1004] sm:$0xf] }
 0x158   : > { %1077 = vst [vmem:[%s14389_s30 + $0x1000] sm:$0xf] %v1076_v0  ;;  %v1080_v2 = vld [vmem:[%s14393_s12 + $0x1008] sm:$0xf]  ;;  %v1082_v3 = vld [vmem:[%s14393_s12 + $0x100c] sm:$0xf] }
 0x159   : > { %1079 = vst [vmem:[%s14389_s30 + $0x1008] sm:$0xf] %v1078_v1  ;;  %1081 = vst [vmem:[%s14389_s30 + $0x1010] sm:$0xf] %v1080_v2  ;;  %v1084_v4 = vld [vmem:[%s14393_s12 + $0x1020] sm:$0xf] }
 0x15a   : > { %1083 = vst [vmem:[%s14389_s30 + $0x1018] sm:$0xf] %v1082_v3  ;;  %v1086_v5 = vld [vmem:[%s14393_s12 + $0x1024] sm:$0xf]  ;;  %v1088_v6 = vld [vmem:[%s14393_s12 + $0x1028] sm:$0xf] }
 0x15b   : > { %1085 = vst [vmem:[%s14389_s30 + $0x1020] sm:$0xf] %v1084_v4  ;;  %1087 = vst [vmem:[%s14389_s30 + $0x1028] sm:$0xf] %v1086_v5  ;;  %v1090_v7 = vld [vmem:[%s14393_s12 + $0x102c] sm:$0xf] }
 0x15c   : > { %1089 = vst [vmem:[%s14389_s30 + $0x1030] sm:$0xf] %v1088_v6  ;;  %v1092_v8 = vld [vmem:[%s14393_s12 + $0x1040] sm:$0xf]  ;;  %v1094_v9 = vld [vmem:[%s14393_s12 + $0x1044] sm:$0xf] }
 0x15d   : > { %1091 = vst [vmem:[%s14389_s30 + $0x1038] sm:$0xf] %v1090_v7  ;;  %1093 = vst [vmem:[%s14389_s30 + $0x1040] sm:$0xf] %v1092_v8  ;;  %v1096_v10 = vld [vmem:[%s14393_s12 + $0x1048] sm:$0xf] }
 0x15e   : > { %1095 = vst [vmem:[%s14389_s30 + $0x1048] sm:$0xf] %v1094_v9  ;;  %v1098_v11 = vld [vmem:[%s14393_s12 + $0x104c] sm:$0xf]  ;;  %v1100_v12 = vld [vmem:[%s14393_s12 + $0x1060] sm:$0xf] }
 0x15f   : > { %1097 = vst [vmem:[%s14389_s30 + $0x1050] sm:$0xf] %v1096_v10  ;;  %1099 = vst [vmem:[%s14389_s30 + $0x1058] sm:$0xf] %v1098_v11  ;;  %v1102_v13 = vld [vmem:[%s14393_s12 + $0x1064] sm:$0xf] }
 0x160   : > { %1101 = vst [vmem:[%s14389_s30 + $0x1060] sm:$0xf] %v1100_v12  ;;  %v1104_v14 = vld [vmem:[%s14393_s12 + $0x1068] sm:$0xf]  ;;  %v1106_v15 = vld [vmem:[%s14393_s12 + $0x106c] sm:$0xf] }
 0x161   : > { %1103 = vst [vmem:[%s14389_s30 + $0x1068] sm:$0xf] %v1102_v13  ;;  %1105 = vst [vmem:[%s14389_s30 + $0x1070] sm:$0xf] %v1104_v14  ;;  %v1108_v16 = vld [vmem:[%s14393_s12 + $0x1080] sm:$0xf] }
 0x162   : > { %1107 = vst [vmem:[%s14389_s30 + $0x1078] sm:$0xf] %v1106_v15  ;;  %v1110_v17 = vld [vmem:[%s14393_s12 + $0x1084] sm:$0xf]  ;;  %v1112_v18 = vld [vmem:[%s14393_s12 + $0x1088] sm:$0xf] }
 0x163   : > { %1109 = vst [vmem:[%s14389_s30 + $0x1080] sm:$0xf] %v1108_v16  ;;  %1111 = vst [vmem:[%s14389_s30 + $0x1088] sm:$0xf] %v1110_v17  ;;  %v1114_v19 = vld [vmem:[%s14393_s12 + $0x108c] sm:$0xf] }
 0x164   : > { %1113 = vst [vmem:[%s14389_s30 + $0x1090] sm:$0xf] %v1112_v18  ;;  %v1116_v20 = vld [vmem:[%s14393_s12 + $0x10a0] sm:$0xf]  ;;  %v1118_v21 = vld [vmem:[%s14393_s12 + $0x10a4] sm:$0xf] }
 0x165   : > { %1115 = vst [vmem:[%s14389_s30 + $0x1098] sm:$0xf] %v1114_v19  ;;  %1117 = vst [vmem:[%s14389_s30 + $0x10a0] sm:$0xf] %v1116_v20  ;;  %v1120_v22 = vld [vmem:[%s14393_s12 + $0x10a8] sm:$0xf] }
 0x166   : > { %1119 = vst [vmem:[%s14389_s30 + $0x10a8] sm:$0xf] %v1118_v21  ;;  %v1122_v23 = vld [vmem:[%s14393_s12 + $0x10ac] sm:$0xf]  ;;  %v1124_v24 = vld [vmem:[%s14393_s12 + $0x10c0] sm:$0xf] }
 0x167   : > { %1121 = vst [vmem:[%s14389_s30 + $0x10b0] sm:$0xf] %v1120_v22  ;;  %1123 = vst [vmem:[%s14389_s30 + $0x10b8] sm:$0xf] %v1122_v23  ;;  %v1126_v25 = vld [vmem:[%s14393_s12 + $0x10c4] sm:$0xf] }
 0x168   : > { %1125 = vst [vmem:[%s14389_s30 + $0x10c0] sm:$0xf] %v1124_v24  ;;  %v1128_v26 = vld [vmem:[%s14393_s12 + $0x10c8] sm:$0xf]  ;;  %v1130_v27 = vld [vmem:[%s14393_s12 + $0x10cc] sm:$0xf] }
 0x169   : > { %1127 = vst [vmem:[%s14389_s30 + $0x10c8] sm:$0xf] %v1126_v25  ;;  %1129 = vst [vmem:[%s14389_s30 + $0x10d0] sm:$0xf] %v1128_v26  ;;  %v1132_v28 = vld [vmem:[%s14393_s12 + $0x10e0] sm:$0xf] }
 0x16a   : > { %1131 = vst [vmem:[%s14389_s30 + $0x10d8] sm:$0xf] %v1130_v27  ;;  %v1134_v29 = vld [vmem:[%s14393_s12 + $0x10e4] sm:$0xf]  ;;  %v1136_v30 = vld [vmem:[%s14393_s12 + $0x10e8] sm:$0xf] }
 0x16b   : > { %1133 = vst [vmem:[%s14389_s30 + $0x10e0] sm:$0xf] %v1132_v28  ;;  %1135 = vst [vmem:[%s14389_s30 + $0x10e8] sm:$0xf] %v1134_v29  ;;  %v1138_v31 = vld [vmem:[%s14393_s12 + $0x10ec] sm:$0xf] }
 0x16c   : > { %1137 = vst [vmem:[%s14389_s30 + $0x10f0] sm:$0xf] %v1136_v30  ;;  %v1140_v32 = vld [vmem:[%s14393_s12 + $0x1100] sm:$0xf]  ;;  %v1142_v33 = vld [vmem:[%s14393_s12 + $0x1104] sm:$0xf] }
 0x16d   : > { %1139 = vst [vmem:[%s14389_s30 + $0x10f8] sm:$0xf] %v1138_v31  ;;  %1141 = vst [vmem:[%s14389_s30 + $0x1100] sm:$0xf] %v1140_v32  ;;  %v1144_v34 = vld [vmem:[%s14393_s12 + $0x1108] sm:$0xf] }
 0x16e   : > { %1143 = vst [vmem:[%s14389_s30 + $0x1108] sm:$0xf] %v1142_v33  ;;  %v1146_v35 = vld [vmem:[%s14393_s12 + $0x110c] sm:$0xf]  ;;  %v1148_v36 = vld [vmem:[%s14393_s12 + $0x1120] sm:$0xf] }
 0x16f   : > { %1145 = vst [vmem:[%s14389_s30 + $0x1110] sm:$0xf] %v1144_v34  ;;  %1147 = vst [vmem:[%s14389_s30 + $0x1118] sm:$0xf] %v1146_v35  ;;  %v1150_v37 = vld [vmem:[%s14393_s12 + $0x1124] sm:$0xf] }
 0x170   : > { %1149 = vst [vmem:[%s14389_s30 + $0x1120] sm:$0xf] %v1148_v36  ;;  %v1152_v38 = vld [vmem:[%s14393_s12 + $0x1128] sm:$0xf]  ;;  %v1154_v39 = vld [vmem:[%s14393_s12 + $0x112c] sm:$0xf] }
 0x171   : > { %1151 = vst [vmem:[%s14389_s30 + $0x1128] sm:$0xf] %v1150_v37  ;;  %1153 = vst [vmem:[%s14389_s30 + $0x1130] sm:$0xf] %v1152_v38  ;;  %v1156_v40 = vld [vmem:[%s14393_s12 + $0x1140] sm:$0xf] }
 0x172   : > { %1155 = vst [vmem:[%s14389_s30 + $0x1138] sm:$0xf] %v1154_v39  ;;  %v1158_v41 = vld [vmem:[%s14393_s12 + $0x1144] sm:$0xf]  ;;  %v1160_v42 = vld [vmem:[%s14393_s12 + $0x1148] sm:$0xf] }
 0x173   : > { %1157 = vst [vmem:[%s14389_s30 + $0x1140] sm:$0xf] %v1156_v40  ;;  %1159 = vst [vmem:[%s14389_s30 + $0x1148] sm:$0xf] %v1158_v41  ;;  %v1162_v43 = vld [vmem:[%s14393_s12 + $0x114c] sm:$0xf] }
 0x174   : > { %1161 = vst [vmem:[%s14389_s30 + $0x1150] sm:$0xf] %v1160_v42  ;;  %v1164_v44 = vld [vmem:[%s14393_s12 + $0x1160] sm:$0xf]  ;;  %v1166_v45 = vld [vmem:[%s14393_s12 + $0x1164] sm:$0xf] }
 0x175   : > { %1163 = vst [vmem:[%s14389_s30 + $0x1158] sm:$0xf] %v1162_v43  ;;  %1165 = vst [vmem:[%s14389_s30 + $0x1160] sm:$0xf] %v1164_v44  ;;  %v1168_v46 = vld [vmem:[%s14393_s12 + $0x1168] sm:$0xf] }
 0x176   : > { %1167 = vst [vmem:[%s14389_s30 + $0x1168] sm:$0xf] %v1166_v45  ;;  %v1170_v47 = vld [vmem:[%s14393_s12 + $0x116c] sm:$0xf]  ;;  %v1172_v48 = vld [vmem:[%s14393_s12 + $0x1180] sm:$0xf] }
 0x177   : > { %1169 = vst [vmem:[%s14389_s30 + $0x1170] sm:$0xf] %v1168_v46  ;;  %1171 = vst [vmem:[%s14389_s30 + $0x1178] sm:$0xf] %v1170_v47  ;;  %v1174_v49 = vld [vmem:[%s14393_s12 + $0x1184] sm:$0xf] }
 0x178   : > { %1173 = vst [vmem:[%s14389_s30 + $0x1180] sm:$0xf] %v1172_v48  ;;  %v1176_v50 = vld [vmem:[%s14393_s12 + $0x1188] sm:$0xf]  ;;  %v1178_v51 = vld [vmem:[%s14393_s12 + $0x118c] sm:$0xf] }
 0x179   : > { %1175 = vst [vmem:[%s14389_s30 + $0x1188] sm:$0xf] %v1174_v49  ;;  %1177 = vst [vmem:[%s14389_s30 + $0x1190] sm:$0xf] %v1176_v50  ;;  %v1180_v52 = vld [vmem:[%s14393_s12 + $0x11a0] sm:$0xf] }
 0x17a   : > { %1179 = vst [vmem:[%s14389_s30 + $0x1198] sm:$0xf] %v1178_v51  ;;  %v1182_v53 = vld [vmem:[%s14393_s12 + $0x11a4] sm:$0xf]  ;;  %v1184_v54 = vld [vmem:[%s14393_s12 + $0x11a8] sm:$0xf] }
 0x17b   : > { %1181 = vst [vmem:[%s14389_s30 + $0x11a0] sm:$0xf] %v1180_v52  ;;  %1183 = vst [vmem:[%s14389_s30 + $0x11a8] sm:$0xf] %v1182_v53  ;;  %v1186_v55 = vld [vmem:[%s14393_s12 + $0x11ac] sm:$0xf] }
 0x17c   : > { %1185 = vst [vmem:[%s14389_s30 + $0x11b0] sm:$0xf] %v1184_v54  ;;  %v1188_v56 = vld [vmem:[%s14393_s12 + $0x11c0] sm:$0xf]  ;;  %v1190_v57 = vld [vmem:[%s14393_s12 + $0x11c4] sm:$0xf] }
 0x17d   : > { %1187 = vst [vmem:[%s14389_s30 + $0x11b8] sm:$0xf] %v1186_v55  ;;  %1189 = vst [vmem:[%s14389_s30 + $0x11c0] sm:$0xf] %v1188_v56  ;;  %v1192_v58 = vld [vmem:[%s14393_s12 + $0x11c8] sm:$0xf] }
 0x17e   : > { %1191 = vst [vmem:[%s14389_s30 + $0x11c8] sm:$0xf] %v1190_v57  ;;  %v1194_v59 = vld [vmem:[%s14393_s12 + $0x11cc] sm:$0xf]  ;;  %v1196_v60 = vld [vmem:[%s14393_s12 + $0x11e0] sm:$0xf] }
 0x17f   : > { %1193 = vst [vmem:[%s14389_s30 + $0x11d0] sm:$0xf] %v1192_v58  ;;  %1195 = vst [vmem:[%s14389_s30 + $0x11d8] sm:$0xf] %v1194_v59  ;;  %v1198_v61 = vld [vmem:[%s14393_s12 + $0x11e4] sm:$0xf] }
 0x180   : > { %1197 = vst [vmem:[%s14389_s30 + $0x11e0] sm:$0xf] %v1196_v60  ;;  %v1200_v62 = vld [vmem:[%s14393_s12 + $0x11e8] sm:$0xf]  ;;  %v1202_v63 = vld [vmem:[%s14393_s12 + $0x11ec] sm:$0xf] }
 0x181   : > { %1199 = vst [vmem:[%s14389_s30 + $0x11e8] sm:$0xf] %v1198_v61  ;;  %1201 = vst [vmem:[%s14389_s30 + $0x11f0] sm:$0xf] %v1200_v62  ;;  %v1204_v0 = vld [vmem:[%s14393_s12 + $0x1200] sm:$0xf] }
 0x182   : > { %1203 = vst [vmem:[%s14389_s30 + $0x11f8] sm:$0xf] %v1202_v63  ;;  %v1206_v1 = vld [vmem:[%s14393_s12 + $0x1204] sm:$0xf]  ;;  %v1208_v2 = vld [vmem:[%s14393_s12 + $0x1208] sm:$0xf] }
 0x183   : > { %1205 = vst [vmem:[%s14389_s30 + $0x1200] sm:$0xf] %v1204_v0  ;;  %1207 = vst [vmem:[%s14389_s30 + $0x1208] sm:$0xf] %v1206_v1  ;;  %v1210_v3 = vld [vmem:[%s14393_s12 + $0x120c] sm:$0xf] }
 0x184   : > { %1209 = vst [vmem:[%s14389_s30 + $0x1210] sm:$0xf] %v1208_v2  ;;  %v1212_v4 = vld [vmem:[%s14393_s12 + $0x1220] sm:$0xf]  ;;  %v1214_v5 = vld [vmem:[%s14393_s12 + $0x1224] sm:$0xf] }
 0x185   : > { %1211 = vst [vmem:[%s14389_s30 + $0x1218] sm:$0xf] %v1210_v3  ;;  %1213 = vst [vmem:[%s14389_s30 + $0x1220] sm:$0xf] %v1212_v4  ;;  %v1216_v6 = vld [vmem:[%s14393_s12 + $0x1228] sm:$0xf] }
 0x186   : > { %1215 = vst [vmem:[%s14389_s30 + $0x1228] sm:$0xf] %v1214_v5  ;;  %v1218_v7 = vld [vmem:[%s14393_s12 + $0x122c] sm:$0xf]  ;;  %v1220_v8 = vld [vmem:[%s14393_s12 + $0x1240] sm:$0xf] }
 0x187   : > { %1217 = vst [vmem:[%s14389_s30 + $0x1230] sm:$0xf] %v1216_v6  ;;  %1219 = vst [vmem:[%s14389_s30 + $0x1238] sm:$0xf] %v1218_v7  ;;  %v1222_v9 = vld [vmem:[%s14393_s12 + $0x1244] sm:$0xf] }
 0x188   : > { %1221 = vst [vmem:[%s14389_s30 + $0x1240] sm:$0xf] %v1220_v8  ;;  %v1224_v10 = vld [vmem:[%s14393_s12 + $0x1248] sm:$0xf]  ;;  %v1226_v11 = vld [vmem:[%s14393_s12 + $0x124c] sm:$0xf] }
 0x189   : > { %1223 = vst [vmem:[%s14389_s30 + $0x1248] sm:$0xf] %v1222_v9  ;;  %1225 = vst [vmem:[%s14389_s30 + $0x1250] sm:$0xf] %v1224_v10  ;;  %v1228_v12 = vld [vmem:[%s14393_s12 + $0x1260] sm:$0xf] }
 0x18a   : > { %1227 = vst [vmem:[%s14389_s30 + $0x1258] sm:$0xf] %v1226_v11  ;;  %v1230_v13 = vld [vmem:[%s14393_s12 + $0x1264] sm:$0xf]  ;;  %v1232_v14 = vld [vmem:[%s14393_s12 + $0x1268] sm:$0xf] }
 0x18b   : > { %1229 = vst [vmem:[%s14389_s30 + $0x1260] sm:$0xf] %v1228_v12  ;;  %1231 = vst [vmem:[%s14389_s30 + $0x1268] sm:$0xf] %v1230_v13  ;;  %v1234_v15 = vld [vmem:[%s14393_s12 + $0x126c] sm:$0xf] }
 0x18c   : > { %1233 = vst [vmem:[%s14389_s30 + $0x1270] sm:$0xf] %v1232_v14  ;;  %v1236_v16 = vld [vmem:[%s14393_s12 + $0x1280] sm:$0xf]  ;;  %v1238_v17 = vld [vmem:[%s14393_s12 + $0x1284] sm:$0xf] }
 0x18d   : > { %1235 = vst [vmem:[%s14389_s30 + $0x1278] sm:$0xf] %v1234_v15  ;;  %1237 = vst [vmem:[%s14389_s30 + $0x1280] sm:$0xf] %v1236_v16  ;;  %v1240_v18 = vld [vmem:[%s14393_s12 + $0x1288] sm:$0xf] }
 0x18e   : > { %1239 = vst [vmem:[%s14389_s30 + $0x1288] sm:$0xf] %v1238_v17  ;;  %v1242_v19 = vld [vmem:[%s14393_s12 + $0x128c] sm:$0xf]  ;;  %v1244_v20 = vld [vmem:[%s14393_s12 + $0x12a0] sm:$0xf] }
 0x18f   : > { %1241 = vst [vmem:[%s14389_s30 + $0x1290] sm:$0xf] %v1240_v18  ;;  %1243 = vst [vmem:[%s14389_s30 + $0x1298] sm:$0xf] %v1242_v19  ;;  %v1246_v21 = vld [vmem:[%s14393_s12 + $0x12a4] sm:$0xf] }
 0x190   : > { %1245 = vst [vmem:[%s14389_s30 + $0x12a0] sm:$0xf] %v1244_v20  ;;  %v1248_v22 = vld [vmem:[%s14393_s12 + $0x12a8] sm:$0xf]  ;;  %v1250_v23 = vld [vmem:[%s14393_s12 + $0x12ac] sm:$0xf] }
 0x191   : > { %1247 = vst [vmem:[%s14389_s30 + $0x12a8] sm:$0xf] %v1246_v21  ;;  %1249 = vst [vmem:[%s14389_s30 + $0x12b0] sm:$0xf] %v1248_v22  ;;  %v1252_v24 = vld [vmem:[%s14393_s12 + $0x12c0] sm:$0xf] }
 0x192   : > { %1251 = vst [vmem:[%s14389_s30 + $0x12b8] sm:$0xf] %v1250_v23  ;;  %v1254_v25 = vld [vmem:[%s14393_s12 + $0x12c4] sm:$0xf]  ;;  %v1256_v26 = vld [vmem:[%s14393_s12 + $0x12c8] sm:$0xf] }
 0x193   : > { %1253 = vst [vmem:[%s14389_s30 + $0x12c0] sm:$0xf] %v1252_v24  ;;  %1255 = vst [vmem:[%s14389_s30 + $0x12c8] sm:$0xf] %v1254_v25  ;;  %v1258_v27 = vld [vmem:[%s14393_s12 + $0x12cc] sm:$0xf] }
 0x194   : > { %1257 = vst [vmem:[%s14389_s30 + $0x12d0] sm:$0xf] %v1256_v26  ;;  %v1260_v28 = vld [vmem:[%s14393_s12 + $0x12e0] sm:$0xf]  ;;  %v1262_v29 = vld [vmem:[%s14393_s12 + $0x12e4] sm:$0xf] }
 0x195   : > { %1259 = vst [vmem:[%s14389_s30 + $0x12d8] sm:$0xf] %v1258_v27  ;;  %1261 = vst [vmem:[%s14389_s30 + $0x12e0] sm:$0xf] %v1260_v28  ;;  %v1264_v30 = vld [vmem:[%s14393_s12 + $0x12e8] sm:$0xf] }
 0x196   : > { %1263 = vst [vmem:[%s14389_s30 + $0x12e8] sm:$0xf] %v1262_v29  ;;  %v1266_v31 = vld [vmem:[%s14393_s12 + $0x12ec] sm:$0xf]  ;;  %v1268_v32 = vld [vmem:[%s14393_s12 + $0x1300] sm:$0xf] }
 0x197   : > { %1265 = vst [vmem:[%s14389_s30 + $0x12f0] sm:$0xf] %v1264_v30  ;;  %1267 = vst [vmem:[%s14389_s30 + $0x12f8] sm:$0xf] %v1266_v31  ;;  %v1270_v33 = vld [vmem:[%s14393_s12 + $0x1304] sm:$0xf] }
 0x198   : > { %1269 = vst [vmem:[%s14389_s30 + $0x1300] sm:$0xf] %v1268_v32  ;;  %v1272_v34 = vld [vmem:[%s14393_s12 + $0x1308] sm:$0xf]  ;;  %v1274_v35 = vld [vmem:[%s14393_s12 + $0x130c] sm:$0xf] }
 0x199   : > { %1271 = vst [vmem:[%s14389_s30 + $0x1308] sm:$0xf] %v1270_v33  ;;  %1273 = vst [vmem:[%s14389_s30 + $0x1310] sm:$0xf] %v1272_v34  ;;  %v1276_v36 = vld [vmem:[%s14393_s12 + $0x1320] sm:$0xf] }
 0x19a   : > { %1275 = vst [vmem:[%s14389_s30 + $0x1318] sm:$0xf] %v1274_v35  ;;  %v1278_v37 = vld [vmem:[%s14393_s12 + $0x1324] sm:$0xf]  ;;  %v1280_v38 = vld [vmem:[%s14393_s12 + $0x1328] sm:$0xf] }
 0x19b   : > { %1277 = vst [vmem:[%s14389_s30 + $0x1320] sm:$0xf] %v1276_v36  ;;  %1279 = vst [vmem:[%s14389_s30 + $0x1328] sm:$0xf] %v1278_v37  ;;  %v1282_v39 = vld [vmem:[%s14393_s12 + $0x132c] sm:$0xf] }
 0x19c   : > { %1281 = vst [vmem:[%s14389_s30 + $0x1330] sm:$0xf] %v1280_v38  ;;  %v1284_v40 = vld [vmem:[%s14393_s12 + $0x1340] sm:$0xf]  ;;  %v1286_v41 = vld [vmem:[%s14393_s12 + $0x1344] sm:$0xf] }
 0x19d   : > { %1283 = vst [vmem:[%s14389_s30 + $0x1338] sm:$0xf] %v1282_v39  ;;  %1285 = vst [vmem:[%s14389_s30 + $0x1340] sm:$0xf] %v1284_v40  ;;  %v1288_v42 = vld [vmem:[%s14393_s12 + $0x1348] sm:$0xf] }
 0x19e   : > { %1287 = vst [vmem:[%s14389_s30 + $0x1348] sm:$0xf] %v1286_v41  ;;  %v1290_v43 = vld [vmem:[%s14393_s12 + $0x134c] sm:$0xf]  ;;  %v1292_v44 = vld [vmem:[%s14393_s12 + $0x1360] sm:$0xf] }
 0x19f   : > { %1289 = vst [vmem:[%s14389_s30 + $0x1350] sm:$0xf] %v1288_v42  ;;  %1291 = vst [vmem:[%s14389_s30 + $0x1358] sm:$0xf] %v1290_v43  ;;  %v1294_v45 = vld [vmem:[%s14393_s12 + $0x1364] sm:$0xf] }
 0x1a0   : > { %1293 = vst [vmem:[%s14389_s30 + $0x1360] sm:$0xf] %v1292_v44  ;;  %v1296_v46 = vld [vmem:[%s14393_s12 + $0x1368] sm:$0xf]  ;;  %v1298_v47 = vld [vmem:[%s14393_s12 + $0x136c] sm:$0xf] }
 0x1a1   : > { %1295 = vst [vmem:[%s14389_s30 + $0x1368] sm:$0xf] %v1294_v45  ;;  %1297 = vst [vmem:[%s14389_s30 + $0x1370] sm:$0xf] %v1296_v46  ;;  %v1300_v48 = vld [vmem:[%s14393_s12 + $0x1380] sm:$0xf] }
 0x1a2   : > { %1299 = vst [vmem:[%s14389_s30 + $0x1378] sm:$0xf] %v1298_v47  ;;  %v1302_v49 = vld [vmem:[%s14393_s12 + $0x1384] sm:$0xf]  ;;  %v1304_v50 = vld [vmem:[%s14393_s12 + $0x1388] sm:$0xf] }
 0x1a3   : > { %1301 = vst [vmem:[%s14389_s30 + $0x1380] sm:$0xf] %v1300_v48  ;;  %1303 = vst [vmem:[%s14389_s30 + $0x1388] sm:$0xf] %v1302_v49  ;;  %v1306_v51 = vld [vmem:[%s14393_s12 + $0x138c] sm:$0xf] }
 0x1a4   : > { %1305 = vst [vmem:[%s14389_s30 + $0x1390] sm:$0xf] %v1304_v50  ;;  %v1308_v52 = vld [vmem:[%s14393_s12 + $0x13a0] sm:$0xf]  ;;  %v1310_v53 = vld [vmem:[%s14393_s12 + $0x13a4] sm:$0xf] }
 0x1a5   : > { %1307 = vst [vmem:[%s14389_s30 + $0x1398] sm:$0xf] %v1306_v51  ;;  %1309 = vst [vmem:[%s14389_s30 + $0x13a0] sm:$0xf] %v1308_v52  ;;  %v1312_v54 = vld [vmem:[%s14393_s12 + $0x13a8] sm:$0xf] }
 0x1a6   : > { %1311 = vst [vmem:[%s14389_s30 + $0x13a8] sm:$0xf] %v1310_v53  ;;  %v1314_v55 = vld [vmem:[%s14393_s12 + $0x13ac] sm:$0xf]  ;;  %v1316_v56 = vld [vmem:[%s14393_s12 + $0x13c0] sm:$0xf] }
 0x1a7   : > { %1313 = vst [vmem:[%s14389_s30 + $0x13b0] sm:$0xf] %v1312_v54  ;;  %1315 = vst [vmem:[%s14389_s30 + $0x13b8] sm:$0xf] %v1314_v55  ;;  %v1318_v57 = vld [vmem:[%s14393_s12 + $0x13c4] sm:$0xf] }
 0x1a8   : > { %1317 = vst [vmem:[%s14389_s30 + $0x13c0] sm:$0xf] %v1316_v56  ;;  %v1320_v58 = vld [vmem:[%s14393_s12 + $0x13c8] sm:$0xf]  ;;  %v1322_v59 = vld [vmem:[%s14393_s12 + $0x13cc] sm:$0xf] }
 0x1a9   : > { %1319 = vst [vmem:[%s14389_s30 + $0x13c8] sm:$0xf] %v1318_v57  ;;  %1321 = vst [vmem:[%s14389_s30 + $0x13d0] sm:$0xf] %v1320_v58  ;;  %v1324_v60 = vld [vmem:[%s14393_s12 + $0x13e0] sm:$0xf] }
 0x1aa   : > { %1323 = vst [vmem:[%s14389_s30 + $0x13d8] sm:$0xf] %v1322_v59  ;;  %v1326_v61 = vld [vmem:[%s14393_s12 + $0x13e4] sm:$0xf]  ;;  %v1328_v62 = vld [vmem:[%s14393_s12 + $0x13e8] sm:$0xf] }
 0x1ab   : > { %1325 = vst [vmem:[%s14389_s30 + $0x13e0] sm:$0xf] %v1324_v60  ;;  %1327 = vst [vmem:[%s14389_s30 + $0x13e8] sm:$0xf] %v1326_v61  ;;  %v1330_v63 = vld [vmem:[%s14393_s12 + $0x13ec] sm:$0xf] }
 0x1ac   : > { %1329 = vst [vmem:[%s14389_s30 + $0x13f0] sm:$0xf] %v1328_v62  ;;  %v1332_v0 = vld [vmem:[%s14393_s12 + $0x1400] sm:$0xf]  ;;  %v1334_v1 = vld [vmem:[%s14393_s12 + $0x1404] sm:$0xf] }
 0x1ad   : > { %1331 = vst [vmem:[%s14389_s30 + $0x13f8] sm:$0xf] %v1330_v63  ;;  %1333 = vst [vmem:[%s14389_s30 + $0x1400] sm:$0xf] %v1332_v0  ;;  %v1336_v2 = vld [vmem:[%s14393_s12 + $0x1408] sm:$0xf] }
 0x1ae   : > { %1335 = vst [vmem:[%s14389_s30 + $0x1408] sm:$0xf] %v1334_v1  ;;  %v1338_v3 = vld [vmem:[%s14393_s12 + $0x140c] sm:$0xf]  ;;  %v1340_v4 = vld [vmem:[%s14393_s12 + $0x1420] sm:$0xf] }
 0x1af   : > { %1337 = vst [vmem:[%s14389_s30 + $0x1410] sm:$0xf] %v1336_v2  ;;  %1339 = vst [vmem:[%s14389_s30 + $0x1418] sm:$0xf] %v1338_v3  ;;  %v1342_v5 = vld [vmem:[%s14393_s12 + $0x1424] sm:$0xf] }
 0x1b0   : > { %1341 = vst [vmem:[%s14389_s30 + $0x1420] sm:$0xf] %v1340_v4  ;;  %v1344_v6 = vld [vmem:[%s14393_s12 + $0x1428] sm:$0xf]  ;;  %v1346_v7 = vld [vmem:[%s14393_s12 + $0x142c] sm:$0xf] }
 0x1b1   : > { %1343 = vst [vmem:[%s14389_s30 + $0x1428] sm:$0xf] %v1342_v5  ;;  %1345 = vst [vmem:[%s14389_s30 + $0x1430] sm:$0xf] %v1344_v6  ;;  %v1348_v8 = vld [vmem:[%s14393_s12 + $0x1440] sm:$0xf] }
 0x1b2   : > { %1347 = vst [vmem:[%s14389_s30 + $0x1438] sm:$0xf] %v1346_v7  ;;  %v1350_v9 = vld [vmem:[%s14393_s12 + $0x1444] sm:$0xf]  ;;  %v1352_v10 = vld [vmem:[%s14393_s12 + $0x1448] sm:$0xf] }
 0x1b3   : > { %1349 = vst [vmem:[%s14389_s30 + $0x1440] sm:$0xf] %v1348_v8  ;;  %1351 = vst [vmem:[%s14389_s30 + $0x1448] sm:$0xf] %v1350_v9  ;;  %v1354_v11 = vld [vmem:[%s14393_s12 + $0x144c] sm:$0xf] }
 0x1b4   : > { %1353 = vst [vmem:[%s14389_s30 + $0x1450] sm:$0xf] %v1352_v10  ;;  %v1356_v12 = vld [vmem:[%s14393_s12 + $0x1460] sm:$0xf]  ;;  %v1358_v13 = vld [vmem:[%s14393_s12 + $0x1464] sm:$0xf] }
 0x1b5   : > { %1355 = vst [vmem:[%s14389_s30 + $0x1458] sm:$0xf] %v1354_v11  ;;  %1357 = vst [vmem:[%s14389_s30 + $0x1460] sm:$0xf] %v1356_v12  ;;  %v1360_v14 = vld [vmem:[%s14393_s12 + $0x1468] sm:$0xf] }
 0x1b6   : > { %1359 = vst [vmem:[%s14389_s30 + $0x1468] sm:$0xf] %v1358_v13  ;;  %v1362_v15 = vld [vmem:[%s14393_s12 + $0x146c] sm:$0xf]  ;;  %v1364_v16 = vld [vmem:[%s14393_s12 + $0x1480] sm:$0xf] }
 0x1b7   : > { %1361 = vst [vmem:[%s14389_s30 + $0x1470] sm:$0xf] %v1360_v14  ;;  %1363 = vst [vmem:[%s14389_s30 + $0x1478] sm:$0xf] %v1362_v15  ;;  %v1366_v17 = vld [vmem:[%s14393_s12 + $0x1484] sm:$0xf] }
 0x1b8   : > { %1365 = vst [vmem:[%s14389_s30 + $0x1480] sm:$0xf] %v1364_v16  ;;  %v1368_v18 = vld [vmem:[%s14393_s12 + $0x1488] sm:$0xf]  ;;  %v1370_v19 = vld [vmem:[%s14393_s12 + $0x148c] sm:$0xf] }
 0x1b9   : > { %1367 = vst [vmem:[%s14389_s30 + $0x1488] sm:$0xf] %v1366_v17  ;;  %1369 = vst [vmem:[%s14389_s30 + $0x1490] sm:$0xf] %v1368_v18  ;;  %v1372_v20 = vld [vmem:[%s14393_s12 + $0x14a0] sm:$0xf] }
 0x1ba   : > { %1371 = vst [vmem:[%s14389_s30 + $0x1498] sm:$0xf] %v1370_v19  ;;  %v1374_v21 = vld [vmem:[%s14393_s12 + $0x14a4] sm:$0xf]  ;;  %v1376_v22 = vld [vmem:[%s14393_s12 + $0x14a8] sm:$0xf] }
 0x1bb   : > { %1373 = vst [vmem:[%s14389_s30 + $0x14a0] sm:$0xf] %v1372_v20  ;;  %1375 = vst [vmem:[%s14389_s30 + $0x14a8] sm:$0xf] %v1374_v21  ;;  %v1378_v23 = vld [vmem:[%s14393_s12 + $0x14ac] sm:$0xf] }
 0x1bc   : > { %1377 = vst [vmem:[%s14389_s30 + $0x14b0] sm:$0xf] %v1376_v22  ;;  %v1380_v24 = vld [vmem:[%s14393_s12 + $0x14c0] sm:$0xf]  ;;  %v1382_v25 = vld [vmem:[%s14393_s12 + $0x14c4] sm:$0xf] }
 0x1bd   : > { %1379 = vst [vmem:[%s14389_s30 + $0x14b8] sm:$0xf] %v1378_v23  ;;  %1381 = vst [vmem:[%s14389_s30 + $0x14c0] sm:$0xf] %v1380_v24  ;;  %v1384_v26 = vld [vmem:[%s14393_s12 + $0x14c8] sm:$0xf] }
 0x1be   : > { %1383 = vst [vmem:[%s14389_s30 + $0x14c8] sm:$0xf] %v1382_v25  ;;  %v1386_v27 = vld [vmem:[%s14393_s12 + $0x14cc] sm:$0xf]  ;;  %v1388_v28 = vld [vmem:[%s14393_s12 + $0x14e0] sm:$0xf] }
 0x1bf   : > { %1385 = vst [vmem:[%s14389_s30 + $0x14d0] sm:$0xf] %v1384_v26  ;;  %1387 = vst [vmem:[%s14389_s30 + $0x14d8] sm:$0xf] %v1386_v27  ;;  %v1390_v29 = vld [vmem:[%s14393_s12 + $0x14e4] sm:$0xf] }
 0x1c0   : > { %1389 = vst [vmem:[%s14389_s30 + $0x14e0] sm:$0xf] %v1388_v28  ;;  %v1392_v30 = vld [vmem:[%s14393_s12 + $0x14e8] sm:$0xf]  ;;  %v1394_v31 = vld [vmem:[%s14393_s12 + $0x14ec] sm:$0xf] }
 0x1c1   : > { %1391 = vst [vmem:[%s14389_s30 + $0x14e8] sm:$0xf] %v1390_v29  ;;  %1393 = vst [vmem:[%s14389_s30 + $0x14f0] sm:$0xf] %v1392_v30  ;;  %v1396_v32 = vld [vmem:[%s14393_s12 + $0x1500] sm:$0xf] }
 0x1c2   : > { %1395 = vst [vmem:[%s14389_s30 + $0x14f8] sm:$0xf] %v1394_v31  ;;  %v1398_v33 = vld [vmem:[%s14393_s12 + $0x1504] sm:$0xf]  ;;  %v1400_v34 = vld [vmem:[%s14393_s12 + $0x1508] sm:$0xf] }
 0x1c3   : > { %1397 = vst [vmem:[%s14389_s30 + $0x1500] sm:$0xf] %v1396_v32  ;;  %1399 = vst [vmem:[%s14389_s30 + $0x1508] sm:$0xf] %v1398_v33  ;;  %v1402_v35 = vld [vmem:[%s14393_s12 + $0x150c] sm:$0xf] }
 0x1c4   : > { %1401 = vst [vmem:[%s14389_s30 + $0x1510] sm:$0xf] %v1400_v34  ;;  %v1404_v36 = vld [vmem:[%s14393_s12 + $0x1520] sm:$0xf]  ;;  %v1406_v37 = vld [vmem:[%s14393_s12 + $0x1524] sm:$0xf] }
 0x1c5   : > { %1403 = vst [vmem:[%s14389_s30 + $0x1518] sm:$0xf] %v1402_v35  ;;  %1405 = vst [vmem:[%s14389_s30 + $0x1520] sm:$0xf] %v1404_v36  ;;  %v1408_v38 = vld [vmem:[%s14393_s12 + $0x1528] sm:$0xf] }
 0x1c6   : > { %1407 = vst [vmem:[%s14389_s30 + $0x1528] sm:$0xf] %v1406_v37  ;;  %v1410_v39 = vld [vmem:[%s14393_s12 + $0x152c] sm:$0xf]  ;;  %v1412_v40 = vld [vmem:[%s14393_s12 + $0x1540] sm:$0xf] }
 0x1c7   : > { %1409 = vst [vmem:[%s14389_s30 + $0x1530] sm:$0xf] %v1408_v38  ;;  %1411 = vst [vmem:[%s14389_s30 + $0x1538] sm:$0xf] %v1410_v39  ;;  %v1414_v41 = vld [vmem:[%s14393_s12 + $0x1544] sm:$0xf] }
 0x1c8   : > { %1413 = vst [vmem:[%s14389_s30 + $0x1540] sm:$0xf] %v1412_v40  ;;  %v1416_v42 = vld [vmem:[%s14393_s12 + $0x1548] sm:$0xf]  ;;  %v1418_v43 = vld [vmem:[%s14393_s12 + $0x154c] sm:$0xf] }
 0x1c9   : > { %1415 = vst [vmem:[%s14389_s30 + $0x1548] sm:$0xf] %v1414_v41  ;;  %1417 = vst [vmem:[%s14389_s30 + $0x1550] sm:$0xf] %v1416_v42  ;;  %v1420_v44 = vld [vmem:[%s14393_s12 + $0x1560] sm:$0xf] }
 0x1ca   : > { %1419 = vst [vmem:[%s14389_s30 + $0x1558] sm:$0xf] %v1418_v43  ;;  %v1422_v45 = vld [vmem:[%s14393_s12 + $0x1564] sm:$0xf]  ;;  %v1424_v46 = vld [vmem:[%s14393_s12 + $0x1568] sm:$0xf] }
 0x1cb   : > { %1421 = vst [vmem:[%s14389_s30 + $0x1560] sm:$0xf] %v1420_v44  ;;  %1423 = vst [vmem:[%s14389_s30 + $0x1568] sm:$0xf] %v1422_v45  ;;  %v1426_v47 = vld [vmem:[%s14393_s12 + $0x156c] sm:$0xf] }
 0x1cc   : > { %1425 = vst [vmem:[%s14389_s30 + $0x1570] sm:$0xf] %v1424_v46  ;;  %v1428_v48 = vld [vmem:[%s14393_s12 + $0x1580] sm:$0xf]  ;;  %v1430_v49 = vld [vmem:[%s14393_s12 + $0x1584] sm:$0xf] }
 0x1cd   : > { %1427 = vst [vmem:[%s14389_s30 + $0x1578] sm:$0xf] %v1426_v47  ;;  %1429 = vst [vmem:[%s14389_s30 + $0x1580] sm:$0xf] %v1428_v48  ;;  %v1432_v50 = vld [vmem:[%s14393_s12 + $0x1588] sm:$0xf] }
 0x1ce   : > { %1431 = vst [vmem:[%s14389_s30 + $0x1588] sm:$0xf] %v1430_v49  ;;  %v1434_v51 = vld [vmem:[%s14393_s12 + $0x158c] sm:$0xf]  ;;  %v1436_v52 = vld [vmem:[%s14393_s12 + $0x15a0] sm:$0xf] }
 0x1cf   : > { %1433 = vst [vmem:[%s14389_s30 + $0x1590] sm:$0xf] %v1432_v50  ;;  %1435 = vst [vmem:[%s14389_s30 + $0x1598] sm:$0xf] %v1434_v51  ;;  %v1438_v53 = vld [vmem:[%s14393_s12 + $0x15a4] sm:$0xf] }
 0x1d0   : > { %1437 = vst [vmem:[%s14389_s30 + $0x15a0] sm:$0xf] %v1436_v52  ;;  %v1440_v54 = vld [vmem:[%s14393_s12 + $0x15a8] sm:$0xf]  ;;  %v1442_v55 = vld [vmem:[%s14393_s12 + $0x15ac] sm:$0xf] }
 0x1d1   : > { %1439 = vst [vmem:[%s14389_s30 + $0x15a8] sm:$0xf] %v1438_v53  ;;  %1441 = vst [vmem:[%s14389_s30 + $0x15b0] sm:$0xf] %v1440_v54  ;;  %v1444_v56 = vld [vmem:[%s14393_s12 + $0x15c0] sm:$0xf] }
 0x1d2   : > { %1443 = vst [vmem:[%s14389_s30 + $0x15b8] sm:$0xf] %v1442_v55  ;;  %v1446_v57 = vld [vmem:[%s14393_s12 + $0x15c4] sm:$0xf]  ;;  %v1448_v58 = vld [vmem:[%s14393_s12 + $0x15c8] sm:$0xf] }
 0x1d3   : > { %1445 = vst [vmem:[%s14389_s30 + $0x15c0] sm:$0xf] %v1444_v56  ;;  %1447 = vst [vmem:[%s14389_s30 + $0x15c8] sm:$0xf] %v1446_v57  ;;  %v1450_v59 = vld [vmem:[%s14393_s12 + $0x15cc] sm:$0xf] }
 0x1d4   : > { %1449 = vst [vmem:[%s14389_s30 + $0x15d0] sm:$0xf] %v1448_v58  ;;  %v1452_v60 = vld [vmem:[%s14393_s12 + $0x15e0] sm:$0xf]  ;;  %v1454_v61 = vld [vmem:[%s14393_s12 + $0x15e4] sm:$0xf] }
 0x1d5   : > { %1451 = vst [vmem:[%s14389_s30 + $0x15d8] sm:$0xf] %v1450_v59  ;;  %1453 = vst [vmem:[%s14389_s30 + $0x15e0] sm:$0xf] %v1452_v60  ;;  %v1456_v62 = vld [vmem:[%s14393_s12 + $0x15e8] sm:$0xf] }
 0x1d6   : > { %1455 = vst [vmem:[%s14389_s30 + $0x15e8] sm:$0xf] %v1454_v61  ;;  %v1458_v63 = vld [vmem:[%s14393_s12 + $0x15ec] sm:$0xf]  ;;  %v1460_v0 = vld [vmem:[%s14393_s12 + $0x1600] sm:$0xf] }
 0x1d7   : > { %1457 = vst [vmem:[%s14389_s30 + $0x15f0] sm:$0xf] %v1456_v62  ;;  %1459 = vst [vmem:[%s14389_s30 + $0x15f8] sm:$0xf] %v1458_v63  ;;  %v1462_v1 = vld [vmem:[%s14393_s12 + $0x1604] sm:$0xf] }
 0x1d8   : > { %1461 = vst [vmem:[%s14389_s30 + $0x1600] sm:$0xf] %v1460_v0  ;;  %v1464_v2 = vld [vmem:[%s14393_s12 + $0x1608] sm:$0xf]  ;;  %v1466_v3 = vld [vmem:[%s14393_s12 + $0x160c] sm:$0xf] }
 0x1d9   : > { %1463 = vst [vmem:[%s14389_s30 + $0x1608] sm:$0xf] %v1462_v1  ;;  %1465 = vst [vmem:[%s14389_s30 + $0x1610] sm:$0xf] %v1464_v2  ;;  %v1468_v4 = vld [vmem:[%s14393_s12 + $0x1620] sm:$0xf] }
 0x1da   : > { %1467 = vst [vmem:[%s14389_s30 + $0x1618] sm:$0xf] %v1466_v3  ;;  %v1470_v5 = vld [vmem:[%s14393_s12 + $0x1624] sm:$0xf]  ;;  %v1472_v6 = vld [vmem:[%s14393_s12 + $0x1628] sm:$0xf] }
 0x1db   : > { %1469 = vst [vmem:[%s14389_s30 + $0x1620] sm:$0xf] %v1468_v4  ;;  %1471 = vst [vmem:[%s14389_s30 + $0x1628] sm:$0xf] %v1470_v5  ;;  %v1474_v7 = vld [vmem:[%s14393_s12 + $0x162c] sm:$0xf] }
 0x1dc   : > { %1473 = vst [vmem:[%s14389_s30 + $0x1630] sm:$0xf] %v1472_v6  ;;  %v1476_v8 = vld [vmem:[%s14393_s12 + $0x1640] sm:$0xf]  ;;  %v1478_v9 = vld [vmem:[%s14393_s12 + $0x1644] sm:$0xf] }
 0x1dd   : > { %1475 = vst [vmem:[%s14389_s30 + $0x1638] sm:$0xf] %v1474_v7  ;;  %1477 = vst [vmem:[%s14389_s30 + $0x1640] sm:$0xf] %v1476_v8  ;;  %v1480_v10 = vld [vmem:[%s14393_s12 + $0x1648] sm:$0xf] }
 0x1de   : > { %1479 = vst [vmem:[%s14389_s30 + $0x1648] sm:$0xf] %v1478_v9  ;;  %v1482_v11 = vld [vmem:[%s14393_s12 + $0x164c] sm:$0xf]  ;;  %v1484_v12 = vld [vmem:[%s14393_s12 + $0x1660] sm:$0xf] }
 0x1df   : > { %1481 = vst [vmem:[%s14389_s30 + $0x1650] sm:$0xf] %v1480_v10  ;;  %1483 = vst [vmem:[%s14389_s30 + $0x1658] sm:$0xf] %v1482_v11  ;;  %v1486_v13 = vld [vmem:[%s14393_s12 + $0x1664] sm:$0xf] }
 0x1e0   : > { %1485 = vst [vmem:[%s14389_s30 + $0x1660] sm:$0xf] %v1484_v12  ;;  %v1488_v14 = vld [vmem:[%s14393_s12 + $0x1668] sm:$0xf]  ;;  %v1490_v15 = vld [vmem:[%s14393_s12 + $0x166c] sm:$0xf] }
 0x1e1   : > { %1487 = vst [vmem:[%s14389_s30 + $0x1668] sm:$0xf] %v1486_v13  ;;  %1489 = vst [vmem:[%s14389_s30 + $0x1670] sm:$0xf] %v1488_v14  ;;  %v1492_v16 = vld [vmem:[%s14393_s12 + $0x1680] sm:$0xf] }
 0x1e2   : > { %1491 = vst [vmem:[%s14389_s30 + $0x1678] sm:$0xf] %v1490_v15  ;;  %v1494_v17 = vld [vmem:[%s14393_s12 + $0x1684] sm:$0xf]  ;;  %v1496_v18 = vld [vmem:[%s14393_s12 + $0x1688] sm:$0xf] }
 0x1e3   : > { %1493 = vst [vmem:[%s14389_s30 + $0x1680] sm:$0xf] %v1492_v16  ;;  %1495 = vst [vmem:[%s14389_s30 + $0x1688] sm:$0xf] %v1494_v17  ;;  %v1498_v19 = vld [vmem:[%s14393_s12 + $0x168c] sm:$0xf] }
 0x1e4   : > { %1497 = vst [vmem:[%s14389_s30 + $0x1690] sm:$0xf] %v1496_v18  ;;  %v1500_v20 = vld [vmem:[%s14393_s12 + $0x16a0] sm:$0xf]  ;;  %v1502_v21 = vld [vmem:[%s14393_s12 + $0x16a4] sm:$0xf] }
 0x1e5   : > { %1499 = vst [vmem:[%s14389_s30 + $0x1698] sm:$0xf] %v1498_v19  ;;  %1501 = vst [vmem:[%s14389_s30 + $0x16a0] sm:$0xf] %v1500_v20  ;;  %v1504_v22 = vld [vmem:[%s14393_s12 + $0x16a8] sm:$0xf] }
 0x1e6   : > { %1503 = vst [vmem:[%s14389_s30 + $0x16a8] sm:$0xf] %v1502_v21  ;;  %v1506_v23 = vld [vmem:[%s14393_s12 + $0x16ac] sm:$0xf]  ;;  %v1508_v24 = vld [vmem:[%s14393_s12 + $0x16c0] sm:$0xf] }
 0x1e7   : > { %1505 = vst [vmem:[%s14389_s30 + $0x16b0] sm:$0xf] %v1504_v22  ;;  %1507 = vst [vmem:[%s14389_s30 + $0x16b8] sm:$0xf] %v1506_v23  ;;  %v1510_v25 = vld [vmem:[%s14393_s12 + $0x16c4] sm:$0xf] }
 0x1e8   : > { %1509 = vst [vmem:[%s14389_s30 + $0x16c0] sm:$0xf] %v1508_v24  ;;  %v1512_v26 = vld [vmem:[%s14393_s12 + $0x16c8] sm:$0xf]  ;;  %v1514_v27 = vld [vmem:[%s14393_s12 + $0x16cc] sm:$0xf] }
 0x1e9   : > { %1511 = vst [vmem:[%s14389_s30 + $0x16c8] sm:$0xf] %v1510_v25  ;;  %1513 = vst [vmem:[%s14389_s30 + $0x16d0] sm:$0xf] %v1512_v26  ;;  %v1516_v28 = vld [vmem:[%s14393_s12 + $0x16e0] sm:$0xf] }
 0x1ea   : > { %1515 = vst [vmem:[%s14389_s30 + $0x16d8] sm:$0xf] %v1514_v27  ;;  %v1518_v29 = vld [vmem:[%s14393_s12 + $0x16e4] sm:$0xf]  ;;  %v1520_v30 = vld [vmem:[%s14393_s12 + $0x16e8] sm:$0xf] }
 0x1eb   : > { %1517 = vst [vmem:[%s14389_s30 + $0x16e0] sm:$0xf] %v1516_v28  ;;  %1519 = vst [vmem:[%s14389_s30 + $0x16e8] sm:$0xf] %v1518_v29  ;;  %v1522_v31 = vld [vmem:[%s14393_s12 + $0x16ec] sm:$0xf] }
 0x1ec   : > { %1521 = vst [vmem:[%s14389_s30 + $0x16f0] sm:$0xf] %v1520_v30  ;;  %v1524_v32 = vld [vmem:[%s14393_s12 + $0x1700] sm:$0xf]  ;;  %v1526_v33 = vld [vmem:[%s14393_s12 + $0x1704] sm:$0xf] }
 0x1ed   : > { %1523 = vst [vmem:[%s14389_s30 + $0x16f8] sm:$0xf] %v1522_v31  ;;  %1525 = vst [vmem:[%s14389_s30 + $0x1700] sm:$0xf] %v1524_v32  ;;  %v1528_v34 = vld [vmem:[%s14393_s12 + $0x1708] sm:$0xf] }
 0x1ee   : > { %1527 = vst [vmem:[%s14389_s30 + $0x1708] sm:$0xf] %v1526_v33  ;;  %v1530_v35 = vld [vmem:[%s14393_s12 + $0x170c] sm:$0xf]  ;;  %v1532_v36 = vld [vmem:[%s14393_s12 + $0x1720] sm:$0xf] }
 0x1ef   : > { %1529 = vst [vmem:[%s14389_s30 + $0x1710] sm:$0xf] %v1528_v34  ;;  %1531 = vst [vmem:[%s14389_s30 + $0x1718] sm:$0xf] %v1530_v35  ;;  %v1534_v37 = vld [vmem:[%s14393_s12 + $0x1724] sm:$0xf] }
 0x1f0   : > { %1533 = vst [vmem:[%s14389_s30 + $0x1720] sm:$0xf] %v1532_v36  ;;  %v1536_v38 = vld [vmem:[%s14393_s12 + $0x1728] sm:$0xf]  ;;  %v1538_v39 = vld [vmem:[%s14393_s12 + $0x172c] sm:$0xf] }
 0x1f1   : > { %1535 = vst [vmem:[%s14389_s30 + $0x1728] sm:$0xf] %v1534_v37  ;;  %1537 = vst [vmem:[%s14389_s30 + $0x1730] sm:$0xf] %v1536_v38  ;;  %v1540_v40 = vld [vmem:[%s14393_s12 + $0x1740] sm:$0xf] }
 0x1f2   : > { %1539 = vst [vmem:[%s14389_s30 + $0x1738] sm:$0xf] %v1538_v39  ;;  %v1542_v41 = vld [vmem:[%s14393_s12 + $0x1744] sm:$0xf]  ;;  %v1544_v42 = vld [vmem:[%s14393_s12 + $0x1748] sm:$0xf] }
 0x1f3   : > { %1541 = vst [vmem:[%s14389_s30 + $0x1740] sm:$0xf] %v1540_v40  ;;  %1543 = vst [vmem:[%s14389_s30 + $0x1748] sm:$0xf] %v1542_v41  ;;  %v1546_v43 = vld [vmem:[%s14393_s12 + $0x174c] sm:$0xf] }
 0x1f4   : > { %1545 = vst [vmem:[%s14389_s30 + $0x1750] sm:$0xf] %v1544_v42  ;;  %v1548_v44 = vld [vmem:[%s14393_s12 + $0x1760] sm:$0xf]  ;;  %v1550_v45 = vld [vmem:[%s14393_s12 + $0x1764] sm:$0xf] }
 0x1f5   : > { %1547 = vst [vmem:[%s14389_s30 + $0x1758] sm:$0xf] %v1546_v43  ;;  %1549 = vst [vmem:[%s14389_s30 + $0x1760] sm:$0xf] %v1548_v44  ;;  %v1552_v46 = vld [vmem:[%s14393_s12 + $0x1768] sm:$0xf] }
 0x1f6   : > { %1551 = vst [vmem:[%s14389_s30 + $0x1768] sm:$0xf] %v1550_v45  ;;  %v1554_v47 = vld [vmem:[%s14393_s12 + $0x176c] sm:$0xf]  ;;  %v1556_v48 = vld [vmem:[%s14393_s12 + $0x1780] sm:$0xf] }
 0x1f7   : > { %1553 = vst [vmem:[%s14389_s30 + $0x1770] sm:$0xf] %v1552_v46  ;;  %1555 = vst [vmem:[%s14389_s30 + $0x1778] sm:$0xf] %v1554_v47  ;;  %v1558_v49 = vld [vmem:[%s14393_s12 + $0x1784] sm:$0xf] }
 0x1f8   : > { %1557 = vst [vmem:[%s14389_s30 + $0x1780] sm:$0xf] %v1556_v48  ;;  %v1560_v50 = vld [vmem:[%s14393_s12 + $0x1788] sm:$0xf]  ;;  %v1562_v51 = vld [vmem:[%s14393_s12 + $0x178c] sm:$0xf] }
 0x1f9   : > { %1559 = vst [vmem:[%s14389_s30 + $0x1788] sm:$0xf] %v1558_v49  ;;  %1561 = vst [vmem:[%s14389_s30 + $0x1790] sm:$0xf] %v1560_v50  ;;  %v1564_v52 = vld [vmem:[%s14393_s12 + $0x17a0] sm:$0xf] }
 0x1fa   : > { %1563 = vst [vmem:[%s14389_s30 + $0x1798] sm:$0xf] %v1562_v51  ;;  %v1566_v53 = vld [vmem:[%s14393_s12 + $0x17a4] sm:$0xf]  ;;  %v1568_v54 = vld [vmem:[%s14393_s12 + $0x17a8] sm:$0xf] }
 0x1fb   : > { %1565 = vst [vmem:[%s14389_s30 + $0x17a0] sm:$0xf] %v1564_v52  ;;  %1567 = vst [vmem:[%s14389_s30 + $0x17a8] sm:$0xf] %v1566_v53  ;;  %v1570_v55 = vld [vmem:[%s14393_s12 + $0x17ac] sm:$0xf] }
 0x1fc   : > { %1569 = vst [vmem:[%s14389_s30 + $0x17b0] sm:$0xf] %v1568_v54  ;;  %v1572_v56 = vld [vmem:[%s14393_s12 + $0x17c0] sm:$0xf]  ;;  %v1574_v57 = vld [vmem:[%s14393_s12 + $0x17c4] sm:$0xf] }
 0x1fd   : > { %1571 = vst [vmem:[%s14389_s30 + $0x17b8] sm:$0xf] %v1570_v55  ;;  %1573 = vst [vmem:[%s14389_s30 + $0x17c0] sm:$0xf] %v1572_v56  ;;  %v1576_v58 = vld [vmem:[%s14393_s12 + $0x17c8] sm:$0xf] }
 0x1fe   : > { %1575 = vst [vmem:[%s14389_s30 + $0x17c8] sm:$0xf] %v1574_v57  ;;  %v1578_v59 = vld [vmem:[%s14393_s12 + $0x17cc] sm:$0xf]  ;;  %v1580_v60 = vld [vmem:[%s14393_s12 + $0x17e0] sm:$0xf] }
 0x1ff   : > { %1577 = vst [vmem:[%s14389_s30 + $0x17d0] sm:$0xf] %v1576_v58  ;;  %1579 = vst [vmem:[%s14389_s30 + $0x17d8] sm:$0xf] %v1578_v59  ;;  %v1582_v61 = vld [vmem:[%s14393_s12 + $0x17e4] sm:$0xf] }
 0x200   : > { %1581 = vst [vmem:[%s14389_s30 + $0x17e0] sm:$0xf] %v1580_v60  ;;  %v1584_v62 = vld [vmem:[%s14393_s12 + $0x17e8] sm:$0xf]  ;;  %v1586_v63 = vld [vmem:[%s14393_s12 + $0x17ec] sm:$0xf] }
 0x201   : > { %1583 = vst [vmem:[%s14389_s30 + $0x17e8] sm:$0xf] %v1582_v61  ;;  %1585 = vst [vmem:[%s14389_s30 + $0x17f0] sm:$0xf] %v1584_v62  ;;  %v1588_v0 = vld [vmem:[%s14393_s12 + $0x1800] sm:$0xf] }
 0x202   : > { %1587 = vst [vmem:[%s14389_s30 + $0x17f8] sm:$0xf] %v1586_v63  ;;  %v1590_v1 = vld [vmem:[%s14393_s12 + $0x1804] sm:$0xf]  ;;  %v1592_v2 = vld [vmem:[%s14393_s12 + $0x1808] sm:$0xf] }
 0x203   : > { %1589 = vst [vmem:[%s14389_s30 + $0x1800] sm:$0xf] %v1588_v0  ;;  %1591 = vst [vmem:[%s14389_s30 + $0x1808] sm:$0xf] %v1590_v1  ;;  %v1594_v3 = vld [vmem:[%s14393_s12 + $0x180c] sm:$0xf] }
 0x204   : > { %1593 = vst [vmem:[%s14389_s30 + $0x1810] sm:$0xf] %v1592_v2  ;;  %v1596_v4 = vld [vmem:[%s14393_s12 + $0x1820] sm:$0xf]  ;;  %v1598_v5 = vld [vmem:[%s14393_s12 + $0x1824] sm:$0xf] }
 0x205   : > { %1595 = vst [vmem:[%s14389_s30 + $0x1818] sm:$0xf] %v1594_v3  ;;  %1597 = vst [vmem:[%s14389_s30 + $0x1820] sm:$0xf] %v1596_v4  ;;  %v1600_v6 = vld [vmem:[%s14393_s12 + $0x1828] sm:$0xf] }
 0x206   : > { %1599 = vst [vmem:[%s14389_s30 + $0x1828] sm:$0xf] %v1598_v5  ;;  %v1602_v7 = vld [vmem:[%s14393_s12 + $0x182c] sm:$0xf]  ;;  %v1604_v8 = vld [vmem:[%s14393_s12 + $0x1840] sm:$0xf] }
 0x207   : > { %1601 = vst [vmem:[%s14389_s30 + $0x1830] sm:$0xf] %v1600_v6  ;;  %1603 = vst [vmem:[%s14389_s30 + $0x1838] sm:$0xf] %v1602_v7  ;;  %v1606_v9 = vld [vmem:[%s14393_s12 + $0x1844] sm:$0xf] }
 0x208   : > { %1605 = vst [vmem:[%s14389_s30 + $0x1840] sm:$0xf] %v1604_v8  ;;  %v1608_v10 = vld [vmem:[%s14393_s12 + $0x1848] sm:$0xf]  ;;  %v1610_v11 = vld [vmem:[%s14393_s12 + $0x184c] sm:$0xf] }
 0x209   : > { %1607 = vst [vmem:[%s14389_s30 + $0x1848] sm:$0xf] %v1606_v9  ;;  %1609 = vst [vmem:[%s14389_s30 + $0x1850] sm:$0xf] %v1608_v10  ;;  %v1612_v12 = vld [vmem:[%s14393_s12 + $0x1860] sm:$0xf] }
 0x20a   : > { %1611 = vst [vmem:[%s14389_s30 + $0x1858] sm:$0xf] %v1610_v11  ;;  %v1614_v13 = vld [vmem:[%s14393_s12 + $0x1864] sm:$0xf]  ;;  %v1616_v14 = vld [vmem:[%s14393_s12 + $0x1868] sm:$0xf] }
 0x20b   : > { %1613 = vst [vmem:[%s14389_s30 + $0x1860] sm:$0xf] %v1612_v12  ;;  %1615 = vst [vmem:[%s14389_s30 + $0x1868] sm:$0xf] %v1614_v13  ;;  %v1618_v15 = vld [vmem:[%s14393_s12 + $0x186c] sm:$0xf] }
 0x20c   : > { %1617 = vst [vmem:[%s14389_s30 + $0x1870] sm:$0xf] %v1616_v14  ;;  %1619 = vst [vmem:[%s14389_s30 + $0x1878] sm:$0xf] %v1618_v15  ;;  %p1621_p0 = scmp.ge.s32.totalorder %s1620_s15, 2  ;;  %s48_s14 = sadd.s32 1, %s14401_s14  }
 0x20d   : > { %p45_p1 = scmp.ge.s32.totalorder %s48_s14, 2  }
 0x20e   : > { %s17746_s15 = smov (%p1621_p0, %s1620_s15), 0 }
 0x20f   : > { %s12898_s16 = sshll.u32 %s17746_s15, 4  ;;  %s12899_s17 = sshll.u32 %s17746_s15, 2 }
 0x210   : > { %s1625_s12 = scalar_lea.vmem %s17714_s5, %s12898_s16   ;;  %s1626_s30 = scalar_lea.vmem [#allocation2], %s12899_s17  }
 0x211   : > { %s17726_s13 = smov %s17746_s15  ;;  %47 = sbr.rel (!%p45_p1) target bundleno = 2 (0x2), region = 143 }
 0x218   :  { %6428 = vsyncadd [#allocation6], 100352  ;;  %v14132_v16 = vld [vmem:[%s17710_s1 + $0x40] sm:$0xff]   ;;  %v14136_v20 = vld [vmem:[%s17710_s1 + $0x48] sm:$0xff]   ;;  %v17721_v52 = vmov 0.0   ;;  %vm14404_vm0 = vmmov 0  }
 0x219   :  { %v14133_v17 = vld [vmem:[%s17710_s1 + $0xc0] sm:$0xff]   ;;  %13273 = vmatprep.subr.bf16.mxu0 %v14132_v16  ;;  %v14137_v21 = vld [vmem:[%s17710_s1 + $0xc8] sm:$0xff]   ;;  %v14140_v24 = vld [vmem:[%s17710_s1 + $0x50] sm:$0xff]   ;;  %vm7294_vm1 = vcmask 519168   ;;  %vm7493_vm2 = vcmask 523264   ;;  %vm7789_vm4 = vcmask 1046528  }
 0x21a   :  { %v14134_v18 = vld [vmem:[%s17710_s1] sm:$0xff]   ;;  %13355 = vmatprep.subr.bf16.mxu1 %v14133_v17  ;;  %v14138_v22 = vld [vmem:[%s17710_s1 + $0x8] sm:$0xff]   ;;  %v14141_v25 = vld [vmem:[%s17710_s1 + $0xd0] sm:$0xff]   ;;  %vm7397_vm3 = vsmask.f32 7424  ;;  %vm7315_vm5 = vcmask 516096  }
 0x21b   :  { %v14135_v19 = vld [vmem:[%s17710_s1 + $0x80] sm:$0xff]   ;;  %13274 = vmatpush3.bf16.msra.mxu0 %v14134_v18  ;;  %v14139_v23 = vld [vmem:[%s17710_s1 + $0x88] sm:$0xff]   ;;  %v14142_v26 = vld [vmem:[%s17710_s1 + $0x10] sm:$0xff]   ;;  %vm9395_vm6 = vcmask 1045504   ;;  %vm8575_vm7 = vsmask.f32 6400 }
 0x21c   :  { %13356 = vmatpush3.bf16.msra.mxu1 %v14135_v19  ;;  %13275 = vmatprep.subr.bf16.mxu0 %v14136_v20  ;;  %v14143_v27 = vld [vmem:[%s17710_s1 + $0x90] sm:$0xff]   ;;  %v14144_v28 = vld [vmem:[%s17710_s1 + $0x58] sm:$0xff]   ;;  %v14148_v32 = vld [vmem:[%s17710_s1 + $0x60] sm:$0xff]   ;;  %vm9649_vm8 = vcmask 521216   ;;  %vm9665_vm9 = vcmask 1040896  }
 0x21d   :  { %13357 = vmatprep.subr.bf16.mxu1 %v14137_v21  ;;  %v14145_v29 = vld [vmem:[%s17710_s1 + $0xd8] sm:$0xff]   ;;  %v14149_v33 = vld [vmem:[%s17710_s1 + $0xe0] sm:$0xff]   ;;  %v14152_v36 = vld [vmem:[%s17710_s1 + $0x68] sm:$0xff]  }
 0x21e   :  { %v14146_v30 = vld [vmem:[%s17710_s1 + $0x18] sm:$0xff]   ;;  %v14150_v34 = vld [vmem:[%s17710_s1 + $0x20] sm:$0xff]   ;;  %v14153_v37 = vld [vmem:[%s17710_s1 + $0xe8] sm:$0xff]  }
 0x21f   :  { %13276 = vmatpush3.bf16.msra.mxu0 %v14138_v22  ;;  %v14147_v31 = vld [vmem:[%s17710_s1 + $0x98] sm:$0xff]   ;;  %v14151_v35 = vld [vmem:[%s17710_s1 + $0xa0] sm:$0xff]   ;;  %v14154_v38 = vld [vmem:[%s17710_s1 + $0x28] sm:$0xff]  }
 0x220   :  { %13358 = vmatpush3.bf16.msra.mxu1 %v14139_v23  ;;  %13277 = vmatprep.subr.bf16.mxu0 %v14140_v24  ;;  %v14155_v39 = vld [vmem:[%s17710_s1 + $0xa8] sm:$0xff]   ;;  %v14156_v40 = vld [vmem:[%s17710_s1 + $0x70] sm:$0xff]   ;;  %v14160_v44 = vld [vmem:[%s17710_s1 + $0x78] sm:$0xff]  }
 0x221   :  { %13359 = vmatprep.subr.bf16.mxu1 %v14141_v25  ;;  %v14157_v41 = vld [vmem:[%s17710_s1 + $0xf0] sm:$0xff]   ;;  %v14161_v45 = vld [vmem:[%s17710_s1 + $0xf8] sm:$0xff]   ;;  %v14224_v3 = vld [vmem:[%s17712_s3 + $0x20] sm:$0xff]  }
 0x222   :  { %v14158_v42 = vld [vmem:[%s17710_s1 + $0x30] sm:$0xff]   ;;  %v14162_v46 = vld [vmem:[%s17710_s1 + $0x38] sm:$0xff]   ;;  %v14225_v5 = vld [vmem:[%s17712_s3 + $0x28] sm:$0xff]  }
 0x223   :  { %13278 = vmatpush3.bf16.msra.mxu0 %v14142_v26  ;;  %v14159_v43 = vld [vmem:[%s17710_s1 + $0xb0] sm:$0xff]   ;;  %v14163_v47 = vld [vmem:[%s17710_s1 + $0xb8] sm:$0xff]   ;;  %v6469_v26 = vld [vmem:[%s17709_s0 + $0x140] sm:$0x11] }
 0x224   :  { %13360 = vmatpush3.bf16.msra.mxu1 %v14143_v27  ;;  %13279 = vmatprep.subr.bf16.mxu0 %v14144_v28  ;;  %v14164_v48 = vld [vmem:[%s17709_s0] ss:$16 sps:$4 sm:$0xff]   ;;  %v14166_v49 = vld [vmem:[%s17709_s0 + $0x4] ss:$16 sps:$4 sm:$0xff]   ;;  %v14167_v50 = vld [vmem:[%s17709_s0 + $0x8] ss:$16 sps:$4 sm:$0xff]  }
 0x225   :  { %13361 = vmatprep.subr.bf16.mxu1 %v14145_v29  ;;  %v14169_v51 = vld [vmem:[%s17709_s0 + $0xc] ss:$16 sps:$4 sm:$0xff]   ;;  %6980 = vmatprep.mubr.bf16.mxu0 %v14166_v49  ;;  %v14170_v53 = vld [vmem:[%s17709_s0 + $0x24] ss:$16 sps:$4 sm:$0xff]   ;;  %v14174_v55 = vld [vmem:[%s17709_s0 + $0x20] ss:$16 sps:$4 sm:$0xff]  }
 0x226   :  { %7100 = vmatprep.mubr.bf16.mxu1 %v14169_v51  ;;  %v14172_v54 = vld [vmem:[%s17709_s0 + $0x2c] ss:$16 sps:$4 sm:$0xff]   ;;  %v14175_v56 = vld [vmem:[%s17709_s0 + $0x28] ss:$16 sps:$4 sm:$0xff]   ;;  %v14176_v57 = vld [vmem:[%s17709_s0 + $0x44] ss:$16 sps:$4 sm:$0xff]  }
 0x227   :  { %13280 = vmatpush3.bf16.msra.mxu0 %v14146_v30  ;;  %v14178_v58 = vld [vmem:[%s17709_s0 + $0x4c] ss:$16 sps:$4 sm:$0xff]   ;;  %v14180_v59 = vld [vmem:[%s17709_s0 + $0x40] ss:$16 sps:$4 sm:$0xff]   ;;  %v14181_v60 = vld [vmem:[%s17709_s0 + $0x48] ss:$16 sps:$4 sm:$0xff]   ;;  %v12942_v30 = vcombine.high %v6469_v26, %v6469_v26 }
 0x228   :  { %13362 = vmatpush3.bf16.msra.mxu1 %v14147_v31  ;;  %13281 = vmatprep.subr.bf16.mxu0 %v14148_v32  ;;  %v14182_v61 = vld [vmem:[%s17709_s0 + $0x64] ss:$16 sps:$4 sm:$0xff]   ;;  %v14184_v62 = vld [vmem:[%s17709_s0 + $0x6c] ss:$16 sps:$4 sm:$0xff]   ;;  %v14186_v63 = vld [vmem:[%s17709_s0 + $0x60] ss:$16 sps:$4 sm:$0xff]   ;;  %v12941_v32 = vcombine.low %v6469_v26, %v6469_v26 }
 0x229   :  { %13363 = vmatprep.subr.bf16.mxu1 %v14149_v33  ;;  %v14187_v0 = vld [vmem:[%s17709_s0 + $0x68] ss:$16 sps:$4 sm:$0xff]   ;;  %v14188_v1 = vld [vmem:[%s17709_s0 + $0x84] ss:$16 sps:$4 sm:$0xff]   ;;  %v14190_v2 = vld [vmem:[%s17709_s0 + $0x8c] ss:$16 sps:$4 sm:$0xff]  }
 0x22a   :  { %v14192_v4 = vld [vmem:[%s17709_s0 + $0x80] ss:$16 sps:$4 sm:$0xff]   ;;  %v14193_v6 = vld [vmem:[%s17709_s0 + $0x88] ss:$16 sps:$4 sm:$0xff]   ;;  %v14194_v7 = vld [vmem:[%s17709_s0 + $0xa4] ss:$16 sps:$4 sm:$0xff]  }
 0x22b   :  { %13282 = vmatpush3.bf16.msra.mxu0 %v14150_v34  ;;  %v14196_v8 = vld [vmem:[%s17709_s0 + $0xac] ss:$16 sps:$4 sm:$0xff]   ;;  %v14226_v9 = vld [vmem:[%s17712_s3 + $0x30] sm:$0xff]   ;;  %v14199_v11 = vld [vmem:[%s17709_s0 + $0xa8] ss:$16 sps:$4 sm:$0xff]  }
 0x22c   :  { %13364 = vmatpush3.bf16.msra.mxu1 %v14151_v35  ;;  %13283 = vmatprep.subr.bf16.mxu0 %v14152_v36  ;;  %v14198_v10 = vld [vmem:[%s17709_s0 + $0xa0] ss:$16 sps:$4 sm:$0xff]   ;;  %v14200_v12 = vld [vmem:[%s17709_s0 + $0xc4] ss:$16 sps:$4 sm:$0xff]   ;;  %v14202_v13 = vld [vmem:[%s17709_s0 + $0xcc] ss:$16 sps:$4 sm:$0xff]  }
 0x22d   :  { %13365 = vmatprep.subr.bf16.mxu1 %v14153_v37  ;;  %v14204_v14 = vld [vmem:[%s17709_s0 + $0xc0] ss:$16 sps:$4 sm:$0xff]   ;;  %v14205_v15 = vld [vmem:[%s17709_s0 + $0xc8] ss:$16 sps:$4 sm:$0xff]   ;;  %v14206_v16 = vld [vmem:[%s17709_s0 + $0xe4] ss:$16 sps:$4 sm:$0xff]  }
 0x22e   :  { %v14208_v17 = vld [vmem:[%s17709_s0 + $0xec] ss:$16 sps:$4 sm:$0xff]   ;;  %v14210_v18 = vld [vmem:[%s17709_s0 + $0xe0] ss:$16 sps:$4 sm:$0xff]   ;;  %v14211_v19 = vld [vmem:[%s17709_s0 + $0xe8] ss:$16 sps:$4 sm:$0xff]  }
 0x22f   :  { %13284 = vmatpush3.bf16.msra.mxu0 %v14154_v38  ;;  %v14212_v20 = vld [vmem:[%s17709_s0 + $0x104] ss:$16 sps:$4 sm:$0xff]   ;;  %v14214_v21 = vld [vmem:[%s17709_s0 + $0x10c] ss:$16 sps:$4 sm:$0xff]   ;;  %v14216_v22 = vld [vmem:[%s17709_s0 + $0x100] ss:$16 sps:$4 sm:$0xff]  }
 0x230   :  { %13366 = vmatpush3.bf16.msra.mxu1 %v14155_v39  ;;  %13285 = vmatprep.subr.bf16.mxu0 %v14156_v40  ;;  %v14217_v23 = vld [vmem:[%s17709_s0 + $0x108] ss:$16 sps:$4 sm:$0xff]   ;;  %v14218_v24 = vld [vmem:[%s17709_s0 + $0x124] ss:$16 sps:$4 sm:$0xff]   ;;  %v14221_v25 = vld [vmem:[%s17709_s0 + $0x12c] ss:$16 sps:$4 sm:$0xff]  }
 0x231   :  { %13367 = vmatprep.subr.bf16.mxu1 %v14157_v41  ;;  %v6470_v27 = vld [vmem:[%s17709_s0 + $0x148] sm:$0x11]  ;;  %v14220_v28 = vld [vmem:[%s17709_s0 + $0x120] ss:$16 sps:$4 sm:$0xff]   ;;  %v14235_v37 = vld [vmem:[%s17712_s3 + $0x18] sm:$0xff]  }
 0x232   :  { %v14223_v29 = vld [vmem:[%s17709_s0 + $0x128] ss:$16 sps:$4 sm:$0xff]   ;;  %v12944_v31 = vcombine.high %v6470_v27, %v6470_v27  ;;  %v12943_v33 = vcombine.low %v6470_v27, %v6470_v27  ;;  %v14231_v34 = vld [vmem:[%s17712_s3] sm:$0xff]   ;;  %v14234_v36 = vld [vmem:[%s17712_s3 + $0x10] sm:$0xff]  }
 0x233   :  { %13286 = vmatpush3.bf16.msra.mxu0 %v14158_v42  ;;  %v14232_v35 = vld [vmem:[%s17712_s3 + $0x8] sm:$0xff]   ;;  %v14233_v38 = vld [vmem:[%s17712_s3 + $0x38] sm:$0xff]   ;;  %v16326_v41 = vld [vmem:[%s17711_s2] ss:$0 sm:$0xff] }
 0x234   :  { %13368 = vmatpush3.bf16.msra.mxu1 %v14159_v43  ;;  %13287 = vmatprep.subr.bf16.mxu0 %v14160_v44 }
 0x235   :  { %13369 = vmatprep.subr.bf16.mxu1 %v14161_v45 }
 0x237   :  { %13288 = vmatpush3.bf16.msra.mxu0 %v14162_v46 }
 0x238   :  { %13370 = vmatpush3.bf16.msra.mxu1 %v14163_v47  ;;  %13598 = vmatprep.subr.bf16.mxu0 %v17721_v52 }
 0x239   :  { %13642 = vmatprep.subr.bf16.mxu1 %v17721_v52 }
 0x23a   :  { %6981 = vmatmul.mubr.bf16.vlgmr.msra.gmra.mrb[0].mxu0 %v14164_v48 }
 0x23b   :  { %7101 = vmatmul.mubr.bf16.vlgmr.msra.gmra.mrb[0].mxu1 %v14167_v50  ;;  %6988 = vmatprep.mubr.bf16.mxu0 %v14170_v53 }
 0x23c   :  { %7108 = vmatprep.mubr.bf16.mxu1 %v14172_v54  ;;  %13599 = vmatpush3.bf16.msra.mxu0 %v14224_v3 }
 0x23d   :  { %13600 = vmatprep.subr.bf16.mxu0 %v17721_v52  ;;  %13643 = vmatpush3.bf16.msra.mxu1 %v14231_v34 }
 0x23e   :  { %13644 = vmatprep.subr.bf16.mxu1 %v17721_v52 }
 0x240   :  { %13601 = vmatpush3.bf16.msra.mxu0 %v14225_v5 }
 0x241   :  { %13602 = vmatprep.subr.bf16.mxu0 %v17721_v52  ;;  %13645 = vmatpush3.bf16.msra.mxu1 %v14232_v35 }
 0x242   :  { %6989 = vmatmul.mubr.bf16.gmra.mrb[4].mxu0 %v14174_v55  ;;  %13646 = vmatprep.subr.bf16.mxu1 %v17721_v52 }
 0x243   :  { %7109 = vmatmul.mubr.bf16.gmra.mrb[4].mxu1 %v14175_v56  ;;  %6996 = vmatprep.mubr.bf16.mxu0 %v14176_v57 }
 0x244   :  { %7116 = vmatprep.mubr.bf16.mxu1 %v14178_v58  ;;  %13603 = vmatpush3.bf16.msra.mxu0 %v14226_v9 }
 0x245   :  { %13604 = vmatprep.subr.bf16.mxu0 %v17721_v52  ;;  %13647 = vmatpush3.bf16.msra.mxu1 %v14234_v36 }
 0x246   :  { %13648 = vmatprep.subr.bf16.mxu1 %v17721_v52 }
 0x248   :  { %13605 = vmatpush3.bf16.msra.mxu0 %v14233_v38 }
 0x249   :  { %13649 = vmatpush3.bf16.msra.mxu1 %v14235_v37  ;;  %13686 = vmatprep.subr.bf16.mxu0 %v17721_v52 }
 0x24a   :  { %6997 = vmatmul.mubr.bf16.gmra.mrb[8].mxu0 %v14180_v59  ;;  %13730 = vmatprep.subr.bf16.mxu1 %v17721_v52 }
 0x24b   :  { %7117 = vmatmul.mubr.bf16.gmra.mrb[8].mxu1 %v14181_v60  ;;  %7004 = vmatprep.mubr.bf16.mxu0 %v14182_v61 }
 0x24c   :  { %7124 = vmatprep.mubr.bf16.mxu1 %v14184_v62 }
 0x252   :  { %7005 = vmatmul.mubr.bf16.gmra.mrb[12].mxu0 %v14186_v63 }
 0x253   :  { %7125 = vmatmul.mubr.bf16.gmra.mrb[12].mxu1 %v14187_v0  ;;  %7012 = vmatprep.mubr.bf16.mxu0 %v14188_v1 }
 0x254   :  { %7132 = vmatprep.mubr.bf16.mxu1 %v14190_v2 }
 0x25a   :  { %7013 = vmatmul.mubr.bf16.gmra.mrb[16].mxu0 %v14192_v4 }
 0x25b   :  { %7133 = vmatmul.mubr.bf16.gmra.mrb[16].mxu1 %v14193_v6  ;;  %7020 = vmatprep.mubr.bf16.mxu0 %v14194_v7 }
 0x25c   :  { %7140 = vmatprep.mubr.bf16.mxu1 %v14196_v8 }
 0x262   :  { %7021 = vmatmul.mubr.bf16.gmra.mrb[20].mxu0 %v14198_v10 }
 0x263   :  { %7141 = vmatmul.mubr.bf16.gmra.mrb[20].mxu1 %v14199_v11  ;;  %7028 = vmatprep.mubr.bf16.mxu0 %v14200_v12 }
 0x264   :  { %7148 = vmatprep.mubr.bf16.mxu1 %v14202_v13 }
 0x26a   :  { %7029 = vmatmul.mubr.bf16.gmra.mrb[24].mxu0 %v14204_v14 }
 0x26b   :  { %7149 = vmatmul.mubr.bf16.gmra.mrb[24].mxu1 %v14205_v15  ;;  %7036 = vmatprep.mubr.bf16.mxu0 %v14206_v16 }
 0x26c   :  { %7156 = vmatprep.mubr.bf16.mxu1 %v14208_v17 }
 0x272   :  { %7037 = vmatmul.mubr.bf16.gmra.mrb[28].mxu0 %v14210_v18 }
 0x273   :  { %7157 = vmatmul.mubr.bf16.gmra.mrb[28].mxu1 %v14211_v19  ;;  %7044 = vmatprep.mubr.bf16.mxu0 %v14212_v20 }
 0x274   :  { %7164 = vmatprep.mubr.bf16.mxu1 %v14214_v21 }
 0x27a   :  { %7045 = vmatmul.mubr.bf16.gmra.mrb[32].mxu0 %v14216_v22 }
 0x27b   :  { %7165 = vmatmul.mubr.bf16.gmra.mrb[32].mxu1 %v14217_v23  ;;  %7052 = vmatprep.mubr.bf16.mxu0 %v14218_v24 }
 0x27c   :  { %7172 = vmatprep.mubr.bf16.mxu1 %v14221_v25 }
 0x282   :  { %7053 = vmatmul.mubr.bf16.gmra.mrb[36].mxu0 %v14220_v28 }
 0x283   :  { %7173 = vmatmul.mubr.bf16.gmra.mrb[36].mxu1 %v14223_v29  ;;  %7060 = vmatprep.mubr.bf16.mxu0 %v12942_v30  ;;  %v14247_v29 = vld [vmem:[%s17712_s3 + $0x60] sm:$0xff]  }
 0x284   :  { %7180 = vmatprep.mubr.bf16.mxu1 %v12944_v31 }
 0x28a   :  { %7061 = vmatmul.mubr.bf16.gmra.mrb[40].mxu0 %v12941_v32 }
 0x28b   :  { %7181 = vmatmul.mubr.bf16.gmra.mrb[40].mxu1 %v12943_v33  ;;  %13606 = vmatprep.mubr.msk.bf16.mxu0 %vm14404_vm0, %v17721_v52 }
 0x28c   :  { %13650 = vmatprep.mubr.msk.bf16.mxu1 %vm14404_vm0, %v17721_v52 }
 0x30d   :  { %v13289_v39 = vpop.f32.mrb[0].mxu0 }
 0x30e   :  { %v13371_v40 = vpop.f32.mrb[0].mxu1  ;;  %v13290_v42 = vpop.f32.mrb[1].mxu0 }
 0x30f   :  { %v13291_v43 = vadd.f32 %v13290_v42, %v13289_v39  ;;  %v13372_v44 = vpop.f32.mrb[1].mxu1  ;;  %v13292_v45 = vpop.f32.mrb[2].mxu0 }
 0x310   :  { %v13373_v46 = vadd.f32 %v13372_v44, %v13371_v40  ;;  %v13374_v47 = vpop.f32.mrb[2].mxu1  ;;  %v13293_v48 = vpop.f32.mrb[3].mxu0 }
 0x311   :  { %v6983_v49 = vadd.f32 %v13291_v43, %v16326_v41  ;;  %v13294_v50 = vadd.f32 %v13293_v48, %v13292_v45  ;;  %v13375_v51 = vpop.f32.mrb[3].mxu1  ;;  %v14248_v43 = vld [vmem:[%s17712_s3 + $0x68] sm:$0xff]  }
 0x312   :  { %v13376_v53 = vadd.f32 %v13375_v51, %v13374_v47 }
 0x313   :  { %v7103_v54 = vadd.f32 %v13373_v46, %v6983_v49  ;;  %v6986_v55 = vadd.f32 %v13294_v50, %v16326_v41 }
 0x315   :  { %v7188_v56 = vmax.f32 %v7103_v54, 0.0  ;;  %v7106_v57 = vadd.f32 %v13376_v53, %v6986_v55  ;;  %v13295_v58 = vpop.f32.mrb[4].mxu0 }
 0x316   :  { %v13377_v59 = vpop.f32.mrb[4].mxu1  ;;  %v13296_v60 = vpop.f32.mrb[5].mxu0 }
 0x317   :  { %v13252_v61 = vpack.c.bf16 %v7188_v56, %v7188_v56  ;;  %v7189_v62 = vmax.f32 %v7106_v57, 0.0  ;;  %v13297_v63 = vadd.f32 %v13296_v60, %v13295_v58  ;;  %v13378_v0 = vpop.f32.mrb[5].mxu1  ;;  %v13298_v1 = vpop.f32.mrb[6].mxu0  ;;  %v14251_v58 = vld [vmem:[%s17712_s3 + $0x70] sm:$0xff]  }
 0x318   :  { %v13379_v2 = vadd.f32 %v13378_v0, %v13377_v59  ;;  %v13380_v3 = vpop.f32.mrb[6].mxu1  ;;  %v13299_v4 = vpop.f32.mrb[7].mxu0 }
 0x319   :  { %7295 = vst.msk [vmem:[#allocation3] sm:$0xf] %vm7294_vm1, %v13252_v61  ;;  %v13253_v5 = vpack.c.bf16 %v7189_v62, %v7189_v62  ;;  %v6991_v6 = vadd.f32 %v13297_v63, %v16326_v41  ;;  %v13300_v7 = vadd.f32 %v13299_v4, %v13298_v1  ;;  %v13381_v8 = vpop.f32.mrb[7].mxu1 }
 0x31a   :  { %v13382_v9 = vadd.f32 %v13381_v8, %v13380_v3 }
 0x31b   :  { %7296 = vst.msk [vmem:[#allocation3 + $0x4] sm:$0xf] %vm7294_vm1, %v13253_v5  ;;  %v7111_v10 = vadd.f32 %v13379_v2, %v6991_v6  ;;  %v6994_v11 = vadd.f32 %v13300_v7, %v16326_v41 }
 0x31d   :  { %v7190_v12 = vmax.f32 %v7111_v10, 0.0  ;;  %v7114_v13 = vadd.f32 %v13382_v9, %v6994_v11  ;;  %v13301_v14 = vpop.f32.mrb[8].mxu0 }
 0x31e   :  { %v13383_v15 = vpop.f32.mrb[8].mxu1  ;;  %v13302_v16 = vpop.f32.mrb[9].mxu0 }
 0x31f   :  { %v13254_v17 = vpack.c.bf16 %v7190_v12, %v7190_v12  ;;  %v7191_v18 = vmax.f32 %v7114_v13, 0.0  ;;  %v13303_v19 = vadd.f32 %v13302_v16, %v13301_v14  ;;  %v13384_v20 = vpop.f32.mrb[9].mxu1  ;;  %v13304_v21 = vpop.f32.mrb[10].mxu0  ;;  %v14238_v12 = vld [vmem:[%s17712_s3 + $0x40] sm:$0xff]  }
 0x320   :  { %v13385_v22 = vadd.f32 %v13384_v20, %v13383_v15  ;;  %v13386_v23 = vpop.f32.mrb[10].mxu1  ;;  %v13305_v24 = vpop.f32.mrb[11].mxu0  ;;  %v7317_v31 = vld [vmem:[#allocation3] sm:$0xf] }
 0x321   :  { %7297 = vst.msk [vmem:[#allocation3 + $0x8] sm:$0xf] %vm7294_vm1, %v13254_v17  ;;  %v13255_v25 = vpack.c.bf16 %v7191_v18, %v7191_v18  ;;  %v6999_v26 = vadd.f32 %v13303_v19, %v16326_v41  ;;  %v13306_v27 = vadd.f32 %v13305_v24, %v13304_v21  ;;  %v13387_v28 = vpop.f32.mrb[11].mxu1  ;;  %v7777_v53 = vld [vmem:[#allocation3] sm:$0xe]  ;;  %v14253_v18 = vld [vmem:[%s17712_s3 + $0x78] sm:$0xff]  }
 0x322   :  { %v13388_v30 = vadd.f32 %v13387_v28, %v13386_v23  ;;  %v7318_v32 = vld [vmem:[#allocation3 + $0x4] sm:$0xf] }
 0x323   :  { %7298 = vst.msk [vmem:[#allocation3 + $0xc] sm:$0xf] %vm7294_vm1, %v13255_v25  ;;  %v7119_v33 = vadd.f32 %v13385_v22, %v6999_v26  ;;  %v7002_v34 = vadd.f32 %v13306_v27, %v16326_v41  ;;  %v12998_v35 = vcombine.low %v7317_v31, %v7318_v32  ;;  %v13034_v59 = vcombine.low %v7777_v53, %v7318_v32  ;;  %v14241_v25 = vld [vmem:[%s17712_s3 + $0x48] sm:$0xff]   ;;  %v8297_v31 = vld [vmem:[#allocation3 + $0x4] sm:$0xe] }
 0x325   :  { %v7192_v36 = vmax.f32 %v7119_v33, 0.0  ;;  %v7122_v37 = vadd.f32 %v13388_v30, %v7002_v34  ;;  %v13307_v38 = vpop.f32.mrb[12].mxu0  ;;  %13651 = vmatmul.mubr.msk.bf16.vlgmr.msra.gmra.mrb[44].mxu1 %vm7493_vm2, %v12998_v35  ;;  %v7401_v42 = vshll.u32 %v12998_v35, 16  ;;  %v7399_v1 = vshrl.u32 %v12998_v35, 16 }
 0x326   :  { %v13389_v39 = vpop.f32.mrb[12].mxu1  ;;  %v13308_v40 = vpop.f32.mrb[13].mxu0  ;;  %13654 = vmatprep.mubr.msk.bf16.mxu1 %vm14404_vm0, %v17721_v52  ;;  %13731 = vmatpush3.bf16.msra.mxu1 %v14247_v29  ;;  %v7790_v6 = vrot.slane %v13034_v59, 1 }
 0x327   :  { %v13256_v44 = vpack.c.bf16 %v7192_v36, %v7192_v36  ;;  %v7193_v45 = vmax.f32 %v7122_v37, 0.0  ;;  %v13309_v46 = vadd.f32 %v13308_v40, %v13307_v38  ;;  %v13390_v47 = vpop.f32.mrb[13].mxu1  ;;  %v13310_v48 = vpop.f32.mrb[14].mxu0  ;;  %13732 = vmatprep.subr.bf16.mxu1 %v17721_v52  ;;  %v7403_v62 = vrot.slane %v7401_v42, 1 }
 0x328   :  { %v13391_v49 = vadd.f32 %v13390_v47, %v13389_v39  ;;  %v13392_v50 = vpop.f32.mrb[14].mxu1  ;;  %v13311_v51 = vpop.f32.mrb[15].mxu0  ;;  %v16371_v19 = vld [vmem:[#allocation3 + $0x8] sm:$0xf] }
 0x329   :  { %7299 = vst.msk [vmem:[#allocation3 + $0x10] sm:$0xf] %vm7294_vm1, %v13256_v44  ;;  %v13257_v54 = vpack.c.bf16 %v7193_v45, %v7193_v45  ;;  %v7007_v55 = vadd.f32 %v13309_v46, %v16326_v41  ;;  %v13312_v56 = vadd.f32 %v13311_v51, %v13310_v48  ;;  %v13393_v57 = vpop.f32.mrb[15].mxu1  ;;  %v7404_v10 = vor.u32 %v7403_v62, %v7399_v1  ;;  %v14245_v48 = vld [vmem:[%s17712_s3 + $0x50] sm:$0xff]  }
 0x32a   :  { %v13394_v60 = vadd.f32 %v13393_v57, %v13392_v50  ;;  %v16353_v61 = vld [vmem:[#allocation3 + $0x8] sm:$0xff]   ;;  %13733 = vmatpush3.bf16.msra.mxu1 %v14248_v43  ;;  %v13070_v36 = vcombine.low %v8297_v31, %v16371_v19 }
 0x32b   :  { %7300 = vst.msk [vmem:[#allocation3 + $0x14] sm:$0xf] %vm7294_vm1, %v13257_v54  ;;  %v7127_v63 = vadd.f32 %v13391_v49, %v7007_v55  ;;  %v7010_v0 = vadd.f32 %v13312_v56, %v16326_v41  ;;  %13734 = vmatprep.subr.bf16.mxu1 %v17721_v52  ;;  %v7406_v2 = vshll.u32 %v16353_v61, 16  ;;  %v7791_v7 = vrot.slane %v16353_v61, 1 }
 0x32c   :  { %v7410_v37 = vshrl.u32 %v16353_v61, 16  ;;  %v8309_v57 = vrot.slane %v13070_v36, 1 }
 0x32d   :  { %v7194_v3 = vmax.f32 %v7127_v63, 0.0  ;;  %v7130_v4 = vadd.f32 %v13394_v60, %v7010_v0  ;;  %v13313_v5 = vpop.f32.mrb[16].mxu0  ;;  %13655 = vmatmul.mubr.msk.bf16.gmra.mrb[48].mxu1 %vm7493_vm2, %v16353_v61  ;;  %v7408_v11 = vrot.slane %v7406_v2, 1  ;;  %v16374_v20 = vsel %vm7789_vm4, %v7790_v6, %v7791_v7  ;;  %v14252_v2 = vld [vmem:[%s17712_s3 + $0x58] sm:$0xff]  }
 0x32e   :  { %v13395_v8 = vpop.f32.mrb[16].mxu1  ;;  %v13314_v9 = vpop.f32.mrb[17].mxu0  ;;  %13658 = vmatprep.mubr.msk.bf16.mxu1 %vm14404_vm0, %v17721_v52  ;;  %13735 = vmatpush3.bf16.msra.mxu1 %v14251_v58 }
 0x32f   :  { %v13258_v13 = vpack.c.bf16 %v7194_v3, %v7194_v3  ;;  %v7195_v14 = vmax.f32 %v7130_v4, 0.0  ;;  %v13315_v15 = vadd.f32 %v13314_v9, %v13313_v5  ;;  %v13396_v16 = vpop.f32.mrb[17].mxu1  ;;  %v13316_v17 = vpop.f32.mrb[18].mxu0  ;;  %13736 = vmatprep.subr.bf16.mxu1 %v17721_v52  ;;  %v7409_v24 = vsel %vm7397_vm3, %v7404_v10, %v7408_v11 }
 0x330   :  { %v13397_v21 = vadd.f32 %v13396_v16, %v13395_v8  ;;  %v13398_v22 = vpop.f32.mrb[18].mxu1  ;;  %v13317_v23 = vpop.f32.mrb[19].mxu0  ;;  %13607 = vmatmul.mubr.msk.bf16.vlgmr.msra.gmra.mrb[44].mxu0 %vm7493_vm2, %v7409_v24  ;;  %v16383_v30 = vld [vmem:[#allocation3 + $0xc] sm:$0xff]   ;;  %v7412_v46 = vor.u32 %v7410_v37, %v7408_v11 }
 0x331   :  { %7301 = vst.msk [vmem:[#allocation3 + $0x18] sm:$0xf] %vm7294_vm1, %v13258_v13  ;;  %v13259_v26 = vpack.c.bf16 %v7195_v14, %v7195_v14  ;;  %v7015_v27 = vadd.f32 %v13315_v15, %v16326_v41  ;;  %v13318_v28 = vadd.f32 %v13317_v23, %v13316_v17  ;;  %v13399_v29 = vpop.f32.mrb[19].mxu1  ;;  %13687 = vmatpush3.bf16.msra.mxu0 %v14238_v12  ;;  %v8310_v50 = vrot.slane %v16383_v30, 1 }
 0x332   :  { %v13400_v32 = vadd.f32 %v13399_v29, %v13398_v22  ;;  %v16385_v33 = vld [vmem:[#allocation3 + $0x10] sm:$0xff]   ;;  %13610 = vmatprep.mubr.msk.bf16.mxu0 %vm14404_vm0, %v17721_v52  ;;  %13688 = vmatprep.subr.bf16.mxu0 %v17721_v52 }
 0x333   :  { %7302 = vst.msk [vmem:[#allocation3 + $0x1c] sm:$0xf] %vm7294_vm1, %v13259_v26  ;;  %v7135_v34 = vadd.f32 %v13397_v21, %v7015_v27  ;;  %v7018_v35 = vadd.f32 %v13318_v28, %v16326_v41  ;;  %13737 = vmatpush3.bf16.msra.mxu1 %v14253_v18  ;;  %v7414_v38 = vshll.u32 %v16385_v33, 16  ;;  %v7793_v39 = vrot.slane %v16385_v33, 1 }
 0x334   :  { %13818 = vmatprep.subr.bf16.mxu1 %v17721_v52  ;;  %v16421_v5 = vsel %vm7789_vm4, %v8309_v57, %v8310_v50  ;;  %v7418_v8 = vshrl.u32 %v16385_v33, 16 }
 0x335   :  { %v7196_v40 = vmax.f32 %v7135_v34, 0.0  ;;  %v7138_v42 = vadd.f32 %v13400_v32, %v7018_v35  ;;  %v13319_v43 = vpop.f32.mrb[20].mxu0  ;;  %13659 = vmatmul.mubr.msk.bf16.gmra.mrb[52].mxu1 %vm7493_vm2, %v16385_v33  ;;  %v7416_v47 = vrot.slane %v7414_v38, 1  ;;  %13689 = vmatpush3.bf16.msra.mxu0 %v14241_v25  ;;  %v16405_v49 = vsel %vm7789_vm4, %v7791_v7, %v7793_v39 }
 0x336   :  { %v13401_v44 = vpop.f32.mrb[20].mxu1  ;;  %v13320_v45 = vpop.f32.mrb[21].mxu0  ;;  %13662 = vmatprep.mubr.msk.bf16.mxu1 %vm14404_vm0, %v17721_v52  ;;  %13690 = vmatprep.subr.bf16.mxu0 %v17721_v52 }
 0x337   :  { %v13260_v51 = vpack.c.bf16 %v7196_v40, %v7196_v40  ;;  %v7197_v53 = vmax.f32 %v7138_v42, 0.0  ;;  %v13321_v54 = vadd.f32 %v13320_v45, %v13319_v43  ;;  %v13402_v55 = vpop.f32.mrb[21].mxu1  ;;  %v13322_v56 = vpop.f32.mrb[22].mxu0  ;;  %v7417_v61 = vsel %vm7397_vm3, %v7412_v46, %v7416_v47 }
 0x338   :  { %v13403_v58 = vadd.f32 %v13402_v55, %v13401_v44  ;;  %v13404_v59 = vpop.f32.mrb[22].mxu1  ;;  %v13323_v60 = vpop.f32.mrb[23].mxu0  ;;  %13611 = vmatmul.mubr.msk.bf16.gmra.mrb[48].mxu0 %vm7493_vm2, %v7417_v61  ;;  %v7420_v16 = vor.u32 %v7418_v8, %v7416_v47 }
 0x339   :  { %7303 = vst.msk [vmem:[#allocation3 + $0x20] sm:$0xf] %vm7294_vm1, %v13260_v51  ;;  %v13261_v62 = vpack.c.bf16 %v7197_v53, %v7197_v53  ;;  %v7023_v63 = vadd.f32 %v13321_v54, %v16326_v41  ;;  %v13324_v0 = vadd.f32 %v13323_v60, %v13322_v56  ;;  %v13405_v1 = vpop.f32.mrb[23].mxu1  ;;  %13614 = vmatprep.mubr.msk.bf16.mxu0 %vm14404_vm0, %v17721_v52 }
 0x33a   :  { %v13406_v3 = vadd.f32 %v13405_v1, %v13404_v59  ;;  %v14240_v4 = vld [vmem:[#allocation3 + $0x18] sm:$0xff]   ;;  %13691 = vmatpush3.bf16.msra.mxu0 %v14245_v48  ;;  %v16448_v59 = vld [vmem:[#allocation3 + $0x14] sm:$0xf] }
 0x33b   :  { %7304 = vst.msk [vmem:[#allocation3 + $0x24] sm:$0xf] %vm7294_vm1, %v13261_v62  ;;  %v7143_v6 = vadd.f32 %v13403_v58, %v7023_v63  ;;  %v7026_v7 = vadd.f32 %v13324_v0, %v16326_v41  ;;  %13692 = vmatprep.subr.bf16.mxu0 %v17721_v52  ;;  %v7422_v9 = vshll.u32 %v14240_v4, 16  ;;  %v7795_v10 = vrot.slane %v14240_v4, 1 }
 0x33d   :  { %v7198_v11 = vmax.f32 %v7143_v6, 0.0  ;;  %v7146_v12 = vadd.f32 %v13406_v3, %v7026_v7  ;;  %v13325_v13 = vpop.f32.mrb[24].mxu0  ;;  %13663 = vmatmul.mubr.msk.bf16.gmra.mrb[56].mxu1 %vm7493_vm2, %v14240_v4  ;;  %v7424_v17 = vrot.slane %v7422_v9, 1  ;;  %v16431_v18 = vsel %vm7789_vm4, %v7793_v39, %v7795_v10  ;;  %v16456_v6 = vld [vmem:[#allocation3 + $0x10] sm:$0xf] }
 0x33e   :  { %v13407_v14 = vpop.f32.mrb[24].mxu1  ;;  %v13326_v15 = vpop.f32.mrb[25].mxu0  ;;  %13666 = vmatprep.mubr.msk.bf16.mxu1 %vm14404_vm0, %v17721_v52  ;;  %13693 = vmatpush3.bf16.msra.mxu0 %v14252_v2  ;;  %v7426_v39 = vshrl.u32 %v14240_v4, 16  ;;  %v16454_v4 = vld [vmem:[#allocation3 + $0x14] sm:$0xff]   ;;  %v13108_v9 = vcombine.low %v16456_v6, %v16448_v59 }
 0x33f   :  { %v13262_v21 = vpack.c.bf16 %v7198_v11, %v7198_v11  ;;  %v7199_v22 = vmax.f32 %v7146_v12, 0.0  ;;  %v13327_v23 = vadd.f32 %v13326_v15, %v13325_v13  ;;  %v13408_v24 = vpop.f32.mrb[25].mxu1  ;;  %v13328_v25 = vpop.f32.mrb[26].mxu0  ;;  %13774 = vmatprep.subr.bf16.mxu0 %v17721_v52  ;;  %v7425_v29 = vsel %vm7397_vm3, %v7420_v16, %v7424_v17 }
 0x340   :  { %v13409_v26 = vadd.f32 %v13408_v24, %v13407_v14  ;;  %v13410_v27 = vpop.f32.mrb[26].mxu1  ;;  %v13329_v28 = vpop.f32.mrb[27].mxu0  ;;  %13615 = vmatmul.mubr.msk.bf16.gmra.mrb[52].mxu0 %vm7493_vm2, %v7425_v29  ;;  %v7428_v48 = vor.u32 %v7426_v39, %v7424_v17 }
 0x341   :  { %7305 = vst.msk [vmem:[#allocation3 + $0x28] sm:$0xf] %vm7294_vm1, %v13262_v21  ;;  %v13263_v31 = vpack.c.bf16 %v7199_v22, %v7199_v22  ;;  %v7031_v32 = vadd.f32 %v13327_v23, %v16326_v41  ;;  %v13330_v33 = vadd.f32 %v13329_v28, %v13328_v25  ;;  %v13411_v34 = vpop.f32.mrb[27].mxu1  ;;  %13618 = vmatprep.mubr.msk.bf16.mxu0 %vm14404_vm0, %v17721_v52  ;;  %v8312_v21 = vrot.slane %v16454_v4, 1 }
 0x342   :  { %v13412_v35 = vadd.f32 %v13411_v34, %v13410_v27  ;;  %v14242_v36 = vld [vmem:[#allocation3 + $0x20] sm:$0xff]  }
 0x343   :  { %7306 = vst.msk [vmem:[#allocation3 + $0x2c] sm:$0xf] %vm7294_vm1, %v13263_v31  ;;  %v7151_v37 = vadd.f32 %v13409_v26, %v7031_v32  ;;  %v7034_v38 = vadd.f32 %v13330_v33, %v16326_v41  ;;  %v7430_v40 = vshll.u32 %v14242_v36, 16  ;;  %v7797_v42 = vrot.slane %v14242_v36, 1  ;;  %v16471_v33 = vld [vmem:[#allocation3 + $0x1c] sm:$0xf] }
 0x344   :  { %v7434_v12 = vshrl.u32 %v14242_v36, 16 }
 0x345   :  { %v7200_v43 = vmax.f32 %v7151_v37, 0.0  ;;  %v7154_v44 = vadd.f32 %v13412_v35, %v7034_v38  ;;  %v13331_v45 = vpop.f32.mrb[28].mxu0  ;;  %13667 = vmatmul.mubr.msk.bf16.gmra.mrb[60].mxu1 %vm7493_vm2, %v14242_v36  ;;  %v7432_v51 = vrot.slane %v7430_v40, 1  ;;  %v16446_v53 = vsel %vm7789_vm4, %v7795_v10, %v7797_v42 }
 0x346   :  { %v13413_v46 = vpop.f32.mrb[28].mxu1  ;;  %v13332_v47 = vpop.f32.mrb[29].mxu0  ;;  %13670 = vmatprep.mubr.msk.bf16.mxu1 %vm14404_vm0, %v17721_v52 }
 0x347   :  { %v13264_v54 = vpack.c.bf16 %v7200_v43, %v7200_v43  ;;  %v7201_v55 = vmax.f32 %v7154_v44, 0.0  ;;  %v13333_v56 = vadd.f32 %v13332_v47, %v13331_v45  ;;  %v13414_v57 = vpop.f32.mrb[29].mxu1  ;;  %v13334_v58 = vpop.f32.mrb[30].mxu0  ;;  %v7433_v63 = vsel %vm7397_vm3, %v7428_v48, %v7432_v51  ;;  %v16477_v43 = vld [vmem:[#allocation3 + $0x1c] sm:$0xff]   ;;  %v16479_v44 = vld [vmem:[#allocation3 + $0x18] sm:$0xf] }
 0x348   :  { %v13415_v60 = vadd.f32 %v13414_v57, %v13413_v46  ;;  %v13416_v61 = vpop.f32.mrb[30].mxu1  ;;  %v13335_v62 = vpop.f32.mrb[31].mxu0  ;;  %13619 = vmatmul.mubr.msk.bf16.gmra.mrb[56].mxu0 %vm7493_vm2, %v7433_v63  ;;  %v7436_v24 = vor.u32 %v7434_v12, %v7432_v51  ;;  %v16486_v45 = vsel %vm7789_vm4, %v8310_v50, %v8312_v21  ;;  %v13109_v48 = vcombine.low %v16479_v44, %v16471_v33 }
 0x349   :  { %7307 = vst.msk [vmem:[#allocation3 + $0x30] sm:$0xf] %vm7294_vm1, %v13264_v54  ;;  %v13265_v0 = vpack.c.bf16 %v7201_v55, %v7201_v55  ;;  %v7039_v1 = vadd.f32 %v13333_v56, %v16326_v41  ;;  %v13336_v2 = vadd.f32 %v13335_v62, %v13334_v58  ;;  %v13417_v3 = vpop.f32.mrb[31].mxu1  ;;  %13622 = vmatprep.mubr.msk.bf16.mxu0 %vm14404_vm0, %v17721_v52 }
 0x34a   :  { %v13418_v7 = vadd.f32 %v13417_v3, %v13416_v61  ;;  %v14243_v8 = vld [vmem:[#allocation3 + $0x28] sm:$0xff]  }
 0x34b   :  { %7308 = vst.msk [vmem:[#allocation3 + $0x34] sm:$0xf] %vm7294_vm1, %v13265_v0  ;;  %v7159_v10 = vadd.f32 %v13415_v60, %v7039_v1  ;;  %v7042_v11 = vadd.f32 %v13336_v2, %v16326_v41  ;;  %v7438_v13 = vshll.u32 %v14243_v8, 16  ;;  %v7799_v14 = vrot.slane %v14243_v8, 1 }
 0x34c   :  { %v7442_v55 = vshrl.u32 %v14243_v8, 16  ;;  %v8314_v2 = vrot.slane %v16477_v43, 1 }
 0x34d   :  { %v7202_v15 = vmax.f32 %v7159_v10, 0.0  ;;  %v7162_v16 = vadd.f32 %v13418_v7, %v7042_v11  ;;  %v13337_v17 = vpop.f32.mrb[32].mxu0  ;;  %13671 = vmatmul.mubr.msk.bf16.gmra.mrb[64].mxu1 %vm7493_vm2, %v14243_v8  ;;  %v7440_v25 = vrot.slane %v7438_v13, 1  ;;  %v16469_v26 = vsel %vm7789_vm4, %v7797_v42, %v7799_v14 }
 0x34e   :  { %v13419_v22 = vpop.f32.mrb[32].mxu1  ;;  %v13338_v23 = vpop.f32.mrb[33].mxu0  ;;  %13674 = vmatprep.mubr.msk.bf16.mxu1 %vm14404_vm0, %v17721_v52 }
 0x34f   :  { %v13266_v27 = vpack.c.bf16 %v7202_v15, %v7202_v15  ;;  %v7203_v28 = vmax.f32 %v7162_v16, 0.0  ;;  %v13339_v29 = vadd.f32 %v13338_v23, %v13337_v17  ;;  %v13420_v31 = vpop.f32.mrb[33].mxu1  ;;  %v13340_v32 = vpop.f32.mrb[34].mxu0  ;;  %v7441_v37 = vsel %vm7397_vm3, %v7436_v24, %v7440_v25  ;;  %v16505_v24 = vld [vmem:[#allocation3 + $0x24] sm:$0xff]  }
 0x350   :  { %v13421_v34 = vadd.f32 %v13420_v31, %v13419_v22  ;;  %v13422_v35 = vpop.f32.mrb[34].mxu1  ;;  %v13341_v36 = vpop.f32.mrb[35].mxu0  ;;  %13623 = vmatmul.mubr.msk.bf16.gmra.mrb[60].mxu0 %vm7493_vm2, %v7441_v37  ;;  %v7444_v63 = vor.u32 %v7442_v55, %v7440_v25 }
 0x351   :  { %7309 = vst.msk [vmem:[#allocation3 + $0x38] sm:$0xf] %vm7294_vm1, %v13266_v27  ;;  %v13267_v38 = vpack.c.bf16 %v7203_v28, %v7203_v28  ;;  %v7047_v39 = vadd.f32 %v13339_v29, %v16326_v41  ;;  %v13342_v40 = vadd.f32 %v13341_v36, %v13340_v32  ;;  %v13423_v42 = vpop.f32.mrb[35].mxu1  ;;  %13626 = vmatprep.mubr.msk.bf16.mxu0 %vm14404_vm0, %v17721_v52 }
 0x352   :  { %v13424_v46 = vadd.f32 %v13423_v42, %v13422_v35  ;;  %v14244_v47 = vld [vmem:[#allocation3 + $0x30] sm:$0xff]   ;;  %v16514_v28 = vsel %vm7789_vm4, %v8312_v21, %v8314_v2  ;;  %v7981_v35 = vld [vmem:[#allocation3 + $0x4] sm:$0xf] }
 0x353   :  { %7310 = vst.msk [vmem:[#allocation3 + $0x3c] sm:$0xf] %vm7294_vm1, %v13267_v38  ;;  %v7167_v51 = vadd.f32 %v13421_v34, %v7047_v39  ;;  %v7050_v54 = vadd.f32 %v13342_v40, %v16326_v41  ;;  %v7446_v56 = vshll.u32 %v14244_v47, 16  ;;  %v7801_v57 = vrot.slane %v14244_v47, 1 }
 0x354   :  { %v7450_v32 = vshrl.u32 %v14244_v47, 16  ;;  %v13048_v39 = vcombine.low %v7981_v35, %v16371_v19  ;;  %v16530_v19 = vld [vmem:[#allocation3 + $0x2c] sm:$0xff]  }
 0x355   :  { %v7204_v58 = vmax.f32 %v7167_v51, 0.0  ;;  %v7170_v60 = vadd.f32 %v13424_v46, %v7050_v54  ;;  %v13343_v50 = vpop.f32.mrb[36].mxu0  ;;  %13675 = vmatmul.mubr.msk.bf16.gmra.mrb[68].mxu1 %vm7493_vm2, %v14244_v47  ;;  %v7448_v0 = vrot.slane %v7446_v56, 1  ;;  %v16498_v1 = vsel %vm7789_vm4, %v7799_v14, %v7801_v57 }
 0x356   :  { %v13344_v61 = vpop.f32.mrb[37].mxu0  ;;  %v13425_v62 = vpop.f32.mrb[36].mxu1  ;;  %13678 = vmatprep.mubr.msk.bf16.mxu1 %vm14404_vm0, %v17721_v52  ;;  %v8316_v47 = vrot.slane %v16505_v24, 1 }
 0x357   :  { %v13268_v3 = vpack.c.bf16 %v7204_v58, %v7204_v58  ;;  %v7205_v7 = vmax.f32 %v7170_v60, 0.0  ;;  %v13345_v8 = vadd.f32 %v13344_v61, %v13343_v50  ;;  %v13346_v10 = vpop.f32.mrb[38].mxu0  ;;  %v13426_v11 = vpop.f32.mrb[37].mxu1  ;;  %v7449_v16 = vsel %vm7397_vm3, %v7444_v63, %v7448_v0 }
 0x358   :  { %v13347_v12 = vpop.f32.mrb[39].mxu0  ;;  %v13427_v13 = vadd.f32 %v13426_v11, %v13425_v62  ;;  %v13428_v15 = vpop.f32.mrb[38].mxu1  ;;  %13627 = vmatmul.mubr.msk.bf16.gmra.mrb[64].mxu0 %vm7493_vm2, %v7449_v16  ;;  %v7452_v40 = vor.u32 %v7450_v32, %v7448_v0  ;;  %v16533_v61 = vsel %vm7789_vm4, %v8314_v2, %v8316_v47  ;;  %v8053_v32 = vshrl.u32 %v13048_v39, 16 }
 0x359   :  { %7311 = vst.msk [vmem:[#allocation3 + $0x40] sm:$0xf] %vm7294_vm1, %v13268_v3  ;;  %v13269_v17 = vpack.c.bf16 %v7205_v7, %v7205_v7  ;;  %v7055_v22 = vadd.f32 %v13345_v8, %v16326_v41  ;;  %v13348_v23 = vadd.f32 %v13347_v12, %v13346_v10  ;;  %v13429_v14 = vpop.f32.mrb[39].mxu1  ;;  %13630 = vmatprep.mubr.msk.bf16.mxu0 %vm14404_vm0, %v17721_v52 }
 0x35a   :  { %v13430_v25 = vadd.f32 %v13429_v14, %v13428_v15  ;;  %v16507_v27 = vld [vmem:[#allocation3 + $0x38] sm:$0xff]   ;;  %v16543_v15 = vld [vmem:[#allocation3 + $0x24] sm:$0xf]  ;;  %v8318_v14 = vrot.slane %v16530_v19, 1 }
 0x35b   :  { %7312 = vst.msk [vmem:[#allocation3 + $0x44] sm:$0xf] %vm7294_vm1, %v13269_v17  ;;  %v7058_v29 = vadd.f32 %v13348_v23, %v16326_v41  ;;  %v7175_v31 = vadd.f32 %v13427_v13, %v7055_v22  ;;  %v7454_v34 = vshll.u32 %v16507_v27, 16  ;;  %v7803_v36 = vrot.slane %v16507_v27, 1  ;;  %v16546_v22 = vld [vmem:[#allocation3 + $0x34] sm:$0xff]  }
 0x35c   :  { %v8060_v13 = vshll.u32 %v16383_v30, 16  ;;  %v16558_v35 = vsel %vm7789_vm4, %v8316_v47, %v8318_v14 }
 0x35d   :  { %v7206_v37 = vmax.f32 %v7175_v31, 0.0  ;;  %v7178_v38 = vadd.f32 %v13430_v25, %v7058_v29  ;;  %13679 = vmatmul.mubr.msk.bf16.gmra.mrb[72].mxu1 %vm7493_vm2, %v16507_v27  ;;  %v13349_v21 = vpop.f32.mrb[40].mxu0  ;;  %v7456_v42 = vrot.slane %v7454_v34, 1  ;;  %v16526_v46 = vsel %vm7789_vm4, %v7801_v57, %v7803_v36 }
 0x35e   :  { %13682 = vmatprep.mubr.msk.bf16.mxu1 %vm14404_vm0, %v17721_v52  ;;  %v13350_v51 = vpop.f32.mrb[41].mxu0  ;;  %v13431_v54 = vpop.f32.mrb[40].mxu1  ;;  %v8055_v57 = vshll.u32 %v13048_v39, 16  ;;  %v7458_v25 = vshrl.u32 %v16507_v27, 16  ;;  %v8320_v39 = vrot.slane %v16546_v22, 1 }
 0x35f   :  { %v13270_v55 = vpack.c.bf16 %v7206_v37, %v7206_v37  ;;  %v7207_v56 = vmax.f32 %v7178_v38, 0.0  ;;  %v13432_v58 = vpop.f32.mrb[41].mxu1  ;;  %v13352_v60 = vpop.f32.mrb[42].mxu0  ;;  %v7457_v50 = vsel %vm7397_vm3, %v7452_v40, %v7456_v42  ;;  %v13351_v63 = vadd.f32 %v13350_v51, %v13349_v21  ;;  %v16565_v40 = vld [vmem:[#allocation3 + $0x20] sm:$0xf] }
 0x360   :  { %13631 = vmatmul.mubr.msk.bf16.gmra.mrb[68].mxu0 %vm7493_vm2, %v7457_v50  ;;  %v13434_v0 = vpop.f32.mrb[42].mxu1  ;;  %v13353_v3 = vpop.f32.mrb[43].mxu0  ;;  %v7333_v7 = vld [vmem:[#allocation3 + $0x40] sm:$0xf]  ;;  %v13433_v11 = vadd.f32 %v13432_v58, %v13431_v54  ;;  %v7460_v37 = vor.u32 %v7458_v25, %v7456_v42  ;;  %v8062_v21 = vrot.slane %v8060_v13, 1  ;;  %v13110_v47 = vcombine.low %v16565_v40, %v16543_v15 }
 0x361   :  { %7313 = vst.msk [vmem:[#allocation3 + $0x48] sm:$0xf] %vm7294_vm1, %v13270_v55  ;;  %v13271_v62 = vpack.c.bf16 %v7207_v56, %v7207_v56  ;;  %13634 = vmatprep.mubr.msk.bf16.mxu0 %vm14404_vm0, %v17721_v52  ;;  %v7063_v16 = vadd.f32 %v13351_v63, %v16326_v41  ;;  %v13435_v17 = vpop.f32.mrb[43].mxu1  ;;  %v16548_v23 = vld [vmem:[#allocation3 + $0x3c] sm:$0xff]   ;;  %v8057_v41 = vrot.slane %v8055_v57, 1  ;;  %v16581_v50 = vsel %vm7789_vm4, %v8318_v14, %v8320_v39 }
 0x362   :  { %v7334_v8 = vld [vmem:[#allocation3 + $0x44] sm:$0x7]  ;;  %v8322_v55 = vrot.slane %v16548_v23, 1  ;;  %v16578_v58 = vld [vmem:[#allocation3 + $0xc] sm:$0xf]  ;;  %v8068_v63 = vshll.u32 %v16454_v4, 16 }
 0x363   :  { %v7343_v10 = vld [vmem:[#allocation3 + $0x44] sm:$0xf]  ;;  %7314 = vst.msk [vmem:[#allocation3 + $0x4c] sm:$0xf] %vm7294_vm1, %v13271_v62  ;;  %v13020_v12 = vcombine.low %v7333_v7, %v7334_v8  ;;  %v7183_v34 = vadd.f32 %v13433_v11, %v7063_v16  ;;  %v8835_v3 = vld [vmem:[#allocation3 + $0x8] sm:$0xe] }
 0x364   :  { %v16540_v2 = vcombine.low %v7333_v7, %v7343_v10  ;;  %v14266_v56 = vld [vmem:[%s17712_s3 + $0xa0] sm:$0xff]   ;;  %v16586_v62 = vsel %vm7789_vm4, %v8320_v39, %v8322_v55  ;;  %v13107_v7 = vcombine.low %v8835_v3, %v16578_v58  ;;  %v14267_v10 = vld [vmem:[%s17712_s3 + $0xa8] sm:$0xff]   ;;  %v8064_v13 = vshrl.u32 %v16383_v30, 16 }
 0x365   :  { %13683 = vmatmul.mubr.msk.bf16.gmra.mrb[76].mxu1 %vm7493_vm2, %v13020_v12  ;;  %v7208_v54 = vmax.f32 %v7183_v34, 0.0  ;;  %v8070_v16 = vrot.slane %v8068_v63, 1  ;;  %v8859_v14 = vrot.slane %v13108_v9, 1  ;;  %v8076_v9 = vshll.u32 %v16477_v43, 16  ;;  %v16626_v34 = vld [vmem:[#allocation3 + $0x2c] sm:$0xf] }
 0x366   :  { %v7462_v29 = vshll.u32 %v16540_v2, 16  ;;  %v17720_v31 = vrot.slane %v16540_v2, 1  ;;  %13738 = vmatprep.mubr.msk.bf16.mxu1 %vm14404_vm0, %v17721_v52  ;;  %v7466_v8 = vshrl.u32 %v16540_v2, 16  ;;  %v8858_v17 = vrot.slane %v13107_v7, 1  ;;  %v16642_v39 = vld [vmem:[#allocation3 + $0x28] sm:$0xf] }
 0x367   :  { %v13272_v60 = vpack.c.bf16 %v7208_v54, %v7208_v54  ;;  %v8066_v25 = vor.u32 %v8064_v13, %v8062_v21  ;;  %v16656_v63 = vld [vmem:[#allocation3 + $0x3c] sm:$0xf]  ;;  %v16663_v7 = vld [vmem:[#allocation3 + $0x44] sm:$0xf] }
 0x368   :  { %v7464_v38 = vrot.slane %v7462_v29, 1  ;;  %v16563_v27 = vsel %vm7789_vm4, %v7803_v36, %v17720_v31  ;;  %v16567_v51 = vld [vmem:[#allocation3 + $0x44] sm:$0xff]   ;;  %v8058_v36 = vor.u32 %v8057_v41, %v8053_v32  ;;  %v14268_v29 = vld [vmem:[%s17712_s3 + $0xb0] sm:$0xff]   ;;  %v16618_v30 = vsel %vm7789_vm4, %v8858_v17, %v8859_v14  ;;  %v16675_v17 = vld [vmem:[#allocation3 + $0x40] sm:$0xf] }
 0x369   :  { %7316 = vst.msk [vmem:[#allocation3 + $0x50] sm:$0x1] %vm7315_vm5, %v13272_v60  ;;  %v17719_v0 = vrot.slane %v16567_v51, 1  ;;  %v8071_v32 = vsel %vm7397_vm3, %v8066_v25, %v8070_v16  ;;  %v8861_v41 = vrot.slane %v13109_v48, 1  ;;  %v14257_v48 = vld [vmem:[%s17712_s3 + $0x80] sm:$0xff]   ;;  %v16679_v25 = vld [vmem:[#allocation3 + $0x18] sm:$0xff]  }
 0x36a   :  { %v7465_v42 = vsel %vm7397_vm3, %v7460_v37, %v7464_v38  ;;  %v8063_v57 = vsel %vm7397_vm3, %v8058_v36, %v8062_v21  ;;  %v7468_v12 = vor.u32 %v7466_v8, %v7464_v38  ;;  %v8863_v37 = vrot.slane %v13110_v47, 1  ;;  %v14270_v38 = vld [vmem:[%s17712_s3 + $0xb8] sm:$0xff]   ;;  %v16633_v21 = vld [vmem:[#allocation3 + $0x34] sm:$0xf] }
 0x36b   :  { %13635 = vmatmul.mubr.msk.bf16.gmra.mrb[72].mxu0 %vm7493_vm2, %v7465_v42  ;;  %v16603_v11 = vsel %vm7789_vm4, %v8322_v55, %v17719_v0  ;;  %v16636_v54 = vsel %vm7789_vm4, %v8859_v14, %v8861_v41  ;;  %v8072_v47 = vshrl.u32 %v16454_v4, 16  ;;  %v8078_v42 = vrot.slane %v8076_v9, 1  ;;  %v14260_v4 = vld [vmem:[%s17712_s3 + $0x88] sm:$0xff]   ;;  %v16677_v14 = vld [vmem:[#allocation3 + $0x10] sm:$0xff]   ;;  %v16706_v0 = vld [vmem:[#allocation3 + $0x40] sm:$0xff]  }
 0x36c   :  { %13638 = vmatprep.mubr.msk.bf16.mxu0 %vm14404_vm0, %v17721_v52  ;;  %v16645_v55 = vsel %vm7789_vm4, %v8861_v41, %v8863_v37  ;;  %v13111_v36 = vcombine.low %v16642_v39, %v16626_v34  ;;  %v16688_v9 = vld [vmem:[#allocation3 + $0x48] sm:$0xf]  ;;  %v13114_v41 = vcombine.low %v16675_v17, %v16663_v7 }
 0x36d   :  { %13739 = vmatmul.mubr.msk.bf16.vlgmr.msra.gmra.mrb[80].mxu1 %vm7493_vm2, %v8063_v57  ;;  %v8074_v57 = vor.u32 %v8072_v47, %v8070_v16  ;;  %v8836_v16 = vld [vmem:[#allocation3 + $0x4c] sm:$0xf] }
 0x36e   :  { %13742 = vmatprep.mubr.msk.bf16.mxu1 %vm14404_vm0, %v17721_v52  ;;  %13819 = vmatpush3.bf16.msra.mxu1 %v14266_v56  ;;  %v16648_v56 = vld [vmem:[#allocation3 + $0x30] sm:$0xf]  ;;  %v8865_v3 = vrot.slane %v13111_v36, 1  ;;  %v13115_v36 = vcombine.low %v16688_v9, %v8836_v16  ;;  %v17724_v16 = vrot.slane %v16677_v14, 2 }
 0x36f   :  { %13820 = vmatprep.subr.bf16.mxu1 %v17721_v52  ;;  %v13112_v60 = vcombine.low %v16648_v56, %v16633_v21 }
 0x370   :  { %v16672_v13 = vsel %vm7789_vm4, %v8863_v37, %v8865_v3  ;;  %v14264_v37 = vld [vmem:[%s17712_s3 + $0x90] sm:$0xff]  }
 0x371   :  { %v8867_v8 = vrot.slane %v13112_v60, 1  ;;  %v8080_v60 = vshrl.u32 %v16477_v43, 16  ;;  %v9399_v43 = vrot.slane %v16679_v25, 2 }
 0x372   :  { %13821 = vmatpush3.bf16.msra.mxu1 %v14267_v10  ;;  %v8079_v10 = vsel %vm7397_vm3, %v8074_v57, %v8078_v42 }
 0x373   :  { %13639 = vmatmul.mubr.msk.bf16.gmra.mrb[76].mxu0 %vm7493_vm2, %v7468_v12  ;;  %13822 = vmatprep.subr.bf16.mxu1 %v17721_v52  ;;  %v16668_v12 = vld [vmem:[#allocation3 + $0x38] sm:$0xf] }
 0x374   :  { %13694 = vmatprep.mubr.msk.bf16.mxu0 %vm14404_vm0, %v17721_v52 }
 0x375   :  { %13743 = vmatmul.mubr.msk.bf16.gmra.mrb[84].mxu1 %vm7493_vm2, %v8071_v32  ;;  %v13113_v32 = vcombine.low %v16668_v12, %v16656_v63 }
 0x376   :  { %13746 = vmatprep.mubr.msk.bf16.mxu1 %vm14404_vm0, %v17721_v52  ;;  %13823 = vmatpush3.bf16.msra.mxu1 %v14268_v29  ;;  %v16682_v29 = vsel %vm7789_vm4, %v8865_v3, %v8867_v8  ;;  %v16702_v3 = vld [vmem:[#allocation3 + $0x30] sm:$0xff]  }
 0x377   :  { %13824 = vmatprep.subr.bf16.mxu1 %v17721_v52  ;;  %17727 = vst [vmem:[#allocation12_spill] sm:$0xff] %v16682_v29  ;;  %v8869_v47 = vrot.slane %v13113_v32, 1  ;;  %v16711_v29 = vld [vmem:[#allocation3 + $0x48] sm:$0xff]   ;;  %v16713_v32 = vrot.slane %v13115_v36, 1 }
 0x379   :  { %v16709_v31 = vsel %vm7789_vm4, %v8867_v8, %v8869_v47  ;;  %17729 = vst [vmem:[#allocation14_spill] sm:$0xff] %v16713_v32  ;;  %v14269_v8 = vld [vmem:[%s17712_s3 + $0x98] sm:$0xff]  }
 0x37a   :  { %13825 = vmatpush3.bf16.msra.mxu1 %v14270_v38  ;;  %v16695_v38 = vld [vmem:[#allocation3 + $0x20] sm:$0xff]   ;;  %17728 = vst [vmem:[#allocation13_spill] sm:$0xff] %v16709_v31 }
 0x37b   :  { %13695 = vmatmul.mubr.msk.bf16.vlgmr.msra.gmra.mrb[80].mxu0 %vm7493_vm2, %v16374_v20  ;;  %v8084_v20 = vshll.u32 %v16505_v24, 16  ;;  %13906 = vmatprep.subr.bf16.mxu1 %v17721_v52 }
 0x37c   :  { %13775 = vmatpush3.bf16.msra.mxu0 %v14257_v48  ;;  %13698 = vmatprep.mubr.msk.bf16.mxu0 %vm14404_vm0, %v17721_v52  ;;  %v16697_v48 = vld [vmem:[#allocation3 + $0x28] sm:$0xff]  }
 0x37d   :  { %13776 = vmatprep.subr.bf16.mxu0 %v17721_v52  ;;  %13747 = vmatmul.mubr.msk.bf16.gmra.mrb[88].mxu1 %vm7493_vm2, %v8079_v10  ;;  %v8086_v57 = vrot.slane %v8084_v20, 1  ;;  %v16704_v10 = vld [vmem:[#allocation3 + $0x38] sm:$0xff]   ;;  %v8082_v20 = vor.u32 %v8080_v60, %v8078_v42  ;;  %v9401_v42 = vrot.slane %v16695_v38, 2 }
 0x37e   :  { %13750 = vmatprep.mubr.msk.bf16.mxu1 %vm14404_vm0, %v17721_v52 }
 0x37f   :  { %v8087_v60 = vsel %vm7397_vm3, %v8082_v20, %v8086_v57  ;;  %v9411_v20 = vrot.slane %v16711_v29, 2 }
 0x380   :  { %13777 = vmatpush3.bf16.msra.mxu0 %v14260_v4  ;;  %v8871_v4 = vrot.slane %v13114_v41, 1  ;;  %v17731_v41 = vmov 0.0  }
 0x381   :  { %13778 = vmatprep.subr.bf16.mxu0 %v17721_v52 }
 0x382   :  { %v16720_v52 = vsel %vm7789_vm4, %v8869_v47, %v8871_v4  ;;  %v16729_v36 = vsel %vm7789_vm4, %v8871_v4, %v16713_v32  ;;  %v9403_v47 = vrot.slane %v16697_v48, 2  ;;  %v9407_v4 = vrot.slane %v16704_v10, 2 }
 0x383   :  { %13699 = vmatmul.mubr.msk.bf16.gmra.mrb[84].mxu0 %vm7493_vm2, %v16405_v49  ;;  %17730 = vst [vmem:[#allocation15_spill] sm:$0xff] %v16720_v52  ;;  %17732 = vst [vmem:[#allocation16_spill] sm:$0xff] %v16729_v36  ;;  %v16734_v49 = vsel %vm9395_vm6, %v17724_v16, %v9399_v43  ;;  %v9405_v52 = vrot.slane %v16702_v3, 2  ;;  %v16745_v32 = vsel %vm9395_vm6, %v9399_v43, %v9401_v42 }
 0x384   :  { %13702 = vmatprep.mubr.msk.bf16.mxu0 %vm14404_vm0, %v17731_v41  ;;  %13779 = vmatpush3.bf16.msra.mxu0 %v14264_v37  ;;  %17733 = vst [vmem:[#allocation17_spill] sm:$0xff] %v16734_v49  ;;  %v8092_v37 = vshll.u32 %v16530_v19, 16  ;;  %v16748_v16 = vsel %vm9395_vm6, %v9401_v42, %v9403_v47  ;;  %v9409_v49 = vrot.slane %v16706_v0, 2 }
 0x385   :  { %13780 = vmatprep.subr.bf16.mxu0 %v17731_v41  ;;  %13751 = vmatmul.mubr.msk.bf16.gmra.mrb[92].mxu1 %vm7493_vm2, %v8087_v60  ;;  %17734 = vst [vmem:[#allocation18_spill] sm:$0xff] %v16748_v16  ;;  %v16755_v36 = vsel %vm9395_vm6, %v9403_v47, %v9405_v52  ;;  %v16758_v31 = vsel %vm9395_vm6, %v9405_v52, %v9407_v4  ;;  %v8088_v60 = vshrl.u32 %v16505_v24, 16  ;;  %v8096_v24 = vshrl.u32 %v16530_v19, 16 }
 0x386   :  { %13754 = vmatprep.mubr.msk.bf16.mxu1 %vm14404_vm0, %v17731_v41  ;;  %v16761_v43 = vsel %vm9395_vm6, %v9407_v4, %v9409_v49  ;;  %v16766_v42 = vsel %vm9395_vm6, %v9409_v49, %v9411_v20  ;;  %v8094_v16 = vrot.slane %v8092_v37, 1  ;;  %v8108_v37 = vshll.u32 %v16548_v23, 16 }
 0x387   :  { %v8090_v47 = vor.u32 %v8088_v60, %v8086_v57  ;;  %v8104_v4 = vshrl.u32 %v16546_v22, 16  ;;  %v8116_v60 = vshll.u32 %v16567_v51, 16 }
 0x388   :  { %13781 = vmatpush3.bf16.msra.mxu0 %v14269_v8  ;;  %v8100_v8 = vshll.u32 %v16546_v22, 16  ;;  %v8110_v19 = vrot.slane %v8108_v37, 1 }
 0x389   :  { %13862 = vmatprep.subr.bf16.mxu0 %v17731_v41  ;;  %v8095_v52 = vsel %vm7397_vm3, %v8090_v47, %v8094_v16  ;;  %v8112_v47 = vshrl.u32 %v16548_v23, 16  ;;  %v8118_v22 = vrot.slane %v8116_v60, 1 }
 0x38a   :  { %v8102_v49 = vrot.slane %v8100_v8, 1  ;;  %v13085_v8 = vcombine.low %v16578_v58, %v16456_v6 }
 0x38b   :  { %13703 = vmatmul.mubr.msk.bf16.gmra.mrb[88].mxu0 %vm7493_vm2, %v16431_v18  ;;  %v8098_v18 = vor.u32 %v8096_v24, %v8094_v16  ;;  %v14271_v24 = vld [vmem:[#allocation3 + $0x4] sm:$0xfe]  }
 0x38c   :  { %13706 = vmatprep.mubr.msk.bf16.mxu0 %vm14404_vm0, %v17731_v41  ;;  %v8585_v23 = vshrl.u32 %v13085_v8, 16 }
 0x38d   :  { %13755 = vmatmul.mubr.msk.bf16.gmra.mrb[96].mxu1 %vm7493_vm2, %v8095_v52  ;;  %v8103_v57 = vsel %vm7397_vm3, %v8098_v18, %v8102_v49  ;;  %v8120_v18 = vshrl.u32 %v16567_v51, 16 }
 0x38e   :  { %13758 = vmatprep.mubr.msk.bf16.mxu1 %vm14404_vm0, %v17731_v41  ;;  %v8587_v6 = vrot.slane %v8585_v23, 1 }
 0x38f   :  { %v8122_v37 = vor.u32 %v8120_v18, %v8118_v22 }
 0x393   :  { %13707 = vmatmul.mubr.msk.bf16.gmra.mrb[92].mxu0 %vm7493_vm2, %v16446_v53  ;;  %v8106_v53 = vor.u32 %v8104_v4, %v8102_v49  ;;  %v8588_v49 = vshll.u32 %v13085_v8, 16  ;;  %v13086_v4 = vcombine.low %v16448_v59, %v16479_v44 }
 0x394   :  { %13710 = vmatprep.mubr.msk.bf16.mxu0 %vm14404_vm0, %v17731_v41 }
 0x395   :  { %13759 = vmatmul.mubr.msk.bf16.gmra.mrb[100].mxu1 %vm7493_vm2, %v8103_v57  ;;  %v8111_v16 = vsel %vm7397_vm3, %v8106_v53, %v8110_v19  ;;  %v8580_v57 = vshll.u32 %v14271_v24, 16  ;;  %v8590_v58 = vrot.slane %v8588_v49, 2  ;;  %v8597_v60 = vshll.u32 %v13086_v4, 16 }
 0x396   :  { %13762 = vmatprep.mubr.msk.bf16.mxu1 %vm14404_vm0, %v17731_v41  ;;  %v17735_v49 = vrot.slane %v16540_v2, 1  ;;  %v14289_v2 = vld [vmem:[%s17712_s3 + $0xf8] sm:$0xff]  }
 0x397   :  { %v8582_v53 = vrot.slane %v8580_v57, 2  ;;  %v13088_v57 = vcombine.low %v16543_v15, %v16642_v39  ;;  %v14278_v15 = vld [vmem:[%s17712_s3 + $0xc8] sm:$0xff]   ;;  %v16866_v39 = vld [vmem:[#allocation3 + $0x50] ss:$0 sps:$4 sm:$0x11]  }
 0x39b   :  { %13711 = vmatmul.mubr.msk.bf16.gmra.mrb[96].mxu0 %vm7493_vm2, %v16469_v26  ;;  %v8114_v26 = vor.u32 %v8112_v47, %v8110_v19 }
 0x39c   :  { %13714 = vmatprep.mubr.msk.bf16.mxu0 %vm14404_vm0, %v17731_v41 }
 0x39d   :  { %13763 = vmatmul.mubr.msk.bf16.gmra.mrb[104].mxu1 %vm7493_vm2, %v8111_v16  ;;  %v8119_v52 = vsel %vm7397_vm3, %v8114_v26, %v8118_v22  ;;  %v8591_v16 = vor.u32 %v8590_v58, %v8587_v6  ;;  %v14284_v22 = vld [vmem:[%s17712_s3 + $0xe0] sm:$0xff]   ;;  %v8599_v26 = vrot.slane %v8597_v60, 2  ;;  %v8612_v58 = vshrl.u32 %v13088_v57, 16 }
 0x39e   :  { %13766 = vmatprep.mubr.msk.bf16.mxu1 %vm14404_vm0, %v17731_v41  ;;  %v9413_v60 = vrot.slane %v16866_v39, 2 }
 0x3a3   :  { %13715 = vmatmul.mubr.msk.bf16.gmra.mrb[100].mxu0 %vm7493_vm2, %v16498_v1  ;;  %v8577_v1 = vshrl.u32 %v14271_v24, 16 }
 0x3a4   :  { %13718 = vmatprep.mubr.msk.bf16.mxu0 %vm14404_vm0, %v17731_v41 }
 0x3a5   :  { %13767 = vmatmul.mubr.msk.bf16.gmra.mrb[108].mxu1 %vm7493_vm2, %v8119_v52  ;;  %v8579_v19 = vrot.slane %v8577_v1, 1  ;;  %v13087_v52 = vcombine.low %v16471_v33, %v16565_v40  ;;  %v14287_v33 = vld [vmem:[%s17712_s3 + $0xf0] sm:$0xff]  }
 0x3a6   :  { %13770 = vmatprep.mubr.msk.bf16.mxu1 %vm14404_vm0, %v17731_v41 }
 0x3a7   :  { %v8583_v47 = vor.u32 %v8582_v53, %v8579_v19  ;;  %v8603_v24 = vshrl.u32 %v13087_v52, 16  ;;  %v8606_v23 = vshll.u32 %v13087_v52, 16  ;;  %v8614_v53 = vrot.slane %v8612_v58, 1 }
 0x3a9   :  { %v8592_v59 = vsel %vm8575_vm7, %v8583_v47, %v8591_v16  ;;  %v8605_v18 = vrot.slane %v8603_v24, 1  ;;  %v8608_v1 = vrot.slane %v8606_v23, 2  ;;  %v13091_v23 = vcombine.low %v16656_v63, %v16675_v17 }
 0x3aa   :  { %v13092_v63 = vcombine.low %v16663_v7, %v16688_v9  ;;  %v14286_v9 = vld [vmem:[#allocation3 + $0x4c] ss:$0 sps:$4 sm:$0x11]  }
 0x3ab   :  { %13719 = vmatmul.mubr.msk.bf16.gmra.mrb[104].mxu0 %vm7493_vm2, %v16526_v46  ;;  %v8594_v46 = vshrl.u32 %v13086_v4, 16  ;;  %v8609_v6 = vor.u32 %v8608_v1, %v8605_v18  ;;  %v8615_v4 = vshll.u32 %v13088_v57, 16 }
 0x3ac   :  { %13722 = vmatprep.mubr.msk.bf16.mxu0 %vm14404_vm0, %v17731_v41  ;;  %v8648_v57 = vshrl.u32 %v13092_v63, 16 }
 0x3ad   :  { %13771 = vmatmul.mubr.msk.bf16.gmra.mrb[112].mxu1 %vm7493_vm2, %v8122_v37  ;;  %v8596_v44 = vrot.slane %v8594_v46, 1  ;;  %v14275_v37 = vld [vmem:[%s17712_s3 + $0xc0] sm:$0xff]   ;;  %v14282_v46 = vld [vmem:[%s17712_s3 + $0xd0] sm:$0xff]  }
 0x3ae   :  { %13826 = vmatprep.mubr.msk.bf16.mxu1 %vm14404_vm0, %v17731_v41 }
 0x3af   :  { %v8600_v8 = vor.u32 %v8599_v26, %v8596_v44 }
 0x3b1   :  { %v8601_v40 = vsel %vm8575_vm7, %v8591_v16, %v8600_v8  ;;  %v8610_v19 = vsel %vm8575_vm7, %v8600_v8, %v8609_v6  ;;  %v8617_v16 = vrot.slane %v8615_v4, 2  ;;  %v8657_v4 = vshll.u32 %v14286_v9, 16 }
 0x3b3   :  { %13723 = vmatmul.mubr.msk.bf16.gmra.mrb[108].mxu0 %vm7493_vm2, %v16563_v27  ;;  %v14285_v27 = vld [vmem:[%s17712_s3 + $0xe8] sm:$0xff]   ;;  %v8618_v47 = vor.u32 %v8617_v16, %v8614_v53  ;;  %v8659_v53 = vrot.slane %v8657_v4, 2  ;;  %v9133_v16 = vshrl.u32 %v16677_v14, 16  ;;  %v9163_v4 = vshll.u32 %v16697_v48, 16 }
 0x3b4   :  { %13726 = vmatprep.mubr.msk.bf16.mxu0 %vm14404_vm0, %v17731_v41 }
 0x3b5   :  { %13827 = vmatmul.mubr.msk.bf16.vlgmr.msra.gmra.mrb[116].mxu1 %vm7493_vm2, %v8592_v59  ;;  %v8619_v44 = vsel %vm8575_vm7, %v8609_v6, %v8618_v47 }
 0x3b6   :  { %13830 = vmatprep.mubr.msk.bf16.mxu1 %vm14404_vm0, %v17731_v41  ;;  %13907 = vmatpush3.bf16.msra.mxu1 %v14284_v22 }
 0x3b7   :  { %13908 = vmatprep.subr.bf16.mxu1 %v17731_v41 }
 0x3ba   :  { %13909 = vmatpush3.bf16.msra.mxu1 %v14285_v27  ;;  %v13090_v27 = vcombine.low %v16633_v21, %v16668_v12 }
 0x3bb   :  { %13727 = vmatmul.mubr.msk.bf16.gmra.mrb[112].mxu0 %vm7493_vm2, %v17735_v49  ;;  %13910 = vmatprep.subr.bf16.mxu1 %v17731_v41 }
 0x3bc   :  { %13782 = vmatprep.mubr.msk.bf16.mxu0 %vm14404_vm0, %v17731_v41  ;;  %v8633_v8 = vshll.u32 %v13090_v27, 16 }
 0x3bd   :  { %13831 = vmatmul.mubr.msk.bf16.gmra.mrb[120].mxu1 %vm7493_vm2, %v8601_v40  ;;  %v8642_v40 = vshll.u32 %v13091_v23, 16 }
 0x3be   :  { %13834 = vmatprep.mubr.msk.bf16.mxu1 %vm14404_vm0, %v17731_v41  ;;  %13911 = vmatpush3.bf16.msra.mxu1 %v14287_v33  ;;  %v8635_v24 = vrot.slane %v8633_v8, 2  ;;  %v8639_v33 = vshrl.u32 %v13091_v23, 16 }
 0x3bf   :  { %13912 = vmatprep.subr.bf16.mxu1 %v17731_v41  ;;  %v8644_v1 = vrot.slane %v8642_v40, 2 }
 0x3c0   :  { %v8641_v18 = vrot.slane %v8639_v33, 1 }
 0x3c2   :  { %13913 = vmatpush3.bf16.msra.mxu1 %v14289_v2  ;;  %v8645_v17 = vor.u32 %v8644_v1, %v8641_v18  ;;  %v8651_v2 = vshll.u32 %v13092_v63, 16 }
 0x3c3   :  { %13783 = vmatmul.mubr.msk.bf16.vlgmr.msra.gmra.mrb[116].mxu0 %vm7493_vm2, %v16421_v5  ;;  %v13089_v5 = vcombine.low %v16626_v34, %v16648_v56  ;;  %v16883_v34 = vsel %vm9395_vm6, %v9411_v20, %v9413_v60  ;;  %v14288_v56 = vld [vmem:[%s17712_s3 + $0xd8] sm:$0xff]   ;;  %v8630_v20 = vshrl.u32 %v13090_v27, 16 }
 0x3c4   :  { %13863 = vmatpush3.bf16.msra.mxu0 %v14275_v37  ;;  %13786 = vmatprep.mubr.msk.bf16.mxu0 %vm14404_vm0, %v17731_v41  ;;  %v8650_v37 = vrot.slane %v8648_v57, 1  ;;  %v8653_v6 = vrot.slane %v8651_v2, 2 }
 0x3c5   :  { %13864 = vmatprep.subr.bf16.mxu0 %v17731_v41  ;;  %13835 = vmatmul.mubr.msk.bf16.gmra.mrb[124].mxu1 %vm7493_vm2, %v8610_v19  ;;  %v8621_v22 = vshrl.u32 %v13089_v5, 16  ;;  %v8624_v59 = vshll.u32 %v13089_v5, 16  ;;  %v8632_v12 = vrot.slane %v8630_v20, 1 }
 0x3c6   :  { %13838 = vmatprep.mubr.msk.bf16.mxu1 %vm14404_vm0, %v17731_v41  ;;  %v8654_v7 = vor.u32 %v8653_v6, %v8650_v37  ;;  %v14293_v6 = vld [vmem:[%s17712_s3 + $0x100] sm:$0xff]  }
 0x3c7   :  { %v8623_v26 = vrot.slane %v8621_v22, 1  ;;  %v8626_v52 = vrot.slane %v8624_v59, 2  ;;  %v8636_v49 = vor.u32 %v8635_v24, %v8632_v12 }
 0x3c8   :  { %13865 = vmatpush3.bf16.msra.mxu0 %v14278_v15  ;;  %v8655_v58 = vsel %vm8575_vm7, %v8645_v17, %v8654_v7  ;;  %v9049_v15 = vld [vmem:[#allocation3 + $0x8] sm:$0xe]  ;;  %v8660_v60 = vsel %vm8575_vm7, %v8654_v7, %v8659_v53 }
 0x3c9   :  { %13866 = vmatprep.subr.bf16.mxu0 %v17731_v41 }
 0x3cb   :  { %13787 = vmatmul.mubr.msk.bf16.gmra.mrb[120].mxu0 %vm7493_vm2, %v16486_v45  ;;  %v8627_v45 = vor.u32 %v8626_v52, %v8623_v26  ;;  %v9145_v52 = vshll.u32 %v16679_v25, 16 }
 0x3cc   :  { %13790 = vmatprep.mubr.msk.bf16.mxu0 %vm14404_vm0, %v17731_v41  ;;  %13867 = vmatpush3.bf16.msra.mxu0 %v14282_v46 }
 0x3cd   :  { %13868 = vmatprep.subr.bf16.mxu0 %v17731_v41  ;;  %13839 = vmatmul.mubr.msk.bf16.gmra.mrb[128].mxu1 %vm7493_vm2, %v8619_v44  ;;  %v8628_v21 = vsel %vm8575_vm7, %v8618_v47, %v8627_v45  ;;  %v9135_v47 = vrot.slane %v9133_v16, 1  ;;  %v9147_v24 = vrot.slane %v9145_v52, 2  ;;  %v14296_v16 = vld [vmem:[%s17712_s3 + $0x108] sm:$0xff]   ;;  %v9172_v52 = vshll.u32 %v16702_v3, 16 }
 0x3ce   :  { %13842 = vmatprep.mubr.msk.bf16.mxu1 %vm14404_vm0, %v17731_v41 }
 0x3d0   :  { %13869 = vmatpush3.bf16.msra.mxu0 %v14288_v56 }
 0x3d1   :  { %13950 = vmatprep.subr.bf16.mxu0 %v17731_v41 }
 0x3d3   :  { %13791 = vmatmul.mubr.msk.bf16.gmra.mrb[124].mxu0 %vm7493_vm2, %v16514_v28  ;;  %v8637_v28 = vsel %vm8575_vm7, %v8627_v45, %v8636_v49 }
 0x3d4   :  { %13794 = vmatprep.mubr.msk.bf16.mxu0 %vm14404_vm0, %v17731_v41 }
 0x3d5   :  { %13843 = vmatmul.mubr.msk.bf16.gmra.mrb[132].mxu1 %vm7493_vm2, %v8628_v21 }
 0x3d6   :  { %13846 = vmatprep.mubr.msk.bf16.mxu1 %vm14404_vm0, %v17731_v41 }
 0x3db   :  { %13795 = vmatmul.mubr.msk.bf16.gmra.mrb[128].mxu0 %vm7493_vm2, %v16533_v61  ;;  %v8646_v61 = vsel %vm8575_vm7, %v8636_v49, %v8645_v17  ;;  %v9151_v49 = vshrl.u32 %v16695_v38, 16 }
 0x3dc   :  { %13798 = vmatprep.mubr.msk.bf16.mxu0 %vm14404_vm0, %v17731_v41 }
 0x3dd   :  { %13847 = vmatmul.mubr.msk.bf16.gmra.mrb[136].mxu1 %vm7493_vm2, %v8637_v28  ;;  %v17736_v28 = vrot.slane %v16567_v51, 1  ;;  %v9153_v17 = vrot.slane %v9151_v49, 1 }
 0x3de   :  { %13850 = vmatprep.mubr.msk.bf16.mxu1 %vm14404_vm0, %v17731_v41 }
 0x3e3   :  { %13799 = vmatmul.mubr.msk.bf16.gmra.mrb[132].mxu0 %vm7493_vm2, %v16558_v35  ;;  %v16932_v35 = vld [vmem:[#allocation3 + $0xc] sm:$0xf] }
 0x3e4   :  { %13802 = vmatprep.mubr.msk.bf16.mxu0 %vm14404_vm0, %v17731_v41  ;;  %v13129_v19 = vcombine.low %v9049_v15, %v16932_v35 }
 0x3e5   :  { %13851 = vmatmul.mubr.msk.bf16.gmra.mrb[140].mxu1 %vm7493_vm2, %v8646_v61 }
 0x3e6   :  { %13854 = vmatprep.mubr.msk.bf16.mxu1 %vm14404_vm0, %v17731_v41  ;;  %v9125_v5 = vshrl.u32 %v13129_v19, 16  ;;  %v9128_v46 = vshll.u32 %v13129_v19, 16 }
 0x3e8   :  { %v9127_v59 = vrot.slane %v9125_v5, 1  ;;  %v9130_v56 = vrot.slane %v9128_v46, 2 }
 0x3ea   :  { %v9131_v20 = vor.u32 %v9130_v56, %v9127_v59  ;;  %v14300_v56 = vld [vmem:[%s17712_s3 + $0x110] sm:$0xff]  }
 0x3eb   :  { %13803 = vmatmul.mubr.msk.bf16.gmra.mrb[136].mxu0 %vm7493_vm2, %v16581_v50  ;;  %v9136_v50 = vshll.u32 %v16677_v14, 16 }
 0x3ec   :  { %13806 = vmatprep.mubr.msk.bf16.mxu0 %vm14404_vm0, %v17731_v41 }
 0x3ed   :  { %13855 = vmatmul.mubr.msk.bf16.gmra.mrb[144].mxu1 %vm7493_vm2, %v8655_v58  ;;  %v9138_v22 = vrot.slane %v9136_v50, 2  ;;  %v9160_v58 = vshrl.u32 %v16697_v48, 16 }
 0x3ee   :  { %13858 = vmatprep.mubr.msk.bf16.mxu1 %vm14404_vm0, %v17731_v41 }
 0x3ef   :  { %v9139_v26 = vor.u32 %v9138_v22, %v9135_v47  ;;  %v9162_v46 = vrot.slane %v9160_v58, 1 }
 0x3f1   :  { %v9140_v21 = vsel %vm8575_vm7, %v9131_v20, %v9139_v26 }
 0x3f3   :  { %13807 = vmatmul.mubr.msk.bf16.gmra.mrb[140].mxu0 %vm7493_vm2, %v16586_v62  ;;  %v9142_v62 = vshrl.u32 %v16679_v25, 16 }
 0x3f4   :  { %13810 = vmatprep.mubr.msk.bf16.mxu0 %vm14404_vm0, %v17731_v41 }
 0x3f5   :  { %13859 = vmatmul.mubr.msk.bf16.gmra.mrb[148].mxu1 %vm7493_vm2, %v8660_v60  ;;  %v9144_v12 = vrot.slane %v9142_v62, 1  ;;  %v9165_v60 = vrot.slane %v9163_v4, 2  ;;  %v9169_v62 = vshrl.u32 %v16702_v3, 16 }
 0x3f6   :  { %13914 = vmatprep.mubr.msk.bf16.mxu1 %vm14404_vm0, %v17731_v41 }
 0x3f7   :  { %v9148_v23 = vor.u32 %v9147_v24, %v9144_v12  ;;  %v9171_v3 = vrot.slane %v9169_v62, 1  ;;  %v9174_v24 = vrot.slane %v9172_v52, 2 }
 0x3f8   :  { %v7706_v44 = vpop.f32.mrb[44].mxu1 }
 0x3f9   :  { %v13652_v27 = vpop.f32.mrb[45].mxu1  ;;  %v9149_v63 = vsel %vm8575_vm7, %v9139_v26, %v9148_v23  ;;  %v9166_v26 = vor.u32 %v9165_v60, %v9162_v46 }
 0x3fa   :  { %v7709_v45 = vpop.f32.mrb[46].mxu1 }
 0x3fb   :  { %13811 = vmatmul.mubr.msk.bf16.gmra.mrb[144].mxu0 %vm7493_vm2, %v16603_v11  ;;  %v13653_v8 = vpop.f32.mrb[47].mxu1  ;;  %v9154_v11 = vshll.u32 %v16695_v38, 16 }
 0x3fc   :  { %13814 = vmatprep.mubr.msk.bf16.mxu0 %vm14404_vm0, %v17731_v41  ;;  %v14304_v8 = vld [vmem:[%s17712_s3 + $0x118] sm:$0xff]  }
 0x3fd   :  { %13915 = vmatmul.mubr.msk.bf16.vlgmr.msra.gmra.mrb[152].mxu1 %vm7493_vm2, %v9140_v21  ;;  %v9156_v57 = vrot.slane %v9154_v11, 2 }
 0x3fe   :  { %13918 = vmatprep.mubr.msk.bf16.mxu1 %vm14404_vm0, %v17731_v41 }
 0x3ff   :  { %v9157_v9 = vor.u32 %v9156_v57, %v9153_v17 }
 0x400   :  { %v7714_v25 = vpop.f32.mrb[48].mxu1 }
 0x401   :  { %v13656_v33 = vpop.f32.mrb[49].mxu1  ;;  %v9158_v5 = vsel %vm8575_vm7, %v9148_v23, %v9157_v9  ;;  %v9167_v12 = vsel %vm8575_vm7, %v9157_v9, %v9166_v26 }
 0x402   :  { %v7717_v40 = vpop.f32.mrb[50].mxu1 }
 0x403   :  { %13815 = vmatmul.mubr.msk.bf16.gmra.mrb[148].mxu0 %vm7493_vm2, %v17736_v28  ;;  %v13657_v18 = vpop.f32.mrb[51].mxu1  ;;  %v7555_v1 = vpop.f32.mrb[44].mxu0  ;;  %v9178_v28 = vshrl.u32 %v16704_v10, 16 }
 0x404   :  { %13870 = vmatprep.mubr.msk.bf16.mxu0 %vm14404_vm0, %v17731_v41  ;;  %v16967_v2 = vadd.f32 %v7706_v44, %v7555_v1  ;;  %v13608_v38 = vpop.f32.mrb[45].mxu0  ;;  %v9181_v18 = vshll.u32 %v16704_v10, 16 }
 0x405   :  { %13919 = vmatmul.mubr.msk.bf16.gmra.mrb[156].mxu1 %vm7493_vm2, %v9149_v63  ;;  %v7558_v61 = vpop.f32.mrb[46].mxu0 }
 0x406   :  { %13922 = vmatprep.mubr.msk.bf16.mxu1 %vm14404_vm0, %v17731_v41  ;;  %v16972_v51 = vadd.f32 %v7709_v45, %v7558_v61  ;;  %v13609_v37 = vpop.f32.mrb[47].mxu0  ;;  %v9180_v61 = vrot.slane %v9178_v28, 1 }
 0x407   :  { %v9183_v37 = vrot.slane %v9181_v18, 2  ;;  %v17738_v18 = vld [vmem:[#allocation13_spill] sm:$0xff] }
 0x408   :  { %v7722_v7 = vpop.f32.mrb[52].mxu1 }
 0x409   :  { %v13660_v15 = vpop.f32.mrb[53].mxu1  ;;  %v9184_v4 = vor.u32 %v9183_v37, %v9180_v61 }
 0x40a   :  { %v7725_v19 = vpop.f32.mrb[54].mxu1  ;;  %v9187_v15 = vshrl.u32 %v16706_v0, 16 }
 0x40b   :  { %13871 = vmatmul.mubr.msk.bf16.vlgmr.msra.gmra.mrb[152].mxu0 %vm7493_vm2, %v16618_v30  ;;  %v13661_v53 = vpop.f32.mrb[55].mxu1  ;;  %v7563_v50 = vpop.f32.mrb[48].mxu0 }
 0x40c   :  { %13951 = vmatpush3.bf16.msra.mxu0 %v14293_v6  ;;  %13874 = vmatprep.mubr.msk.bf16.mxu0 %vm14404_vm0, %v17731_v41  ;;  %v16988_v48 = vadd.f32 %v7714_v25, %v7563_v50  ;;  %v13612_v30 = vpop.f32.mrb[49].mxu0  ;;  %v9189_v60 = vrot.slane %v9187_v15, 1 }
 0x40d   :  { %13952 = vmatprep.subr.bf16.mxu0 %v17731_v41  ;;  %13923 = vmatmul.mubr.msk.bf16.gmra.mrb[160].mxu1 %vm7493_vm2, %v9158_v5  ;;  %v7566_v47 = vpop.f32.mrb[50].mxu0 }
 0x40e   :  { %13926 = vmatprep.mubr.msk.bf16.mxu1 %vm14404_vm0, %v17731_v41  ;;  %v16993_v22 = vadd.f32 %v7717_v40, %v7566_v47  ;;  %v13613_v59 = vpop.f32.mrb[51].mxu0  ;;  %v9175_v40 = vor.u32 %v9174_v24, %v9171_v3 }
 0x410   :  { %13953 = vmatpush3.bf16.msra.mxu0 %v14296_v16  ;;  %v7730_v44 = vpop.f32.mrb[56].mxu1  ;;  %v9176_v38 = vsel %vm8575_vm7, %v9166_v26, %v9175_v40  ;;  %v9185_v46 = vsel %vm8575_vm7, %v9175_v40, %v9184_v4  ;;  %v9199_v26 = vshll.u32 %v16711_v29, 16 }
 0x411   :  { %13954 = vmatprep.subr.bf16.mxu0 %v17731_v41  ;;  %v13664_v27 = vpop.f32.mrb[57].mxu1 }
 0x412   :  { %v7733_v45 = vpop.f32.mrb[58].mxu1  ;;  %v17737_v27 = vld [vmem:[#allocation12_spill] sm:$0xff] }
 0x413   :  { %13875 = vmatmul.mubr.msk.bf16.gmra.mrb[156].mxu0 %vm7493_vm2, %v16636_v54  ;;  %v13665_v20 = vpop.f32.mrb[59].mxu1  ;;  %v7571_v21 = vpop.f32.mrb[52].mxu0 }
 0x414   :  { %13878 = vmatprep.mubr.msk.bf16.mxu0 %vm14404_vm0, %v17731_v41  ;;  %13955 = vmatpush3.bf16.msra.mxu0 %v14300_v56  ;;  %v17010_v25 = vadd.f32 %v7722_v7, %v7571_v21  ;;  %v13616_v54 = vpop.f32.mrb[53].mxu0 }
 0x415   :  { %13956 = vmatprep.subr.bf16.mxu0 %v17731_v41  ;;  %13927 = vmatmul.mubr.msk.bf16.gmra.mrb[164].mxu1 %vm7493_vm2, %v9167_v12  ;;  %v7574_v23 = vpop.f32.mrb[54].mxu0  ;;  %v9201_v12 = vrot.slane %v9199_v26, 2 }
 0x416   :  { %13930 = vmatprep.mubr.msk.bf16.mxu1 %vm14404_vm0, %v17731_v41  ;;  %v17015_v49 = vadd.f32 %v7725_v19, %v7574_v23  ;;  %v13617_v11 = vpop.f32.mrb[55].mxu0  ;;  %v9190_v19 = vshll.u32 %v16706_v0, 16 }
 0x418   :  { %13957 = vmatpush3.bf16.msra.mxu0 %v14304_v8  ;;  %v7738_v33 = vpop.f32.mrb[60].mxu1  ;;  %v9192_v30 = vrot.slane %v9190_v19, 2  ;;  %v17739_v19 = vld [vmem:[#allocation15_spill] sm:$0xff] }
 0x419   :  { %v13668_v1 = vpop.f32.mrb[61].mxu1 }
 0x41a   :  { %v7741_v63 = vpop.f32.mrb[62].mxu1 }
 0x41b   :  { %13879 = vmatmul.mubr.msk.bf16.gmra.mrb[160].mxu0 %vm7493_vm2, %v16645_v55  ;;  %v13669_v17 = vpop.f32.mrb[63].mxu1  ;;  %v7579_v57 = vpop.f32.mrb[56].mxu0 }
 0x41c   :  { %13882 = vmatprep.mubr.msk.bf16.mxu0 %vm14404_vm0, %v17731_v41  ;;  %v17024_v6 = vadd.f32 %v7730_v44, %v7579_v57  ;;  %v13620_v7 = vpop.f32.mrb[57].mxu0  ;;  %v9193_v44 = vor.u32 %v9192_v30, %v9189_v60  ;;  %v9205_v57 = vshll.u32 %v16866_v39, 16 }
 0x41d   :  { %13931 = vmatmul.mubr.msk.bf16.gmra.mrb[168].mxu1 %vm7493_vm2, %v9176_v38  ;;  %v7582_v10 = vpop.f32.mrb[58].mxu0 }
 0x41e   :  { %13934 = vmatprep.mubr.msk.bf16.mxu1 %vm14404_vm0, %v17731_v41  ;;  %v17029_v9 = vadd.f32 %v7733_v45, %v7582_v10  ;;  %v13621_v55 = vpop.f32.mrb[59].mxu0  ;;  %v9194_v8 = vsel %vm8575_vm7, %v9184_v4, %v9193_v44 }
 0x420   :  { %v7746_v58 = vpop.f32.mrb[64].mxu1 }
 0x421   :  { %v13672_v53 = vpop.f32.mrb[65].mxu1 }
 0x422   :  { %v7749_v16 = vpop.f32.mrb[66].mxu1 }
 0x423   :  { %13883 = vmatmul.mubr.msk.bf16.gmra.mrb[164].mxu0 %vm7493_vm2, %v16672_v13  ;;  %v13673_v50 = vpop.f32.mrb[67].mxu1  ;;  %v7587_v5 = vpop.f32.mrb[60].mxu0  ;;  %v9196_v13 = vshrl.u32 %v16711_v29, 16 }
 0x424   :  { %13886 = vmatprep.mubr.msk.bf16.mxu0 %vm14404_vm0, %v17731_v41  ;;  %v13624_v47 = vpop.f32.mrb[61].mxu0 }
 0x425   :  { %13935 = vmatmul.mubr.msk.bf16.gmra.mrb[172].mxu1 %vm7493_vm2, %v9185_v46  ;;  %v7590_v59 = vpop.f32.mrb[62].mxu0  ;;  %v9198_v21 = vrot.slane %v9196_v13, 1 }
 0x426   :  { %13938 = vmatprep.mubr.msk.bf16.mxu1 %vm14404_vm0, %v17731_v41  ;;  %v13625_v0 = vpop.f32.mrb[63].mxu0 }
 0x427   :  { %v9202_v33 = vor.u32 %v9201_v12, %v9198_v21  ;;  %v17741_v12 = vld [vmem:[#allocation14_spill] sm:$0xff] }
 0x428   :  { %v7754_v56 = vpop.f32.mrb[68].mxu1 }
 0x429   :  { %v13676_v62 = vpop.f32.mrb[69].mxu1  ;;  %v9203_v17 = vsel %vm8575_vm7, %v9193_v44, %v9202_v33 }
 0x42a   :  { %v7757_v52 = vpop.f32.mrb[70].mxu1 }
 0x42b   :  { %13887 = vmatmul.mubr.msk.bf16.gmra.mrb[168].mxu0 %vm7493_vm2, %v17737_v27  ;;  %v13677_v45 = vpop.f32.mrb[71].mxu1  ;;  %v7595_v20 = vpop.f32.mrb[64].mxu0 }
 0x42c   :  { %13890 = vmatprep.mubr.msk.bf16.mxu0 %vm14404_vm0, %v17731_v41  ;;  %v17048_v3 = vadd.f32 %v7746_v58, %v7595_v20  ;;  %v13628_v24 = vpop.f32.mrb[65].mxu0  ;;  %v9207_v58 = vrot.slane %v9205_v57, 2 }
 0x42d   :  { %13939 = vmatmul.mubr.msk.bf16.gmra.mrb[176].mxu1 %vm7493_vm2, %v9194_v8  ;;  %v7598_v29 = vpop.f32.mrb[66].mxu0  ;;  %v9383_v24 = vld [vmem:[#allocation3 + $0x8] sm:$0xc] }
 0x42e   :  { %13942 = vmatprep.mubr.msk.bf16.mxu1 %vm14404_vm0, %v17731_v41  ;;  %v17053_v54 = vadd.f32 %v7749_v16, %v7598_v29  ;;  %v13629_v23 = vpop.f32.mrb[67].mxu0  ;;  %v9208_v53 = vsel %vm8575_vm7, %v9202_v33, %v9207_v58 }
 0x42f   :  { %v13152_v23 = vcombine.low %v9383_v24, %v16932_v35 }
 0x430   :  { %v7762_v11 = vpop.f32.mrb[72].mxu1 }
 0x431   :  { %v13680_v40 = vpop.f32.mrb[73].mxu1 }
 0x432   :  { %v7765_v28 = vpop.f32.mrb[74].mxu1 }
 0x433   :  { %13891 = vmatmul.mubr.msk.bf16.gmra.mrb[172].mxu0 %vm7493_vm2, %v17738_v18  ;;  %v13681_v1 = vpop.f32.mrb[75].mxu1  ;;  %v7603_v63 = vpop.f32.mrb[68].mxu0  ;;  %v9396_v18 = vrot.slane %v13152_v23, 2 }
 0x434   :  { %13894 = vmatprep.mubr.msk.bf16.mxu0 %vm14404_vm0, %v17731_v41  ;;  %v17061_v38 = vadd.f32 %v7754_v56, %v7603_v63  ;;  %v13632_v61 = vpop.f32.mrb[69].mxu0  ;;  %v17740_v56 = vld [vmem:[#allocation16_spill] sm:$0xff] }
 0x435   :  { %13943 = vmatmul.mubr.msk.bf16.gmra.mrb[180].mxu1 %vm7493_vm2, %v9203_v17  ;;  %v7606_v37 = vpop.f32.mrb[70].mxu0 }
 0x436   :  { %13946 = vmatprep.mubr.msk.bf16.mxu1 %vm14404_vm0, %v17731_v41  ;;  %v17066_v7 = vadd.f32 %v7757_v52, %v7606_v37  ;;  %v13633_v10 = vpop.f32.mrb[71].mxu0  ;;  %v17742_v37 = vrot.slane %v16677_v14, 2 }
 0x438   :  { %v7770_v55 = vpop.f32.mrb[76].mxu1  ;;  %v9398_v10 = vsel %vm9395_vm6, %v9396_v18, %v17742_v37 }
 0x439   :  { %v13684_v4 = vpop.f32.mrb[77].mxu1 }
 0x43a   :  { %v7773_v15 = vpop.f32.mrb[78].mxu1 }
 0x43b   :  { %13895 = vmatmul.mubr.msk.bf16.gmra.mrb[176].mxu0 %vm7493_vm2, %v17739_v19  ;;  %v13685_v39 = vpop.f32.mrb[79].mxu1 }
 0x43c   :  { %13898 = vmatprep.mubr.msk.bf16.mxu0 %vm14404_vm0, %v17731_v41 }
 0x43d   :  { %13947 = vmatmul.mubr.msk.bf16.gmra.mrb[184].mxu1 %vm7493_vm2, %v9208_v53 }
 0x43e   :  { %v7611_v16 = vpop.f32.mrb[72].mxu0 }
 0x43f   :  { %v17074_v50 = vadd.f32 %v7762_v11, %v7611_v16  ;;  %v13636_v5 = vpop.f32.mrb[73].mxu0 }
 0x440   :  { %v7614_v46 = vpop.f32.mrb[74].mxu0  ;;  %v8208_v47 = vpop.f32.mrb[80].mxu1 }
 0x441   :  { %v17076_v60 = vadd.f32 %v7765_v28, %v7614_v46  ;;  %v13637_v30 = vpop.f32.mrb[75].mxu0  ;;  %v13740_v59 = vpop.f32.mrb[81].mxu1  ;;  %v17743_v46 = vld [vmem:[#allocation17_spill] sm:$0xff] }
 0x442   :  { %v8211_v0 = vpop.f32.mrb[82].mxu1 }
 0x443   :  { %13899 = vmatmul.mubr.msk.bf16.gmra.mrb[180].mxu0 %vm7493_vm2, %v17740_v56  ;;  %v13741_v44 = vpop.f32.mrb[83].mxu1 }
 0x444   :  { %13902 = vmatprep.mubr.msk.bf16.mxu0 %vm14404_vm0, %v17731_v41 }
 0x446   :  { %v7619_v13 = vpop.f32.mrb[76].mxu0 }
 0x447   :  { %v17082_v26 = vadd.f32 %v7770_v55, %v7619_v13  ;;  %v13640_v62 = vpop.f32.mrb[77].mxu0 }
 0x448   :  { %v7622_v52 = vpop.f32.mrb[78].mxu0  ;;  %v8216_v20 = vpop.f32.mrb[84].mxu1 }
 0x449   :  { %v17084_v27 = vadd.f32 %v7773_v15, %v7622_v52  ;;  %v13641_v45 = vpop.f32.mrb[79].mxu0  ;;  %v13744_v8 = vpop.f32.mrb[85].mxu1 }
 0x44a   :  { %v8219_v21 = vpop.f32.mrb[86].mxu1 }
 0x44b   :  { %13903 = vmatmul.mubr.msk.bf16.gmra.mrb[184].mxu0 %vm7493_vm2, %v17741_v12  ;;  %v13745_v29 = vpop.f32.mrb[87].mxu1 }
 0x44c   :  { %13958 = vmatprep.mubr.msk.bf16.mxu0 %vm14404_vm0, %v17731_v41 }
 0x44e   :  { %v7892_v11 = vpop.f32.mrb[80].mxu0 }
 0x44f   :  { %v7963_v33 = vadd.f32 %v7892_v11, %v16967_v2  ;;  %v13696_v40 = vpop.f32.mrb[81].mxu0 }
 0x450   :  { %v7895_v28 = vpop.f32.mrb[82].mxu0  ;;  %v8224_v17 = vpop.f32.mrb[88].mxu1 }
 0x451   :  { %v7964_v1 = vadd.f32 %v7895_v28, %v16972_v51  ;;  %v13697_v63 = vpop.f32.mrb[83].mxu0  ;;  %v17093_v57 = vadd.f32 %v8208_v47, %v7963_v33  ;;  %v13748_v61 = vpop.f32.mrb[89].mxu1 }
 0x452   :  { %v8227_v55 = vpop.f32.mrb[90].mxu1 }
 0x453   :  { %13959 = vmatmul.mubr.msk.bf16.vlgmr.msra.gmra.mrb[188].mxu0 %vm7493_vm2, %v9398_v10  ;;  %v17099_v35 = vadd.f32 %v8211_v0, %v7964_v1  ;;  %v13749_v2 = vpop.f32.mrb[91].mxu1 }
 0x454   :  { %13962 = vmatprep.mubr.msk.bf16.mxu0 %vm14404_vm0, %v17731_v41 }
 0x456   :  { %v7900_v58 = vpop.f32.mrb[84].mxu0 }
 0x457   :  { %v7965_v51 = vadd.f32 %v7900_v58, %v16988_v48  ;;  %v13700_v4 = vpop.f32.mrb[85].mxu0 }
 0x458   :  { %v7903_v15 = vpop.f32.mrb[86].mxu0  ;;  %v8232_v14 = vpop.f32.mrb[92].mxu1 }
 0x459   :  { %v7966_v19 = vadd.f32 %v7903_v15, %v16993_v22  ;;  %v13701_v39 = vpop.f32.mrb[87].mxu0  ;;  %v17105_v53 = vadd.f32 %v8216_v20, %v7965_v51  ;;  %v13752_v16 = vpop.f32.mrb[93].mxu1 }
 0x45a   :  { %v8235_v5 = vpop.f32.mrb[94].mxu1 }
 0x45b   :  { %13963 = vmatmul.mubr.msk.bf16.gmra.mrb[192].mxu0 %vm7493_vm2, %v17743_v46  ;;  %v17109_v30 = vadd.f32 %v8219_v21, %v7966_v19  ;;  %v13753_v47 = vpop.f32.mrb[95].mxu1 }
 0x45c   :  { %13966 = vmatprep.mubr.msk.bf16.mxu0 %vm14404_vm0, %v17731_v41 }
 0x45e   :  { %v7908_v48 = vpop.f32.mrb[88].mxu0 }
 0x45f   :  { %v7967_v59 = vadd.f32 %v7908_v48, %v17010_v25  ;;  %v13704_v0 = vpop.f32.mrb[89].mxu0 }
 0x460   :  { %v7911_v22 = vpop.f32.mrb[90].mxu0  ;;  %v8240_v13 = vpop.f32.mrb[96].mxu1 }
 0x461   :  { %v7968_v56 = vadd.f32 %v7911_v22, %v17015_v49  ;;  %v13705_v44 = vpop.f32.mrb[91].mxu0  ;;  %v17115_v62 = vadd.f32 %v8224_v17, %v7967_v59  ;;  %v13756_v52 = vpop.f32.mrb[97].mxu1 }
 0x462   :  { %v8243_v45 = vpop.f32.mrb[98].mxu1 }
 0x463   :  { %13967 = vmatmul.mubr.msk.bf16.gmra.mrb[196].mxu0 %vm7493_vm2, %v16745_v32  ;;  %v17119_v20 = vadd.f32 %v8227_v55, %v7968_v56  ;;  %v13757_v8 = vpop.f32.mrb[99].mxu1  ;;  %v17744_v32 = vld [vmem:[#allocation18_spill] sm:$0xff] }
 0x464   :  { %13970 = vmatprep.mubr.msk.bf16.mxu0 %vm14404_vm0, %v17731_v41 }
 0x466   :  { %v7916_v25 = vpop.f32.mrb[92].mxu0 }
 0x467   :  { %v7969_v21 = vadd.f32 %v7916_v25, %v17024_v6  ;;  %v13708_v12 = vpop.f32.mrb[93].mxu0 }
 0x468   :  { %v7919_v49 = vpop.f32.mrb[94].mxu0  ;;  %v8248_v23 = vpop.f32.mrb[100].mxu1 }
 0x469   :  { %v7970_v24 = vadd.f32 %v7919_v49, %v17029_v9  ;;  %v13709_v29 = vpop.f32.mrb[95].mxu0  ;;  %v17125_v11 = vadd.f32 %v8232_v14, %v7969_v21  ;;  %v13760_v33 = vpop.f32.mrb[101].mxu1 }
 0x46a   :  { %v8251_v40 = vpop.f32.mrb[102].mxu1 }
 0x46b   :  { %13971 = vmatmul.mubr.msk.bf16.gmra.mrb[200].mxu0 %vm7493_vm2, %v17744_v32  ;;  %v17129_v28 = vadd.f32 %v8235_v5, %v7970_v24  ;;  %v13761_v18 = vpop.f32.mrb[103].mxu1 }
 0x46c   :  { %13974 = vmatprep.mubr.msk.bf16.mxu0 %vm14404_vm0, %v17731_v41 }
 0x46e   :  { %v7924_v6 = vpop.f32.mrb[96].mxu0 }
 0x46f   :  { %v13712_v1 = vpop.f32.mrb[97].mxu0 }
 0x470   :  { %v7927_v63 = vpop.f32.mrb[98].mxu0  ;;  %v8256_v9 = vpop.f32.mrb[104].mxu1 }
 0x471   :  { %v13713_v17 = vpop.f32.mrb[99].mxu0  ;;  %v13764_v61 = vpop.f32.mrb[105].mxu1 }
 0x472   :  { %v8259_v37 = vpop.f32.mrb[106].mxu1 }
 0x473   :  { %13975 = vmatmul.mubr.msk.bf16.gmra.mrb[204].mxu0 %vm7493_vm2, %v16755_v36  ;;  %v13765_v10 = vpop.f32.mrb[107].mxu1 }
 0x474   :  { %13978 = vmatprep.mubr.msk.bf16.mxu0 %vm14404_vm0, %v17731_v41 }
 0x476   :  { %v7932_v55 = vpop.f32.mrb[100].mxu0 }
 0x477   :  { %v7973_v2 = vadd.f32 %v7932_v55, %v17048_v3  ;;  %v13716_v58 = vpop.f32.mrb[101].mxu0 }
 0x478   :  { %v7935_v51 = vpop.f32.mrb[102].mxu0  ;;  %v8264_v19 = vpop.f32.mrb[108].mxu1 }
 0x479   :  { %v7974_v4 = vadd.f32 %v7935_v51, %v17053_v54  ;;  %v13717_v15 = vpop.f32.mrb[103].mxu0  ;;  %v17139_v39 = vadd.f32 %v8248_v23, %v7973_v2  ;;  %v13768_v14 = vpop.f32.mrb[109].mxu1 }
 0x47a   :  { %v8267_v16 = vpop.f32.mrb[110].mxu1 }
 0x47b   :  { %13979 = vmatmul.mubr.msk.bf16.gmra.mrb[208].mxu0 %vm7493_vm2, %v16758_v31  ;;  %v17143_v36 = vadd.f32 %v8251_v40, %v7974_v4  ;;  %v13769_v5 = vpop.f32.mrb[111].mxu1 }
 0x47c   :  { %13982 = vmatprep.mubr.msk.bf16.mxu0 %vm14404_vm0, %v17731_v41 }
 0x47e   :  { %v7940_v3 = vpop.f32.mrb[104].mxu0 }
 0x47f   :  { %v7975_v46 = vadd.f32 %v7940_v3, %v17061_v38  ;;  %v13720_v47 = vpop.f32.mrb[105].mxu0 }
 0x480   :  { %v7943_v54 = vpop.f32.mrb[106].mxu0  ;;  %v8272_v0 = vpop.f32.mrb[112].mxu1 }
 0x481   :  { %v7976_v48 = vadd.f32 %v7943_v54, %v17066_v7  ;;  %v13721_v59 = vpop.f32.mrb[107].mxu0  ;;  %v17149_v22 = vadd.f32 %v8256_v9, %v7975_v46  ;;  %v13772_v56 = vpop.f32.mrb[113].mxu1 }
 0x482   :  { %v8275_v44 = vpop.f32.mrb[114].mxu1 }
 0x483   :  { %13983 = vmatmul.mubr.msk.bf16.gmra.mrb[212].mxu0 %vm7493_vm2, %v16761_v43  ;;  %v17153_v31 = vadd.f32 %v8259_v37, %v7976_v48  ;;  %v13773_v13 = vpop.f32.mrb[115].mxu1 }
 0x484   :  { %13986 = vmatprep.mubr.msk.bf16.mxu0 %vm14404_vm0, %v17731_v41 }
 0x486   :  { %v7948_v38 = vpop.f32.mrb[108].mxu0 }
 0x487   :  { %v7977_v52 = vadd.f32 %v7948_v38, %v17074_v50  ;;  %v13724_v45 = vpop.f32.mrb[109].mxu0 }
 0x488   :  { %v7951_v7 = vpop.f32.mrb[110].mxu0  ;;  %v8746_v21 = vpop.f32.mrb[116].mxu1 }
 0x489   :  { %v7978_v8 = vadd.f32 %v7951_v7, %v17076_v60  ;;  %v13725_v25 = vpop.f32.mrb[111].mxu0  ;;  %v17159_v12 = vadd.f32 %v8264_v19, %v7977_v52  ;;  %v13828_v49 = vpop.f32.mrb[117].mxu1 }
 0x48a   :  { %v8749_v24 = vpop.f32.mrb[118].mxu1 }
 0x48b   :  { %13987 = vmatmul.mubr.msk.bf16.gmra.mrb[216].mxu0 %vm7493_vm2, %v16766_v42  ;;  %v17163_v43 = vadd.f32 %v8267_v16, %v7978_v8  ;;  %v13829_v29 = vpop.f32.mrb[119].mxu1 }
 0x48c   :  { %13990 = vmatprep.mubr.msk.bf16.mxu0 %vm14404_vm0, %v17731_v41 }
 0x48e   :  { %v7956_v50 = vpop.f32.mrb[112].mxu0 }
 0x48f   :  { %v7979_v23 = vadd.f32 %v7956_v50, %v17082_v26  ;;  %v13728_v33 = vpop.f32.mrb[113].mxu0 }
 0x490   :  { %v7959_v60 = vpop.f32.mrb[114].mxu0  ;;  %v8754_v18 = vpop.f32.mrb[120].mxu1 }
 0x491   :  { %v7980_v40 = vadd.f32 %v7959_v60, %v17084_v27  ;;  %v13729_v32 = vpop.f32.mrb[115].mxu0  ;;  %v17169_v6 = vadd.f32 %v8272_v0, %v7979_v23  ;;  %v13832_v1 = vpop.f32.mrb[121].mxu1 }
 0x492   :  { %v8757_v63 = vpop.f32.mrb[122].mxu1 }
 0x493   :  { %13991 = vmatmul.mubr.msk.bf16.gmra.mrb[220].mxu0 %vm7493_vm2, %v16883_v34  ;;  %v17173_v42 = vadd.f32 %v8275_v44, %v7980_v40  ;;  %v13833_v17 = vpop.f32.mrb[123].mxu1 }
 0x496   :  { %v8411_v41 = vpop.f32.mrb[116].mxu0 }
 0x497   :  { %v8482_v9 = vadd.f32 %v8411_v41, %v17093_v57  ;;  %v13784_v26 = vpop.f32.mrb[117].mxu0 }
 0x498   :  { %v8414_v61 = vpop.f32.mrb[118].mxu0  ;;  %v8762_v10 = vpop.f32.mrb[124].mxu1 }
 0x499   :  { %v8483_v37 = vadd.f32 %v8414_v61, %v17099_v35  ;;  %v13785_v27 = vpop.f32.mrb[119].mxu0  ;;  %v17177_v55 = vadd.f32 %v8746_v21, %v8482_v9  ;;  %v13836_v2 = vpop.f32.mrb[125].mxu1 }
 0x49a   :  { %v8765_v58 = vpop.f32.mrb[126].mxu1 }
 0x49b   :  { %v17179_v51 = vadd.f32 %v8749_v24, %v8483_v37  ;;  %v13837_v4 = vpop.f32.mrb[127].mxu1 }
 0x49e   :  { %v8419_v34 = vpop.f32.mrb[120].mxu0 }
 0x49f   :  { %v8484_v15 = vadd.f32 %v8419_v34, %v17105_v53  ;;  %v13788_v19 = vpop.f32.mrb[121].mxu0 }
 0x4a0   :  { %v8422_v14 = vpop.f32.mrb[122].mxu0  ;;  %v8770_v5 = vpop.f32.mrb[128].mxu1 }
 0x4a1   :  { %v8485_v57 = vadd.f32 %v8422_v14, %v17109_v30  ;;  %v13789_v16 = vpop.f32.mrb[123].mxu0  ;;  %v17183_v3 = vadd.f32 %v8754_v18, %v8484_v15  ;;  %v13840_v35 = vpop.f32.mrb[129].mxu1 }
 0x4a2   :  { %v8773_v46 = vpop.f32.mrb[130].mxu1 }
 0x4a3   :  { %v17185_v47 = vadd.f32 %v8757_v63, %v8485_v57  ;;  %v13841_v54 = vpop.f32.mrb[131].mxu1 }
 0x4a6   :  { %v8427_v48 = vpop.f32.mrb[124].mxu0 }
 0x4a7   :  { %v8486_v59 = vadd.f32 %v8427_v48, %v17115_v62  ;;  %v13792_v0 = vpop.f32.mrb[125].mxu0 }
 0x4a8   :  { %v8430_v56 = vpop.f32.mrb[126].mxu0  ;;  %v8778_v13 = vpop.f32.mrb[132].mxu1 }
 0x4a9   :  { %v8487_v53 = vadd.f32 %v8430_v56, %v17119_v20  ;;  %v13793_v44 = vpop.f32.mrb[127].mxu0  ;;  %v17189_v38 = vadd.f32 %v8762_v10, %v8486_v59  ;;  %v13844_v30 = vpop.f32.mrb[133].mxu1 }
 0x4aa   :  { %v8781_v52 = vpop.f32.mrb[134].mxu1 }
 0x4ab   :  { %v17191_v45 = vadd.f32 %v8765_v58, %v8487_v53  ;;  %v13845_v7 = vpop.f32.mrb[135].mxu1 }
 0x4ae   :  { %v8435_v8 = vpop.f32.mrb[128].mxu0 }
 0x4af   :  { %v8488_v25 = vadd.f32 %v8435_v8, %v17125_v11  ;;  %v13796_v21 = vpop.f32.mrb[129].mxu0 }
 0x4b0   :  { %v8438_v49 = vpop.f32.mrb[130].mxu0  ;;  %v8786_v29 = vpop.f32.mrb[136].mxu1 }
 0x4b1   :  { %v8489_v62 = vadd.f32 %v8438_v49, %v17129_v28  ;;  %v13797_v24 = vpop.f32.mrb[131].mxu0  ;;  %v17195_v50 = vadd.f32 %v8770_v5, %v8488_v25  ;;  %v13848_v20 = vpop.f32.mrb[137].mxu1 }
 0x4b2   :  { %v8789_v23 = vpop.f32.mrb[138].mxu1 }
 0x4b3   :  { %v17197_v33 = vadd.f32 %v8773_v46, %v8489_v62  ;;  %v13849_v60 = vpop.f32.mrb[139].mxu1 }
 0x4b6   :  { %v8443_v40 = vpop.f32.mrb[132].mxu0 }
 0x4b7   :  { %v13800_v32 = vpop.f32.mrb[133].mxu0 }
 0x4b8   :  { %v8446_v18 = vpop.f32.mrb[134].mxu0  ;;  %v8794_v63 = vpop.f32.mrb[140].mxu1 }
 0x4b9   :  { %v13801_v1 = vpop.f32.mrb[135].mxu0  ;;  %v13852_v17 = vpop.f32.mrb[141].mxu1 }
 0x4ba   :  { %v8797_v11 = vpop.f32.mrb[142].mxu1 }
 0x4bb   :  { %v13853_v41 = vpop.f32.mrb[143].mxu1 }
 0x4be   :  { %v8451_v9 = vpop.f32.mrb[136].mxu0 }
 0x4bf   :  { %v8492_v28 = vadd.f32 %v8451_v9, %v17139_v39  ;;  %v13804_v26 = vpop.f32.mrb[137].mxu0 }
 0x4c0   :  { %v8454_v61 = vpop.f32.mrb[138].mxu0  ;;  %v8802_v10 = vpop.f32.mrb[144].mxu1 }
 0x4c1   :  { %v8493_v37 = vadd.f32 %v8454_v61, %v17143_v36  ;;  %v13805_v27 = vpop.f32.mrb[139].mxu0  ;;  %v17201_v2 = vadd.f32 %v8786_v29, %v8492_v28  ;;  %v13856_v58 = vpop.f32.mrb[145].mxu1 }
 0x4c2   :  { %v8805_v4 = vpop.f32.mrb[146].mxu1 }
 0x4c3   :  { %v17203_v34 = vadd.f32 %v8789_v23, %v8493_v37  ;;  %v13857_v15 = vpop.f32.mrb[147].mxu1 }
 0x4c6   :  { %v8459_v19 = vpop.f32.mrb[140].mxu0 }
 0x4c7   :  { %v8494_v14 = vadd.f32 %v8459_v19, %v17149_v22  ;;  %v13808_v57 = vpop.f32.mrb[141].mxu0 }
 0x4c8   :  { %v8462_v16 = vpop.f32.mrb[142].mxu0  ;;  %v8810_v35 = vpop.f32.mrb[148].mxu1 }
 0x4c9   :  { %v8495_v39 = vadd.f32 %v8462_v16, %v17153_v31  ;;  %v13809_v5 = vpop.f32.mrb[143].mxu0  ;;  %v17207_v46 = vadd.f32 %v8794_v63, %v8494_v14  ;;  %v13860_v36 = vpop.f32.mrb[149].mxu1 }
 0x4ca   :  { %v8813_v54 = vpop.f32.mrb[150].mxu1 }
 0x4cb   :  { %v17209_v48 = vadd.f32 %v8797_v11, %v8495_v39  ;;  %v13861_v59 = vpop.f32.mrb[151].mxu1 }
 0x4ce   :  { %v8467_v0 = vpop.f32.mrb[144].mxu0 }
 0x4cf   :  { %v8496_v56 = vadd.f32 %v8467_v0, %v17159_v12  ;;  %v13812_v53 = vpop.f32.mrb[145].mxu0 }
 0x4d0   :  { %v8470_v44 = vpop.f32.mrb[146].mxu0  ;;  %v9294_v30 = vpop.f32.mrb[152].mxu1 }
 0x4d1   :  { %v8497_v22 = vadd.f32 %v8470_v44, %v17163_v43  ;;  %v13813_v13 = vpop.f32.mrb[147].mxu0  ;;  %v17213_v52 = vadd.f32 %v8802_v10, %v8496_v56  ;;  %v13916_v31 = vpop.f32.mrb[153].mxu1 }
 0x4d2   :  { %v9297_v7 = vpop.f32.mrb[154].mxu1 }
 0x4d3   :  { %v17215_v8 = vadd.f32 %v8805_v4, %v8497_v22  ;;  %v13917_v25 = vpop.f32.mrb[155].mxu1 }
 0x4d6   :  { %v8475_v21 = vpop.f32.mrb[148].mxu0 }
 0x4d7   :  { %v8498_v49 = vadd.f32 %v8475_v21, %v17169_v6  ;;  %v13816_v62 = vpop.f32.mrb[149].mxu0 }
 0x4d8   :  { %v8478_v24 = vpop.f32.mrb[150].mxu0  ;;  %v9302_v20 = vpop.f32.mrb[156].mxu1 }
 0x4d9   :  { %v8499_v12 = vadd.f32 %v8478_v24, %v17173_v42  ;;  %v13817_v29 = vpop.f32.mrb[151].mxu0  ;;  %v17219_v23 = vadd.f32 %v8810_v35, %v8498_v49  ;;  %v13920_v43 = vpop.f32.mrb[157].mxu1 }
 0x4da   :  { %v9305_v60 = vpop.f32.mrb[158].mxu1 }
 0x4db   :  { %v17221_v40 = vadd.f32 %v8813_v54, %v8499_v12  ;;  %v13921_v32 = vpop.f32.mrb[159].mxu1 }
 0x4de   :  { %v8960_v18 = vpop.f32.mrb[152].mxu0 }
 0x4df   :  { %v9031_v1 = vadd.f32 %v8960_v18, %v17177_v55  ;;  %v13872_v63 = vpop.f32.mrb[153].mxu0 }
 0x4e0   :  { %v8963_v17 = vpop.f32.mrb[154].mxu0  ;;  %v9310_v41 = vpop.f32.mrb[160].mxu1 }
 0x4e1   :  { %v9032_v6 = vadd.f32 %v8963_v17, %v17179_v51  ;;  %v13873_v11 = vpop.f32.mrb[155].mxu0  ;;  %v17225_v9 = vadd.f32 %v9294_v30, %v9031_v1  ;;  %v13924_v42 = vpop.f32.mrb[161].mxu1 }
 0x4e2   :  { %v9313_v28 = vpop.f32.mrb[162].mxu1 }
 0x4e3   :  { %v17227_v26 = vadd.f32 %v9297_v7, %v9032_v6  ;;  %v13925_v61 = vpop.f32.mrb[163].mxu1 }
 0x4e6   :  { %v8968_v37 = vpop.f32.mrb[156].mxu0 }
 0x4e7   :  { %v9033_v27 = vadd.f32 %v8968_v37, %v17183_v3  ;;  %v13876_v10 = vpop.f32.mrb[157].mxu0 }
 0x4e8   :  { %v8971_v58 = vpop.f32.mrb[158].mxu0  ;;  %v9318_v15 = vpop.f32.mrb[164].mxu1 }
 0x4e9   :  { %v9034_v55 = vadd.f32 %v8971_v58, %v17185_v47  ;;  %v13877_v4 = vpop.f32.mrb[159].mxu0  ;;  %v17231_v19 = vadd.f32 %v9302_v20, %v9033_v27  ;;  %v13928_v51 = vpop.f32.mrb[165].mxu1 }
 0x4ea   :  { %v9321_v14 = vpop.f32.mrb[166].mxu1 }
 0x4eb   :  { %v17233_v57 = vadd.f32 %v9305_v60, %v9034_v55  ;;  %v13929_v16 = vpop.f32.mrb[167].mxu1 }
 0x4ee   :  { %v8976_v39 = vpop.f32.mrb[160].mxu0 }
 0x4ef   :  { %v9035_v5 = vadd.f32 %v8976_v39, %v17189_v38  ;;  %v13880_v35 = vpop.f32.mrb[161].mxu0 }
 0x4f0   :  { %v8979_v36 = vpop.f32.mrb[162].mxu0  ;;  %v9326_v59 = vpop.f32.mrb[168].mxu1 }
 0x4f1   :  { %v9036_v3 = vadd.f32 %v8979_v36, %v17191_v45  ;;  %v13881_v54 = vpop.f32.mrb[163].mxu0  ;;  %v17237_v0 = vadd.f32 %v9310_v41, %v9035_v5  ;;  %v13932_v47 = vpop.f32.mrb[169].mxu1 }
 0x4f2   :  { %v9329_v56 = vpop.f32.mrb[170].mxu1 }
 0x4f3   :  { %v17239_v53 = vadd.f32 %v9313_v28, %v9036_v3  ;;  %v13933_v44 = vpop.f32.mrb[171].mxu1 }
 0x4f6   :  { %v8984_v22 = vpop.f32.mrb[164].mxu0 }
 0x4f7   :  { %v9037_v13 = vadd.f32 %v8984_v22, %v17195_v50  ;;  %v13884_v30 = vpop.f32.mrb[165].mxu0 }
 0x4f8   :  { %v8987_v31 = vpop.f32.mrb[166].mxu0  ;;  %v9334_v25 = vpop.f32.mrb[172].mxu1 }
 0x4f9   :  { %v9038_v38 = vadd.f32 %v8987_v31, %v17197_v33  ;;  %v13885_v7 = vpop.f32.mrb[167].mxu0  ;;  %v17243_v21 = vadd.f32 %v9318_v15, %v9037_v13  ;;  %v13936_v45 = vpop.f32.mrb[173].mxu1 }
 0x4fa   :  { %v9337_v49 = vpop.f32.mrb[174].mxu1 }
 0x4fb   :  { %v17245_v62 = vadd.f32 %v9321_v14, %v9038_v38  ;;  %v13937_v24 = vpop.f32.mrb[175].mxu1 }
 0x4fe   :  { %v8992_v12 = vpop.f32.mrb[168].mxu0 }
 0x4ff   :  { %v13888_v29 = vpop.f32.mrb[169].mxu0 }
 0x500   :  { %v8995_v20 = vpop.f32.mrb[170].mxu0  ;;  %v9342_v60 = vpop.f32.mrb[176].mxu1 }
 0x501   :  { %v13889_v43 = vpop.f32.mrb[171].mxu0  ;;  %v13940_v32 = vpop.f32.mrb[177].mxu1 }
 0x502   :  { %v9345_v50 = vpop.f32.mrb[178].mxu1 }
 0x503   :  { %v13941_v18 = vpop.f32.mrb[179].mxu1 }
 0x506   :  { %v9000_v1 = vpop.f32.mrb[172].mxu0 }
 0x507   :  { %v9041_v33 = vadd.f32 %v9000_v1, %v17201_v2  ;;  %v13892_v63 = vpop.f32.mrb[173].mxu0 }
 0x508   :  { %v9003_v17 = vpop.f32.mrb[174].mxu0  ;;  %v9350_v41 = vpop.f32.mrb[180].mxu1 }
 0x509   :  { %v9042_v6 = vadd.f32 %v9003_v17, %v17203_v34  ;;  %v13893_v11 = vpop.f32.mrb[175].mxu0  ;;  %v17249_v42 = vadd.f32 %v9334_v25, %v9041_v33  ;;  %v13944_v28 = vpop.f32.mrb[181].mxu1 }
 0x50a   :  { %v9353_v61 = vpop.f32.mrb[182].mxu1 }
 0x50b   :  { %v17251_v37 = vadd.f32 %v9337_v49, %v9042_v6  ;;  %v13945_v27 = vpop.f32.mrb[183].mxu1 }
 0x50e   :  { %v9008_v10 = vpop.f32.mrb[176].mxu0 }
 0x50f   :  { %v9043_v58 = vadd.f32 %v9008_v10, %v17207_v46  ;;  %v13896_v55 = vpop.f32.mrb[177].mxu0 }
 0x510   :  { %v9011_v4 = vpop.f32.mrb[178].mxu0  ;;  %v9358_v51 = vpop.f32.mrb[184].mxu1 }
 0x511   :  { %v9044_v2 = vadd.f32 %v9011_v4, %v17209_v48  ;;  %v13897_v15 = vpop.f32.mrb[179].mxu0  ;;  %v17255_v14 = vadd.f32 %v9342_v60, %v9043_v58  ;;  %v13948_v34 = vpop.f32.mrb[185].mxu1 }
 0x512   :  { %v9361_v16 = vpop.f32.mrb[186].mxu1 }
 0x513   :  { %v17257_v39 = vadd.f32 %v9345_v50, %v9044_v2  ;;  %v13949_v5 = vpop.f32.mrb[187].mxu1 }
 0x516   :  { %v9016_v35 = vpop.f32.mrb[180].mxu0 }
 0x517   :  { %v9045_v36 = vadd.f32 %v9016_v35, %v17213_v52  ;;  %v13900_v3 = vpop.f32.mrb[181].mxu0 }
 0x518   :  { %v9019_v54 = vpop.f32.mrb[182].mxu0 }
 0x519   :  { %v9046_v46 = vadd.f32 %v9019_v54, %v17215_v8  ;;  %v13901_v59 = vpop.f32.mrb[183].mxu0  ;;  %v17261_v47 = vadd.f32 %v9350_v41, %v9045_v36  ;;  %v17274_v8 = vld [vmem:[%s17713_s4] ss:$0 sm:$0xff]  ;;  %s14405_s4 = smov 64  }
 0x51b   :  { %v17263_v48 = vadd.f32 %v9353_v61, %v9046_v46 }
 0x51e   :  { %v9024_v56 = vpop.f32.mrb[184].mxu0 }
 0x51f   :  { %v9047_v44 = vadd.f32 %v9024_v56, %v17219_v23  ;;  %v13904_v22 = vpop.f32.mrb[185].mxu0 }
 0x520   :  { %v9027_v13 = vpop.f32.mrb[186].mxu0 }
 0x521   :  { %v9048_v30 = vadd.f32 %v9027_v13, %v17221_v40  ;;  %v13905_v31 = vpop.f32.mrb[187].mxu0  ;;  %v17267_v38 = vadd.f32 %v9358_v51, %v9047_v44 }
 0x523   :  { %v17269_v52 = vadd.f32 %v9361_v16, %v9048_v30 }
 0x526   :  { %v9500_v7 = vpop.f32.mrb[188].mxu0 }
 0x527   :  { %v9571_v25 = vadd.f32 %v9500_v7, %v17225_v9  ;;  %v13960_v45 = vpop.f32.mrb[189].mxu0 }
 0x528   :  { %v9503_v49 = vpop.f32.mrb[190].mxu0 }
 0x529   :  { %v9596_v23 = vadd.f32 %v17274_v8, %v9571_v25  ;;  %v9572_v24 = vadd.f32 %v9503_v49, %v17227_v26  ;;  %v13961_v40 = vpop.f32.mrb[191].mxu0 }
 0x52b   :  { %v9614_v12 = vmax.f32 %v9596_v23, 0.0  ;;  %v9597_v29 = vadd.f32 %v17274_v8, %v9572_v24 }
 0x52d   :  { %9632 = vst.msk [vmem:[#allocation4] sm:$0xff] %vm7493_vm2, %v9614_v12  ;;  %v9615_v20 = vmax.f32 %v9597_v29, 0.0 }
 0x52e   :  { %v9508_v43 = vpop.f32.mrb[192].mxu0 }
 0x52f   :  { %9633 = vst.msk [vmem:[#allocation4 + $0x8] sm:$0xff] %vm7493_vm2, %v9615_v20  ;;  %v9573_v60 = vadd.f32 %v9508_v43, %v17231_v19  ;;  %v13964_v32 = vpop.f32.mrb[193].mxu0 }
 0x530   :  { %v9511_v9 = vpop.f32.mrb[194].mxu0 }
 0x531   :  { %v9598_v50 = vadd.f32 %v17274_v8, %v9573_v60  ;;  %v9574_v18 = vadd.f32 %v9511_v9, %v17233_v57  ;;  %v13965_v1 = vpop.f32.mrb[195].mxu0 }
 0x533   :  { %v9616_v26 = vmax.f32 %v9598_v50, 0.0  ;;  %v9599_v33 = vadd.f32 %v17274_v8, %v9574_v18 }
 0x534   :  { %v13169_v63 = vld.sshfl [vmem:[#allocation4 + $0x5] sm:$0x1 pattern:$0x76325410]  ;;  %v9682_v17 = vld [vmem:[#allocation4 + $0x4] sm:$0x1] }
 0x535   :  { %9634 = vst.msk [vmem:[#allocation4 + $0x10] sm:$0xff] %vm7493_vm2, %v9616_v26  ;;  %v9617_v6 = vmax.f32 %v9599_v33, 0.0  ;;  %9693 = vrot.lane.b32.xlu1 %v13169_v63, %s14405_s4  ;;  %v13167_v11 = vld.sshfl [vmem:[#allocation4 + $0x1] sm:$0x1 pattern:$0x76325410] }
 0x536   :  { %9683 = vst.msk [vmem:[#allocation5 + $0x4] sm:$0x1] %vm7315_vm5, %v9682_v17  ;;  %9662 = vrot.lane.b32.xlu0 %v13167_v11, %s14405_s4  ;;  %v9516_v19 = vpop.f32.mrb[196].mxu0  ;;  %v9651_v4 = vld [vmem:[#allocation4] sm:$0x1] }
 0x537   :  { %9635 = vst.msk [vmem:[#allocation4 + $0x18] sm:$0xff] %vm7493_vm2, %v9617_v6  ;;  %v9575_v57 = vadd.f32 %v9516_v19, %v17237_v0  ;;  %v13968_v41 = vpop.f32.mrb[197].mxu0  ;;  %v13170_v61 = vld.sshfl [vmem:[#allocation4 + $0x9] sm:$0x1 pattern:$0x76325410] }
 0x538   :  { %v9519_v28 = vpop.f32.mrb[198].mxu0  ;;  %v13168_v58 = vld.sshfl [vmem:[#allocation4 + $0x3] sm:$0x1 pattern:$0x76325410] }
 0x539   :  { %v9600_v27 = vadd.f32 %v17274_v8, %v9575_v57  ;;  %v9576_v10 = vadd.f32 %v9519_v28, %v17239_v53  ;;  %9708 = vrot.lane.b32.xlu1 %v13170_v61, %s14405_s4  ;;  %v13969_v55 = vpop.f32.mrb[199].mxu0  ;;  %9652 = vst.msk [vmem:[#allocation5] sm:$0x1] %vm7315_vm5, %v9651_v4  ;;  %v9667_v0 = vld [vmem:[#allocation4 + $0x2] sm:$0x1] }
 0x53a   :  { %9678 = vrot.lane.b32.xlu0 %v13168_v58, %s14405_s4  ;;  %v9697_v51 = vld [vmem:[#allocation4 + $0x6] sm:$0x1]  ;;  %v13172_v34 = vld.sshfl [vmem:[#allocation4 + $0xd] sm:$0x1 pattern:$0x76325410] }
 0x53b   :  { %v9618_v2 = vmax.f32 %v9600_v27, 0.0  ;;  %v9601_v15 = vadd.f32 %v17274_v8, %v9576_v10  ;;  %9668 = vst.msk [vmem:[#allocation5 + $0x2] sm:$0x1] %vm7315_vm5, %v9667_v0  ;;  %9698 = vst.msk [vmem:[#allocation5 + $0x6] sm:$0x1] %vm7315_vm5, %v9697_v51 }
 0x53c   :  { %v9712_v53 = vld [vmem:[#allocation4 + $0xa] sm:$0x1]  ;;  %v13171_v5 = vld.sshfl [vmem:[#allocation4 + $0xb] sm:$0x1 pattern:$0x76325410] }
 0x53d   :  { %9636 = vst.msk [vmem:[#allocation4 + $0x20] sm:$0xff] %vm7493_vm2, %v9618_v2  ;;  %v9619_v16 = vmax.f32 %v9601_v15, 0.0  ;;  %9738 = vrot.lane.b32.xlu1 %v13172_v34, %s14405_s4  ;;  %v13174_v46 = vld.sshfl [vmem:[#allocation4 + $0x13] sm:$0x1 pattern:$0x76325410] }
 0x53e   :  { %9713 = vst.msk [vmem:[#allocation5 + $0x8] sm:$0x1] %vm7315_vm5, %v9712_v53  ;;  %9723 = vrot.lane.b32.xlu0 %v13171_v5, %s14405_s4  ;;  %v9524_v35 = vpop.f32.mrb[200].mxu0  ;;  %v9727_v13 = vld [vmem:[#allocation4 + $0xc] sm:$0x1] }
 0x53f   :  { %9637 = vst.msk [vmem:[#allocation4 + $0x28] sm:$0xff] %vm7493_vm2, %v9619_v16  ;;  %v9577_v36 = vadd.f32 %v9524_v35, %v17243_v21  ;;  %v13972_v3 = vpop.f32.mrb[201].mxu0  ;;  %v13173_v44 = vld.sshfl [vmem:[#allocation4 + $0xf] sm:$0x1 pattern:$0x76325410] }
 0x540   :  { %v9527_v54 = vpop.f32.mrb[202].mxu0  ;;  %v9742_v30 = vld [vmem:[#allocation4 + $0xe] sm:$0x1]  ;;  %v9757_v31 = vld [vmem:[#allocation4 + $0x12] sm:$0x1] }
 0x541   :  { %v9602_v59 = vadd.f32 %v17274_v8, %v9577_v36  ;;  %v9578_v56 = vadd.f32 %v9527_v54, %v17245_v62  ;;  %9768 = vrot.lane.b32.xlu1 %v13174_v46, %s14405_s4  ;;  %v13973_v22 = vpop.f32.mrb[203].mxu0  ;;  %9728 = vst.msk [vmem:[#allocation5 + $0xa] sm:$0x1] %vm7315_vm5, %v9727_v13  ;;  %9743 = vst.msk [vmem:[#allocation5 + $0xc] sm:$0x1] %vm7315_vm5, %v9742_v30 }
 0x542   :  { %9753 = vrot.lane.b32.xlu0 %v13173_v44, %s14405_s4  ;;  %9758 = vst.msk [vmem:[#allocation5 + $0xe] sm:$0x1] %vm7315_vm5, %v9757_v31  ;;  %v9772_v21 = vld [vmem:[#allocation4 + $0x14] sm:$0x1]  ;;  %v9787_v62 = vld [vmem:[#allocation4 + $0x16] sm:$0x1] }
 0x543   :  { %v9620_v7 = vmax.f32 %v9602_v59, 0.0  ;;  %v9603_v25 = vadd.f32 %v17274_v8, %v9578_v56  ;;  %v13176_v45 = vld.sshfl [vmem:[#allocation4 + $0x17] sm:$0x1 pattern:$0x76325410] }
 0x544   :  { %9773 = vst.msk [vmem:[#allocation5 + $0x10] sm:$0x1] %vm7315_vm5, %v9772_v21  ;;  %9788 = vst.msk [vmem:[#allocation5 + $0x12] sm:$0x1] %vm7315_vm5, %v9787_v62  ;;  %v9817_v49 = vld [vmem:[#allocation4 + $0x1c] sm:$0x1] }
 0x545   :  { %9638 = vst.msk [vmem:[#allocation4 + $0x30] sm:$0xff] %vm7493_vm2, %v9620_v7  ;;  %v9621_v23 = vmax.f32 %v9603_v25, 0.0  ;;  %v13175_v24 = vld.sshfl [vmem:[#allocation4 + $0x15] sm:$0x1 pattern:$0x76325410]  ;;  %9798 = vrot.lane.b32.xlu1 %v13176_v45, %s14405_s4 }
 0x546   :  { %9818 = vst.msk [vmem:[#allocation5 + $0x16] sm:$0x1] %vm7315_vm5, %v9817_v49  ;;  %9783 = vrot.lane.b32.xlu0 %v13175_v24, %s14405_s4  ;;  %v9532_v40 = vpop.f32.mrb[204].mxu0  ;;  %v9802_v32 = vld [vmem:[#allocation4 + $0x18] sm:$0x1] }
 0x547   :  { %9639 = vst.msk [vmem:[#allocation4 + $0x38] sm:$0xff] %vm7493_vm2, %v9621_v23  ;;  %v13976_v12 = vpop.f32.mrb[205].mxu0  ;;  %v13178_v20 = vld.sshfl [vmem:[#allocation4 + $0x1d] sm:$0x1 pattern:$0x76325410] }
 0x548   :  { %v9535_v29 = vpop.f32.mrb[206].mxu0  ;;  %v13177_v43 = vld.sshfl [vmem:[#allocation4 + $0x1b] sm:$0x1 pattern:$0x76325410] }
 0x549   :  { %9828 = vrot.lane.b32.xlu1 %v13178_v20, %s14405_s4  ;;  %v13977_v60 = vpop.f32.mrb[207].mxu0  ;;  %v9832_v9 = vld [vmem:[#allocation4 + $0x1e] sm:$0x1]  ;;  %v9847_v50 = vld [vmem:[#allocation4 + $0x20] sm:$0x1] }
 0x54a   :  { %9813 = vrot.lane.b32.xlu0 %v13177_v43, %s14405_s4  ;;  %9803 = vst.msk [vmem:[#allocation5 + $0x14] sm:$0x1] %vm7315_vm5, %v9802_v32  ;;  %9833 = vst.msk [vmem:[#allocation5 + $0x18] sm:$0x1] %vm7315_vm5, %v9832_v9  ;;  %v9862_v18 = vld [vmem:[#allocation4 + $0x24] sm:$0x1] }
 0x54b   :  { %9848 = vst.msk [vmem:[#allocation5 + $0x1a] sm:$0x1] %vm7315_vm5, %v9847_v50  ;;  %v9877_v1 = vld [vmem:[#allocation4 + $0x26] sm:$0x1]  ;;  %9863 = vst.msk [vmem:[#allocation5 + $0x1c] sm:$0x1] %vm7315_vm5, %v9862_v18 }
 0x54c   :  { %v13180_v26 = vld.sshfl [vmem:[#allocation4 + $0x21] sm:$0x1 pattern:$0x76325410]  ;;  %9878 = vst.msk [vmem:[#allocation5 + $0x1e] sm:$0x1] %vm7315_vm5, %v9877_v1 }
 0x54d   :  { %v9907_v33 = vld [vmem:[#allocation4 + $0x2a] sm:$0x1]  ;;  %v13179_v63 = vld.sshfl [vmem:[#allocation4 + $0x1f] sm:$0x1 pattern:$0x76325410]  ;;  %9858 = vrot.lane.b32.xlu1 %v13180_v26, %s14405_s4 }
 0x54e   :  { %9908 = vst.msk [vmem:[#allocation5 + $0x22] sm:$0x1] %vm7315_vm5, %v9907_v33  ;;  %v10012_v17 = vld [vmem:[#allocation4 + $0x3c] sm:$0x1]  ;;  %9843 = vrot.lane.b32.xlu0 %v13179_v63, %s14405_s4  ;;  %v9540_v6 = vpop.f32.mrb[208].mxu0 }
 0x54f   :  { %v9892_v11 = vld [vmem:[#allocation4 + $0x28] sm:$0x1]  ;;  %10013 = vst.msk [vmem:[#allocation5 + $0x30] sm:$0x1] %vm7315_vm5, %v10012_v17  ;;  %v9581_v19 = vadd.f32 %v9540_v6, %v17249_v42  ;;  %v13980_v57 = vpop.f32.mrb[209].mxu0 }
 0x550   :  { %9893 = vst.msk [vmem:[#allocation5 + $0x20] sm:$0x1] %vm7315_vm5, %v9892_v11  ;;  %v9543_v41 = vpop.f32.mrb[210].mxu0  ;;  %v9922_v55 = vld [vmem:[#allocation4 + $0x2e] sm:$0x1] }
 0x551   :  { %v13182_v28 = vld.sshfl [vmem:[#allocation4 + $0x27] sm:$0x1 pattern:$0x76325410]  ;;  %v9606_v61 = vadd.f32 %v17274_v8, %v9581_v19  ;;  %v9582_v27 = vadd.f32 %v9543_v41, %v17251_v37  ;;  %v13981_v58 = vpop.f32.mrb[211].mxu0 }
 0x552   :  { %v13181_v10 = vld.sshfl [vmem:[#allocation4 + $0x25] sm:$0x1 pattern:$0x76325410]  ;;  %9888 = vrot.lane.b32.xlu1 %v13182_v28, %s14405_s4  ;;  %v9937_v4 = vld [vmem:[#allocation4 + $0x30] sm:$0x1] }
 0x553   :  { %9873 = vrot.lane.b32.xlu0 %v13181_v10, %s14405_s4  ;;  %v9952_v2 = vld [vmem:[#allocation4 + $0x32] sm:$0x1]  ;;  %v9624_v15 = vmax.f32 %v9606_v61, 0.0  ;;  %v9607_v42 = vadd.f32 %v17274_v8, %v9582_v27  ;;  %9923 = vst.msk [vmem:[#allocation5 + $0x24] sm:$0x1] %vm7315_vm5, %v9922_v55 }
 0x554   :  { %9938 = vst.msk [vmem:[#allocation5 + $0x26] sm:$0x1] %vm7315_vm5, %v9937_v4  ;;  %9953 = vst.msk [vmem:[#allocation5 + $0x28] sm:$0x1] %vm7315_vm5, %v9952_v2  ;;  %v9967_v0 = vld [vmem:[#allocation4 + $0x36] sm:$0x1] }
 0x555   :  { %v9997_v37 = vld [vmem:[#allocation4 + $0x3a] sm:$0x1]  ;;  %v13184_v51 = vld.sshfl [vmem:[#allocation4 + $0x2d] sm:$0x1 pattern:$0x76325410] }
 0x556   :  { %9968 = vst.msk [vmem:[#allocation5 + $0x2a] sm:$0x1] %vm7315_vm5, %v9967_v0  ;;  %9998 = vst.msk [vmem:[#allocation5 + $0x2e] sm:$0x1] %vm7315_vm5, %v9997_v37  ;;  %v9982_v34 = vld [vmem:[#allocation4 + $0x38] sm:$0x1]  ;;  %9918 = vrot.lane.b32.xlu1 %v13184_v51, %s14405_s4 }
 0x557   :  { %9642 = vst.msk [vmem:[#allocation4 + $0x50] sm:$0xff] %vm7493_vm2, %v9624_v15  ;;  %v9625_v53 = vmax.f32 %v9607_v42, 0.0  ;;  %v13183_v16 = vld.sshfl [vmem:[#allocation4 + $0x29] sm:$0x1 pattern:$0x76325410] }
 0x558   :  { %9983 = vst.msk [vmem:[#allocation5 + $0x2c] sm:$0x1] %vm7315_vm5, %v9982_v34  ;;  %9903 = vrot.lane.b32.xlu0 %v13183_v16, %s14405_s4  ;;  %v9548_v5 = vpop.f32.mrb[212].mxu0 }
 0x559   :  { %9643 = vst.msk [vmem:[#allocation4 + $0x58] sm:$0xff] %vm7493_vm2, %v9625_v53  ;;  %v9583_v35 = vadd.f32 %v9548_v5, %v17255_v14  ;;  %v13984_v36 = vpop.f32.mrb[213].mxu0  ;;  %v13186_v54 = vld.sshfl [vmem:[#allocation4 + $0x31] sm:$0x1 pattern:$0x76325410] }
 0x55a   :  { %v9551_v3 = vpop.f32.mrb[214].mxu0  ;;  %v13185_v56 = vld.sshfl [vmem:[#allocation4 + $0x2f] sm:$0x1 pattern:$0x76325410]  ;;  %9948 = vrot.lane.b32.xlu1 %v13186_v54, %s14405_s4 }
 0x55b   :  { %v9608_v46 = vadd.f32 %v17274_v8, %v9583_v35  ;;  %v9584_v59 = vadd.f32 %v9551_v3, %v17257_v39  ;;  %v13985_v44 = vpop.f32.mrb[215].mxu0  ;;  %v13188_v30 = vld.sshfl [vmem:[#allocation4 + $0x37] sm:$0x1 pattern:$0x76325410] }
 0x55c   :  { %9933 = vrot.lane.b32.xlu0 %v13185_v56, %s14405_s4  ;;  %v13187_v7 = vld.sshfl [vmem:[#allocation4 + $0x33] sm:$0x1 pattern:$0x76325410] }
 0x55d   :  { %v9626_v22 = vmax.f32 %v9608_v46, 0.0  ;;  %v9609_v13 = vadd.f32 %v17274_v8, %v9584_v59  ;;  %v13190_v45 = vld.sshfl [vmem:[#allocation4 + $0x3b] sm:$0x1 pattern:$0x76325410] }
 0x55e   :  { %v10029_v31 = vld [vmem:[#allocation4 + $0x53] sm:$0x1]  ;;  %9978 = vrot.lane.b32.xlu1 %v13188_v30, %s14405_s4  ;;  %v9556_v39 = vpop.f32.mrb[216].mxu0  ;;  %v10014_v12 = vld [vmem:[#allocation4 + $0x51] sm:$0x1] }
 0x55f   :  { %9644 = vst.msk [vmem:[#allocation4 + $0x60] sm:$0xff] %vm7493_vm2, %v9626_v22  ;;  %v9627_v14 = vmax.f32 %v9609_v13, 0.0  ;;  %v9585_v25 = vadd.f32 %v9556_v39, %v17261_v47  ;;  %v13988_v21 = vpop.f32.mrb[217].mxu0  ;;  %v10044_v29 = vld [vmem:[#allocation4 + $0x55] sm:$0x1] }
 0x560   :  { %10030 = vst.msk [vmem:[#allocation5 + $0x3] sm:$0x1] %vm7315_vm5, %v10029_v31  ;;  %9963 = vrot.lane.b32.xlu0 %v13187_v7, %s14405_s4  ;;  %v9559_v62 = vpop.f32.mrb[218].mxu0  ;;  %v10059_v20 = vld [vmem:[#allocation4 + $0x57] sm:$0x1] }
 0x561   :  { %9645 = vst.msk [vmem:[#allocation4 + $0x68] sm:$0xff] %vm7493_vm2, %v9627_v14  ;;  %v9610_v49 = vadd.f32 %v17274_v8, %v9585_v25  ;;  %v9586_v23 = vadd.f32 %v9559_v62, %v17263_v48  ;;  %v13189_v24 = vld.sshfl [vmem:[#allocation4 + $0x39] sm:$0x1 pattern:$0x76325410]  ;;  %v13989_v40 = vpop.f32.mrb[219].mxu0 }
 0x562   :  { %10008 = vrot.lane.b32.xlu1 %v13190_v45, %s14405_s4  ;;  %10015 = vst.msk [vmem:[#allocation5 + $0x1] sm:$0x1] %vm7315_vm5, %v10014_v12  ;;  %10045 = vst.msk [vmem:[#allocation5 + $0x5] sm:$0x1] %vm7315_vm5, %v10044_v29  ;;  %v10074_v47 = vld [vmem:[#allocation4 + $0x5b] sm:$0x1] }
 0x563   :  { %v9628_v43 = vmax.f32 %v9610_v49, 0.0  ;;  %v9611_v60 = vadd.f32 %v17274_v8, %v9586_v23  ;;  %10060 = vst.msk [vmem:[#allocation5 + $0x7] sm:$0x1] %vm7315_vm5, %v10059_v20  ;;  %v10089_v48 = vld [vmem:[#allocation4 + $0x5d] sm:$0x1] }
 0x564   :  { %9993 = vrot.lane.b32.xlu0 %v13189_v24, %s14405_s4  ;;  %v13192_v32 = vld.sshfl [vmem:[#allocation4 + $0x54] sm:$0x1 pattern:$0x76325410]  ;;  %10075 = vst.msk [vmem:[#allocation5 + $0x9] sm:$0x1] %vm7315_vm5, %v10074_v47 }
 0x565   :  { %10090 = vst.msk [vmem:[#allocation5 + $0xb] sm:$0x1] %vm7315_vm5, %v10089_v48  ;;  %v9629_v50 = vmax.f32 %v9611_v60, 0.0  ;;  %v10104_v41 = vld [vmem:[#allocation4 + $0x5f] sm:$0x1] }
 0x566   :  { %v10119_v9 = vld [vmem:[#allocation4 + $0x63] sm:$0x1]  ;;  %9646 = vst.msk [vmem:[#allocation4 + $0x70] sm:$0xff] %vm7493_vm2, %v9628_v43  ;;  %10040 = vrot.lane.b32.xlu1 %v13192_v32, %s14405_s4  ;;  %v9564_v1 = vpop.f32.mrb[220].mxu0  ;;  %v10134_v28 = vld [vmem:[#allocation4 + $0x65] sm:$0x1] }
 0x567   :  { %v13191_v18 = vld.sshfl [vmem:[#allocation4 + $0x52] sm:$0x1 pattern:$0x76325410]  ;;  %10120 = vst.msk [vmem:[#allocation5 + $0xf] sm:$0x1] %vm7315_vm5, %v10119_v9  ;;  %v9587_v26 = vadd.f32 %v9564_v1, %v17267_v38 }
 0x568   :  { %10025 = vrot.lane.b32.xlu0 %v13191_v18, %s14405_s4  ;;  %9647 = vst.msk [vmem:[#allocation4 + $0x78] sm:$0xff] %vm7493_vm2, %v9629_v50  ;;  %v13992_v33 = vpop.f32.mrb[221].mxu0  ;;  %v13194_v17 = vld.sshfl [vmem:[#allocation4 + $0x5a] sm:$0x1 pattern:$0x76325410] }
 0x569   :  { %v9567_v63 = vpop.f32.mrb[222].mxu0  ;;  %v9612_v6 = vadd.f32 %v17274_v8, %v9587_v26  ;;  %v13193_v19 = vld.sshfl [vmem:[#allocation4 + $0x56] sm:$0x1 pattern:$0x76325410] }
 0x56a   :  { %v9588_v11 = vadd.f32 %v9567_v63, %v17269_v52  ;;  %10070 = vrot.lane.b32.xlu1 %v13194_v17, %s14405_s4  ;;  %v13993_v57 = vpop.f32.mrb[223].mxu0  ;;  %v10149_v61 = vld [vmem:[#allocation4 + $0x67] sm:$0x1]  ;;  %10105 = vst.msk [vmem:[#allocation5 + $0xd] sm:$0x1] %vm7315_vm5, %v10104_v41 }
 0x56b   :  { %v9630_v27 = vmax.f32 %v9612_v6, 0.0  ;;  %10135 = vst.msk [vmem:[#allocation5 + $0x11] sm:$0x1] %vm7315_vm5, %v10134_v28  ;;  %10150 = vst.msk [vmem:[#allocation5 + $0x13] sm:$0x1] %vm7315_vm5, %v10149_v61 }
 0x56c   :  { %10055 = vrot.lane.b32.xlu0 %v13193_v19, %s14405_s4  ;;  %v9613_v10 = vadd.f32 %v17274_v8, %v9588_v11  ;;  %v10164_v38 = vld [vmem:[#allocation4 + $0x69] sm:$0x1]  ;;  %v10179_v52 = vld [vmem:[#allocation4 + $0x6d] sm:$0x1]  ;;  %v10194_v8 = vld [vmem:[#allocation4 + $0x6f] sm:$0x1] }
 0x56d   :  { %v13196_v58 = vld.sshfl [vmem:[#allocation4 + $0x5e] sm:$0x1 pattern:$0x76325410]  ;;  %10165 = vst.msk [vmem:[#allocation5 + $0x15] sm:$0x1] %vm7315_vm5, %v10164_v38 }
 0x56e   :  { %10180 = vst.msk [vmem:[#allocation5 + $0x17] sm:$0x1] %vm7315_vm5, %v10179_v52  ;;  %v10209_v55 = vld [vmem:[#allocation4 + $0x71] sm:$0x1]  ;;  %v9631_v4 = vmax.f32 %v9613_v10, 0.0  ;;  %10100 = vrot.lane.b32.xlu1 %v13196_v58, %s14405_s4 }
 0x56f   :  { %9648 = vst.msk [vmem:[#allocation4 + $0x80] sm:$0xff] %vm7493_vm2, %v9630_v27  ;;  %v13195_v2 = vld.sshfl [vmem:[#allocation4 + $0x5c] sm:$0x1 pattern:$0x76325410] }
 0x570   :  { %10210 = vst.msk [vmem:[#allocation5 + $0x1b] sm:$0x1] %vm7315_vm5, %v10209_v55  ;;  %10085 = vrot.lane.b32.xlu0 %v13195_v2, %s14405_s4  ;;  %10195 = vst.msk [vmem:[#allocation5 + $0x19] sm:$0x1] %vm7315_vm5, %v10194_v8  ;;  %v10224_v15 = vld [vmem:[#allocation4 + $0x75] sm:$0x1] }
 0x571   :  { %9650 = vst.msk [vmem:[#allocation4 + $0x88] sm:$0x3f] %vm9649_vm8, %v9631_v4  ;;  %v13198_v42 = vld.sshfl [vmem:[#allocation4 + $0x64] sm:$0x1 pattern:$0x76325410] }
 0x572   :  { %10225 = vst.msk [vmem:[#allocation5 + $0x1d] sm:$0x1] %vm7315_vm5, %v10224_v15  ;;  %v10239_v0 = vld [vmem:[#allocation4 + $0x77] sm:$0x1]  ;;  %10130 = vrot.lane.b32.xlu1 %v13198_v42, %s14405_s4  ;;  %v10254_v51 = vld [vmem:[#allocation4 + $0x79] sm:$0x1] }
 0x573   :  { %v13197_v37 = vld.sshfl [vmem:[#allocation4 + $0x60] sm:$0x1 pattern:$0x76325410]  ;;  %10240 = vst.msk [vmem:[#allocation5 + $0x1f] sm:$0x1] %vm7315_vm5, %v10239_v0 }
 0x574   :  { %10115 = vrot.lane.b32.xlu0 %v13197_v37, %s14405_s4  ;;  %10255 = vst.msk [vmem:[#allocation5 + $0x21] sm:$0x1] %vm7315_vm5, %v10254_v51  ;;  %v10269_v34 = vld [vmem:[#allocation4 + $0x7b] sm:$0x1]  ;;  %v10284_v53 = vld [vmem:[#allocation4 + $0x7f] sm:$0x1] }
 0x575   :  { %10270 = vst.msk [vmem:[#allocation5 + $0x23] sm:$0x1] %vm7315_vm5, %v10269_v34  ;;  %10285 = vst.msk [vmem:[#allocation5 + $0x25] sm:$0x1] %vm7315_vm5, %v10284_v53 }
 0x576   :  { %v13200_v16 = vld.sshfl [vmem:[#allocation4 + $0x68] sm:$0x1 pattern:$0x76325410]  ;;  %v10299_v5 = vld [vmem:[#allocation4 + $0x81] sm:$0x1] }
 0x577   :  { %v13199_v35 = vld.sshfl [vmem:[#allocation4 + $0x66] sm:$0x1 pattern:$0x76325410]  ;;  %10160 = vrot.lane.b32.xlu1 %v13200_v16, %s14405_s4  ;;  %10300 = vst.msk [vmem:[#allocation5 + $0x27] sm:$0x1] %vm7315_vm5, %v10299_v5 }
 0x578   :  { %v10314_v36 = vld [vmem:[#allocation4 + $0x83] sm:$0x1]  ;;  %v10374_v3 = vld [vmem:[#allocation4 + $0x8d] sm:$0x1]  ;;  %10145 = vrot.lane.b32.xlu0 %v13199_v35, %s14405_s4  ;;  %v10329_v54 = vld [vmem:[#allocation4 + $0x87] sm:$0x1] }
 0x579   :  { %10315 = vst.msk [vmem:[#allocation5 + $0x29] sm:$0x1] %vm7315_vm5, %v10314_v36  ;;  %10375 = vst.msk [vmem:[#allocation5 + $0x31] sm:$0x1] %vm7315_vm5, %v10374_v3  ;;  %v10344_v59 = vld [vmem:[#allocation4 + $0x89] sm:$0x1] }
 0x57a   :  { %v13202_v46 = vld.sshfl [vmem:[#allocation4 + $0x6e] sm:$0x1 pattern:$0x76325410]  ;;  %10330 = vst.msk [vmem:[#allocation5 + $0x2b] sm:$0x1] %vm7315_vm5, %v10329_v54 }
 0x57b   :  { %v13201_v56 = vld.sshfl [vmem:[#allocation4 + $0x6c] sm:$0x1 pattern:$0x76325410]  ;;  %10190 = vrot.lane.b32.xlu1 %v13202_v46, %s14405_s4  ;;  %10345 = vst.msk [vmem:[#allocation5 + $0x2d] sm:$0x1] %vm7315_vm5, %v10344_v59 }
 0x57c   :  { %v10359_v44 = vld [vmem:[#allocation4 + $0x8b] sm:$0x1]  ;;  %10175 = vrot.lane.b32.xlu0 %v13201_v56, %s14405_s4  ;;  %v13204_v22 = vld.sshfl [vmem:[#allocation4 + $0x72] sm:$0x1 pattern:$0x76325410] }
 0x57d   :  { %10360 = vst.msk [vmem:[#allocation5 + $0x2f] sm:$0x1] %vm7315_vm5, %v10359_v44  ;;  %v13203_v13 = vld.sshfl [vmem:[#allocation4 + $0x70] sm:$0x1 pattern:$0x76325410] }
 0x57e   :  { %v13206_v30 = vld.sshfl [vmem:[#allocation4 + $0x78] sm:$0x1 pattern:$0x76325410] }
 0x57f   :  { %10220 = vrot.lane.b32.xlu1 %v13204_v22, %s14405_s4  ;;  %v13205_v31 = vld.sshfl [vmem:[#allocation4 + $0x76] sm:$0x1 pattern:$0x76325410] }
 0x580   :  { %10205 = vrot.lane.b32.xlu0 %v13203_v13, %s14405_s4  ;;  %v13208_v14 = vld.sshfl [vmem:[#allocation4 + $0x7e] sm:$0x1 pattern:$0x76325410] }
 0x581   :  { %v13207_v7 = vld.sshfl [vmem:[#allocation4 + $0x7a] sm:$0x1 pattern:$0x76325410] }
 0x582   :  { %v13210_v39 = vld.sshfl [vmem:[#allocation4 + $0x82] sm:$0x1 pattern:$0x76325410] }
 0x583   :  { %10250 = vrot.lane.b32.xlu1 %v13206_v30, %s14405_s4  ;;  %v13209_v25 = vld.sshfl [vmem:[#allocation4 + $0x80] sm:$0x1 pattern:$0x76325410] }
 0x584   :  { %10235 = vrot.lane.b32.xlu0 %v13205_v31, %s14405_s4  ;;  %v13212_v21 = vld.sshfl [vmem:[#allocation4 + $0x88] sm:$0x1 pattern:$0x76325410] }
 0x585   :  { %v13211_v62 = vld.sshfl [vmem:[#allocation4 + $0x84] sm:$0x1 pattern:$0x76325410] }
 0x586   :  { %v13214_v45 = vld.sshfl [vmem:[#allocation4 + $0x8c] sm:$0x1 pattern:$0x76325410] }
 0x587   :  { %10280 = vrot.lane.b32.xlu1 %v13208_v14, %s14405_s4  ;;  %v13213_v49 = vld.sshfl [vmem:[#allocation4 + $0x8a] sm:$0x1 pattern:$0x76325410] }
 0x588   :  { %10265 = vrot.lane.b32.xlu0 %v13207_v7, %s14405_s4 }
 0x58b   :  { %10310 = vrot.lane.b32.xlu1 %v13210_v39, %s14405_s4 }
 0x58c   :  { %10295 = vrot.lane.b32.xlu0 %v13209_v25, %s14405_s4 }
 0x58f   :  { %10340 = vrot.lane.b32.xlu1 %v13212_v21, %s14405_s4 }
 0x590   :  { %10325 = vrot.lane.b32.xlu0 %v13211_v62, %s14405_s4 }
 0x593   :  { %10370 = vrot.lane.b32.xlu1 %v13214_v45, %s14405_s4 }
 0x594   :  { %10355 = vrot.lane.b32.xlu0 %v13213_v49, %s14405_s4 }
 0x5a7   :  { %v9694_v23 = vpop.permute.xlu1 %9693 }
 0x5a8   :  { %9696 = vst.msk [vmem:[#allocation5 + $0x4] sm:$0x1] %vm9665_vm9, %v9694_v23  ;;  %v9663_v24 = vpop.permute.xlu0 %9662 }
 0x5a9   :  { %9666 = vst.msk [vmem:[#allocation5] sm:$0x1] %vm9665_vm9, %v9663_v24 }
 0x5ab   :  { %v9709_v40 = vpop.permute.xlu1 %9708 }
 0x5ac   :  { %v9679_v12 = vpop.permute.xlu0 %9678  ;;  %9711 = vst.msk [vmem:[#allocation5 + $0x6] sm:$0x1] %vm9665_vm9, %v9709_v40 }
 0x5ad   :  { %9681 = vst.msk [vmem:[#allocation5 + $0x2] sm:$0x1] %vm9665_vm9, %v9679_v12 }
 0x5af   :  { %v9739_v29 = vpop.permute.xlu1 %9738 }
 0x5b0   :  { %v9724_v20 = vpop.permute.xlu0 %9723  ;;  %9741 = vst.msk [vmem:[#allocation5 + $0xa] sm:$0x1] %vm9665_vm9, %v9739_v29 }
 0x5b1   :  { %9726 = vst.msk [vmem:[#allocation5 + $0x8] sm:$0x1] %vm9665_vm9, %v9724_v20 }
 0x5b3   :  { %v9769_v43 = vpop.permute.xlu1 %9768 }
 0x5b4   :  { %v9754_v60 = vpop.permute.xlu0 %9753  ;;  %9771 = vst.msk [vmem:[#allocation5 + $0xe] sm:$0x1] %vm9665_vm9, %v9769_v43 }
 0x5b5   :  { %9756 = vst.msk [vmem:[#allocation5 + $0xc] sm:$0x1] %vm9665_vm9, %v9754_v60 }
 0x5b7   :  { %v9799_v47 = vpop.permute.xlu1 %9798 }
 0x5b8   :  { %v9784_v48 = vpop.permute.xlu0 %9783  ;;  %9801 = vst.msk [vmem:[#allocation5 + $0x12] sm:$0x1] %vm9665_vm9, %v9799_v47 }
 0x5b9   :  { %9786 = vst.msk [vmem:[#allocation5 + $0x10] sm:$0x1] %vm9665_vm9, %v9784_v48 }
 0x5bb   :  { %v9829_v32 = vpop.permute.xlu1 %9828 }
 0x5bc   :  { %9831 = vst.msk [vmem:[#allocation5 + $0x16] sm:$0x1] %vm9665_vm9, %v9829_v32  ;;  %v9814_v9 = vpop.permute.xlu0 %9813 }
 0x5bd   :  { %9816 = vst.msk [vmem:[#allocation5 + $0x14] sm:$0x1] %vm9665_vm9, %v9814_v9 }
 0x5bf   :  { %v9859_v50 = vpop.permute.xlu1 %9858 }
 0x5c0   :  { %v9844_v18 = vpop.permute.xlu0 %9843  ;;  %9861 = vst.msk [vmem:[#allocation5 + $0x1a] sm:$0x1] %vm9665_vm9, %v9859_v50 }
 0x5c1   :  { %9846 = vst.msk [vmem:[#allocation5 + $0x18] sm:$0x1] %vm9665_vm9, %v9844_v18 }
 0x5c4   :  { %v9889_v1 = vpop.permute.xlu1 %9888 }
 0x5c5   :  { %v9874_v26 = vpop.permute.xlu0 %9873  ;;  %9891 = vst.msk [vmem:[#allocation5 + $0x1e] sm:$0x1] %vm9665_vm9, %v9889_v1 }
 0x5c6   :  { %9876 = vst.msk [vmem:[#allocation5 + $0x1c] sm:$0x1] %vm9665_vm9, %v9874_v26 }
 0x5c8   :  { %v9919_v33 = vpop.permute.xlu1 %9918 }
 0x5c9   :  { %9921 = vst.msk [vmem:[#allocation5 + $0x22] sm:$0x1] %vm9665_vm9, %v9919_v33 }
 0x5ca   :  { %v9904_v63 = vpop.permute.xlu0 %9903 }
 0x5cb   :  { %9906 = vst.msk [vmem:[#allocation5 + $0x20] sm:$0x1] %vm9665_vm9, %v9904_v63 }
 0x5cc   :  { %v9949_v17 = vpop.permute.xlu1 %9948 }
 0x5cd   :  { %9951 = vst.msk [vmem:[#allocation5 + $0x26] sm:$0x1] %vm9665_vm9, %v9949_v17 }
 0x5ce   :  { %v9934_v6 = vpop.permute.xlu0 %9933 }
 0x5cf   :  { %9936 = vst.msk [vmem:[#allocation5 + $0x24] sm:$0x1] %vm9665_vm9, %v9934_v6 }
 0x5d0   :  { %v9979_v11 = vpop.permute.xlu1 %9978 }
 0x5d1   :  { %9981 = vst.msk [vmem:[#allocation5 + $0x2a] sm:$0x1] %vm9665_vm9, %v9979_v11 }
 0x5d2   :  { %v9964_v19 = vpop.permute.xlu0 %9963 }
 0x5d3   :  { %9966 = vst.msk [vmem:[#allocation5 + $0x28] sm:$0x1] %vm9665_vm9, %v9964_v19 }
 0x5d4   :  { %v10009_v57 = vpop.permute.xlu1 %10008 }
 0x5d5   :  { %10011 = vst.msk [vmem:[#allocation5 + $0x2e] sm:$0x1] %vm9665_vm9, %v10009_v57 }
 0x5d6   :  { %v9994_v41 = vpop.permute.xlu0 %9993 }
 0x5d7   :  { %9996 = vst.msk [vmem:[#allocation5 + $0x2c] sm:$0x1] %vm9665_vm9, %v9994_v41 }
 0x5d8   :  { %v10041_v28 = vpop.permute.xlu1 %10040 }
 0x5d9   :  { %10043 = vst.msk [vmem:[#allocation5 + $0x3] sm:$0x1] %vm9665_vm9, %v10041_v28 }
 0x5da   :  { %v10026_v61 = vpop.permute.xlu0 %10025 }
 0x5db   :  { %10028 = vst.msk [vmem:[#allocation5 + $0x1] sm:$0x1] %vm9665_vm9, %v10026_v61 }
 0x5dc   :  { %v10071_v27 = vpop.permute.xlu1 %10070 }
 0x5dd   :  { %10073 = vst.msk [vmem:[#allocation5 + $0x7] sm:$0x1] %vm9665_vm9, %v10071_v27 }
 0x5de   :  { %v10056_v10 = vpop.permute.xlu0 %10055 }
 0x5df   :  { %10058 = vst.msk [vmem:[#allocation5 + $0x5] sm:$0x1] %vm9665_vm9, %v10056_v10 }
 0x5e0   :  { %v10101_v38 = vpop.permute.xlu1 %10100 }
 0x5e1   :  { %10103 = vst.msk [vmem:[#allocation5 + $0xb] sm:$0x1] %vm9665_vm9, %v10101_v38 }
 0x5e2   :  { %v10086_v52 = vpop.permute.xlu0 %10085 }
 0x5e3   :  { %10088 = vst.msk [vmem:[#allocation5 + $0x9] sm:$0x1] %vm9665_vm9, %v10086_v52 }
 0x5e4   :  { %v10131_v58 = vpop.permute.xlu1 %10130 }
 0x5e5   :  { %10133 = vst.msk [vmem:[#allocation5 + $0xf] sm:$0x1] %vm9665_vm9, %v10131_v58 }
 0x5e6   :  { %v10116_v55 = vpop.permute.xlu0 %10115 }
 0x5e7   :  { %10118 = vst.msk [vmem:[#allocation5 + $0xd] sm:$0x1] %vm9665_vm9, %v10116_v55 }
 0x5e9   :  { %v10161_v4 = vpop.permute.xlu1 %10160 }
 0x5ea   :  { %v10146_v2 = vpop.permute.xlu0 %10145  ;;  %10163 = vst.msk [vmem:[#allocation5 + $0x13] sm:$0x1] %vm9665_vm9, %v10161_v4 }
 0x5eb   :  { %10148 = vst.msk [vmem:[#allocation5 + $0x11] sm:$0x1] %vm9665_vm9, %v10146_v2 }
 0x5ed   :  { %v10191_v8 = vpop.permute.xlu1 %10190 }
 0x5ee   :  { %v10176_v15 = vpop.permute.xlu0 %10175  ;;  %10193 = vst.msk [vmem:[#allocation5 + $0x17] sm:$0x1] %vm9665_vm9, %v10191_v8 }
 0x5ef   :  { %10178 = vst.msk [vmem:[#allocation5 + $0x15] sm:$0x1] %vm9665_vm9, %v10176_v15 }
 0x5f1   :  { %v10221_v42 = vpop.permute.xlu1 %10220 }
 0x5f2   :  { %10223 = vst.msk [vmem:[#allocation5 + $0x1b] sm:$0x1] %vm9665_vm9, %v10221_v42  ;;  %v10206_v0 = vpop.permute.xlu0 %10205 }
 0x5f3   :  { %10208 = vst.msk [vmem:[#allocation5 + $0x19] sm:$0x1] %vm9665_vm9, %v10206_v0 }
 0x5f5   :  { %v10251_v37 = vpop.permute.xlu1 %10250 }
 0x5f6   :  { %v10236_v51 = vpop.permute.xlu0 %10235  ;;  %10253 = vst.msk [vmem:[#allocation5 + $0x1f] sm:$0x1] %vm9665_vm9, %v10251_v37 }
 0x5f7   :  { %10238 = vst.msk [vmem:[#allocation5 + $0x1d] sm:$0x1] %vm9665_vm9, %v10236_v51 }
 0x5f9   :  { %v10281_v34 = vpop.permute.xlu1 %10280 }
 0x5fa   :  { %v10266_v53 = vpop.permute.xlu0 %10265  ;;  %10283 = vst.msk [vmem:[#allocation5 + $0x23] sm:$0x1] %vm9665_vm9, %v10281_v34 }
 0x5fb   :  { %10268 = vst.msk [vmem:[#allocation5 + $0x21] sm:$0x1] %vm9665_vm9, %v10266_v53 }
 0x5fd   :  { %v10311_v16 = vpop.permute.xlu1 %10310 }
 0x5fe   :  { %10313 = vst.msk [vmem:[#allocation5 + $0x27] sm:$0x1] %vm9665_vm9, %v10311_v16  ;;  %v10296_v5 = vpop.permute.xlu0 %10295 }
 0x5ff   :  { %10298 = vst.msk [vmem:[#allocation5 + $0x25] sm:$0x1] %vm9665_vm9, %v10296_v5 }
 0x601   :  { %v10341_v35 = vpop.permute.xlu1 %10340 }
 0x602   :  { %v10326_v36 = vpop.permute.xlu0 %10325  ;;  %10343 = vst.msk [vmem:[#allocation5 + $0x2b] sm:$0x1] %vm9665_vm9, %v10341_v35 }
 0x603   :  { %10328 = vst.msk [vmem:[#allocation5 + $0x29] sm:$0x1] %vm9665_vm9, %v10326_v36 }
 0x605   :  { %v10371_v3 = vpop.permute.xlu1 %10370 }
 0x606   :  { %v10356_v54 = vpop.permute.xlu0 %10355  ;;  %10373 = vst.msk [vmem:[#allocation5 + $0x2f] sm:$0x1] %vm9665_vm9, %v10371_v3 }
 0x607   :  { %10358 = vst.msk [vmem:[#allocation5 + $0x2d] sm:$0x1] %vm9665_vm9, %v10356_v54 }
 0x608   :  { %14383 = dma.done.wait [#allocation6], 100352 }
 0x609   :  { %14384 = vsyncadd [#allocation6], 4294866944  ;;  %v10554_v46 = vld [vmem:[#allocation2 + $0x8] sm:$0xff]  ;;  %v10556_v59 = vld [vmem:[#allocation2 + $0x18] sm:$0xff]  ;;  %v14406_v45 = vmov 1983009808   ;;  %v10398_v23 = vlaneseq }
 0x60a   :  { %v10553_v56 = vld [vmem:[#allocation2] sm:$0xff]  ;;  %11362 = vmatprep.subr.bf16.mxu1 %v10554_v46  ;;  %11895 = vmatprep.subr.bf16.mxu0 %v10556_v59  ;;  %v10555_v44 = vld [vmem:[#allocation2 + $0x10] sm:$0xff]  ;;  %v10558_v22 = vld [vmem:[#allocation2 + $0x28] sm:$0xff]  ;;  %v10396_v49 = vunpack.c.l.s4 %v14406_v45  ;;  %s14408_s21 = smov [#allocation7]  }
 0x60b   :  { %v10560_v13 = vld [vmem:[#allocation2 + $0x38] sm:$0xff]  ;;  %11363 = vmatpush1.bf16.msra.mxu1 %v10553_v56  ;;  %11896 = vmatpush1.bf16.msra.mxu0 %v10555_v44  ;;  %v10557_v30 = vld [vmem:[#allocation2 + $0x20] sm:$0xff]  ;;  %v10559_v31 = vld [vmem:[#allocation2 + $0x30] sm:$0xff]  ;;  %v17470_v43 = vshrl.u32 %v10398_v23, 7  ;;  %s12786_s22 = sshll.u32 %s14408_s21, 4  ;;  %s12787_s22 = int_to_ptr.vmem [resolvable:$true] %s12786_s22 }
 0x60c   :  { %11364 = vmatprep.subr.bf16.mxu1 %v10558_v22  ;;  %11897 = vmatprep.subr.bf16.mxu0 %v10560_v13  ;;  %v10562_v14 = vld [vmem:[#allocation2 + $0x48] sm:$0xff]  ;;  %v10564_v7 = vld [vmem:[#allocation2 + $0x58] sm:$0xff]  ;;  %v10561_v39 = vld [vmem:[#allocation2 + $0x40] sm:$0xff]  ;;  %v10397_v20 = vunpack.c.0.s8 %v10396_v49  ;;  %p14350_p3 = scmp.lt.s32.totalorder %s12787_s22, %s12787_s22 }
 0x60d   :  { %v10563_v25 = vld [vmem:[#allocation2 + $0x50] sm:$0xff]  ;;  %v10566_v21 = vld [vmem:[#allocation2 + $0x68] sm:$0xff]  ;;  %v10568_v62 = vld [vmem:[#allocation2 + $0x78] sm:$0xff] }
 0x60e   :  { %v10565_v24 = vld [vmem:[#allocation2 + $0x60] sm:$0xff]  ;;  %v10567_v40 = vld [vmem:[#allocation2 + $0x70] sm:$0xff]  ;;  %v10570_v12 = vld [vmem:[#allocation2 + $0x88] sm:$0xff]  ;;  %v17473_v9 = vsub.s32 %v10397_v20, %v17470_v43 }
 0x60f   :  { %11365 = vmatpush1.bf16.msra.mxu1 %v10557_v30  ;;  %11898 = vmatpush1.bf16.msra.mxu0 %v10559_v31  ;;  %v10572_v29 = vld [vmem:[#allocation2 + $0x98] sm:$0xff]  ;;  %v10569_v60 = vld [vmem:[#allocation2 + $0x80] sm:$0xff]  ;;  %v10571_v47 = vld [vmem:[#allocation2 + $0x90] sm:$0xff] }
 0x610   :  { %11366 = vmatprep.subr.bf16.mxu1 %v10562_v14  ;;  %11899 = vmatprep.subr.bf16.mxu0 %v10564_v7  ;;  %v10574_v48 = vld [vmem:[#allocation2 + $0xa8] sm:$0xff]  ;;  %v10576_v32 = vld [vmem:[#allocation2 + $0xb8] sm:$0xff]  ;;  %v10573_v50 = vld [vmem:[#allocation2 + $0xa0] sm:$0xff] }
 0x611   :  { %v10575_v18 = vld [vmem:[#allocation2 + $0xb0] sm:$0xff]  ;;  %v10578_v1 = vld [vmem:[#allocation2 + $0xc8] sm:$0xff]  ;;  %v10580_v26 = vld [vmem:[#allocation2 + $0xd8] sm:$0xff] }
 0x612   :  { %v17475_v33 = vld [vmem:[#allocation5] sm:$0xff]  ;;  %v10579_v6 = vld [vmem:[#allocation2 + $0xd0] sm:$0xff]  ;;  %v10584_v19 = vld [vmem:[#allocation2 + $0xf8] sm:$0xff] }
 0x613   :  { %11367 = vmatpush1.bf16.msra.mxu1 %v10561_v39  ;;  %11900 = vmatpush1.bf16.msra.mxu0 %v10563_v25  ;;  %v17479_v63 = vrot.slane %v17475_v33, %v17473_v9  ;;  %v10577_v17 = vld [vmem:[#allocation2 + $0xc0] sm:$0xff]  ;;  %v10582_v11 = vld [vmem:[#allocation2 + $0xe8] sm:$0xff]  ;;  %v10583_v61 = vld [vmem:[#allocation2 + $0xf0] sm:$0xff]  ;;  %v10394_v22 = vcombine.high %v17475_v33, %v17475_v33 }
 0x614   :  { %11368 = vmatprep.subr.bf16.mxu1 %v10566_v21  ;;  %11901 = vmatprep.subr.bf16.mxu0 %v10568_v62  ;;  %v10581_v28 = vld [vmem:[#allocation2 + $0xe0] sm:$0xff]  ;;  %v10586_v27 = vld [vmem:[#allocation2 + $0x108] sm:$0xff]  ;;  %v10588_v10 = vld [vmem:[#allocation2 + $0x118] sm:$0xff] }
 0x615   :  { %v10409_v57 = vcombine.high %v17479_v63, %v17479_v63  ;;  %v10585_v38 = vld [vmem:[#allocation2 + $0x100] sm:$0xff]  ;;  %v10587_v52 = vld [vmem:[#allocation2 + $0x110] sm:$0xff]  ;;  %v10590_v58 = vld [vmem:[#allocation2 + $0x128] sm:$0xff]  ;;  %v17486_v7 = vrot.slane %v10394_v22, %v17473_v9  ;;  %v10528_v49 = vpack.c.bf16 %v17479_v63, %v17479_v63 }
 0x616   :  { %v10592_v55 = vld [vmem:[#allocation2 + $0x138] sm:$0xff]  ;;  %v10589_v4 = vld [vmem:[#allocation2 + $0x120] sm:$0xff]  ;;  %v10591_v2 = vld [vmem:[#allocation2 + $0x130] sm:$0xff] }
 0x617   :  { %11369 = vmatpush1.bf16.msra.mxu1 %v10565_v24  ;;  %11902 = vmatpush1.bf16.msra.mxu0 %v10567_v40  ;;  %v10529_v41 = vpack.c.bf16 %v10409_v57, %v10409_v57  ;;  %v10594_v8 = vld [vmem:[#allocation2 + $0x148] sm:$0xff]  ;;  %v10596_v15 = vld [vmem:[#allocation2 + $0x158] sm:$0xff]  ;;  %v10593_v42 = vld [vmem:[#allocation2 + $0x140] sm:$0xff]  ;;  %v10410_v45 = vcombine.high %v17486_v7, %v17486_v7 }
 0x618   :  { %11370 = vmatprep.subr.bf16.mxu1 %v10570_v12  ;;  %11903 = vmatprep.subr.bf16.mxu0 %v10572_v29  ;;  %v10595_v0 = vld [vmem:[#allocation2 + $0x150] sm:$0xff]  ;;  %v10598_v37 = vld [vmem:[#allocation2 + $0x168] sm:$0xff]  ;;  %v10600_v51 = vld [vmem:[#allocation2 + $0x178] sm:$0xff] }
 0x619   :  { %11394 = vmatprep.mubr.bf16.mxu1 %v10529_v41  ;;  %11927 = vmatprep.mubr.bf16.mxu0 %v10529_v41  ;;  %v10597_v34 = vld [vmem:[#allocation2 + $0x160] sm:$0xff]  ;;  %v10599_v53 = vld [vmem:[#allocation2 + $0x170] sm:$0xff]  ;;  %v10602_v16 = vld [vmem:[#allocation2 + $0x188] sm:$0xff]  ;;  %v10531_v29 = vpack.c.bf16 %v10410_v45, %v10410_v45 }
 0x61a   :  { %v10604_v5 = vld [vmem:[#allocation2 + $0x198] sm:$0xff]  ;;  %v10601_v35 = vld [vmem:[#allocation2 + $0x180] sm:$0xff]  ;;  %v10603_v36 = vld [vmem:[#allocation2 + $0x190] sm:$0xff] }
 0x61b   :  { %11371 = vmatpush1.bf16.msra.mxu1 %v10569_v60  ;;  %11904 = vmatpush1.bf16.msra.mxu0 %v10571_v47  ;;  %v10606_v3 = vld [vmem:[#allocation2 + $0x1a8] sm:$0xff]  ;;  %v10608_v54 = vld [vmem:[#allocation2 + $0x1b8] sm:$0xff]  ;;  %v10605_v46 = vld [vmem:[#allocation2 + $0x1a0] sm:$0xff] }
 0x61c   :  { %11372 = vmatprep.subr.bf16.mxu1 %v10574_v48  ;;  %11905 = vmatprep.subr.bf16.mxu0 %v10576_v32  ;;  %v10607_v59 = vld [vmem:[#allocation2 + $0x1b0] sm:$0xff]  ;;  %v10610_v56 = vld [vmem:[#allocation2 + $0x1c8] sm:$0xff]  ;;  %v10612_v44 = vld [vmem:[#allocation2 + $0x1d8] sm:$0xff] }
 0x61d   :  { %v10609_v13 = vld [vmem:[#allocation2 + $0x1c0] sm:$0xff]  ;;  %v10611_v30 = vld [vmem:[#allocation2 + $0x1d0] sm:$0xff]  ;;  %v10614_v31 = vld [vmem:[#allocation2 + $0x1e8] sm:$0xff] }
 0x61e   :  { %v10616_v14 = vld [vmem:[#allocation2 + $0x1f8] sm:$0xff]  ;;  %v10613_v39 = vld [vmem:[#allocation2 + $0x1e0] sm:$0xff]  ;;  %v10615_v25 = vld [vmem:[#allocation2 + $0x1f0] sm:$0xff] }
 0x61f   :  { %11373 = vmatpush1.bf16.msra.mxu1 %v10573_v50  ;;  %11906 = vmatpush1.bf16.msra.mxu0 %v10575_v18  ;;  %v10618_v21 = vld [vmem:[#allocation2 + $0x208] sm:$0xff]  ;;  %v10620_v62 = vld [vmem:[#allocation2 + $0x218] sm:$0xff]  ;;  %v10617_v23 = vld [vmem:[#allocation2 + $0x200] sm:$0xff] }
 0x620   :  { %11374 = vmatprep.subr.bf16.mxu1 %v10578_v1  ;;  %11907 = vmatprep.subr.bf16.mxu0 %v10580_v26  ;;  %v10619_v24 = vld [vmem:[#allocation2 + $0x210] sm:$0xff]  ;;  %v10622_v40 = vld [vmem:[#allocation2 + $0x228] sm:$0xff]  ;;  %v10624_v12 = vld [vmem:[#allocation2 + $0x238] sm:$0xff] }
 0x621   :  { %v10621_v20 = vld [vmem:[#allocation2 + $0x220] sm:$0xff]  ;;  %v10623_v60 = vld [vmem:[#allocation2 + $0x230] sm:$0xff]  ;;  %v10626_v47 = vld [vmem:[#allocation2 + $0x248] sm:$0xff] }
 0x622   :  { %v10628_v48 = vld [vmem:[#allocation2 + $0x258] sm:$0xff]  ;;  %v10625_v32 = vld [vmem:[#allocation2 + $0x240] sm:$0xff]  ;;  %v10627_v50 = vld [vmem:[#allocation2 + $0x250] sm:$0xff] }
 0x623   :  { %11375 = vmatpush1.bf16.msra.mxu1 %v10577_v17  ;;  %11908 = vmatpush1.bf16.msra.mxu0 %v10579_v6  ;;  %v10630_v18 = vld [vmem:[#allocation2 + $0x268] sm:$0xff]  ;;  %v10632_v1 = vld [vmem:[#allocation2 + $0x278] sm:$0xff]  ;;  %v10629_v26 = vld [vmem:[#allocation2 + $0x260] sm:$0xff] }
 0x624   :  { %11376 = vmatprep.subr.bf16.mxu1 %v10582_v11  ;;  %11909 = vmatprep.subr.bf16.mxu0 %v10584_v19  ;;  %v10631_v33 = vld [vmem:[#allocation2 + $0x270] sm:$0xff]  ;;  %v10634_v63 = vld [vmem:[#allocation2 + $0x288] sm:$0xff]  ;;  %v10636_v17 = vld [vmem:[#allocation2 + $0x298] sm:$0xff] }
 0x625   :  { %v10633_v6 = vld [vmem:[#allocation2 + $0x280] sm:$0xff]  ;;  %v10635_v11 = vld [vmem:[#allocation2 + $0x290] sm:$0xff]  ;;  %v10638_v19 = vld [vmem:[#allocation2 + $0x2a8] sm:$0xff] }
 0x626   :  { %v10640_v57 = vld [vmem:[#allocation2 + $0x2b8] sm:$0xff]  ;;  %v10637_v41 = vld [vmem:[#allocation2 + $0x2a0] sm:$0xff]  ;;  %v10667_v22 = vld [vmem:[#allocation2 + $0x390] sm:$0xff] }
 0x627   :  { %11377 = vmatpush1.bf16.msra.mxu1 %v10581_v28  ;;  %11910 = vmatpush1.bf16.msra.mxu0 %v10583_v61  ;;  %v10639_v28 = vld [vmem:[#allocation2 + $0x2b0] sm:$0xff]  ;;  %v10642_v61 = vld [vmem:[#allocation2 + $0x2c8] sm:$0xff] }
 0x628   :  { %11378 = vmatprep.subr.bf16.mxu1 %v10586_v27  ;;  %11911 = vmatprep.subr.bf16.mxu0 %v10588_v10  ;;  %v10644_v27 = vld [vmem:[#allocation2 + $0x2d8] sm:$0xff]  ;;  %v10641_v10 = vld [vmem:[#allocation2 + $0x2c0] sm:$0xff]  ;;  %v10675_v45 = vld [vmem:[#allocation2 + $0x3d0] sm:$0xff] }
 0x62b   :  { %11379 = vmatpush1.bf16.msra.mxu1 %v10585_v38  ;;  %11912 = vmatpush1.bf16.msra.mxu0 %v10587_v52  ;;  %v10643_v38 = vld [vmem:[#allocation2 + $0x2d0] sm:$0xff]  ;;  %v10646_v52 = vld [vmem:[#allocation2 + $0x2e8] sm:$0xff] }
 0x62c   :  { %11380 = vmatprep.subr.bf16.mxu1 %v10590_v58  ;;  %11913 = vmatprep.subr.bf16.mxu0 %v10592_v55  ;;  %v10648_v58 = vld [vmem:[#allocation2 + $0x2f8] sm:$0xff]  ;;  %v10645_v55 = vld [vmem:[#allocation2 + $0x2e0] sm:$0xff] }
 0x62f   :  { %11381 = vmatpush1.bf16.msra.mxu1 %v10589_v4  ;;  %11914 = vmatpush1.bf16.msra.mxu0 %v10591_v2  ;;  %v10647_v4 = vld [vmem:[#allocation2 + $0x2f0] sm:$0xff]  ;;  %v10650_v2 = vld [vmem:[#allocation2 + $0x308] sm:$0xff] }
 0x630   :  { %11382 = vmatprep.subr.bf16.mxu1 %v10594_v8  ;;  %11915 = vmatprep.subr.bf16.mxu0 %v10596_v15  ;;  %v10652_v8 = vld [vmem:[#allocation2 + $0x318] sm:$0xff]  ;;  %v10649_v15 = vld [vmem:[#allocation2 + $0x300] sm:$0xff] }
 0x633   :  { %11383 = vmatpush1.bf16.msra.mxu1 %v10593_v42  ;;  %11916 = vmatpush1.bf16.msra.mxu0 %v10595_v0  ;;  %v10651_v42 = vld [vmem:[#allocation2 + $0x310] sm:$0xff]  ;;  %v10654_v0 = vld [vmem:[#allocation2 + $0x328] sm:$0xff] }
 0x634   :  { %11384 = vmatprep.subr.bf16.mxu1 %v10598_v37  ;;  %11917 = vmatprep.subr.bf16.mxu0 %v10600_v51  ;;  %v10656_v37 = vld [vmem:[#allocation2 + $0x338] sm:$0xff]  ;;  %v10653_v51 = vld [vmem:[#allocation2 + $0x320] sm:$0xff] }
 0x637   :  { %11385 = vmatpush1.bf16.msra.mxu1 %v10597_v34  ;;  %11918 = vmatpush1.bf16.msra.mxu0 %v10599_v53  ;;  %v10655_v34 = vld [vmem:[#allocation2 + $0x330] sm:$0xff]  ;;  %v10658_v53 = vld [vmem:[#allocation2 + $0x348] sm:$0xff] }
 0x638   :  { %11386 = vmatprep.subr.bf16.mxu1 %v10602_v16  ;;  %11919 = vmatprep.subr.bf16.mxu0 %v10604_v5  ;;  %v10660_v16 = vld [vmem:[#allocation2 + $0x358] sm:$0xff]  ;;  %v10657_v5 = vld [vmem:[#allocation2 + $0x340] sm:$0xff] }
 0x63b   :  { %11387 = vmatpush1.bf16.msra.mxu1 %v10601_v35  ;;  %11920 = vmatpush1.bf16.msra.mxu0 %v10603_v36  ;;  %v10659_v35 = vld [vmem:[#allocation2 + $0x350] sm:$0xff]  ;;  %v10662_v36 = vld [vmem:[#allocation2 + $0x368] sm:$0xff] }
 0x63c   :  { %11388 = vmatprep.subr.bf16.mxu1 %v10606_v3  ;;  %11921 = vmatprep.subr.bf16.mxu0 %v10608_v54  ;;  %v10664_v3 = vld [vmem:[#allocation2 + $0x378] sm:$0xff]  ;;  %v10661_v54 = vld [vmem:[#allocation2 + $0x360] sm:$0xff] }
 0x63f   :  { %11389 = vmatpush1.bf16.msra.mxu1 %v10605_v46  ;;  %11922 = vmatpush1.bf16.msra.mxu0 %v10607_v59  ;;  %v10663_v46 = vld [vmem:[#allocation2 + $0x370] sm:$0xff]  ;;  %v10666_v59 = vld [vmem:[#allocation2 + $0x388] sm:$0xff] }
 0x640   :  { %11390 = vmatprep.subr.bf16.mxu1 %v10610_v56  ;;  %11923 = vmatprep.subr.bf16.mxu0 %v10612_v44  ;;  %v10668_v56 = vld [vmem:[#allocation2 + $0x398] sm:$0xff]  ;;  %v10665_v44 = vld [vmem:[#allocation2 + $0x380] sm:$0xff] }
 0x643   :  { %11391 = vmatpush1.bf16.msra.mxu1 %v10609_v13  ;;  %11924 = vmatpush1.bf16.msra.mxu0 %v10611_v30  ;;  %v10670_v13 = vld [vmem:[#allocation2 + $0x3a8] sm:$0xff]  ;;  %v10672_v30 = vld [vmem:[#allocation2 + $0x3b8] sm:$0xff] }
 0x644   :  { %11392 = vmatprep.subr.bf16.mxu1 %v10614_v31  ;;  %11925 = vmatprep.subr.bf16.mxu0 %v10616_v14  ;;  %v10669_v31 = vld [vmem:[#allocation2 + $0x3a0] sm:$0xff]  ;;  %v10671_v14 = vld [vmem:[#allocation2 + $0x3b0] sm:$0xff] }
 0x647   :  { %11393 = vmatpush1.bf16.msra.mxu1 %v10613_v39  ;;  %11926 = vmatpush1.bf16.msra.mxu0 %v10615_v25  ;;  %v10674_v39 = vld [vmem:[#allocation2 + $0x3c8] sm:$0xff]  ;;  %v10676_v25 = vld [vmem:[#allocation2 + $0x3d8] sm:$0xff] }
 0x648   :  { %11403 = vmatprep.subr.bf16.mxu1 %v10618_v21  ;;  %11936 = vmatprep.subr.bf16.mxu0 %v10620_v62  ;;  %v17492_v21 = vld [vmem:[#allocation5 + $0x8] sm:$0xff]  ;;  %v10673_v62 = vld [vmem:[#allocation2 + $0x3c0] sm:$0xff] }
 0x64a   :  { %11395 = vmatmul.mubr.bf16.vlgmr.msra.gmra.mrb[188].mxu1 %v10528_v49  ;;  %11928 = vmatmul.mubr.bf16.vlgmr.msra.gmra.mrb[224].mxu0 %v10528_v49  ;;  %v10678_v49 = vld [vmem:[#allocation2 + $0x3e8] sm:$0xff] }
 0x64b   :  { %11404 = vmatpush1.bf16.msra.mxu1 %v10617_v23  ;;  %11937 = vmatpush1.bf16.msra.mxu0 %v10619_v24  ;;  %v10680_v23 = vld [vmem:[#allocation2 + $0x3f8] sm:$0xff]  ;;  %v17496_v24 = vrot.slane %v17492_v21, %v17473_v9 }
 0x64c   :  { %11405 = vmatprep.subr.bf16.mxu1 %v10622_v40  ;;  %11938 = vmatprep.subr.bf16.mxu0 %v10624_v12  ;;  %v10677_v40 = vld [vmem:[#allocation2 + $0x3e0] sm:$0xff]  ;;  %v10679_v12 = vld [vmem:[#allocation2 + $0x3f0] sm:$0xff] }
 0x64d   :  { %11435 = vmatprep.mubr.bf16.mxu1 %v10531_v29  ;;  %11968 = vmatprep.mubr.bf16.mxu0 %v10531_v29  ;;  %v10682_v29 = vld [vmem:[#allocation2 + $0x408] sm:$0xff] }
 0x64f   :  { %11406 = vmatpush1.bf16.msra.mxu1 %v10621_v20  ;;  %11939 = vmatpush1.bf16.msra.mxu0 %v10623_v60  ;;  %v10684_v20 = vld [vmem:[#allocation2 + $0x418] sm:$0xff]  ;;  %v10426_v60 = vcombine.high %v17496_v24, %v17496_v24 }
 0x650   :  { %11407 = vmatprep.subr.bf16.mxu1 %v10626_v47  ;;  %11940 = vmatprep.subr.bf16.mxu0 %v10628_v48  ;;  %v10530_v47 = vpack.c.bf16 %v17486_v7, %v17486_v7  ;;  %v10681_v48 = vld [vmem:[#allocation2 + $0x400] sm:$0xff] }
 0x651   :  { %v10689_v7 = vld [vmem:[#allocation2 + $0x440] sm:$0xff] }
 0x653   :  { %11408 = vmatpush1.bf16.msra.mxu1 %v10625_v32  ;;  %11941 = vmatpush1.bf16.msra.mxu0 %v10627_v50  ;;  %v10683_v32 = vld [vmem:[#allocation2 + $0x410] sm:$0xff]  ;;  %v10686_v50 = vld [vmem:[#allocation2 + $0x428] sm:$0xff] }
 0x654   :  { %11409 = vmatprep.subr.bf16.mxu1 %v10630_v18  ;;  %11942 = vmatprep.subr.bf16.mxu0 %v10632_v1  ;;  %v10688_v18 = vld [vmem:[#allocation2 + $0x438] sm:$0xff]  ;;  %v10533_v1 = vpack.c.bf16 %v10426_v60, %v10426_v60  ;;  %v10737_v60 = vld [vmem:[#allocation2 + $0x5c0] sm:$0xff] }
 0x657   :  { %11410 = vmatpush1.bf16.msra.mxu1 %v10629_v26  ;;  %11943 = vmatpush1.bf16.msra.mxu0 %v10631_v33  ;;  %v10685_v26 = vld [vmem:[#allocation2 + $0x420] sm:$0xff]  ;;  %v10687_v33 = vld [vmem:[#allocation2 + $0x430] sm:$0xff] }
 0x658   :  { %11411 = vmatprep.subr.bf16.mxu1 %v10634_v63  ;;  %11944 = vmatprep.subr.bf16.mxu0 %v10636_v17  ;;  %v10690_v63 = vld [vmem:[#allocation2 + $0x448] sm:$0xff]  ;;  %v10692_v17 = vld [vmem:[#allocation2 + $0x458] sm:$0xff] }
 0x65b   :  { %11412 = vmatpush1.bf16.msra.mxu1 %v10633_v6  ;;  %11945 = vmatpush1.bf16.msra.mxu0 %v10635_v11  ;;  %v10691_v6 = vld [vmem:[#allocation2 + $0x450] sm:$0xff]  ;;  %v10694_v11 = vld [vmem:[#allocation2 + $0x468] sm:$0xff] }
 0x65c   :  { %11413 = vmatprep.subr.bf16.mxu1 %v10638_v19  ;;  %11946 = vmatprep.subr.bf16.mxu0 %v10640_v57  ;;  %v10696_v19 = vld [vmem:[#allocation2 + $0x478] sm:$0xff]  ;;  %v10693_v57 = vld [vmem:[#allocation2 + $0x460] sm:$0xff] }
 0x65f   :  { %11414 = vmatpush1.bf16.msra.mxu1 %v10637_v41  ;;  %11947 = vmatpush1.bf16.msra.mxu0 %v10639_v28  ;;  %v10695_v41 = vld [vmem:[#allocation2 + $0x470] sm:$0xff]  ;;  %v10698_v28 = vld [vmem:[#allocation2 + $0x488] sm:$0xff] }
 0x660   :  { %11415 = vmatprep.subr.bf16.mxu1 %v10642_v61  ;;  %11948 = vmatprep.subr.bf16.mxu0 %v10644_v27  ;;  %v10700_v61 = vld [vmem:[#allocation2 + $0x498] sm:$0xff]  ;;  %v10697_v27 = vld [vmem:[#allocation2 + $0x480] sm:$0xff] }
 0x663   :  { %11416 = vmatpush1.bf16.msra.mxu1 %v10641_v10  ;;  %11949 = vmatpush1.bf16.msra.mxu0 %v10643_v38  ;;  %v10699_v10 = vld [vmem:[#allocation2 + $0x490] sm:$0xff]  ;;  %v10702_v38 = vld [vmem:[#allocation2 + $0x4a8] sm:$0xff] }
 0x664   :  { %11417 = vmatprep.subr.bf16.mxu1 %v10646_v52  ;;  %11950 = vmatprep.subr.bf16.mxu0 %v10648_v58  ;;  %v10704_v52 = vld [vmem:[#allocation2 + $0x4b8] sm:$0xff]  ;;  %v10701_v58 = vld [vmem:[#allocation2 + $0x4a0] sm:$0xff] }
 0x667   :  { %11418 = vmatpush1.bf16.msra.mxu1 %v10645_v55  ;;  %11951 = vmatpush1.bf16.msra.mxu0 %v10647_v4  ;;  %v10703_v55 = vld [vmem:[#allocation2 + $0x4b0] sm:$0xff]  ;;  %v10706_v4 = vld [vmem:[#allocation2 + $0x4c8] sm:$0xff] }
 0x668   :  { %11419 = vmatprep.subr.bf16.mxu1 %v10650_v2  ;;  %11952 = vmatprep.subr.bf16.mxu0 %v10652_v8  ;;  %v10708_v2 = vld [vmem:[#allocation2 + $0x4d8] sm:$0xff]  ;;  %v10705_v8 = vld [vmem:[#allocation2 + $0x4c0] sm:$0xff] }
 0x66b   :  { %11420 = vmatpush1.bf16.msra.mxu1 %v10649_v15  ;;  %11953 = vmatpush1.bf16.msra.mxu0 %v10651_v42  ;;  %v10707_v15 = vld [vmem:[#allocation2 + $0x4d0] sm:$0xff]  ;;  %v10710_v42 = vld [vmem:[#allocation2 + $0x4e8] sm:$0xff] }
 0x66c   :  { %11421 = vmatprep.subr.bf16.mxu1 %v10654_v0  ;;  %11954 = vmatprep.subr.bf16.mxu0 %v10656_v37  ;;  %v10712_v0 = vld [vmem:[#allocation2 + $0x4f8] sm:$0xff]  ;;  %v10709_v37 = vld [vmem:[#allocation2 + $0x4e0] sm:$0xff] }
 0x66f   :  { %11422 = vmatpush1.bf16.msra.mxu1 %v10653_v51  ;;  %11955 = vmatpush1.bf16.msra.mxu0 %v10655_v34  ;;  %v10711_v51 = vld [vmem:[#allocation2 + $0x4f0] sm:$0xff]  ;;  %v10714_v34 = vld [vmem:[#allocation2 + $0x508] sm:$0xff] }
 0x670   :  { %11423 = vmatprep.subr.bf16.mxu1 %v10658_v53  ;;  %11956 = vmatprep.subr.bf16.mxu0 %v10660_v16  ;;  %v10716_v53 = vld [vmem:[#allocation2 + $0x518] sm:$0xff]  ;;  %v10713_v16 = vld [vmem:[#allocation2 + $0x500] sm:$0xff] }
 0x673   :  { %11424 = vmatpush1.bf16.msra.mxu1 %v10657_v5  ;;  %11957 = vmatpush1.bf16.msra.mxu0 %v10659_v35  ;;  %v10715_v5 = vld [vmem:[#allocation2 + $0x510] sm:$0xff]  ;;  %v10718_v35 = vld [vmem:[#allocation2 + $0x528] sm:$0xff] }
 0x674   :  { %11425 = vmatprep.subr.bf16.mxu1 %v10662_v36  ;;  %11958 = vmatprep.subr.bf16.mxu0 %v10664_v3  ;;  %v10720_v36 = vld [vmem:[#allocation2 + $0x538] sm:$0xff]  ;;  %v10717_v3 = vld [vmem:[#allocation2 + $0x520] sm:$0xff] }
 0x677   :  { %11426 = vmatpush1.bf16.msra.mxu1 %v10661_v54  ;;  %11959 = vmatpush1.bf16.msra.mxu0 %v10663_v46  ;;  %v10719_v54 = vld [vmem:[#allocation2 + $0x530] sm:$0xff]  ;;  %v10722_v46 = vld [vmem:[#allocation2 + $0x548] sm:$0xff] }
 0x678   :  { %11427 = vmatprep.subr.bf16.mxu1 %v10666_v59  ;;  %11960 = vmatprep.subr.bf16.mxu0 %v10668_v56  ;;  %v10724_v59 = vld [vmem:[#allocation2 + $0x558] sm:$0xff]  ;;  %v10721_v56 = vld [vmem:[#allocation2 + $0x540] sm:$0xff] }
 0x67b   :  { %11428 = vmatpush1.bf16.msra.mxu1 %v10665_v44  ;;  %11961 = vmatpush1.bf16.msra.mxu0 %v10667_v22  ;;  %v10723_v44 = vld [vmem:[#allocation2 + $0x550] sm:$0xff]  ;;  %v10726_v22 = vld [vmem:[#allocation2 + $0x568] sm:$0xff] }
 0x67c   :  { %11429 = vmatprep.subr.bf16.mxu1 %v10670_v13  ;;  %11962 = vmatprep.subr.bf16.mxu0 %v10672_v30  ;;  %v10728_v13 = vld [vmem:[#allocation2 + $0x578] sm:$0xff]  ;;  %v10725_v30 = vld [vmem:[#allocation2 + $0x560] sm:$0xff] }
 0x67f   :  { %11430 = vmatpush1.bf16.msra.mxu1 %v10669_v31  ;;  %11963 = vmatpush1.bf16.msra.mxu0 %v10671_v14  ;;  %v10727_v31 = vld [vmem:[#allocation2 + $0x570] sm:$0xff]  ;;  %v10730_v14 = vld [vmem:[#allocation2 + $0x588] sm:$0xff] }
 0x680   :  { %11431 = vmatprep.subr.bf16.mxu1 %v10674_v39  ;;  %11964 = vmatprep.subr.bf16.mxu0 %v10676_v25  ;;  %v10732_v39 = vld [vmem:[#allocation2 + $0x598] sm:$0xff]  ;;  %v10729_v25 = vld [vmem:[#allocation2 + $0x580] sm:$0xff] }
 0x683   :  { %11432 = vmatpush1.bf16.msra.mxu1 %v10673_v62  ;;  %11965 = vmatpush1.bf16.msra.mxu0 %v10675_v45  ;;  %v10731_v62 = vld [vmem:[#allocation2 + $0x590] sm:$0xff]  ;;  %v10734_v45 = vld [vmem:[#allocation2 + $0x5a8] sm:$0xff] }
 0x684   :  { %11433 = vmatprep.subr.bf16.mxu1 %v10678_v49  ;;  %11966 = vmatprep.subr.bf16.mxu0 %v10680_v23  ;;  %v10736_v49 = vld [vmem:[#allocation2 + $0x5b8] sm:$0xff]  ;;  %v10733_v23 = vld [vmem:[#allocation2 + $0x5a0] sm:$0xff] }
 0x687   :  { %11434 = vmatpush1.bf16.msra.mxu1 %v10677_v40  ;;  %11967 = vmatpush1.bf16.msra.mxu0 %v10679_v12  ;;  %v10735_v40 = vld [vmem:[#allocation2 + $0x5b0] sm:$0xff]  ;;  %v10738_v12 = vld [vmem:[#allocation2 + $0x5c8] sm:$0xff] }
 0x688   :  { %11444 = vmatprep.subr.bf16.mxu1 %v10682_v29  ;;  %11977 = vmatprep.subr.bf16.mxu0 %v10684_v20  ;;  %v10740_v29 = vld [vmem:[#allocation2 + $0x5d8] sm:$0xff]  ;;  %v10411_v20 = vcombine.high %v17492_v21, %v17492_v21 }
 0x68a   :  { %11436 = vmatmul.mubr.bf16.vlgmr.msra.gmra.mrb[188].mxu1 %v10530_v47  ;;  %11969 = vmatmul.mubr.bf16.vlgmr.msra.gmra.mrb[224].mxu0 %v10530_v47  ;;  %v10739_v47 = vld [vmem:[#allocation2 + $0x5d0] sm:$0xff] }
 0x68b   :  { %11445 = vmatpush1.bf16.msra.mxu1 %v10681_v48  ;;  %11978 = vmatpush1.bf16.msra.mxu0 %v10683_v32  ;;  %v10742_v48 = vld [vmem:[#allocation2 + $0x5e8] sm:$0xff]  ;;  %v10744_v32 = vld [vmem:[#allocation2 + $0x5f8] sm:$0xff] }
 0x68c   :  { %11446 = vmatprep.subr.bf16.mxu1 %v10686_v50  ;;  %11979 = vmatprep.subr.bf16.mxu0 %v10688_v18  ;;  %v17505_v50 = vrot.slane %v10411_v20, %v17473_v9  ;;  %v10741_v18 = vld [vmem:[#allocation2 + $0x5e0] sm:$0xff]  ;;  %v10795_v20 = vld [vmem:[#allocation2 + $0x790] sm:$0xff] }
 0x68d   :  { %11476 = vmatprep.mubr.bf16.mxu1 %v10533_v1  ;;  %12009 = vmatprep.mubr.bf16.mxu0 %v10533_v1  ;;  %v10743_v1 = vld [vmem:[#allocation2 + $0x5f0] sm:$0xff] }
 0x68e   :  { %v10427_v21 = vcombine.high %v17505_v50, %v17505_v50 }
 0x68f   :  { %11447 = vmatpush1.bf16.msra.mxu1 %v10685_v26  ;;  %11980 = vmatpush1.bf16.msra.mxu0 %v10687_v33  ;;  %v10746_v26 = vld [vmem:[#allocation2 + $0x608] sm:$0xff]  ;;  %v10748_v33 = vld [vmem:[#allocation2 + $0x618] sm:$0xff] }
 0x690   :  { %11448 = vmatprep.subr.bf16.mxu1 %v10690_v63  ;;  %11981 = vmatprep.subr.bf16.mxu0 %v10692_v17  ;;  %v10532_v63 = vpack.c.bf16 %v17496_v24, %v17496_v24  ;;  %v10745_v17 = vld [vmem:[#allocation2 + $0x600] sm:$0xff] }
 0x691   :  { %v10753_v24 = vld [vmem:[#allocation2 + $0x640] sm:$0xff] }
 0x693   :  { %11449 = vmatpush1.bf16.msra.mxu1 %v10689_v7  ;;  %11982 = vmatpush1.bf16.msra.mxu0 %v10691_v6  ;;  %v10747_v7 = vld [vmem:[#allocation2 + $0x610] sm:$0xff]  ;;  %v10750_v6 = vld [vmem:[#allocation2 + $0x628] sm:$0xff] }
 0x694   :  { %11450 = vmatprep.subr.bf16.mxu1 %v10694_v11  ;;  %11983 = vmatprep.subr.bf16.mxu0 %v10696_v19  ;;  %v10752_v11 = vld [vmem:[#allocation2 + $0x638] sm:$0xff]  ;;  %v10535_v19 = vpack.c.bf16 %v10427_v21, %v10427_v21  ;;  %v10803_v21 = vld [vmem:[#allocation2 + $0x7d0] sm:$0xff] }
 0x697   :  { %11451 = vmatpush1.bf16.msra.mxu1 %v10693_v57  ;;  %11984 = vmatpush1.bf16.msra.mxu0 %v10695_v41  ;;  %v10749_v57 = vld [vmem:[#allocation2 + $0x620] sm:$0xff]  ;;  %v10751_v41 = vld [vmem:[#allocation2 + $0x630] sm:$0xff] }
 0x698   :  { %11452 = vmatprep.subr.bf16.mxu1 %v10698_v28  ;;  %11985 = vmatprep.subr.bf16.mxu0 %v10700_v61  ;;  %v10754_v28 = vld [vmem:[#allocation2 + $0x648] sm:$0xff]  ;;  %v10756_v61 = vld [vmem:[#allocation2 + $0x658] sm:$0xff] }
 0x69b   :  { %11453 = vmatpush1.bf16.msra.mxu1 %v10697_v27  ;;  %11986 = vmatpush1.bf16.msra.mxu0 %v10699_v10  ;;  %v10755_v27 = vld [vmem:[#allocation2 + $0x650] sm:$0xff]  ;;  %v10758_v10 = vld [vmem:[#allocation2 + $0x668] sm:$0xff] }
 0x69c   :  { %11454 = vmatprep.subr.bf16.mxu1 %v10702_v38  ;;  %11987 = vmatprep.subr.bf16.mxu0 %v10704_v52  ;;  %v10760_v38 = vld [vmem:[#allocation2 + $0x678] sm:$0xff]  ;;  %v10757_v52 = vld [vmem:[#allocation2 + $0x660] sm:$0xff] }
 0x69f   :  { %11455 = vmatpush1.bf16.msra.mxu1 %v10701_v58  ;;  %11988 = vmatpush1.bf16.msra.mxu0 %v10703_v55  ;;  %v10759_v58 = vld [vmem:[#allocation2 + $0x670] sm:$0xff]  ;;  %v10762_v55 = vld [vmem:[#allocation2 + $0x688] sm:$0xff] }
 0x6a0   :  { %11456 = vmatprep.subr.bf16.mxu1 %v10706_v4  ;;  %11989 = vmatprep.subr.bf16.mxu0 %v10708_v2  ;;  %v10764_v4 = vld [vmem:[#allocation2 + $0x698] sm:$0xff]  ;;  %v10761_v2 = vld [vmem:[#allocation2 + $0x680] sm:$0xff] }
 0x6a3   :  { %11457 = vmatpush1.bf16.msra.mxu1 %v10705_v8  ;;  %11990 = vmatpush1.bf16.msra.mxu0 %v10707_v15  ;;  %v10763_v8 = vld [vmem:[#allocation2 + $0x690] sm:$0xff]  ;;  %v10766_v15 = vld [vmem:[#allocation2 + $0x6a8] sm:$0xff] }
 0x6a4   :  { %11458 = vmatprep.subr.bf16.mxu1 %v10710_v42  ;;  %11991 = vmatprep.subr.bf16.mxu0 %v10712_v0  ;;  %v10768_v42 = vld [vmem:[#allocation2 + $0x6b8] sm:$0xff]  ;;  %v10765_v0 = vld [vmem:[#allocation2 + $0x6a0] sm:$0xff] }
 0x6a7   :  { %11459 = vmatpush1.bf16.msra.mxu1 %v10709_v37  ;;  %11992 = vmatpush1.bf16.msra.mxu0 %v10711_v51  ;;  %v10767_v37 = vld [vmem:[#allocation2 + $0x6b0] sm:$0xff]  ;;  %v10770_v51 = vld [vmem:[#allocation2 + $0x6c8] sm:$0xff] }
 0x6a8   :  { %11460 = vmatprep.subr.bf16.mxu1 %v10714_v34  ;;  %11993 = vmatprep.subr.bf16.mxu0 %v10716_v53  ;;  %v10772_v34 = vld [vmem:[#allocation2 + $0x6d8] sm:$0xff]  ;;  %v10769_v53 = vld [vmem:[#allocation2 + $0x6c0] sm:$0xff] }
 0x6ab   :  { %11461 = vmatpush1.bf16.msra.mxu1 %v10713_v16  ;;  %11994 = vmatpush1.bf16.msra.mxu0 %v10715_v5  ;;  %v10771_v16 = vld [vmem:[#allocation2 + $0x6d0] sm:$0xff]  ;;  %v10774_v5 = vld [vmem:[#allocation2 + $0x6e8] sm:$0xff] }
 0x6ac   :  { %11462 = vmatprep.subr.bf16.mxu1 %v10718_v35  ;;  %11995 = vmatprep.subr.bf16.mxu0 %v10720_v36  ;;  %v10776_v35 = vld [vmem:[#allocation2 + $0x6f8] sm:$0xff]  ;;  %v10773_v36 = vld [vmem:[#allocation2 + $0x6e0] sm:$0xff] }
 0x6af   :  { %11463 = vmatpush1.bf16.msra.mxu1 %v10717_v3  ;;  %11996 = vmatpush1.bf16.msra.mxu0 %v10719_v54  ;;  %v10775_v3 = vld [vmem:[#allocation2 + $0x6f0] sm:$0xff]  ;;  %v10778_v54 = vld [vmem:[#allocation2 + $0x708] sm:$0xff] }
 0x6b0   :  { %11464 = vmatprep.subr.bf16.mxu1 %v10722_v46  ;;  %11997 = vmatprep.subr.bf16.mxu0 %v10724_v59  ;;  %v10780_v46 = vld [vmem:[#allocation2 + $0x718] sm:$0xff]  ;;  %v10777_v59 = vld [vmem:[#allocation2 + $0x700] sm:$0xff] }
 0x6b3   :  { %11465 = vmatpush1.bf16.msra.mxu1 %v10721_v56  ;;  %11998 = vmatpush1.bf16.msra.mxu0 %v10723_v44  ;;  %v10779_v56 = vld [vmem:[#allocation2 + $0x710] sm:$0xff]  ;;  %v10782_v44 = vld [vmem:[#allocation2 + $0x728] sm:$0xff] }
 0x6b4   :  { %11466 = vmatprep.subr.bf16.mxu1 %v10726_v22  ;;  %11999 = vmatprep.subr.bf16.mxu0 %v10728_v13  ;;  %v10784_v22 = vld [vmem:[#allocation2 + $0x738] sm:$0xff]  ;;  %v10781_v13 = vld [vmem:[#allocation2 + $0x720] sm:$0xff] }
 0x6b7   :  { %11467 = vmatpush1.bf16.msra.mxu1 %v10725_v30  ;;  %12000 = vmatpush1.bf16.msra.mxu0 %v10727_v31  ;;  %v10783_v30 = vld [vmem:[#allocation2 + $0x730] sm:$0xff]  ;;  %v10786_v31 = vld [vmem:[#allocation2 + $0x748] sm:$0xff] }
 0x6b8   :  { %11468 = vmatprep.subr.bf16.mxu1 %v10730_v14  ;;  %12001 = vmatprep.subr.bf16.mxu0 %v10732_v39  ;;  %v10788_v14 = vld [vmem:[#allocation2 + $0x758] sm:$0xff]  ;;  %v10785_v39 = vld [vmem:[#allocation2 + $0x740] sm:$0xff] }
 0x6bb   :  { %11469 = vmatpush1.bf16.msra.mxu1 %v10729_v25  ;;  %12002 = vmatpush1.bf16.msra.mxu0 %v10731_v62  ;;  %v10787_v25 = vld [vmem:[#allocation2 + $0x750] sm:$0xff]  ;;  %v10790_v62 = vld [vmem:[#allocation2 + $0x768] sm:$0xff] }
 0x6bc   :  { %11470 = vmatprep.subr.bf16.mxu1 %v10734_v45  ;;  %12003 = vmatprep.subr.bf16.mxu0 %v10736_v49  ;;  %v10792_v45 = vld [vmem:[#allocation2 + $0x778] sm:$0xff]  ;;  %v10789_v49 = vld [vmem:[#allocation2 + $0x760] sm:$0xff] }
 0x6bf   :  { %11471 = vmatpush1.bf16.msra.mxu1 %v10733_v23  ;;  %12004 = vmatpush1.bf16.msra.mxu0 %v10735_v40  ;;  %v10791_v23 = vld [vmem:[#allocation2 + $0x770] sm:$0xff]  ;;  %v10794_v40 = vld [vmem:[#allocation2 + $0x788] sm:$0xff] }
 0x6c0   :  { %11472 = vmatprep.subr.bf16.mxu1 %v10738_v12  ;;  %12005 = vmatprep.subr.bf16.mxu0 %v10740_v29  ;;  %v10796_v12 = vld [vmem:[#allocation2 + $0x798] sm:$0xff]  ;;  %v10793_v29 = vld [vmem:[#allocation2 + $0x780] sm:$0xff] }
 0x6c3   :  { %11473 = vmatpush1.bf16.msra.mxu1 %v10737_v60  ;;  %12006 = vmatpush1.bf16.msra.mxu0 %v10739_v47  ;;  %v10798_v60 = vld [vmem:[#allocation2 + $0x7a8] sm:$0xff]  ;;  %v10800_v47 = vld [vmem:[#allocation2 + $0x7b8] sm:$0xff] }
 0x6c4   :  { %11474 = vmatprep.subr.bf16.mxu1 %v10742_v48  ;;  %12007 = vmatprep.subr.bf16.mxu0 %v10744_v32  ;;  %v10797_v48 = vld [vmem:[#allocation2 + $0x7a0] sm:$0xff]  ;;  %v10799_v32 = vld [vmem:[#allocation2 + $0x7b0] sm:$0xff] }
 0x6c7   :  { %11475 = vmatpush1.bf16.msra.mxu1 %v10741_v18  ;;  %12008 = vmatpush1.bf16.msra.mxu0 %v10743_v1  ;;  %v10802_v18 = vld [vmem:[#allocation2 + $0x7c8] sm:$0xff]  ;;  %v10804_v1 = vld [vmem:[#allocation2 + $0x7d8] sm:$0xff] }
 0x6c8   :  { %11485 = vmatprep.subr.bf16.mxu1 %v10746_v26  ;;  %12018 = vmatprep.subr.bf16.mxu0 %v10748_v33  ;;  %v17511_v26 = vld [vmem:[#allocation5 + $0x10] sm:$0xff]  ;;  %v10801_v33 = vld [vmem:[#allocation2 + $0x7c0] sm:$0xff] }
 0x6ca   :  { %11477 = vmatmul.mubr.bf16.vlgmr.msra.gmra.mrb[188].mxu1 %v10532_v63  ;;  %12010 = vmatmul.mubr.bf16.vlgmr.msra.gmra.mrb[224].mxu0 %v10532_v63  ;;  %v10806_v63 = vld [vmem:[#allocation2 + $0x7e8] sm:$0xff] }
 0x6cb   :  { %11486 = vmatpush1.bf16.msra.mxu1 %v10745_v17  ;;  %12019 = vmatpush1.bf16.msra.mxu0 %v10747_v7  ;;  %v10808_v17 = vld [vmem:[#allocation2 + $0x7f8] sm:$0xff]  ;;  %v17515_v7 = vrot.slane %v17511_v26, %v17473_v9 }
 0x6cc   :  { %11487 = vmatprep.subr.bf16.mxu1 %v10750_v6  ;;  %12020 = vmatprep.subr.bf16.mxu0 %v10752_v11  ;;  %v10805_v6 = vld [vmem:[#allocation2 + $0x7e0] sm:$0xff]  ;;  %v10807_v11 = vld [vmem:[#allocation2 + $0x7f0] sm:$0xff] }
 0x6cd   :  { %11517 = vmatprep.mubr.bf16.mxu1 %v10535_v19  ;;  %12050 = vmatprep.mubr.bf16.mxu0 %v10535_v19  ;;  %v10810_v19 = vld [vmem:[#allocation2 + $0x808] sm:$0xff] }
 0x6cf   :  { %11488 = vmatpush1.bf16.msra.mxu1 %v10749_v57  ;;  %12021 = vmatpush1.bf16.msra.mxu0 %v10751_v41  ;;  %v10812_v57 = vld [vmem:[#allocation2 + $0x818] sm:$0xff]  ;;  %v10443_v41 = vcombine.high %v17515_v7, %v17515_v7 }
 0x6d0   :  { %11489 = vmatprep.subr.bf16.mxu1 %v10754_v28  ;;  %12022 = vmatprep.subr.bf16.mxu0 %v10756_v61  ;;  %v10534_v28 = vpack.c.bf16 %v17505_v50, %v17505_v50  ;;  %v10809_v61 = vld [vmem:[#allocation2 + $0x800] sm:$0xff] }
 0x6d1   :  { %v10817_v50 = vld [vmem:[#allocation2 + $0x840] sm:$0xff] }
 0x6d3   :  { %11490 = vmatpush1.bf16.msra.mxu1 %v10753_v24  ;;  %12023 = vmatpush1.bf16.msra.mxu0 %v10755_v27  ;;  %v10811_v24 = vld [vmem:[#allocation2 + $0x810] sm:$0xff]  ;;  %v10814_v27 = vld [vmem:[#allocation2 + $0x828] sm:$0xff] }
 0x6d4   :  { %11491 = vmatprep.subr.bf16.mxu1 %v10758_v10  ;;  %12024 = vmatprep.subr.bf16.mxu0 %v10760_v38  ;;  %v10816_v10 = vld [vmem:[#allocation2 + $0x838] sm:$0xff]  ;;  %v10537_v38 = vpack.c.bf16 %v10443_v41, %v10443_v41  ;;  %v10865_v41 = vld [vmem:[#allocation2 + $0x9c0] sm:$0xff] }
 0x6d7   :  { %11492 = vmatpush1.bf16.msra.mxu1 %v10757_v52  ;;  %12025 = vmatpush1.bf16.msra.mxu0 %v10759_v58  ;;  %v10813_v52 = vld [vmem:[#allocation2 + $0x820] sm:$0xff]  ;;  %v10815_v58 = vld [vmem:[#allocation2 + $0x830] sm:$0xff] }
 0x6d8   :  { %11493 = vmatprep.subr.bf16.mxu1 %v10762_v55  ;;  %12026 = vmatprep.subr.bf16.mxu0 %v10764_v4  ;;  %v10818_v55 = vld [vmem:[#allocation2 + $0x848] sm:$0xff]  ;;  %v10820_v4 = vld [vmem:[#allocation2 + $0x858] sm:$0xff] }
 0x6db   :  { %11494 = vmatpush1.bf16.msra.mxu1 %v10761_v2  ;;  %12027 = vmatpush1.bf16.msra.mxu0 %v10763_v8  ;;  %v10819_v2 = vld [vmem:[#allocation2 + $0x850] sm:$0xff]  ;;  %v10822_v8 = vld [vmem:[#allocation2 + $0x868] sm:$0xff] }
 0x6dc   :  { %11495 = vmatprep.subr.bf16.mxu1 %v10766_v15  ;;  %12028 = vmatprep.subr.bf16.mxu0 %v10768_v42  ;;  %v10824_v15 = vld [vmem:[#allocation2 + $0x878] sm:$0xff]  ;;  %v10821_v42 = vld [vmem:[#allocation2 + $0x860] sm:$0xff] }
 0x6df   :  { %11496 = vmatpush1.bf16.msra.mxu1 %v10765_v0  ;;  %12029 = vmatpush1.bf16.msra.mxu0 %v10767_v37  ;;  %v10823_v0 = vld [vmem:[#allocation2 + $0x870] sm:$0xff]  ;;  %v10826_v37 = vld [vmem:[#allocation2 + $0x888] sm:$0xff] }
 0x6e0   :  { %11497 = vmatprep.subr.bf16.mxu1 %v10770_v51  ;;  %12030 = vmatprep.subr.bf16.mxu0 %v10772_v34  ;;  %v10828_v51 = vld [vmem:[#allocation2 + $0x898] sm:$0xff]  ;;  %v10825_v34 = vld [vmem:[#allocation2 + $0x880] sm:$0xff] }
 0x6e3   :  { %11498 = vmatpush1.bf16.msra.mxu1 %v10769_v53  ;;  %12031 = vmatpush1.bf16.msra.mxu0 %v10771_v16  ;;  %v10827_v53 = vld [vmem:[#allocation2 + $0x890] sm:$0xff]  ;;  %v10830_v16 = vld [vmem:[#allocation2 + $0x8a8] sm:$0xff] }
 0x6e4   :  { %11499 = vmatprep.subr.bf16.mxu1 %v10774_v5  ;;  %12032 = vmatprep.subr.bf16.mxu0 %v10776_v35  ;;  %v10832_v5 = vld [vmem:[#allocation2 + $0x8b8] sm:$0xff]  ;;  %v10829_v35 = vld [vmem:[#allocation2 + $0x8a0] sm:$0xff] }
 0x6e7   :  { %11500 = vmatpush1.bf16.msra.mxu1 %v10773_v36  ;;  %12033 = vmatpush1.bf16.msra.mxu0 %v10775_v3  ;;  %v10831_v36 = vld [vmem:[#allocation2 + $0x8b0] sm:$0xff]  ;;  %v10834_v3 = vld [vmem:[#allocation2 + $0x8c8] sm:$0xff] }
 0x6e8   :  { %11501 = vmatprep.subr.bf16.mxu1 %v10778_v54  ;;  %12034 = vmatprep.subr.bf16.mxu0 %v10780_v46  ;;  %v10836_v54 = vld [vmem:[#allocation2 + $0x8d8] sm:$0xff]  ;;  %v10833_v46 = vld [vmem:[#allocation2 + $0x8c0] sm:$0xff] }
 0x6eb   :  { %11502 = vmatpush1.bf16.msra.mxu1 %v10777_v59  ;;  %12035 = vmatpush1.bf16.msra.mxu0 %v10779_v56  ;;  %v10835_v59 = vld [vmem:[#allocation2 + $0x8d0] sm:$0xff]  ;;  %v10838_v56 = vld [vmem:[#allocation2 + $0x8e8] sm:$0xff] }
 0x6ec   :  { %11503 = vmatprep.subr.bf16.mxu1 %v10782_v44  ;;  %12036 = vmatprep.subr.bf16.mxu0 %v10784_v22  ;;  %v10840_v44 = vld [vmem:[#allocation2 + $0x8f8] sm:$0xff]  ;;  %v10837_v22 = vld [vmem:[#allocation2 + $0x8e0] sm:$0xff] }
 0x6ef   :  { %11504 = vmatpush1.bf16.msra.mxu1 %v10781_v13  ;;  %12037 = vmatpush1.bf16.msra.mxu0 %v10783_v30  ;;  %v10839_v13 = vld [vmem:[#allocation2 + $0x8f0] sm:$0xff]  ;;  %v10842_v30 = vld [vmem:[#allocation2 + $0x908] sm:$0xff] }
 0x6f0   :  { %11505 = vmatprep.subr.bf16.mxu1 %v10786_v31  ;;  %12038 = vmatprep.subr.bf16.mxu0 %v10788_v14  ;;  %v10844_v31 = vld [vmem:[#allocation2 + $0x918] sm:$0xff]  ;;  %v10841_v14 = vld [vmem:[#allocation2 + $0x900] sm:$0xff] }
 0x6f3   :  { %11506 = vmatpush1.bf16.msra.mxu1 %v10785_v39  ;;  %12039 = vmatpush1.bf16.msra.mxu0 %v10787_v25  ;;  %v10843_v39 = vld [vmem:[#allocation2 + $0x910] sm:$0xff]  ;;  %v10846_v25 = vld [vmem:[#allocation2 + $0x928] sm:$0xff] }
 0x6f4   :  { %11507 = vmatprep.subr.bf16.mxu1 %v10790_v62  ;;  %12040 = vmatprep.subr.bf16.mxu0 %v10792_v45  ;;  %v10848_v62 = vld [vmem:[#allocation2 + $0x938] sm:$0xff]  ;;  %v10845_v45 = vld [vmem:[#allocation2 + $0x920] sm:$0xff] }
 0x6f7   :  { %11508 = vmatpush1.bf16.msra.mxu1 %v10789_v49  ;;  %12041 = vmatpush1.bf16.msra.mxu0 %v10791_v23  ;;  %v10847_v49 = vld [vmem:[#allocation2 + $0x930] sm:$0xff]  ;;  %v10850_v23 = vld [vmem:[#allocation2 + $0x948] sm:$0xff] }
 0x6f8   :  { %11509 = vmatprep.subr.bf16.mxu1 %v10794_v40  ;;  %12042 = vmatprep.subr.bf16.mxu0 %v10796_v12  ;;  %v10852_v40 = vld [vmem:[#allocation2 + $0x958] sm:$0xff]  ;;  %v10849_v12 = vld [vmem:[#allocation2 + $0x940] sm:$0xff] }
 0x6fb   :  { %11510 = vmatpush1.bf16.msra.mxu1 %v10793_v29  ;;  %12043 = vmatpush1.bf16.msra.mxu0 %v10795_v20  ;;  %v10851_v29 = vld [vmem:[#allocation2 + $0x950] sm:$0xff]  ;;  %v10854_v20 = vld [vmem:[#allocation2 + $0x968] sm:$0xff] }
 0x6fc   :  { %11511 = vmatprep.subr.bf16.mxu1 %v10798_v60  ;;  %12044 = vmatprep.subr.bf16.mxu0 %v10800_v47  ;;  %v10856_v60 = vld [vmem:[#allocation2 + $0x978] sm:$0xff]  ;;  %v10853_v47 = vld [vmem:[#allocation2 + $0x960] sm:$0xff] }
 0x6ff   :  { %11512 = vmatpush1.bf16.msra.mxu1 %v10797_v48  ;;  %12045 = vmatpush1.bf16.msra.mxu0 %v10799_v32  ;;  %v10855_v48 = vld [vmem:[#allocation2 + $0x970] sm:$0xff]  ;;  %v10858_v32 = vld [vmem:[#allocation2 + $0x988] sm:$0xff] }
 0x700   :  { %11513 = vmatprep.subr.bf16.mxu1 %v10802_v18  ;;  %12046 = vmatprep.subr.bf16.mxu0 %v10804_v1  ;;  %v10860_v18 = vld [vmem:[#allocation2 + $0x998] sm:$0xff]  ;;  %v10857_v1 = vld [vmem:[#allocation2 + $0x980] sm:$0xff] }
 0x703   :  { %11514 = vmatpush1.bf16.msra.mxu1 %v10801_v33  ;;  %12047 = vmatpush1.bf16.msra.mxu0 %v10803_v21  ;;  %v10859_v33 = vld [vmem:[#allocation2 + $0x990] sm:$0xff]  ;;  %v10862_v21 = vld [vmem:[#allocation2 + $0x9a8] sm:$0xff] }
 0x704   :  { %11515 = vmatprep.subr.bf16.mxu1 %v10806_v63  ;;  %12048 = vmatprep.subr.bf16.mxu0 %v10808_v17  ;;  %v10864_v63 = vld [vmem:[#allocation2 + $0x9b8] sm:$0xff]  ;;  %v10861_v17 = vld [vmem:[#allocation2 + $0x9a0] sm:$0xff] }
 0x707   :  { %11516 = vmatpush1.bf16.msra.mxu1 %v10805_v6  ;;  %12049 = vmatpush1.bf16.msra.mxu0 %v10807_v11  ;;  %v10863_v6 = vld [vmem:[#allocation2 + $0x9b0] sm:$0xff]  ;;  %v10866_v11 = vld [vmem:[#allocation2 + $0x9c8] sm:$0xff] }
 0x708   :  { %11526 = vmatprep.subr.bf16.mxu1 %v10810_v19  ;;  %12059 = vmatprep.subr.bf16.mxu0 %v10812_v57  ;;  %v10868_v19 = vld [vmem:[#allocation2 + $0x9d8] sm:$0xff]  ;;  %v10428_v57 = vcombine.high %v17511_v26, %v17511_v26 }
 0x70a   :  { %11518 = vmatmul.mubr.bf16.vlgmr.msra.gmra.mrb[188].mxu1 %v10534_v28  ;;  %12051 = vmatmul.mubr.bf16.vlgmr.msra.gmra.mrb[224].mxu0 %v10534_v28  ;;  %v10867_v28 = vld [vmem:[#allocation2 + $0x9d0] sm:$0xff] }
 0x70b   :  { %11527 = vmatpush1.bf16.msra.mxu1 %v10809_v61  ;;  %12060 = vmatpush1.bf16.msra.mxu0 %v10811_v24  ;;  %v10870_v61 = vld [vmem:[#allocation2 + $0x9e8] sm:$0xff]  ;;  %v10872_v24 = vld [vmem:[#allocation2 + $0x9f8] sm:$0xff] }
 0x70c   :  { %11528 = vmatprep.subr.bf16.mxu1 %v10814_v27  ;;  %12061 = vmatprep.subr.bf16.mxu0 %v10816_v10  ;;  %v17524_v27 = vrot.slane %v10428_v57, %v17473_v9  ;;  %v10869_v10 = vld [vmem:[#allocation2 + $0x9e0] sm:$0xff]  ;;  %v10923_v57 = vld [vmem:[#allocation2 + $0xb90] sm:$0xff] }
 0x70d   :  { %11558 = vmatprep.mubr.bf16.mxu1 %v10537_v38  ;;  %12091 = vmatprep.mubr.bf16.mxu0 %v10537_v38  ;;  %v10871_v38 = vld [vmem:[#allocation2 + $0x9f0] sm:$0xff] }
 0x70e   :  { %v10444_v26 = vcombine.high %v17524_v27, %v17524_v27 }
 0x70f   :  { %11529 = vmatpush1.bf16.msra.mxu1 %v10813_v52  ;;  %12062 = vmatpush1.bf16.msra.mxu0 %v10815_v58  ;;  %v10874_v52 = vld [vmem:[#allocation2 + $0xa08] sm:$0xff]  ;;  %v10876_v58 = vld [vmem:[#allocation2 + $0xa18] sm:$0xff] }
 0x710   :  { %11530 = vmatprep.subr.bf16.mxu1 %v10818_v55  ;;  %12063 = vmatprep.subr.bf16.mxu0 %v10820_v4  ;;  %v10536_v55 = vpack.c.bf16 %v17515_v7, %v17515_v7  ;;  %v10873_v4 = vld [vmem:[#allocation2 + $0xa00] sm:$0xff] }
 0x711   :  { %v10881_v7 = vld [vmem:[#allocation2 + $0xa40] sm:$0xff] }
 0x713   :  { %11531 = vmatpush1.bf16.msra.mxu1 %v10817_v50  ;;  %12064 = vmatpush1.bf16.msra.mxu0 %v10819_v2  ;;  %v10875_v50 = vld [vmem:[#allocation2 + $0xa10] sm:$0xff]  ;;  %v10878_v2 = vld [vmem:[#allocation2 + $0xa28] sm:$0xff] }
 0x714   :  { %11532 = vmatprep.subr.bf16.mxu1 %v10822_v8  ;;  %12065 = vmatprep.subr.bf16.mxu0 %v10824_v15  ;;  %v10880_v8 = vld [vmem:[#allocation2 + $0xa38] sm:$0xff]  ;;  %v10539_v15 = vpack.c.bf16 %v10444_v26, %v10444_v26  ;;  %v10931_v26 = vld [vmem:[#allocation2 + $0xbd0] sm:$0xff] }
 0x717   :  { %11533 = vmatpush1.bf16.msra.mxu1 %v10821_v42  ;;  %12066 = vmatpush1.bf16.msra.mxu0 %v10823_v0  ;;  %v10877_v42 = vld [vmem:[#allocation2 + $0xa20] sm:$0xff]  ;;  %v10879_v0 = vld [vmem:[#allocation2 + $0xa30] sm:$0xff] }
 0x718   :  { %11534 = vmatprep.subr.bf16.mxu1 %v10826_v37  ;;  %12067 = vmatprep.subr.bf16.mxu0 %v10828_v51  ;;  %v10882_v37 = vld [vmem:[#allocation2 + $0xa48] sm:$0xff]  ;;  %v10884_v51 = vld [vmem:[#allocation2 + $0xa58] sm:$0xff] }
 0x71b   :  { %11535 = vmatpush1.bf16.msra.mxu1 %v10825_v34  ;;  %12068 = vmatpush1.bf16.msra.mxu0 %v10827_v53  ;;  %v10883_v34 = vld [vmem:[#allocation2 + $0xa50] sm:$0xff]  ;;  %v10886_v53 = vld [vmem:[#allocation2 + $0xa68] sm:$0xff] }
 0x71c   :  { %11536 = vmatprep.subr.bf16.mxu1 %v10830_v16  ;;  %12069 = vmatprep.subr.bf16.mxu0 %v10832_v5  ;;  %v10888_v16 = vld [vmem:[#allocation2 + $0xa78] sm:$0xff]  ;;  %v10885_v5 = vld [vmem:[#allocation2 + $0xa60] sm:$0xff] }
 0x71f   :  { %11537 = vmatpush1.bf16.msra.mxu1 %v10829_v35  ;;  %12070 = vmatpush1.bf16.msra.mxu0 %v10831_v36  ;;  %v10887_v35 = vld [vmem:[#allocation2 + $0xa70] sm:$0xff]  ;;  %v10890_v36 = vld [vmem:[#allocation2 + $0xa88] sm:$0xff] }
 0x720   :  { %11538 = vmatprep.subr.bf16.mxu1 %v10834_v3  ;;  %12071 = vmatprep.subr.bf16.mxu0 %v10836_v54  ;;  %v10892_v3 = vld [vmem:[#allocation2 + $0xa98] sm:$0xff]  ;;  %v10889_v54 = vld [vmem:[#allocation2 + $0xa80] sm:$0xff] }
 0x723   :  { %11539 = vmatpush1.bf16.msra.mxu1 %v10833_v46  ;;  %12072 = vmatpush1.bf16.msra.mxu0 %v10835_v59  ;;  %v10891_v46 = vld [vmem:[#allocation2 + $0xa90] sm:$0xff]  ;;  %v10894_v59 = vld [vmem:[#allocation2 + $0xaa8] sm:$0xff] }
 0x724   :  { %11540 = vmatprep.subr.bf16.mxu1 %v10838_v56  ;;  %12073 = vmatprep.subr.bf16.mxu0 %v10840_v44  ;;  %v10896_v56 = vld [vmem:[#allocation2 + $0xab8] sm:$0xff]  ;;  %v10893_v44 = vld [vmem:[#allocation2 + $0xaa0] sm:$0xff] }
 0x727   :  { %11541 = vmatpush1.bf16.msra.mxu1 %v10837_v22  ;;  %12074 = vmatpush1.bf16.msra.mxu0 %v10839_v13  ;;  %v10895_v22 = vld [vmem:[#allocation2 + $0xab0] sm:$0xff]  ;;  %v10898_v13 = vld [vmem:[#allocation2 + $0xac8] sm:$0xff] }
 0x728   :  { %11542 = vmatprep.subr.bf16.mxu1 %v10842_v30  ;;  %12075 = vmatprep.subr.bf16.mxu0 %v10844_v31  ;;  %v10900_v30 = vld [vmem:[#allocation2 + $0xad8] sm:$0xff]  ;;  %v10897_v31 = vld [vmem:[#allocation2 + $0xac0] sm:$0xff] }
 0x72b   :  { %11543 = vmatpush1.bf16.msra.mxu1 %v10841_v14  ;;  %12076 = vmatpush1.bf16.msra.mxu0 %v10843_v39  ;;  %v10899_v14 = vld [vmem:[#allocation2 + $0xad0] sm:$0xff]  ;;  %v10902_v39 = vld [vmem:[#allocation2 + $0xae8] sm:$0xff] }
 0x72c   :  { %11544 = vmatprep.subr.bf16.mxu1 %v10846_v25  ;;  %12077 = vmatprep.subr.bf16.mxu0 %v10848_v62  ;;  %v10904_v25 = vld [vmem:[#allocation2 + $0xaf8] sm:$0xff]  ;;  %v10901_v62 = vld [vmem:[#allocation2 + $0xae0] sm:$0xff] }
 0x72f   :  { %11545 = vmatpush1.bf16.msra.mxu1 %v10845_v45  ;;  %12078 = vmatpush1.bf16.msra.mxu0 %v10847_v49  ;;  %v10903_v45 = vld [vmem:[#allocation2 + $0xaf0] sm:$0xff]  ;;  %v10906_v49 = vld [vmem:[#allocation2 + $0xb08] sm:$0xff] }
 0x730   :  { %11546 = vmatprep.subr.bf16.mxu1 %v10850_v23  ;;  %12079 = vmatprep.subr.bf16.mxu0 %v10852_v40  ;;  %v10908_v23 = vld [vmem:[#allocation2 + $0xb18] sm:$0xff]  ;;  %v10905_v40 = vld [vmem:[#allocation2 + $0xb00] sm:$0xff] }
 0x733   :  { %11547 = vmatpush1.bf16.msra.mxu1 %v10849_v12  ;;  %12080 = vmatpush1.bf16.msra.mxu0 %v10851_v29  ;;  %v10907_v12 = vld [vmem:[#allocation2 + $0xb10] sm:$0xff]  ;;  %v10910_v29 = vld [vmem:[#allocation2 + $0xb28] sm:$0xff] }
 0x734   :  { %11548 = vmatprep.subr.bf16.mxu1 %v10854_v20  ;;  %12081 = vmatprep.subr.bf16.mxu0 %v10856_v60  ;;  %v10912_v20 = vld [vmem:[#allocation2 + $0xb38] sm:$0xff]  ;;  %v10909_v60 = vld [vmem:[#allocation2 + $0xb20] sm:$0xff] }
 0x737   :  { %11549 = vmatpush1.bf16.msra.mxu1 %v10853_v47  ;;  %12082 = vmatpush1.bf16.msra.mxu0 %v10855_v48  ;;  %v10911_v47 = vld [vmem:[#allocation2 + $0xb30] sm:$0xff]  ;;  %v10914_v48 = vld [vmem:[#allocation2 + $0xb48] sm:$0xff] }
 0x738   :  { %11550 = vmatprep.subr.bf16.mxu1 %v10858_v32  ;;  %12083 = vmatprep.subr.bf16.mxu0 %v10860_v18  ;;  %v10916_v32 = vld [vmem:[#allocation2 + $0xb58] sm:$0xff]  ;;  %v10913_v18 = vld [vmem:[#allocation2 + $0xb40] sm:$0xff] }
 0x73b   :  { %11551 = vmatpush1.bf16.msra.mxu1 %v10857_v1  ;;  %12084 = vmatpush1.bf16.msra.mxu0 %v10859_v33  ;;  %v10915_v1 = vld [vmem:[#allocation2 + $0xb50] sm:$0xff]  ;;  %v10918_v33 = vld [vmem:[#allocation2 + $0xb68] sm:$0xff] }
 0x73c   :  { %11552 = vmatprep.subr.bf16.mxu1 %v10862_v21  ;;  %12085 = vmatprep.subr.bf16.mxu0 %v10864_v63  ;;  %v10920_v21 = vld [vmem:[#allocation2 + $0xb78] sm:$0xff]  ;;  %v10917_v63 = vld [vmem:[#allocation2 + $0xb60] sm:$0xff] }
 0x73f   :  { %11553 = vmatpush1.bf16.msra.mxu1 %v10861_v17  ;;  %12086 = vmatpush1.bf16.msra.mxu0 %v10863_v6  ;;  %v10919_v17 = vld [vmem:[#allocation2 + $0xb70] sm:$0xff]  ;;  %v10922_v6 = vld [vmem:[#allocation2 + $0xb88] sm:$0xff] }
 0x740   :  { %11554 = vmatprep.subr.bf16.mxu1 %v10866_v11  ;;  %12087 = vmatprep.subr.bf16.mxu0 %v10868_v19  ;;  %v10924_v11 = vld [vmem:[#allocation2 + $0xb98] sm:$0xff]  ;;  %v10921_v19 = vld [vmem:[#allocation2 + $0xb80] sm:$0xff] }
 0x743   :  { %11555 = vmatpush1.bf16.msra.mxu1 %v10865_v41  ;;  %12088 = vmatpush1.bf16.msra.mxu0 %v10867_v28  ;;  %v10926_v41 = vld [vmem:[#allocation2 + $0xba8] sm:$0xff]  ;;  %v10928_v28 = vld [vmem:[#allocation2 + $0xbb8] sm:$0xff] }
 0x744   :  { %11556 = vmatprep.subr.bf16.mxu1 %v10870_v61  ;;  %12089 = vmatprep.subr.bf16.mxu0 %v10872_v24  ;;  %v10925_v61 = vld [vmem:[#allocation2 + $0xba0] sm:$0xff]  ;;  %v10927_v24 = vld [vmem:[#allocation2 + $0xbb0] sm:$0xff] }
 0x747   :  { %11557 = vmatpush1.bf16.msra.mxu1 %v10869_v10  ;;  %12090 = vmatpush1.bf16.msra.mxu0 %v10871_v38  ;;  %v10930_v10 = vld [vmem:[#allocation2 + $0xbc8] sm:$0xff]  ;;  %v10932_v38 = vld [vmem:[#allocation2 + $0xbd8] sm:$0xff] }
 0x748   :  { %11567 = vmatprep.subr.bf16.mxu1 %v10874_v52  ;;  %12100 = vmatprep.subr.bf16.mxu0 %v10876_v58  ;;  %v17530_v52 = vld [vmem:[#allocation5 + $0x18] sm:$0xff] }
 0x749   :  { %v10929_v58 = vld [vmem:[#allocation2 + $0xbc0] sm:$0xff] }
 0x74a   :  { %11559 = vmatmul.mubr.bf16.vlgmr.msra.gmra.mrb[188].mxu1 %v10536_v55  ;;  %12092 = vmatmul.mubr.bf16.vlgmr.msra.gmra.mrb[224].mxu0 %v10536_v55  ;;  %v10934_v55 = vld [vmem:[#allocation2 + $0xbe8] sm:$0xff] }
 0x74b   :  { %11568 = vmatpush1.bf16.msra.mxu1 %v10873_v4  ;;  %12101 = vmatpush1.bf16.msra.mxu0 %v10875_v50  ;;  %v10936_v4 = vld [vmem:[#allocation2 + $0xbf8] sm:$0xff]  ;;  %v17534_v50 = vrot.slane %v17530_v52, %v17473_v9 }
 0x74c   :  { %11569 = vmatprep.subr.bf16.mxu1 %v10878_v2  ;;  %12102 = vmatprep.subr.bf16.mxu0 %v10880_v8  ;;  %v10933_v2 = vld [vmem:[#allocation2 + $0xbe0] sm:$0xff]  ;;  %v10935_v8 = vld [vmem:[#allocation2 + $0xbf0] sm:$0xff] }
 0x74d   :  { %11599 = vmatprep.mubr.bf16.mxu1 %v10539_v15  ;;  %12132 = vmatprep.mubr.bf16.mxu0 %v10539_v15  ;;  %v10938_v15 = vld [vmem:[#allocation2 + $0xc08] sm:$0xff] }
 0x74f   :  { %11570 = vmatpush1.bf16.msra.mxu1 %v10877_v42  ;;  %12103 = vmatpush1.bf16.msra.mxu0 %v10879_v0  ;;  %v10940_v42 = vld [vmem:[#allocation2 + $0xc18] sm:$0xff]  ;;  %v10460_v0 = vcombine.high %v17534_v50, %v17534_v50 }
 0x750   :  { %11571 = vmatprep.subr.bf16.mxu1 %v10882_v37  ;;  %12104 = vmatprep.subr.bf16.mxu0 %v10884_v51  ;;  %v10538_v37 = vpack.c.bf16 %v17524_v27, %v17524_v27  ;;  %v10937_v51 = vld [vmem:[#allocation2 + $0xc00] sm:$0xff] }
 0x751   :  { %v10945_v27 = vld [vmem:[#allocation2 + $0xc40] sm:$0xff] }
 0x753   :  { %11572 = vmatpush1.bf16.msra.mxu1 %v10881_v7  ;;  %12105 = vmatpush1.bf16.msra.mxu0 %v10883_v34  ;;  %v10939_v7 = vld [vmem:[#allocation2 + $0xc10] sm:$0xff]  ;;  %v10942_v34 = vld [vmem:[#allocation2 + $0xc28] sm:$0xff] }
 0x754   :  { %11573 = vmatprep.subr.bf16.mxu1 %v10886_v53  ;;  %12106 = vmatprep.subr.bf16.mxu0 %v10888_v16  ;;  %v10944_v53 = vld [vmem:[#allocation2 + $0xc38] sm:$0xff]  ;;  %v10541_v16 = vpack.c.bf16 %v10460_v0, %v10460_v0  ;;  %v10993_v0 = vld [vmem:[#allocation2 + $0xdc0] sm:$0xff] }
 0x757   :  { %11574 = vmatpush1.bf16.msra.mxu1 %v10885_v5  ;;  %12107 = vmatpush1.bf16.msra.mxu0 %v10887_v35  ;;  %v10941_v5 = vld [vmem:[#allocation2 + $0xc20] sm:$0xff]  ;;  %v10943_v35 = vld [vmem:[#allocation2 + $0xc30] sm:$0xff] }
 0x758   :  { %11575 = vmatprep.subr.bf16.mxu1 %v10890_v36  ;;  %12108 = vmatprep.subr.bf16.mxu0 %v10892_v3  ;;  %v10946_v36 = vld [vmem:[#allocation2 + $0xc48] sm:$0xff]  ;;  %v10948_v3 = vld [vmem:[#allocation2 + $0xc58] sm:$0xff] }
 0x75b   :  { %11576 = vmatpush1.bf16.msra.mxu1 %v10889_v54  ;;  %12109 = vmatpush1.bf16.msra.mxu0 %v10891_v46  ;;  %v10947_v54 = vld [vmem:[#allocation2 + $0xc50] sm:$0xff]  ;;  %v10950_v46 = vld [vmem:[#allocation2 + $0xc68] sm:$0xff] }
 0x75c   :  { %11577 = vmatprep.subr.bf16.mxu1 %v10894_v59  ;;  %12110 = vmatprep.subr.bf16.mxu0 %v10896_v56  ;;  %v10952_v59 = vld [vmem:[#allocation2 + $0xc78] sm:$0xff]  ;;  %v10949_v56 = vld [vmem:[#allocation2 + $0xc60] sm:$0xff] }
 0x75f   :  { %11578 = vmatpush1.bf16.msra.mxu1 %v10893_v44  ;;  %12111 = vmatpush1.bf16.msra.mxu0 %v10895_v22  ;;  %v10951_v44 = vld [vmem:[#allocation2 + $0xc70] sm:$0xff]  ;;  %v10954_v22 = vld [vmem:[#allocation2 + $0xc88] sm:$0xff] }
 0x760   :  { %11579 = vmatprep.subr.bf16.mxu1 %v10898_v13  ;;  %12112 = vmatprep.subr.bf16.mxu0 %v10900_v30  ;;  %v10956_v13 = vld [vmem:[#allocation2 + $0xc98] sm:$0xff]  ;;  %v10953_v30 = vld [vmem:[#allocation2 + $0xc80] sm:$0xff] }
 0x763   :  { %11580 = vmatpush1.bf16.msra.mxu1 %v10897_v31  ;;  %12113 = vmatpush1.bf16.msra.mxu0 %v10899_v14  ;;  %v10955_v31 = vld [vmem:[#allocation2 + $0xc90] sm:$0xff]  ;;  %v10958_v14 = vld [vmem:[#allocation2 + $0xca8] sm:$0xff] }
 0x764   :  { %11581 = vmatprep.subr.bf16.mxu1 %v10902_v39  ;;  %12114 = vmatprep.subr.bf16.mxu0 %v10904_v25  ;;  %v10960_v39 = vld [vmem:[#allocation2 + $0xcb8] sm:$0xff]  ;;  %v10957_v25 = vld [vmem:[#allocation2 + $0xca0] sm:$0xff] }
 0x767   :  { %11582 = vmatpush1.bf16.msra.mxu1 %v10901_v62  ;;  %12115 = vmatpush1.bf16.msra.mxu0 %v10903_v45  ;;  %v10959_v62 = vld [vmem:[#allocation2 + $0xcb0] sm:$0xff]  ;;  %v10962_v45 = vld [vmem:[#allocation2 + $0xcc8] sm:$0xff] }
 0x768   :  { %11583 = vmatprep.subr.bf16.mxu1 %v10906_v49  ;;  %12116 = vmatprep.subr.bf16.mxu0 %v10908_v23  ;;  %v10964_v49 = vld [vmem:[#allocation2 + $0xcd8] sm:$0xff]  ;;  %v10961_v23 = vld [vmem:[#allocation2 + $0xcc0] sm:$0xff] }
 0x76b   :  { %11584 = vmatpush1.bf16.msra.mxu1 %v10905_v40  ;;  %12117 = vmatpush1.bf16.msra.mxu0 %v10907_v12  ;;  %v10963_v40 = vld [vmem:[#allocation2 + $0xcd0] sm:$0xff]  ;;  %v10966_v12 = vld [vmem:[#allocation2 + $0xce8] sm:$0xff] }
 0x76c   :  { %11585 = vmatprep.subr.bf16.mxu1 %v10910_v29  ;;  %12118 = vmatprep.subr.bf16.mxu0 %v10912_v20  ;;  %v10968_v29 = vld [vmem:[#allocation2 + $0xcf8] sm:$0xff]  ;;  %v10965_v20 = vld [vmem:[#allocation2 + $0xce0] sm:$0xff] }
 0x76f   :  { %11586 = vmatpush1.bf16.msra.mxu1 %v10909_v60  ;;  %12119 = vmatpush1.bf16.msra.mxu0 %v10911_v47  ;;  %v10967_v60 = vld [vmem:[#allocation2 + $0xcf0] sm:$0xff]  ;;  %v10970_v47 = vld [vmem:[#allocation2 + $0xd08] sm:$0xff] }
 0x770   :  { %11587 = vmatprep.subr.bf16.mxu1 %v10914_v48  ;;  %12120 = vmatprep.subr.bf16.mxu0 %v10916_v32  ;;  %v10972_v48 = vld [vmem:[#allocation2 + $0xd18] sm:$0xff]  ;;  %v10969_v32 = vld [vmem:[#allocation2 + $0xd00] sm:$0xff] }
 0x773   :  { %11588 = vmatpush1.bf16.msra.mxu1 %v10913_v18  ;;  %12121 = vmatpush1.bf16.msra.mxu0 %v10915_v1  ;;  %v10971_v18 = vld [vmem:[#allocation2 + $0xd10] sm:$0xff]  ;;  %v10974_v1 = vld [vmem:[#allocation2 + $0xd28] sm:$0xff] }
 0x774   :  { %11589 = vmatprep.subr.bf16.mxu1 %v10918_v33  ;;  %12122 = vmatprep.subr.bf16.mxu0 %v10920_v21  ;;  %v10976_v33 = vld [vmem:[#allocation2 + $0xd38] sm:$0xff]  ;;  %v10973_v21 = vld [vmem:[#allocation2 + $0xd20] sm:$0xff] }
 0x777   :  { %11590 = vmatpush1.bf16.msra.mxu1 %v10917_v63  ;;  %12123 = vmatpush1.bf16.msra.mxu0 %v10919_v17  ;;  %v10975_v63 = vld [vmem:[#allocation2 + $0xd30] sm:$0xff]  ;;  %v10978_v17 = vld [vmem:[#allocation2 + $0xd48] sm:$0xff] }
 0x778   :  { %11591 = vmatprep.subr.bf16.mxu1 %v10922_v6  ;;  %12124 = vmatprep.subr.bf16.mxu0 %v10924_v11  ;;  %v10980_v6 = vld [vmem:[#allocation2 + $0xd58] sm:$0xff]  ;;  %v10977_v11 = vld [vmem:[#allocation2 + $0xd40] sm:$0xff] }
 0x77b   :  { %11592 = vmatpush1.bf16.msra.mxu1 %v10921_v19  ;;  %12125 = vmatpush1.bf16.msra.mxu0 %v10923_v57  ;;  %v10979_v19 = vld [vmem:[#allocation2 + $0xd50] sm:$0xff]  ;;  %v10982_v57 = vld [vmem:[#allocation2 + $0xd68] sm:$0xff] }
 0x77c   :  { %11593 = vmatprep.subr.bf16.mxu1 %v10926_v41  ;;  %12126 = vmatprep.subr.bf16.mxu0 %v10928_v28  ;;  %v10984_v41 = vld [vmem:[#allocation2 + $0xd78] sm:$0xff]  ;;  %v10981_v28 = vld [vmem:[#allocation2 + $0xd60] sm:$0xff] }
 0x77f   :  { %11594 = vmatpush1.bf16.msra.mxu1 %v10925_v61  ;;  %12127 = vmatpush1.bf16.msra.mxu0 %v10927_v24  ;;  %v10983_v61 = vld [vmem:[#allocation2 + $0xd70] sm:$0xff]  ;;  %v10986_v24 = vld [vmem:[#allocation2 + $0xd88] sm:$0xff] }
 0x780   :  { %11595 = vmatprep.subr.bf16.mxu1 %v10930_v10  ;;  %12128 = vmatprep.subr.bf16.mxu0 %v10932_v38  ;;  %v10988_v10 = vld [vmem:[#allocation2 + $0xd98] sm:$0xff]  ;;  %v10985_v38 = vld [vmem:[#allocation2 + $0xd80] sm:$0xff] }
 0x783   :  { %11596 = vmatpush1.bf16.msra.mxu1 %v10929_v58  ;;  %12129 = vmatpush1.bf16.msra.mxu0 %v10931_v26  ;;  %v10987_v58 = vld [vmem:[#allocation2 + $0xd90] sm:$0xff]  ;;  %v10990_v26 = vld [vmem:[#allocation2 + $0xda8] sm:$0xff] }
 0x784   :  { %11597 = vmatprep.subr.bf16.mxu1 %v10934_v55  ;;  %12130 = vmatprep.subr.bf16.mxu0 %v10936_v4  ;;  %v10992_v55 = vld [vmem:[#allocation2 + $0xdb8] sm:$0xff]  ;;  %v10989_v4 = vld [vmem:[#allocation2 + $0xda0] sm:$0xff] }
 0x787   :  { %11598 = vmatpush1.bf16.msra.mxu1 %v10933_v2  ;;  %12131 = vmatpush1.bf16.msra.mxu0 %v10935_v8  ;;  %v10991_v2 = vld [vmem:[#allocation2 + $0xdb0] sm:$0xff]  ;;  %v10994_v8 = vld [vmem:[#allocation2 + $0xdc8] sm:$0xff] }
 0x788   :  { %11608 = vmatprep.subr.bf16.mxu1 %v10938_v15  ;;  %12141 = vmatprep.subr.bf16.mxu0 %v10940_v42  ;;  %v10996_v15 = vld [vmem:[#allocation2 + $0xdd8] sm:$0xff]  ;;  %v10445_v42 = vcombine.high %v17530_v52, %v17530_v52 }
 0x78a   :  { %11600 = vmatmul.mubr.bf16.vlgmr.msra.gmra.mrb[188].mxu1 %v10538_v37  ;;  %12133 = vmatmul.mubr.bf16.vlgmr.msra.gmra.mrb[224].mxu0 %v10538_v37  ;;  %v10995_v37 = vld [vmem:[#allocation2 + $0xdd0] sm:$0xff] }
 0x78b   :  { %11609 = vmatpush1.bf16.msra.mxu1 %v10937_v51  ;;  %12142 = vmatpush1.bf16.msra.mxu0 %v10939_v7  ;;  %v10998_v51 = vld [vmem:[#allocation2 + $0xde8] sm:$0xff]  ;;  %v11000_v7 = vld [vmem:[#allocation2 + $0xdf8] sm:$0xff] }
 0x78c   :  { %11610 = vmatprep.subr.bf16.mxu1 %v10942_v34  ;;  %12143 = vmatprep.subr.bf16.mxu0 %v10944_v53  ;;  %v17543_v34 = vrot.slane %v10445_v42, %v17473_v9  ;;  %v10997_v53 = vld [vmem:[#allocation2 + $0xde0] sm:$0xff]  ;;  %v11051_v42 = vld [vmem:[#allocation2 + $0xf90] sm:$0xff] }
 0x78d   :  { %11640 = vmatprep.mubr.bf16.mxu1 %v10541_v16  ;;  %12173 = vmatprep.mubr.bf16.mxu0 %v10541_v16  ;;  %v10999_v16 = vld [vmem:[#allocation2 + $0xdf0] sm:$0xff] }
 0x78e   :  { %v10461_v52 = vcombine.high %v17543_v34, %v17543_v34 }
 0x78f   :  { %11611 = vmatpush1.bf16.msra.mxu1 %v10941_v5  ;;  %12144 = vmatpush1.bf16.msra.mxu0 %v10943_v35  ;;  %v11002_v5 = vld [vmem:[#allocation2 + $0xe08] sm:$0xff]  ;;  %v11004_v35 = vld [vmem:[#allocation2 + $0xe18] sm:$0xff] }
 0x790   :  { %11612 = vmatprep.subr.bf16.mxu1 %v10946_v36  ;;  %12145 = vmatprep.subr.bf16.mxu0 %v10948_v3  ;;  %v10540_v36 = vpack.c.bf16 %v17534_v50, %v17534_v50  ;;  %v11001_v3 = vld [vmem:[#allocation2 + $0xe00] sm:$0xff] }
 0x791   :  { %v11009_v50 = vld [vmem:[#allocation2 + $0xe40] sm:$0xff] }
 0x793   :  { %11613 = vmatpush1.bf16.msra.mxu1 %v10945_v27  ;;  %12146 = vmatpush1.bf16.msra.mxu0 %v10947_v54  ;;  %v11003_v27 = vld [vmem:[#allocation2 + $0xe10] sm:$0xff]  ;;  %v11006_v54 = vld [vmem:[#allocation2 + $0xe28] sm:$0xff] }
 0x794   :  { %11614 = vmatprep.subr.bf16.mxu1 %v10950_v46  ;;  %12147 = vmatprep.subr.bf16.mxu0 %v10952_v59  ;;  %v11008_v46 = vld [vmem:[#allocation2 + $0xe38] sm:$0xff]  ;;  %v10543_v59 = vpack.c.bf16 %v10461_v52, %v10461_v52  ;;  %v11059_v52 = vld [vmem:[#allocation2 + $0xfd0] sm:$0xff] }
 0x797   :  { %11615 = vmatpush1.bf16.msra.mxu1 %v10949_v56  ;;  %12148 = vmatpush1.bf16.msra.mxu0 %v10951_v44  ;;  %v11005_v56 = vld [vmem:[#allocation2 + $0xe20] sm:$0xff]  ;;  %v11007_v44 = vld [vmem:[#allocation2 + $0xe30] sm:$0xff] }
 0x798   :  { %11616 = vmatprep.subr.bf16.mxu1 %v10954_v22  ;;  %12149 = vmatprep.subr.bf16.mxu0 %v10956_v13  ;;  %v11010_v22 = vld [vmem:[#allocation2 + $0xe48] sm:$0xff]  ;;  %v11012_v13 = vld [vmem:[#allocation2 + $0xe58] sm:$0xff] }
 0x79b   :  { %11617 = vmatpush1.bf16.msra.mxu1 %v10953_v30  ;;  %12150 = vmatpush1.bf16.msra.mxu0 %v10955_v31  ;;  %v11011_v30 = vld [vmem:[#allocation2 + $0xe50] sm:$0xff]  ;;  %v11014_v31 = vld [vmem:[#allocation2 + $0xe68] sm:$0xff] }
 0x79c   :  { %11618 = vmatprep.subr.bf16.mxu1 %v10958_v14  ;;  %12151 = vmatprep.subr.bf16.mxu0 %v10960_v39  ;;  %v11016_v14 = vld [vmem:[#allocation2 + $0xe78] sm:$0xff]  ;;  %v11013_v39 = vld [vmem:[#allocation2 + $0xe60] sm:$0xff] }
 0x79f   :  { %11619 = vmatpush1.bf16.msra.mxu1 %v10957_v25  ;;  %12152 = vmatpush1.bf16.msra.mxu0 %v10959_v62  ;;  %v11015_v25 = vld [vmem:[#allocation2 + $0xe70] sm:$0xff]  ;;  %v11018_v62 = vld [vmem:[#allocation2 + $0xe88] sm:$0xff] }
 0x7a0   :  { %11620 = vmatprep.subr.bf16.mxu1 %v10962_v45  ;;  %12153 = vmatprep.subr.bf16.mxu0 %v10964_v49  ;;  %v11020_v45 = vld [vmem:[#allocation2 + $0xe98] sm:$0xff]  ;;  %v11017_v49 = vld [vmem:[#allocation2 + $0xe80] sm:$0xff] }
 0x7a3   :  { %11621 = vmatpush1.bf16.msra.mxu1 %v10961_v23  ;;  %12154 = vmatpush1.bf16.msra.mxu0 %v10963_v40  ;;  %v11019_v23 = vld [vmem:[#allocation2 + $0xe90] sm:$0xff]  ;;  %v11022_v40 = vld [vmem:[#allocation2 + $0xea8] sm:$0xff] }
 0x7a4   :  { %11622 = vmatprep.subr.bf16.mxu1 %v10966_v12  ;;  %12155 = vmatprep.subr.bf16.mxu0 %v10968_v29  ;;  %v11024_v12 = vld [vmem:[#allocation2 + $0xeb8] sm:$0xff]  ;;  %v11021_v29 = vld [vmem:[#allocation2 + $0xea0] sm:$0xff] }
 0x7a7   :  { %11623 = vmatpush1.bf16.msra.mxu1 %v10965_v20  ;;  %12156 = vmatpush1.bf16.msra.mxu0 %v10967_v60  ;;  %v11023_v20 = vld [vmem:[#allocation2 + $0xeb0] sm:$0xff]  ;;  %v11026_v60 = vld [vmem:[#allocation2 + $0xec8] sm:$0xff] }
 0x7a8   :  { %11624 = vmatprep.subr.bf16.mxu1 %v10970_v47  ;;  %12157 = vmatprep.subr.bf16.mxu0 %v10972_v48  ;;  %v11028_v47 = vld [vmem:[#allocation2 + $0xed8] sm:$0xff]  ;;  %v11025_v48 = vld [vmem:[#allocation2 + $0xec0] sm:$0xff] }
 0x7ab   :  { %11625 = vmatpush1.bf16.msra.mxu1 %v10969_v32  ;;  %12158 = vmatpush1.bf16.msra.mxu0 %v10971_v18  ;;  %v11027_v32 = vld [vmem:[#allocation2 + $0xed0] sm:$0xff]  ;;  %v11030_v18 = vld [vmem:[#allocation2 + $0xee8] sm:$0xff] }
 0x7ac   :  { %11626 = vmatprep.subr.bf16.mxu1 %v10974_v1  ;;  %12159 = vmatprep.subr.bf16.mxu0 %v10976_v33  ;;  %v11032_v1 = vld [vmem:[#allocation2 + $0xef8] sm:$0xff]  ;;  %v11029_v33 = vld [vmem:[#allocation2 + $0xee0] sm:$0xff] }
 0x7af   :  { %11627 = vmatpush1.bf16.msra.mxu1 %v10973_v21  ;;  %12160 = vmatpush1.bf16.msra.mxu0 %v10975_v63  ;;  %v11031_v21 = vld [vmem:[#allocation2 + $0xef0] sm:$0xff]  ;;  %v11034_v63 = vld [vmem:[#allocation2 + $0xf08] sm:$0xff] }
 0x7b0   :  { %11628 = vmatprep.subr.bf16.mxu1 %v10978_v17  ;;  %12161 = vmatprep.subr.bf16.mxu0 %v10980_v6  ;;  %v11036_v17 = vld [vmem:[#allocation2 + $0xf18] sm:$0xff]  ;;  %v11033_v6 = vld [vmem:[#allocation2 + $0xf00] sm:$0xff] }
 0x7b3   :  { %11629 = vmatpush1.bf16.msra.mxu1 %v10977_v11  ;;  %12162 = vmatpush1.bf16.msra.mxu0 %v10979_v19  ;;  %v11035_v11 = vld [vmem:[#allocation2 + $0xf10] sm:$0xff]  ;;  %v11038_v19 = vld [vmem:[#allocation2 + $0xf28] sm:$0xff] }
 0x7b4   :  { %11630 = vmatprep.subr.bf16.mxu1 %v10982_v57  ;;  %12163 = vmatprep.subr.bf16.mxu0 %v10984_v41  ;;  %v11040_v57 = vld [vmem:[#allocation2 + $0xf38] sm:$0xff]  ;;  %v11037_v41 = vld [vmem:[#allocation2 + $0xf20] sm:$0xff] }
 0x7b7   :  { %11631 = vmatpush1.bf16.msra.mxu1 %v10981_v28  ;;  %12164 = vmatpush1.bf16.msra.mxu0 %v10983_v61  ;;  %v11039_v28 = vld [vmem:[#allocation2 + $0xf30] sm:$0xff]  ;;  %v11042_v61 = vld [vmem:[#allocation2 + $0xf48] sm:$0xff] }
 0x7b8   :  { %11632 = vmatprep.subr.bf16.mxu1 %v10986_v24  ;;  %12165 = vmatprep.subr.bf16.mxu0 %v10988_v10  ;;  %v11044_v24 = vld [vmem:[#allocation2 + $0xf58] sm:$0xff]  ;;  %v11041_v10 = vld [vmem:[#allocation2 + $0xf40] sm:$0xff] }
 0x7bb   :  { %11633 = vmatpush1.bf16.msra.mxu1 %v10985_v38  ;;  %12166 = vmatpush1.bf16.msra.mxu0 %v10987_v58  ;;  %v11043_v38 = vld [vmem:[#allocation2 + $0xf50] sm:$0xff]  ;;  %v11046_v58 = vld [vmem:[#allocation2 + $0xf68] sm:$0xff] }
 0x7bc   :  { %11634 = vmatprep.subr.bf16.mxu1 %v10990_v26  ;;  %12167 = vmatprep.subr.bf16.mxu0 %v10992_v55  ;;  %v11048_v26 = vld [vmem:[#allocation2 + $0xf78] sm:$0xff]  ;;  %v11045_v55 = vld [vmem:[#allocation2 + $0xf60] sm:$0xff] }
 0x7bf   :  { %11635 = vmatpush1.bf16.msra.mxu1 %v10989_v4  ;;  %12168 = vmatpush1.bf16.msra.mxu0 %v10991_v2  ;;  %v11047_v4 = vld [vmem:[#allocation2 + $0xf70] sm:$0xff]  ;;  %v11050_v2 = vld [vmem:[#allocation2 + $0xf88] sm:$0xff] }
 0x7c0   :  { %11636 = vmatprep.subr.bf16.mxu1 %v10994_v8  ;;  %12169 = vmatprep.subr.bf16.mxu0 %v10996_v15  ;;  %v11052_v8 = vld [vmem:[#allocation2 + $0xf98] sm:$0xff]  ;;  %v11049_v15 = vld [vmem:[#allocation2 + $0xf80] sm:$0xff] }
 0x7c3   :  { %11637 = vmatpush1.bf16.msra.mxu1 %v10993_v0  ;;  %12170 = vmatpush1.bf16.msra.mxu0 %v10995_v37  ;;  %v11054_v0 = vld [vmem:[#allocation2 + $0xfa8] sm:$0xff]  ;;  %v11056_v37 = vld [vmem:[#allocation2 + $0xfb8] sm:$0xff] }
 0x7c4   :  { %11638 = vmatprep.subr.bf16.mxu1 %v10998_v51  ;;  %12171 = vmatprep.subr.bf16.mxu0 %v11000_v7  ;;  %v11053_v51 = vld [vmem:[#allocation2 + $0xfa0] sm:$0xff]  ;;  %v11055_v7 = vld [vmem:[#allocation2 + $0xfb0] sm:$0xff] }
 0x7c7   :  { %11639 = vmatpush1.bf16.msra.mxu1 %v10997_v53  ;;  %12172 = vmatpush1.bf16.msra.mxu0 %v10999_v16  ;;  %v11058_v53 = vld [vmem:[#allocation2 + $0xfc8] sm:$0xff]  ;;  %v11060_v16 = vld [vmem:[#allocation2 + $0xfd8] sm:$0xff] }
 0x7c8   :  { %11649 = vmatprep.subr.bf16.mxu1 %v11002_v5  ;;  %12182 = vmatprep.subr.bf16.mxu0 %v11004_v35  ;;  %v17549_v5 = vld [vmem:[#allocation5 + $0x20] sm:$0xff] }
 0x7c9   :  { %v11057_v35 = vld [vmem:[#allocation2 + $0xfc0] sm:$0xff] }
 0x7ca   :  { %11641 = vmatmul.mubr.bf16.vlgmr.msra.gmra.mrb[188].mxu1 %v10540_v36  ;;  %12174 = vmatmul.mubr.bf16.vlgmr.msra.gmra.mrb[224].mxu0 %v10540_v36  ;;  %v11062_v36 = vld [vmem:[#allocation2 + $0xfe8] sm:$0xff] }
 0x7cb   :  { %11650 = vmatpush1.bf16.msra.mxu1 %v11001_v3  ;;  %12183 = vmatpush1.bf16.msra.mxu0 %v11003_v27  ;;  %v11064_v3 = vld [vmem:[#allocation2 + $0xff8] sm:$0xff]  ;;  %v17553_v27 = vrot.slane %v17549_v5, %v17473_v9 }
 0x7cc   :  { %11651 = vmatprep.subr.bf16.mxu1 %v11006_v54  ;;  %12184 = vmatprep.subr.bf16.mxu0 %v11008_v46  ;;  %v11061_v54 = vld [vmem:[#allocation2 + $0xfe0] sm:$0xff]  ;;  %v11063_v46 = vld [vmem:[#allocation2 + $0xff0] sm:$0xff] }
 0x7cd   :  { %11681 = vmatprep.mubr.bf16.mxu1 %v10543_v59  ;;  %12214 = vmatprep.mubr.bf16.mxu0 %v10543_v59  ;;  %v11066_v59 = vld [vmem:[#allocation2 + $0x1008] sm:$0xff] }
 0x7cf   :  { %11652 = vmatpush1.bf16.msra.mxu1 %v11005_v56  ;;  %12185 = vmatpush1.bf16.msra.mxu0 %v11007_v44  ;;  %v11068_v56 = vld [vmem:[#allocation2 + $0x1018] sm:$0xff]  ;;  %v10477_v44 = vcombine.high %v17553_v27, %v17553_v27 }
 0x7d0   :  { %11653 = vmatprep.subr.bf16.mxu1 %v11010_v22  ;;  %12186 = vmatprep.subr.bf16.mxu0 %v11012_v13  ;;  %v10542_v22 = vpack.c.bf16 %v17543_v34, %v17543_v34  ;;  %v11065_v13 = vld [vmem:[#allocation2 + $0x1000] sm:$0xff] }
 0x7d1   :  { %v11073_v34 = vld [vmem:[#allocation2 + $0x1040] sm:$0xff] }
 0x7d3   :  { %11654 = vmatpush1.bf16.msra.mxu1 %v11009_v50  ;;  %12187 = vmatpush1.bf16.msra.mxu0 %v11011_v30  ;;  %v11067_v50 = vld [vmem:[#allocation2 + $0x1010] sm:$0xff]  ;;  %v11070_v30 = vld [vmem:[#allocation2 + $0x1028] sm:$0xff] }
 0x7d4   :  { %11655 = vmatprep.subr.bf16.mxu1 %v11014_v31  ;;  %12188 = vmatprep.subr.bf16.mxu0 %v11016_v14  ;;  %v11072_v31 = vld [vmem:[#allocation2 + $0x1038] sm:$0xff]  ;;  %v10545_v14 = vpack.c.bf16 %v10477_v44, %v10477_v44  ;;  %v11121_v44 = vld [vmem:[#allocation2 + $0x11c0] sm:$0xff] }
 0x7d7   :  { %11656 = vmatpush1.bf16.msra.mxu1 %v11013_v39  ;;  %12189 = vmatpush1.bf16.msra.mxu0 %v11015_v25  ;;  %v11069_v39 = vld [vmem:[#allocation2 + $0x1020] sm:$0xff]  ;;  %v11071_v25 = vld [vmem:[#allocation2 + $0x1030] sm:$0xff] }
 0x7d8   :  { %11657 = vmatprep.subr.bf16.mxu1 %v11018_v62  ;;  %12190 = vmatprep.subr.bf16.mxu0 %v11020_v45  ;;  %v11074_v62 = vld [vmem:[#allocation2 + $0x1048] sm:$0xff]  ;;  %v11076_v45 = vld [vmem:[#allocation2 + $0x1058] sm:$0xff] }
 0x7db   :  { %11658 = vmatpush1.bf16.msra.mxu1 %v11017_v49  ;;  %12191 = vmatpush1.bf16.msra.mxu0 %v11019_v23  ;;  %v11075_v49 = vld [vmem:[#allocation2 + $0x1050] sm:$0xff]  ;;  %v11078_v23 = vld [vmem:[#allocation2 + $0x1068] sm:$0xff] }
 0x7dc   :  { %11659 = vmatprep.subr.bf16.mxu1 %v11022_v40  ;;  %12192 = vmatprep.subr.bf16.mxu0 %v11024_v12  ;;  %v11080_v40 = vld [vmem:[#allocation2 + $0x1078] sm:$0xff]  ;;  %v11077_v12 = vld [vmem:[#allocation2 + $0x1060] sm:$0xff] }
 0x7df   :  { %11660 = vmatpush1.bf16.msra.mxu1 %v11021_v29  ;;  %12193 = vmatpush1.bf16.msra.mxu0 %v11023_v20  ;;  %v11079_v29 = vld [vmem:[#allocation2 + $0x1070] sm:$0xff]  ;;  %v11082_v20 = vld [vmem:[#allocation2 + $0x1088] sm:$0xff] }
 0x7e0   :  { %11661 = vmatprep.subr.bf16.mxu1 %v11026_v60  ;;  %12194 = vmatprep.subr.bf16.mxu0 %v11028_v47  ;;  %v11084_v60 = vld [vmem:[#allocation2 + $0x1098] sm:$0xff]  ;;  %v11081_v47 = vld [vmem:[#allocation2 + $0x1080] sm:$0xff] }
 0x7e3   :  { %11662 = vmatpush1.bf16.msra.mxu1 %v11025_v48  ;;  %12195 = vmatpush1.bf16.msra.mxu0 %v11027_v32  ;;  %v11083_v48 = vld [vmem:[#allocation2 + $0x1090] sm:$0xff]  ;;  %v11086_v32 = vld [vmem:[#allocation2 + $0x10a8] sm:$0xff] }
 0x7e4   :  { %11663 = vmatprep.subr.bf16.mxu1 %v11030_v18  ;;  %12196 = vmatprep.subr.bf16.mxu0 %v11032_v1  ;;  %v11088_v18 = vld [vmem:[#allocation2 + $0x10b8] sm:$0xff]  ;;  %v11085_v1 = vld [vmem:[#allocation2 + $0x10a0] sm:$0xff] }
 0x7e7   :  { %11664 = vmatpush1.bf16.msra.mxu1 %v11029_v33  ;;  %12197 = vmatpush1.bf16.msra.mxu0 %v11031_v21  ;;  %v11087_v33 = vld [vmem:[#allocation2 + $0x10b0] sm:$0xff]  ;;  %v11090_v21 = vld [vmem:[#allocation2 + $0x10c8] sm:$0xff] }
 0x7e8   :  { %11665 = vmatprep.subr.bf16.mxu1 %v11034_v63  ;;  %12198 = vmatprep.subr.bf16.mxu0 %v11036_v17  ;;  %v11092_v63 = vld [vmem:[#allocation2 + $0x10d8] sm:$0xff]  ;;  %v11089_v17 = vld [vmem:[#allocation2 + $0x10c0] sm:$0xff] }
 0x7eb   :  { %11666 = vmatpush1.bf16.msra.mxu1 %v11033_v6  ;;  %12199 = vmatpush1.bf16.msra.mxu0 %v11035_v11  ;;  %v11091_v6 = vld [vmem:[#allocation2 + $0x10d0] sm:$0xff]  ;;  %v11094_v11 = vld [vmem:[#allocation2 + $0x10e8] sm:$0xff] }
 0x7ec   :  { %11667 = vmatprep.subr.bf16.mxu1 %v11038_v19  ;;  %12200 = vmatprep.subr.bf16.mxu0 %v11040_v57  ;;  %v11096_v19 = vld [vmem:[#allocation2 + $0x10f8] sm:$0xff]  ;;  %v11093_v57 = vld [vmem:[#allocation2 + $0x10e0] sm:$0xff] }
 0x7ef   :  { %11668 = vmatpush1.bf16.msra.mxu1 %v11037_v41  ;;  %12201 = vmatpush1.bf16.msra.mxu0 %v11039_v28  ;;  %v11095_v41 = vld [vmem:[#allocation2 + $0x10f0] sm:$0xff]  ;;  %v11098_v28 = vld [vmem:[#allocation2 + $0x1108] sm:$0xff] }
 0x7f0   :  { %11669 = vmatprep.subr.bf16.mxu1 %v11042_v61  ;;  %12202 = vmatprep.subr.bf16.mxu0 %v11044_v24  ;;  %v11100_v61 = vld [vmem:[#allocation2 + $0x1118] sm:$0xff]  ;;  %v11097_v24 = vld [vmem:[#allocation2 + $0x1100] sm:$0xff] }
 0x7f3   :  { %11670 = vmatpush1.bf16.msra.mxu1 %v11041_v10  ;;  %12203 = vmatpush1.bf16.msra.mxu0 %v11043_v38  ;;  %v11099_v10 = vld [vmem:[#allocation2 + $0x1110] sm:$0xff]  ;;  %v11102_v38 = vld [vmem:[#allocation2 + $0x1128] sm:$0xff] }
 0x7f4   :  { %11671 = vmatprep.subr.bf16.mxu1 %v11046_v58  ;;  %12204 = vmatprep.subr.bf16.mxu0 %v11048_v26  ;;  %v11104_v58 = vld [vmem:[#allocation2 + $0x1138] sm:$0xff]  ;;  %v11101_v26 = vld [vmem:[#allocation2 + $0x1120] sm:$0xff] }
 0x7f7   :  { %11672 = vmatpush1.bf16.msra.mxu1 %v11045_v55  ;;  %12205 = vmatpush1.bf16.msra.mxu0 %v11047_v4  ;;  %v11103_v55 = vld [vmem:[#allocation2 + $0x1130] sm:$0xff]  ;;  %v11106_v4 = vld [vmem:[#allocation2 + $0x1148] sm:$0xff] }
 0x7f8   :  { %11673 = vmatprep.subr.bf16.mxu1 %v11050_v2  ;;  %12206 = vmatprep.subr.bf16.mxu0 %v11052_v8  ;;  %v11108_v2 = vld [vmem:[#allocation2 + $0x1158] sm:$0xff]  ;;  %v11105_v8 = vld [vmem:[#allocation2 + $0x1140] sm:$0xff] }
 0x7fb   :  { %11674 = vmatpush1.bf16.msra.mxu1 %v11049_v15  ;;  %12207 = vmatpush1.bf16.msra.mxu0 %v11051_v42  ;;  %v11107_v15 = vld [vmem:[#allocation2 + $0x1150] sm:$0xff]  ;;  %v11110_v42 = vld [vmem:[#allocation2 + $0x1168] sm:$0xff] }
 0x7fc   :  { %11675 = vmatprep.subr.bf16.mxu1 %v11054_v0  ;;  %12208 = vmatprep.subr.bf16.mxu0 %v11056_v37  ;;  %v11112_v0 = vld [vmem:[#allocation2 + $0x1178] sm:$0xff]  ;;  %v11109_v37 = vld [vmem:[#allocation2 + $0x1160] sm:$0xff] }
 0x7ff   :  { %11676 = vmatpush1.bf16.msra.mxu1 %v11053_v51  ;;  %12209 = vmatpush1.bf16.msra.mxu0 %v11055_v7  ;;  %v11111_v51 = vld [vmem:[#allocation2 + $0x1170] sm:$0xff]  ;;  %v11114_v7 = vld [vmem:[#allocation2 + $0x1188] sm:$0xff] }
 0x800   :  { %11677 = vmatprep.subr.bf16.mxu1 %v11058_v53  ;;  %12210 = vmatprep.subr.bf16.mxu0 %v11060_v16  ;;  %v11116_v53 = vld [vmem:[#allocation2 + $0x1198] sm:$0xff]  ;;  %v11113_v16 = vld [vmem:[#allocation2 + $0x1180] sm:$0xff] }
 0x803   :  { %11678 = vmatpush1.bf16.msra.mxu1 %v11057_v35  ;;  %12211 = vmatpush1.bf16.msra.mxu0 %v11059_v52  ;;  %v11115_v35 = vld [vmem:[#allocation2 + $0x1190] sm:$0xff]  ;;  %v11118_v52 = vld [vmem:[#allocation2 + $0x11a8] sm:$0xff] }
 0x804   :  { %11679 = vmatprep.subr.bf16.mxu1 %v11062_v36  ;;  %12212 = vmatprep.subr.bf16.mxu0 %v11064_v3  ;;  %v11120_v36 = vld [vmem:[#allocation2 + $0x11b8] sm:$0xff]  ;;  %v11117_v3 = vld [vmem:[#allocation2 + $0x11a0] sm:$0xff] }
 0x807   :  { %11680 = vmatpush1.bf16.msra.mxu1 %v11061_v54  ;;  %12213 = vmatpush1.bf16.msra.mxu0 %v11063_v46  ;;  %v11119_v54 = vld [vmem:[#allocation2 + $0x11b0] sm:$0xff]  ;;  %v11122_v46 = vld [vmem:[#allocation2 + $0x11c8] sm:$0xff] }
 0x808   :  { %11690 = vmatprep.subr.bf16.mxu1 %v11066_v59  ;;  %12223 = vmatprep.subr.bf16.mxu0 %v11068_v56  ;;  %v11124_v59 = vld [vmem:[#allocation2 + $0x11d8] sm:$0xff]  ;;  %v10462_v56 = vcombine.high %v17549_v5, %v17549_v5 }
 0x80a   :  { %11682 = vmatmul.mubr.bf16.vlgmr.msra.gmra.mrb[188].mxu1 %v10542_v22  ;;  %12215 = vmatmul.mubr.bf16.vlgmr.msra.gmra.mrb[224].mxu0 %v10542_v22  ;;  %v11123_v22 = vld [vmem:[#allocation2 + $0x11d0] sm:$0xff] }
 0x80b   :  { %11691 = vmatpush1.bf16.msra.mxu1 %v11065_v13  ;;  %12224 = vmatpush1.bf16.msra.mxu0 %v11067_v50  ;;  %v11126_v13 = vld [vmem:[#allocation2 + $0x11e8] sm:$0xff]  ;;  %v11128_v50 = vld [vmem:[#allocation2 + $0x11f8] sm:$0xff] }
 0x80c   :  { %11692 = vmatprep.subr.bf16.mxu1 %v11070_v30  ;;  %12225 = vmatprep.subr.bf16.mxu0 %v11072_v31  ;;  %v17562_v30 = vrot.slane %v10462_v56, %v17473_v9  ;;  %v11125_v31 = vld [vmem:[#allocation2 + $0x11e0] sm:$0xff]  ;;  %v11179_v56 = vld [vmem:[#allocation2 + $0x1390] sm:$0xff] }
 0x80d   :  { %11722 = vmatprep.mubr.bf16.mxu1 %v10545_v14  ;;  %12255 = vmatprep.mubr.bf16.mxu0 %v10545_v14  ;;  %v11127_v14 = vld [vmem:[#allocation2 + $0x11f0] sm:$0xff] }
 0x80e   :  { %v10478_v5 = vcombine.high %v17562_v30, %v17562_v30 }
 0x80f   :  { %11693 = vmatpush1.bf16.msra.mxu1 %v11069_v39  ;;  %12226 = vmatpush1.bf16.msra.mxu0 %v11071_v25  ;;  %v11130_v39 = vld [vmem:[#allocation2 + $0x1208] sm:$0xff]  ;;  %v11132_v25 = vld [vmem:[#allocation2 + $0x1218] sm:$0xff] }
 0x810   :  { %11694 = vmatprep.subr.bf16.mxu1 %v11074_v62  ;;  %12227 = vmatprep.subr.bf16.mxu0 %v11076_v45  ;;  %v10544_v62 = vpack.c.bf16 %v17553_v27, %v17553_v27  ;;  %v11129_v45 = vld [vmem:[#allocation2 + $0x1200] sm:$0xff] }
 0x811   :  { %v11137_v27 = vld [vmem:[#allocation2 + $0x1240] sm:$0xff] }
 0x813   :  { %11695 = vmatpush1.bf16.msra.mxu1 %v11073_v34  ;;  %12228 = vmatpush1.bf16.msra.mxu0 %v11075_v49  ;;  %v11131_v34 = vld [vmem:[#allocation2 + $0x1210] sm:$0xff]  ;;  %v11134_v49 = vld [vmem:[#allocation2 + $0x1228] sm:$0xff] }
 0x814   :  { %11696 = vmatprep.subr.bf16.mxu1 %v11078_v23  ;;  %12229 = vmatprep.subr.bf16.mxu0 %v11080_v40  ;;  %v11136_v23 = vld [vmem:[#allocation2 + $0x1238] sm:$0xff]  ;;  %v10547_v40 = vpack.c.bf16 %v10478_v5, %v10478_v5  ;;  %v11187_v5 = vld [vmem:[#allocation2 + $0x13d0] sm:$0xff] }
 0x817   :  { %11697 = vmatpush1.bf16.msra.mxu1 %v11077_v12  ;;  %12230 = vmatpush1.bf16.msra.mxu0 %v11079_v29  ;;  %v11133_v12 = vld [vmem:[#allocation2 + $0x1220] sm:$0xff]  ;;  %v11135_v29 = vld [vmem:[#allocation2 + $0x1230] sm:$0xff] }
 0x818   :  { %11698 = vmatprep.subr.bf16.mxu1 %v11082_v20  ;;  %12231 = vmatprep.subr.bf16.mxu0 %v11084_v60  ;;  %v11138_v20 = vld [vmem:[#allocation2 + $0x1248] sm:$0xff]  ;;  %v11140_v60 = vld [vmem:[#allocation2 + $0x1258] sm:$0xff] }
 0x81b   :  { %11699 = vmatpush1.bf16.msra.mxu1 %v11081_v47  ;;  %12232 = vmatpush1.bf16.msra.mxu0 %v11083_v48  ;;  %v11139_v47 = vld [vmem:[#allocation2 + $0x1250] sm:$0xff]  ;;  %v11142_v48 = vld [vmem:[#allocation2 + $0x1268] sm:$0xff] }
 0x81c   :  { %11700 = vmatprep.subr.bf16.mxu1 %v11086_v32  ;;  %12233 = vmatprep.subr.bf16.mxu0 %v11088_v18  ;;  %v11144_v32 = vld [vmem:[#allocation2 + $0x1278] sm:$0xff]  ;;  %v11141_v18 = vld [vmem:[#allocation2 + $0x1260] sm:$0xff] }
 0x81f   :  { %11701 = vmatpush1.bf16.msra.mxu1 %v11085_v1  ;;  %12234 = vmatpush1.bf16.msra.mxu0 %v11087_v33  ;;  %v11143_v1 = vld [vmem:[#allocation2 + $0x1270] sm:$0xff]  ;;  %v11146_v33 = vld [vmem:[#allocation2 + $0x1288] sm:$0xff] }
 0x820   :  { %11702 = vmatprep.subr.bf16.mxu1 %v11090_v21  ;;  %12235 = vmatprep.subr.bf16.mxu0 %v11092_v63  ;;  %v11148_v21 = vld [vmem:[#allocation2 + $0x1298] sm:$0xff]  ;;  %v11145_v63 = vld [vmem:[#allocation2 + $0x1280] sm:$0xff] }
 0x823   :  { %11703 = vmatpush1.bf16.msra.mxu1 %v11089_v17  ;;  %12236 = vmatpush1.bf16.msra.mxu0 %v11091_v6  ;;  %v11147_v17 = vld [vmem:[#allocation2 + $0x1290] sm:$0xff]  ;;  %v11150_v6 = vld [vmem:[#allocation2 + $0x12a8] sm:$0xff] }
 0x824   :  { %11704 = vmatprep.subr.bf16.mxu1 %v11094_v11  ;;  %12237 = vmatprep.subr.bf16.mxu0 %v11096_v19  ;;  %v11152_v11 = vld [vmem:[#allocation2 + $0x12b8] sm:$0xff]  ;;  %v11149_v19 = vld [vmem:[#allocation2 + $0x12a0] sm:$0xff] }
 0x827   :  { %11705 = vmatpush1.bf16.msra.mxu1 %v11093_v57  ;;  %12238 = vmatpush1.bf16.msra.mxu0 %v11095_v41  ;;  %v11151_v57 = vld [vmem:[#allocation2 + $0x12b0] sm:$0xff]  ;;  %v11154_v41 = vld [vmem:[#allocation2 + $0x12c8] sm:$0xff] }
 0x828   :  { %11706 = vmatprep.subr.bf16.mxu1 %v11098_v28  ;;  %12239 = vmatprep.subr.bf16.mxu0 %v11100_v61  ;;  %v11156_v28 = vld [vmem:[#allocation2 + $0x12d8] sm:$0xff]  ;;  %v11153_v61 = vld [vmem:[#allocation2 + $0x12c0] sm:$0xff] }
 0x82b   :  { %11707 = vmatpush1.bf16.msra.mxu1 %v11097_v24  ;;  %12240 = vmatpush1.bf16.msra.mxu0 %v11099_v10  ;;  %v11155_v24 = vld [vmem:[#allocation2 + $0x12d0] sm:$0xff]  ;;  %v11158_v10 = vld [vmem:[#allocation2 + $0x12e8] sm:$0xff] }
 0x82c   :  { %11708 = vmatprep.subr.bf16.mxu1 %v11102_v38  ;;  %12241 = vmatprep.subr.bf16.mxu0 %v11104_v58  ;;  %v11160_v38 = vld [vmem:[#allocation2 + $0x12f8] sm:$0xff]  ;;  %v11157_v58 = vld [vmem:[#allocation2 + $0x12e0] sm:$0xff] }
 0x82f   :  { %11709 = vmatpush1.bf16.msra.mxu1 %v11101_v26  ;;  %12242 = vmatpush1.bf16.msra.mxu0 %v11103_v55  ;;  %v11159_v26 = vld [vmem:[#allocation2 + $0x12f0] sm:$0xff]  ;;  %v11162_v55 = vld [vmem:[#allocation2 + $0x1308] sm:$0xff] }
 0x830   :  { %11710 = vmatprep.subr.bf16.mxu1 %v11106_v4  ;;  %12243 = vmatprep.subr.bf16.mxu0 %v11108_v2  ;;  %v11164_v4 = vld [vmem:[#allocation2 + $0x1318] sm:$0xff]  ;;  %v11161_v2 = vld [vmem:[#allocation2 + $0x1300] sm:$0xff] }
 0x833   :  { %11711 = vmatpush1.bf16.msra.mxu1 %v11105_v8  ;;  %12244 = vmatpush1.bf16.msra.mxu0 %v11107_v15  ;;  %v11163_v8 = vld [vmem:[#allocation2 + $0x1310] sm:$0xff]  ;;  %v11166_v15 = vld [vmem:[#allocation2 + $0x1328] sm:$0xff] }
 0x834   :  { %11712 = vmatprep.subr.bf16.mxu1 %v11110_v42  ;;  %12245 = vmatprep.subr.bf16.mxu0 %v11112_v0  ;;  %v11168_v42 = vld [vmem:[#allocation2 + $0x1338] sm:$0xff]  ;;  %v11165_v0 = vld [vmem:[#allocation2 + $0x1320] sm:$0xff] }
 0x837   :  { %11713 = vmatpush1.bf16.msra.mxu1 %v11109_v37  ;;  %12246 = vmatpush1.bf16.msra.mxu0 %v11111_v51  ;;  %v11167_v37 = vld [vmem:[#allocation2 + $0x1330] sm:$0xff]  ;;  %v11170_v51 = vld [vmem:[#allocation2 + $0x1348] sm:$0xff] }
 0x838   :  { %11714 = vmatprep.subr.bf16.mxu1 %v11114_v7  ;;  %12247 = vmatprep.subr.bf16.mxu0 %v11116_v53  ;;  %v11172_v7 = vld [vmem:[#allocation2 + $0x1358] sm:$0xff]  ;;  %v11169_v53 = vld [vmem:[#allocation2 + $0x1340] sm:$0xff] }
 0x83b   :  { %11715 = vmatpush1.bf16.msra.mxu1 %v11113_v16  ;;  %12248 = vmatpush1.bf16.msra.mxu0 %v11115_v35  ;;  %v11171_v16 = vld [vmem:[#allocation2 + $0x1350] sm:$0xff]  ;;  %v11174_v35 = vld [vmem:[#allocation2 + $0x1368] sm:$0xff] }
 0x83c   :  { %11716 = vmatprep.subr.bf16.mxu1 %v11118_v52  ;;  %12249 = vmatprep.subr.bf16.mxu0 %v11120_v36  ;;  %v11176_v52 = vld [vmem:[#allocation2 + $0x1378] sm:$0xff]  ;;  %v11173_v36 = vld [vmem:[#allocation2 + $0x1360] sm:$0xff] }
 0x83f   :  { %11717 = vmatpush1.bf16.msra.mxu1 %v11117_v3  ;;  %12250 = vmatpush1.bf16.msra.mxu0 %v11119_v54  ;;  %v11175_v3 = vld [vmem:[#allocation2 + $0x1370] sm:$0xff]  ;;  %v11178_v54 = vld [vmem:[#allocation2 + $0x1388] sm:$0xff] }
 0x840   :  { %11718 = vmatprep.subr.bf16.mxu1 %v11122_v46  ;;  %12251 = vmatprep.subr.bf16.mxu0 %v11124_v59  ;;  %v11180_v46 = vld [vmem:[#allocation2 + $0x1398] sm:$0xff]  ;;  %v11177_v59 = vld [vmem:[#allocation2 + $0x1380] sm:$0xff] }
 0x843   :  { %11719 = vmatpush1.bf16.msra.mxu1 %v11121_v44  ;;  %12252 = vmatpush1.bf16.msra.mxu0 %v11123_v22  ;;  %v11182_v44 = vld [vmem:[#allocation2 + $0x13a8] sm:$0xff]  ;;  %v11184_v22 = vld [vmem:[#allocation2 + $0x13b8] sm:$0xff] }
 0x844   :  { %11720 = vmatprep.subr.bf16.mxu1 %v11126_v13  ;;  %12253 = vmatprep.subr.bf16.mxu0 %v11128_v50  ;;  %v11181_v13 = vld [vmem:[#allocation2 + $0x13a0] sm:$0xff]  ;;  %v11183_v50 = vld [vmem:[#allocation2 + $0x13b0] sm:$0xff] }
 0x847   :  { %11721 = vmatpush1.bf16.msra.mxu1 %v11125_v31  ;;  %12254 = vmatpush1.bf16.msra.mxu0 %v11127_v14  ;;  %v11186_v31 = vld [vmem:[#allocation2 + $0x13c8] sm:$0xff]  ;;  %v11188_v14 = vld [vmem:[#allocation2 + $0x13d8] sm:$0xff] }
 0x848   :  { %11731 = vmatprep.subr.bf16.mxu1 %v11130_v39  ;;  %12264 = vmatprep.subr.bf16.mxu0 %v11132_v25  ;;  %v17568_v39 = vld [vmem:[#allocation5 + $0x28] sm:$0xff]  ;;  %v11185_v25 = vld [vmem:[#allocation2 + $0x13c0] sm:$0xff] }
 0x84a   :  { %11723 = vmatmul.mubr.bf16.vlgmr.msra.gmra.mrb[188].mxu1 %v10544_v62  ;;  %12256 = vmatmul.mubr.bf16.vlgmr.msra.gmra.mrb[224].mxu0 %v10544_v62  ;;  %v11190_v62 = vld [vmem:[#allocation2 + $0x13e8] sm:$0xff] }
 0x84b   :  { %11732 = vmatpush1.bf16.msra.mxu1 %v11129_v45  ;;  %12265 = vmatpush1.bf16.msra.mxu0 %v11131_v34  ;;  %v11192_v45 = vld [vmem:[#allocation2 + $0x13f8] sm:$0xff]  ;;  %v17572_v34 = vrot.slane %v17568_v39, %v17473_v9 }
 0x84c   :  { %11733 = vmatprep.subr.bf16.mxu1 %v11134_v49  ;;  %12266 = vmatprep.subr.bf16.mxu0 %v11136_v23  ;;  %v11189_v49 = vld [vmem:[#allocation2 + $0x13e0] sm:$0xff]  ;;  %v11191_v23 = vld [vmem:[#allocation2 + $0x13f0] sm:$0xff] }
 0x84d   :  { %11763 = vmatprep.mubr.bf16.mxu1 %v10547_v40  ;;  %12296 = vmatprep.mubr.bf16.mxu0 %v10547_v40  ;;  %v11194_v40 = vld [vmem:[#allocation2 + $0x1408] sm:$0xff] }
 0x84f   :  { %11734 = vmatpush1.bf16.msra.mxu1 %v11133_v12  ;;  %12267 = vmatpush1.bf16.msra.mxu0 %v11135_v29  ;;  %v11196_v12 = vld [vmem:[#allocation2 + $0x1418] sm:$0xff]  ;;  %v10494_v29 = vcombine.high %v17572_v34, %v17572_v34 }
 0x850   :  { %11735 = vmatprep.subr.bf16.mxu1 %v11138_v20  ;;  %12268 = vmatprep.subr.bf16.mxu0 %v11140_v60  ;;  %v10546_v20 = vpack.c.bf16 %v17562_v30, %v17562_v30  ;;  %v11193_v60 = vld [vmem:[#allocation2 + $0x1400] sm:$0xff] }
 0x851   :  { %v11201_v30 = vld [vmem:[#allocation2 + $0x1440] sm:$0xff] }
 0x853   :  { %11736 = vmatpush1.bf16.msra.mxu1 %v11137_v27  ;;  %12269 = vmatpush1.bf16.msra.mxu0 %v11139_v47  ;;  %v11195_v27 = vld [vmem:[#allocation2 + $0x1410] sm:$0xff]  ;;  %v11198_v47 = vld [vmem:[#allocation2 + $0x1428] sm:$0xff] }
 0x854   :  { %11737 = vmatprep.subr.bf16.mxu1 %v11142_v48  ;;  %12270 = vmatprep.subr.bf16.mxu0 %v11144_v32  ;;  %v11200_v48 = vld [vmem:[#allocation2 + $0x1438] sm:$0xff]  ;;  %v10549_v32 = vpack.c.bf16 %v10494_v29, %v10494_v29  ;;  %v11249_v29 = vld [vmem:[#allocation2 + $0x15c0] sm:$0xff] }
 0x857   :  { %11738 = vmatpush1.bf16.msra.mxu1 %v11141_v18  ;;  %12271 = vmatpush1.bf16.msra.mxu0 %v11143_v1  ;;  %v11197_v18 = vld [vmem:[#allocation2 + $0x1420] sm:$0xff]  ;;  %v11199_v1 = vld [vmem:[#allocation2 + $0x1430] sm:$0xff] }
 0x858   :  { %11739 = vmatprep.subr.bf16.mxu1 %v11146_v33  ;;  %12272 = vmatprep.subr.bf16.mxu0 %v11148_v21  ;;  %v11202_v33 = vld [vmem:[#allocation2 + $0x1448] sm:$0xff]  ;;  %v11204_v21 = vld [vmem:[#allocation2 + $0x1458] sm:$0xff] }
 0x85b   :  { %11740 = vmatpush1.bf16.msra.mxu1 %v11145_v63  ;;  %12273 = vmatpush1.bf16.msra.mxu0 %v11147_v17  ;;  %v11203_v63 = vld [vmem:[#allocation2 + $0x1450] sm:$0xff]  ;;  %v11206_v17 = vld [vmem:[#allocation2 + $0x1468] sm:$0xff] }
 0x85c   :  { %11741 = vmatprep.subr.bf16.mxu1 %v11150_v6  ;;  %12274 = vmatprep.subr.bf16.mxu0 %v11152_v11  ;;  %v11208_v6 = vld [vmem:[#allocation2 + $0x1478] sm:$0xff]  ;;  %v11205_v11 = vld [vmem:[#allocation2 + $0x1460] sm:$0xff] }
 0x85f   :  { %11742 = vmatpush1.bf16.msra.mxu1 %v11149_v19  ;;  %12275 = vmatpush1.bf16.msra.mxu0 %v11151_v57  ;;  %v11207_v19 = vld [vmem:[#allocation2 + $0x1470] sm:$0xff]  ;;  %v11210_v57 = vld [vmem:[#allocation2 + $0x1488] sm:$0xff] }
 0x860   :  { %11743 = vmatprep.subr.bf16.mxu1 %v11154_v41  ;;  %12276 = vmatprep.subr.bf16.mxu0 %v11156_v28  ;;  %v11212_v41 = vld [vmem:[#allocation2 + $0x1498] sm:$0xff]  ;;  %v11209_v28 = vld [vmem:[#allocation2 + $0x1480] sm:$0xff] }
 0x863   :  { %11744 = vmatpush1.bf16.msra.mxu1 %v11153_v61  ;;  %12277 = vmatpush1.bf16.msra.mxu0 %v11155_v24  ;;  %v11211_v61 = vld [vmem:[#allocation2 + $0x1490] sm:$0xff]  ;;  %v11214_v24 = vld [vmem:[#allocation2 + $0x14a8] sm:$0xff] }
 0x864   :  { %11745 = vmatprep.subr.bf16.mxu1 %v11158_v10  ;;  %12278 = vmatprep.subr.bf16.mxu0 %v11160_v38  ;;  %v11216_v10 = vld [vmem:[#allocation2 + $0x14b8] sm:$0xff]  ;;  %v11213_v38 = vld [vmem:[#allocation2 + $0x14a0] sm:$0xff] }
 0x867   :  { %11746 = vmatpush1.bf16.msra.mxu1 %v11157_v58  ;;  %12279 = vmatpush1.bf16.msra.mxu0 %v11159_v26  ;;  %v11215_v58 = vld [vmem:[#allocation2 + $0x14b0] sm:$0xff]  ;;  %v11218_v26 = vld [vmem:[#allocation2 + $0x14c8] sm:$0xff] }
 0x868   :  { %11747 = vmatprep.subr.bf16.mxu1 %v11162_v55  ;;  %12280 = vmatprep.subr.bf16.mxu0 %v11164_v4  ;;  %v11220_v55 = vld [vmem:[#allocation2 + $0x14d8] sm:$0xff]  ;;  %v11217_v4 = vld [vmem:[#allocation2 + $0x14c0] sm:$0xff] }
 0x86b   :  { %11748 = vmatpush1.bf16.msra.mxu1 %v11161_v2  ;;  %12281 = vmatpush1.bf16.msra.mxu0 %v11163_v8  ;;  %v11219_v2 = vld [vmem:[#allocation2 + $0x14d0] sm:$0xff]  ;;  %v11222_v8 = vld [vmem:[#allocation2 + $0x14e8] sm:$0xff] }
 0x86c   :  { %11749 = vmatprep.subr.bf16.mxu1 %v11166_v15  ;;  %12282 = vmatprep.subr.bf16.mxu0 %v11168_v42  ;;  %v11224_v15 = vld [vmem:[#allocation2 + $0x14f8] sm:$0xff]  ;;  %v11221_v42 = vld [vmem:[#allocation2 + $0x14e0] sm:$0xff] }
 0x86f   :  { %11750 = vmatpush1.bf16.msra.mxu1 %v11165_v0  ;;  %12283 = vmatpush1.bf16.msra.mxu0 %v11167_v37  ;;  %v11223_v0 = vld [vmem:[#allocation2 + $0x14f0] sm:$0xff]  ;;  %v11226_v37 = vld [vmem:[#allocation2 + $0x1508] sm:$0xff] }
 0x870   :  { %11751 = vmatprep.subr.bf16.mxu1 %v11170_v51  ;;  %12284 = vmatprep.subr.bf16.mxu0 %v11172_v7  ;;  %v11228_v51 = vld [vmem:[#allocation2 + $0x1518] sm:$0xff]  ;;  %v11225_v7 = vld [vmem:[#allocation2 + $0x1500] sm:$0xff] }
 0x873   :  { %11752 = vmatpush1.bf16.msra.mxu1 %v11169_v53  ;;  %12285 = vmatpush1.bf16.msra.mxu0 %v11171_v16  ;;  %v11227_v53 = vld [vmem:[#allocation2 + $0x1510] sm:$0xff]  ;;  %v11230_v16 = vld [vmem:[#allocation2 + $0x1528] sm:$0xff] }
 0x874   :  { %11753 = vmatprep.subr.bf16.mxu1 %v11174_v35  ;;  %12286 = vmatprep.subr.bf16.mxu0 %v11176_v52  ;;  %v11232_v35 = vld [vmem:[#allocation2 + $0x1538] sm:$0xff]  ;;  %v11229_v52 = vld [vmem:[#allocation2 + $0x1520] sm:$0xff] }
 0x877   :  { %11754 = vmatpush1.bf16.msra.mxu1 %v11173_v36  ;;  %12287 = vmatpush1.bf16.msra.mxu0 %v11175_v3  ;;  %v11231_v36 = vld [vmem:[#allocation2 + $0x1530] sm:$0xff]  ;;  %v11234_v3 = vld [vmem:[#allocation2 + $0x1548] sm:$0xff] }
 0x878   :  { %11755 = vmatprep.subr.bf16.mxu1 %v11178_v54  ;;  %12288 = vmatprep.subr.bf16.mxu0 %v11180_v46  ;;  %v11236_v54 = vld [vmem:[#allocation2 + $0x1558] sm:$0xff]  ;;  %v11233_v46 = vld [vmem:[#allocation2 + $0x1540] sm:$0xff] }
 0x87b   :  { %11756 = vmatpush1.bf16.msra.mxu1 %v11177_v59  ;;  %12289 = vmatpush1.bf16.msra.mxu0 %v11179_v56  ;;  %v11235_v59 = vld [vmem:[#allocation2 + $0x1550] sm:$0xff]  ;;  %v11238_v56 = vld [vmem:[#allocation2 + $0x1568] sm:$0xff] }
 0x87c   :  { %11757 = vmatprep.subr.bf16.mxu1 %v11182_v44  ;;  %12290 = vmatprep.subr.bf16.mxu0 %v11184_v22  ;;  %v11240_v44 = vld [vmem:[#allocation2 + $0x1578] sm:$0xff]  ;;  %v11237_v22 = vld [vmem:[#allocation2 + $0x1560] sm:$0xff] }
 0x87f   :  { %11758 = vmatpush1.bf16.msra.mxu1 %v11181_v13  ;;  %12291 = vmatpush1.bf16.msra.mxu0 %v11183_v50  ;;  %v11239_v13 = vld [vmem:[#allocation2 + $0x1570] sm:$0xff]  ;;  %v11242_v50 = vld [vmem:[#allocation2 + $0x1588] sm:$0xff] }
 0x880   :  { %11759 = vmatprep.subr.bf16.mxu1 %v11186_v31  ;;  %12292 = vmatprep.subr.bf16.mxu0 %v11188_v14  ;;  %v11244_v31 = vld [vmem:[#allocation2 + $0x1598] sm:$0xff]  ;;  %v11241_v14 = vld [vmem:[#allocation2 + $0x1580] sm:$0xff] }
 0x883   :  { %11760 = vmatpush1.bf16.msra.mxu1 %v11185_v25  ;;  %12293 = vmatpush1.bf16.msra.mxu0 %v11187_v5  ;;  %v11243_v25 = vld [vmem:[#allocation2 + $0x1590] sm:$0xff]  ;;  %v11246_v5 = vld [vmem:[#allocation2 + $0x15a8] sm:$0xff] }
 0x884   :  { %11761 = vmatprep.subr.bf16.mxu1 %v11190_v62  ;;  %12294 = vmatprep.subr.bf16.mxu0 %v11192_v45  ;;  %v11248_v62 = vld [vmem:[#allocation2 + $0x15b8] sm:$0xff]  ;;  %v11245_v45 = vld [vmem:[#allocation2 + $0x15a0] sm:$0xff] }
 0x887   :  { %11762 = vmatpush1.bf16.msra.mxu1 %v11189_v49  ;;  %12295 = vmatpush1.bf16.msra.mxu0 %v11191_v23  ;;  %v11247_v49 = vld [vmem:[#allocation2 + $0x15b0] sm:$0xff]  ;;  %v11250_v23 = vld [vmem:[#allocation2 + $0x15c8] sm:$0xff] }
 0x888   :  { %11772 = vmatprep.subr.bf16.mxu1 %v11194_v40  ;;  %12305 = vmatprep.subr.bf16.mxu0 %v11196_v12  ;;  %v11252_v40 = vld [vmem:[#allocation2 + $0x15d8] sm:$0xff]  ;;  %v10479_v12 = vcombine.high %v17568_v39, %v17568_v39 }
 0x88a   :  { %11764 = vmatmul.mubr.bf16.vlgmr.msra.gmra.mrb[188].mxu1 %v10546_v20  ;;  %12297 = vmatmul.mubr.bf16.vlgmr.msra.gmra.mrb[224].mxu0 %v10546_v20  ;;  %v11251_v20 = vld [vmem:[#allocation2 + $0x15d0] sm:$0xff] }
 0x88b   :  { %11773 = vmatpush1.bf16.msra.mxu1 %v11193_v60  ;;  %12306 = vmatpush1.bf16.msra.mxu0 %v11195_v27  ;;  %v11254_v60 = vld [vmem:[#allocation2 + $0x15e8] sm:$0xff]  ;;  %v11256_v27 = vld [vmem:[#allocation2 + $0x15f8] sm:$0xff] }
 0x88c   :  { %11774 = vmatprep.subr.bf16.mxu1 %v11198_v47  ;;  %12307 = vmatprep.subr.bf16.mxu0 %v11200_v48  ;;  %v17581_v47 = vrot.slane %v10479_v12, %v17473_v9  ;;  %v11253_v48 = vld [vmem:[#allocation2 + $0x15e0] sm:$0xff]  ;;  %v11310_v12 = vld [vmem:[#allocation2 + $0x17a8] sm:$0xff] }
 0x88d   :  { %11804 = vmatprep.mubr.bf16.mxu1 %v10549_v32  ;;  %12337 = vmatprep.mubr.bf16.mxu0 %v10549_v32  ;;  %v11255_v32 = vld [vmem:[#allocation2 + $0x15f0] sm:$0xff]  ;;  %v11257_v9 = vld [vmem:[#allocation2 + $0x1600] sm:$0xff] }
 0x88e   :  { %v10495_v39 = vcombine.high %v17581_v47, %v17581_v47 }
 0x88f   :  { %11775 = vmatpush1.bf16.msra.mxu1 %v11197_v18  ;;  %12308 = vmatpush1.bf16.msra.mxu0 %v11199_v1  ;;  %v11258_v18 = vld [vmem:[#allocation2 + $0x1608] sm:$0xff]  ;;  %v11260_v1 = vld [vmem:[#allocation2 + $0x1618] sm:$0xff] }
 0x890   :  { %11776 = vmatprep.subr.bf16.mxu1 %v11202_v33  ;;  %12309 = vmatprep.subr.bf16.mxu0 %v11204_v21  ;;  %v10548_v33 = vpack.c.bf16 %v17572_v34, %v17572_v34  ;;  %v11259_v21 = vld [vmem:[#allocation2 + $0x1610] sm:$0xff]  ;;  %v11265_v34 = vld [vmem:[#allocation2 + $0x1640] sm:$0xff] }
 0x893   :  { %11777 = vmatpush1.bf16.msra.mxu1 %v11201_v30  ;;  %12310 = vmatpush1.bf16.msra.mxu0 %v11203_v63  ;;  %v11262_v30 = vld [vmem:[#allocation2 + $0x1628] sm:$0xff]  ;;  %v11264_v63 = vld [vmem:[#allocation2 + $0x1638] sm:$0xff] }
 0x894   :  { %11778 = vmatprep.subr.bf16.mxu1 %v11206_v17  ;;  %12311 = vmatprep.subr.bf16.mxu0 %v11208_v6  ;;  %v10551_v17 = vpack.c.bf16 %v10495_v39, %v10495_v39  ;;  %v11261_v6 = vld [vmem:[#allocation2 + $0x1620] sm:$0xff]  ;;  %v11320_v39 = vld [vmem:[#allocation2 + $0x17f8] sm:$0xff] }
 0x897   :  { %11779 = vmatpush1.bf16.msra.mxu1 %v11205_v11  ;;  %12312 = vmatpush1.bf16.msra.mxu0 %v11207_v19  ;;  %v11263_v11 = vld [vmem:[#allocation2 + $0x1630] sm:$0xff]  ;;  %v11266_v19 = vld [vmem:[#allocation2 + $0x1648] sm:$0xff] }
 0x898   :  { %11780 = vmatprep.subr.bf16.mxu1 %v11210_v57  ;;  %12313 = vmatprep.subr.bf16.mxu0 %v11212_v41  ;;  %v11268_v57 = vld [vmem:[#allocation2 + $0x1658] sm:$0xff]  ;;  %v11267_v41 = vld [vmem:[#allocation2 + $0x1650] sm:$0xff] }
 0x89b   :  { %11781 = vmatpush1.bf16.msra.mxu1 %v11209_v28  ;;  %12314 = vmatpush1.bf16.msra.mxu0 %v11211_v61  ;;  %v11270_v28 = vld [vmem:[#allocation2 + $0x1668] sm:$0xff]  ;;  %v11272_v61 = vld [vmem:[#allocation2 + $0x1678] sm:$0xff] }
 0x89c   :  { %11782 = vmatprep.subr.bf16.mxu1 %v11214_v24  ;;  %12315 = vmatprep.subr.bf16.mxu0 %v11216_v10  ;;  %v11269_v24 = vld [vmem:[#allocation2 + $0x1660] sm:$0xff]  ;;  %v11271_v10 = vld [vmem:[#allocation2 + $0x1670] sm:$0xff] }
 0x89f   :  { %11783 = vmatpush1.bf16.msra.mxu1 %v11213_v38  ;;  %12316 = vmatpush1.bf16.msra.mxu0 %v11215_v58  ;;  %v11274_v38 = vld [vmem:[#allocation2 + $0x1688] sm:$0xff]  ;;  %v11276_v58 = vld [vmem:[#allocation2 + $0x1698] sm:$0xff] }
 0x8a0   :  { %11784 = vmatprep.subr.bf16.mxu1 %v11218_v26  ;;  %12317 = vmatprep.subr.bf16.mxu0 %v11220_v55  ;;  %v11273_v26 = vld [vmem:[#allocation2 + $0x1680] sm:$0xff]  ;;  %v11275_v55 = vld [vmem:[#allocation2 + $0x1690] sm:$0xff] }
 0x8a3   :  { %11785 = vmatpush1.bf16.msra.mxu1 %v11217_v4  ;;  %12318 = vmatpush1.bf16.msra.mxu0 %v11219_v2  ;;  %v11278_v4 = vld [vmem:[#allocation2 + $0x16a8] sm:$0xff]  ;;  %v11280_v2 = vld [vmem:[#allocation2 + $0x16b8] sm:$0xff] }
 0x8a4   :  { %11786 = vmatprep.subr.bf16.mxu1 %v11222_v8  ;;  %12319 = vmatprep.subr.bf16.mxu0 %v11224_v15  ;;  %v11277_v8 = vld [vmem:[#allocation2 + $0x16a0] sm:$0xff]  ;;  %v11279_v15 = vld [vmem:[#allocation2 + $0x16b0] sm:$0xff] }
 0x8a7   :  { %11787 = vmatpush1.bf16.msra.mxu1 %v11221_v42  ;;  %12320 = vmatpush1.bf16.msra.mxu0 %v11223_v0  ;;  %v11282_v42 = vld [vmem:[#allocation2 + $0x16c8] sm:$0xff]  ;;  %v11284_v0 = vld [vmem:[#allocation2 + $0x16d8] sm:$0xff] }
 0x8a8   :  { %11788 = vmatprep.subr.bf16.mxu1 %v11226_v37  ;;  %12321 = vmatprep.subr.bf16.mxu0 %v11228_v51  ;;  %v11281_v37 = vld [vmem:[#allocation2 + $0x16c0] sm:$0xff]  ;;  %v11283_v51 = vld [vmem:[#allocation2 + $0x16d0] sm:$0xff] }
 0x8ab   :  { %11789 = vmatpush1.bf16.msra.mxu1 %v11225_v7  ;;  %12322 = vmatpush1.bf16.msra.mxu0 %v11227_v53  ;;  %v11286_v7 = vld [vmem:[#allocation2 + $0x16e8] sm:$0xff]  ;;  %v11288_v53 = vld [vmem:[#allocation2 + $0x16f8] sm:$0xff] }
 0x8ac   :  { %11790 = vmatprep.subr.bf16.mxu1 %v11230_v16  ;;  %12323 = vmatprep.subr.bf16.mxu0 %v11232_v35  ;;  %v11285_v16 = vld [vmem:[#allocation2 + $0x16e0] sm:$0xff]  ;;  %v11287_v35 = vld [vmem:[#allocation2 + $0x16f0] sm:$0xff] }
 0x8af   :  { %11791 = vmatpush1.bf16.msra.mxu1 %v11229_v52  ;;  %12324 = vmatpush1.bf16.msra.mxu0 %v11231_v36  ;;  %v11290_v52 = vld [vmem:[#allocation2 + $0x1708] sm:$0xff]  ;;  %v11292_v36 = vld [vmem:[#allocation2 + $0x1718] sm:$0xff] }
 0x8b0   :  { %11792 = vmatprep.subr.bf16.mxu1 %v11234_v3  ;;  %12325 = vmatprep.subr.bf16.mxu0 %v11236_v54  ;;  %v11289_v3 = vld [vmem:[#allocation2 + $0x1700] sm:$0xff]  ;;  %v11291_v54 = vld [vmem:[#allocation2 + $0x1710] sm:$0xff] }
 0x8b3   :  { %11793 = vmatpush1.bf16.msra.mxu1 %v11233_v46  ;;  %12326 = vmatpush1.bf16.msra.mxu0 %v11235_v59  ;;  %v11294_v46 = vld [vmem:[#allocation2 + $0x1728] sm:$0xff]  ;;  %v11296_v59 = vld [vmem:[#allocation2 + $0x1738] sm:$0xff] }
 0x8b4   :  { %11794 = vmatprep.subr.bf16.mxu1 %v11238_v56  ;;  %12327 = vmatprep.subr.bf16.mxu0 %v11240_v44  ;;  %v11293_v56 = vld [vmem:[#allocation2 + $0x1720] sm:$0xff]  ;;  %v11295_v44 = vld [vmem:[#allocation2 + $0x1730] sm:$0xff] }
 0x8b7   :  { %11795 = vmatpush1.bf16.msra.mxu1 %v11237_v22  ;;  %12328 = vmatpush1.bf16.msra.mxu0 %v11239_v13  ;;  %v11298_v22 = vld [vmem:[#allocation2 + $0x1748] sm:$0xff]  ;;  %v11300_v13 = vld [vmem:[#allocation2 + $0x1758] sm:$0xff] }
 0x8b8   :  { %11796 = vmatprep.subr.bf16.mxu1 %v11242_v50  ;;  %12329 = vmatprep.subr.bf16.mxu0 %v11244_v31  ;;  %v11297_v50 = vld [vmem:[#allocation2 + $0x1740] sm:$0xff]  ;;  %v11299_v31 = vld [vmem:[#allocation2 + $0x1750] sm:$0xff] }
 0x8bb   :  { %11797 = vmatpush1.bf16.msra.mxu1 %v11241_v14  ;;  %12330 = vmatpush1.bf16.msra.mxu0 %v11243_v25  ;;  %v11302_v14 = vld [vmem:[#allocation2 + $0x1768] sm:$0xff]  ;;  %v11304_v25 = vld [vmem:[#allocation2 + $0x1778] sm:$0xff] }
 0x8bc   :  { %11798 = vmatprep.subr.bf16.mxu1 %v11246_v5  ;;  %12331 = vmatprep.subr.bf16.mxu0 %v11248_v62  ;;  %v11301_v5 = vld [vmem:[#allocation2 + $0x1760] sm:$0xff]  ;;  %v11303_v62 = vld [vmem:[#allocation2 + $0x1770] sm:$0xff] }
 0x8bf   :  { %11799 = vmatpush1.bf16.msra.mxu1 %v11245_v45  ;;  %12332 = vmatpush1.bf16.msra.mxu0 %v11247_v49  ;;  %v11306_v45 = vld [vmem:[#allocation2 + $0x1788] sm:$0xff]  ;;  %v11308_v49 = vld [vmem:[#allocation2 + $0x1798] sm:$0xff] }
 0x8c0   :  { %11800 = vmatprep.subr.bf16.mxu1 %v11250_v23  ;;  %12333 = vmatprep.subr.bf16.mxu0 %v11252_v40  ;;  %v11305_v23 = vld [vmem:[#allocation2 + $0x1780] sm:$0xff]  ;;  %v11307_v40 = vld [vmem:[#allocation2 + $0x1790] sm:$0xff] }
 0x8c3   :  { %11801 = vmatpush1.bf16.msra.mxu1 %v11249_v29  ;;  %12334 = vmatpush1.bf16.msra.mxu0 %v11251_v20  ;;  %v11312_v29 = vld [vmem:[#allocation2 + $0x17b8] sm:$0xff]  ;;  %v11309_v20 = vld [vmem:[#allocation2 + $0x17a0] sm:$0xff] }
 0x8c4   :  { %11802 = vmatprep.subr.bf16.mxu1 %v11254_v60  ;;  %12335 = vmatprep.subr.bf16.mxu0 %v11256_v27  ;;  %v11311_v60 = vld [vmem:[#allocation2 + $0x17b0] sm:$0xff]  ;;  %v11314_v27 = vld [vmem:[#allocation2 + $0x17c8] sm:$0xff] }
 0x8c7   :  { %11803 = vmatpush1.bf16.msra.mxu1 %v11253_v48  ;;  %12336 = vmatpush1.bf16.msra.mxu0 %v11255_v32  ;;  %v11316_v48 = vld [vmem:[#allocation2 + $0x17d8] sm:$0xff]  ;;  %v11313_v32 = vld [vmem:[#allocation2 + $0x17c0] sm:$0xff] }
 0x8c8   :  { %11813 = vmatprep.subr.bf16.mxu1 %v11258_v18  ;;  %12346 = vmatprep.subr.bf16.mxu0 %v11260_v1  ;;  %v11315_v18 = vld [vmem:[#allocation2 + $0x17d0] sm:$0xff]  ;;  %v11318_v1 = vld [vmem:[#allocation2 + $0x17e8] sm:$0xff] }
 0x8ca   :  { %11805 = vmatmul.mubr.bf16.vlgmr.msra.gmra.mrb[188].mxu1 %v10548_v33  ;;  %12338 = vmatmul.mubr.bf16.vlgmr.msra.gmra.mrb[224].mxu0 %v10548_v33  ;;  %v11317_v33 = vld [vmem:[#allocation2 + $0x17e0] sm:$0xff] }
 0x8cb   :  { %11814 = vmatpush1.bf16.msra.mxu1 %v11257_v9  ;;  %12347 = vmatpush1.bf16.msra.mxu0 %v11259_v21  ;;  %v11319_v9 = vld [vmem:[#allocation2 + $0x17f0] sm:$0xff]  ;;  %v11322_v21 = vld [vmem:[#allocation2 + $0x1808] sm:$0xff] }
 0x8cc   :  { %11815 = vmatprep.subr.bf16.mxu1 %v11262_v30  ;;  %12348 = vmatprep.subr.bf16.mxu0 %v11264_v63  ;;  %v11324_v30 = vld [vmem:[#allocation2 + $0x1818] sm:$0xff]  ;;  %v10550_v63 = vpack.c.bf16 %v17581_v47, %v17581_v47  ;;  %v11329_v47 = vld [vmem:[#allocation2 + $0x1840] sm:$0xff] }
 0x8cd   :  { %11845 = vmatprep.mubr.bf16.mxu1 %v10551_v17  ;;  %12378 = vmatprep.mubr.bf16.mxu0 %v10551_v17  ;;  %v11321_v17 = vld [vmem:[#allocation2 + $0x1800] sm:$0xff] }
 0x8cf   :  { %11816 = vmatpush1.bf16.msra.mxu1 %v11261_v6  ;;  %12349 = vmatpush1.bf16.msra.mxu0 %v11263_v11  ;;  %v11323_v6 = vld [vmem:[#allocation2 + $0x1810] sm:$0xff]  ;;  %v11326_v11 = vld [vmem:[#allocation2 + $0x1828] sm:$0xff] }
 0x8d0   :  { %11817 = vmatprep.subr.bf16.mxu1 %v11266_v19  ;;  %12350 = vmatprep.subr.bf16.mxu0 %v11268_v57  ;;  %v11328_v19 = vld [vmem:[#allocation2 + $0x1838] sm:$0xff]  ;;  %v11325_v57 = vld [vmem:[#allocation2 + $0x1820] sm:$0xff] }
 0x8d3   :  { %11818 = vmatpush1.bf16.msra.mxu1 %v11265_v34  ;;  %12351 = vmatpush1.bf16.msra.mxu0 %v11267_v41  ;;  %v11327_v34 = vld [vmem:[#allocation2 + $0x1830] sm:$0xff]  ;;  %v11330_v41 = vld [vmem:[#allocation2 + $0x1848] sm:$0xff] }
 0x8d4   :  { %11819 = vmatprep.subr.bf16.mxu1 %v11270_v28  ;;  %12352 = vmatprep.subr.bf16.mxu0 %v11272_v61  ;;  %v11332_v28 = vld [vmem:[#allocation2 + $0x1858] sm:$0xff]  ;;  %v14407_v61 = vmov 0  }
 0x8d7   :  { %11820 = vmatpush1.bf16.msra.mxu1 %v11269_v24  ;;  %12353 = vmatpush1.bf16.msra.mxu0 %v11271_v10  ;;  %v11331_v24 = vld [vmem:[#allocation2 + $0x1850] sm:$0xff]  ;;  %v11334_v10 = vld [vmem:[#allocation2 + $0x1868] sm:$0xff] }
 0x8d8   :  { %11821 = vmatprep.subr.bf16.mxu1 %v11274_v38  ;;  %12354 = vmatprep.subr.bf16.mxu0 %v11276_v58  ;;  %v11336_v38 = vld [vmem:[#allocation2 + $0x1878] sm:$0xff]  ;;  %v13215_v58 = vld.sshfl [vmem:[#allocation5 + $0x30] sm:$0x3 pattern:$0x76325410] }
 0x8db   :  { %11822 = vmatpush1.bf16.msra.mxu1 %v11273_v26  ;;  %12355 = vmatpush1.bf16.msra.mxu0 %v11275_v55  ;;  %v11333_v26 = vld [vmem:[#allocation2 + $0x1860] sm:$0xff]  ;;  %v11335_v55 = vld [vmem:[#allocation2 + $0x1870] sm:$0xff] }
 0x8dc   :  { %11823 = vmatprep.subr.bf16.mxu1 %v11278_v4  ;;  %12356 = vmatprep.subr.bf16.mxu0 %v11280_v2  ;;  %v14313_v4 = vld [vmem:[%s17716_s7 + $0x40] sm:$0xff]   ;;  %v10552_v2 = vpack.c.bf16 %v13215_v58, %v13215_v58 }
 0x8df   :  { %11824 = vmatpush1.bf16.msra.mxu1 %v11277_v8  ;;  %12357 = vmatpush1.bf16.msra.mxu0 %v11279_v15  ;;  %v14314_v8 = vld [vmem:[%s17716_s7] sm:$0xff]   ;;  %v14315_v15 = vld [vmem:[%s17716_s7 + $0x48] sm:$0xff]  }
 0x8e0   :  { %11825 = vmatprep.subr.bf16.mxu1 %v11282_v42  ;;  %12358 = vmatprep.subr.bf16.mxu0 %v11284_v0  ;;  %v14316_v42 = vld [vmem:[%s17716_s7 + $0x8] sm:$0xff]   ;;  %v14317_v0 = vld [vmem:[%s17716_s7 + $0x50] sm:$0xff]  }
 0x8e3   :  { %11826 = vmatpush1.bf16.msra.mxu1 %v11281_v37  ;;  %12359 = vmatpush1.bf16.msra.mxu0 %v11283_v51  ;;  %v14318_v37 = vld [vmem:[%s17716_s7 + $0x10] sm:$0xff]   ;;  %v14319_v51 = vld [vmem:[%s17716_s7 + $0x58] sm:$0xff]  }
 0x8e4   :  { %11827 = vmatprep.subr.bf16.mxu1 %v11286_v7  ;;  %12360 = vmatprep.subr.bf16.mxu0 %v11288_v53  ;;  %v14320_v7 = vld [vmem:[%s17716_s7 + $0x18] sm:$0xff]   ;;  %v14321_v53 = vld [vmem:[%s17716_s7 + $0x60] sm:$0xff]  }
 0x8e7   :  { %11828 = vmatpush1.bf16.msra.mxu1 %v11285_v16  ;;  %12361 = vmatpush1.bf16.msra.mxu0 %v11287_v35  ;;  %v14322_v16 = vld [vmem:[%s17716_s7 + $0x20] sm:$0xff]   ;;  %v14323_v35 = vld [vmem:[%s17716_s7 + $0x68] sm:$0xff]  }
 0x8e8   :  { %11829 = vmatprep.subr.bf16.mxu1 %v11290_v52  ;;  %12362 = vmatprep.subr.bf16.mxu0 %v11292_v36  ;;  %v14324_v52 = vld [vmem:[%s17716_s7 + $0x28] sm:$0xff]   ;;  %v14325_v36 = vld [vmem:[%s17716_s7 + $0x70] sm:$0xff]  }
 0x8eb   :  { %11830 = vmatpush1.bf16.msra.mxu1 %v11289_v3  ;;  %12363 = vmatpush1.bf16.msra.mxu0 %v11291_v54  ;;  %v14326_v3 = vld [vmem:[%s17716_s7 + $0x30] sm:$0xff]   ;;  %v14327_v54 = vld [vmem:[%s17716_s7 + $0x78] sm:$0xff]  }
 0x8ec   :  { %11831 = vmatprep.subr.bf16.mxu1 %v11294_v46  ;;  %12364 = vmatprep.subr.bf16.mxu0 %v11296_v59  ;;  %v14328_v46 = vld [vmem:[%s17716_s7 + $0x38] sm:$0xff]   ;;  %v14329_v59 = vld [vmem:[%s17716_s7 + $0xc0] sm:$0xff]  }
 0x8ef   :  { %11832 = vmatpush1.bf16.msra.mxu1 %v11293_v56  ;;  %12365 = vmatpush1.bf16.msra.mxu0 %v11295_v44  ;;  %v11341_v56 = vsub.s32 0, %v17470_v43  ;;  %v11337_v44 = vld [vmem:[%s17715_s6] sm:$0xf] }
 0x8f0   :  { %11833 = vmatprep.subr.bf16.mxu1 %v11298_v22  ;;  %12366 = vmatprep.subr.bf16.mxu0 %v11300_v13  ;;  %v11345_v22 = vsub.s32 1, %v17470_v43  ;;  %v11353_v13 = vsub.s32 3, %v17470_v43 }
 0x8f3   :  { %11834 = vmatpush1.bf16.msra.mxu1 %v11297_v50  ;;  %12367 = vmatpush1.bf16.msra.mxu0 %v11299_v31  ;;  %v11342_v50 = vrot.slane %v11337_v44, %v11341_v56  ;;  %v11346_v31 = vrot.slane %v11337_v44, %v11345_v22 }
 0x8f4   :  { %11835 = vmatprep.subr.bf16.mxu1 %v11302_v14  ;;  %12368 = vmatprep.subr.bf16.mxu0 %v11304_v25  ;;  %v11354_v14 = vrot.slane %v11337_v44, %v11353_v13 }
 0x8f7   :  { %11836 = vmatpush1.bf16.msra.mxu1 %v11301_v5  ;;  %12369 = vmatpush1.bf16.msra.mxu0 %v11303_v62 }
 0x8f8   :  { %11837 = vmatprep.subr.bf16.mxu1 %v11306_v45  ;;  %12370 = vmatprep.subr.bf16.mxu0 %v11308_v49 }
 0x8fb   :  { %11838 = vmatpush1.bf16.msra.mxu1 %v11305_v23  ;;  %12371 = vmatpush1.bf16.msra.mxu0 %v11307_v40 }
 0x8fc   :  { %11839 = vmatprep.subr.bf16.mxu1 %v11310_v12  ;;  %12372 = vmatprep.subr.bf16.mxu0 %v11312_v29 }
 0x8ff   :  { %11840 = vmatpush1.bf16.msra.mxu1 %v11309_v20  ;;  %12373 = vmatpush1.bf16.msra.mxu0 %v11311_v60 }
 0x900   :  { %11841 = vmatprep.subr.bf16.mxu1 %v11314_v27  ;;  %12374 = vmatprep.subr.bf16.mxu0 %v11316_v48 }
 0x903   :  { %11842 = vmatpush1.bf16.msra.mxu1 %v11313_v32  ;;  %12375 = vmatpush1.bf16.msra.mxu0 %v11315_v18 }
 0x904   :  { %11843 = vmatprep.subr.bf16.mxu1 %v11318_v1  ;;  %12376 = vmatprep.subr.bf16.mxu0 %v11320_v39  ;;  %v14330_v1 = vld [vmem:[%s17716_s7 + $0x80] sm:$0xff]  }
 0x907   :  { %11844 = vmatpush1.bf16.msra.mxu1 %v11317_v33  ;;  %12377 = vmatpush1.bf16.msra.mxu0 %v11319_v9  ;;  %v14331_v33 = vld [vmem:[%s17716_s7 + $0xc8] sm:$0xff]  }
 0x908   :  { %11854 = vmatprep.subr.bf16.mxu1 %v11322_v21  ;;  %12387 = vmatprep.subr.bf16.mxu0 %v11324_v30  ;;  %v14332_v21 = vld [vmem:[%s17716_s7 + $0x88] sm:$0xff]   ;;  %v14333_v30 = vld [vmem:[%s17716_s7 + $0xd0] sm:$0xff]  }
 0x90a   :  { %11846 = vmatmul.mubr.bf16.vlgmr.msra.gmra.mrb[188].mxu1 %v10550_v63  ;;  %12379 = vmatmul.mubr.bf16.vlgmr.msra.gmra.mrb[224].mxu0 %v10550_v63  ;;  %v14334_v63 = vld [vmem:[%s17716_s7 + $0x90] sm:$0xff]  }
 0x90b   :  { %11855 = vmatpush1.bf16.msra.mxu1 %v11321_v17  ;;  %12388 = vmatpush1.bf16.msra.mxu0 %v11323_v6  ;;  %v14335_v17 = vld [vmem:[%s17716_s7 + $0xd8] sm:$0xff]  }
 0x90c   :  { %11856 = vmatprep.subr.bf16.mxu1 %v11326_v11  ;;  %12389 = vmatprep.subr.bf16.mxu0 %v11328_v19  ;;  %v14336_v6 = vld [vmem:[%s17716_s7 + $0x98] sm:$0xff]   ;;  %v14337_v11 = vld [vmem:[%s17716_s7 + $0xe0] sm:$0xff]  }
 0x90d   :  { %11886 = vmatprep.mubr.bf16.mxu1 %v14407_v61  ;;  %12419 = vmatprep.mubr.bf16.mxu0 %v14407_v61  ;;  %v14338_v19 = vld [vmem:[%s17716_s7 + $0xa0] sm:$0xff]   ;;  %v14341_v61 = vld [vmem:[%s17716_s7 + $0xf0] sm:$0xff]  }
 0x90f   :  { %11857 = vmatpush1.bf16.msra.mxu1 %v11325_v57  ;;  %12390 = vmatpush1.bf16.msra.mxu0 %v11327_v34  ;;  %v11349_v57 = vsub.s32 2, %v17470_v43  ;;  %v14339_v34 = vld [vmem:[%s17716_s7 + $0xe8] sm:$0xff]   ;;  %v14342_v43 = vld [vmem:[%s17716_s7 + $0xb0] sm:$0xff]  }
 0x910   :  { %11858 = vmatprep.subr.bf16.mxu1 %v11330_v41  ;;  %12391 = vmatprep.subr.bf16.mxu0 %v11332_v28  ;;  %v14340_v41 = vld [vmem:[%s17716_s7 + $0xa8] sm:$0xff]  }
 0x911   :  { %v11350_v28 = vrot.slane %v11337_v44, %v11349_v57 }
 0x913   :  { %11859 = vmatpush1.bf16.msra.mxu1 %v11329_v47  ;;  %12392 = vmatpush1.bf16.msra.mxu0 %v11331_v24  ;;  %v14343_v24 = vld [vmem:[%s17716_s7 + $0xf8] sm:$0xff]  }
 0x914   :  { %11860 = vmatprep.subr.bf16.mxu1 %v11334_v10  ;;  %12393 = vmatprep.subr.bf16.mxu0 %v11336_v38  ;;  %v14344_v10 = vld [vmem:[%s17716_s7 + $0xb8] sm:$0xff]   ;;  %s14345_s7 = scalar_lea.vmem %s12787_s22, 32 }
 0x915   :  { %p14346_p2 = scmp.ne.s32.totalorder %s12787_s22, %s14345_s7  ;;  %p14351_p4 = scmp.lt.s32.totalorder %s14345_s7, %s14345_s7 }
 0x917   :  { %11861 = vmatpush1.bf16.msra.mxu1 %v11333_v26  ;;  %12394 = vmatpush1.bf16.msra.mxu0 %v11335_v55  ;;  %p14352_p5 = por %p14351_p4, %p14350_p3 }
 0x918   :  { %13554 = vmatprep.subr.bf16.mxu1 %v14313_v4 }
 0x919   :  { %p14353_p6 = pnand %p14352_p5, %p14346_p2 }
 0x91a   :  { %13216 = vmatmul.mubr.msk.bf16.vlgmr.msra.gmra.mrb[188].mxu1 %vm7493_vm2, %v10552_v2  ;;  %13217 = vmatmul.mubr.msk.bf16.vlgmr.msra.gmra.mrb[224].mxu0 %vm7493_vm2, %v10552_v2 }
 0x91b   :  { %13555 = vmatpush3.bf16.msra.mxu1 %v14314_v8 }
 0x91c   :  { %13556 = vmatprep.subr.bf16.mxu1 %v14315_v15  ;;  %v13218_v15 = vld [vmem:[%s17717_s8] ss:$0 sm:$0xff] }
 0x91f   :  { %13557 = vmatpush3.bf16.msra.mxu1 %v14316_v42 }
 0x920   :  { %13558 = vmatprep.subr.bf16.mxu1 %v14317_v0 }
 0x923   :  { %13559 = vmatpush3.bf16.msra.mxu1 %v14318_v37 }
 0x924   :  { %13560 = vmatprep.subr.bf16.mxu1 %v14319_v51 }
 0x927   :  { %13561 = vmatpush3.bf16.msra.mxu1 %v14320_v7 }
 0x928   :  { %13562 = vmatprep.subr.bf16.mxu1 %v14321_v53 }
 0x92b   :  { %13563 = vmatpush3.bf16.msra.mxu1 %v14322_v16 }
 0x92c   :  { %13564 = vmatprep.subr.bf16.mxu1 %v14323_v35 }
 0x92f   :  { %13565 = vmatpush3.bf16.msra.mxu1 %v14324_v52 }
 0x930   :  { %13566 = vmatprep.subr.bf16.mxu1 %v14325_v36 }
 0x933   :  { %13567 = vmatpush3.bf16.msra.mxu1 %v14326_v3 }
 0x934   :  { %13568 = vmatprep.subr.bf16.mxu1 %v14327_v54 }
 0x937   :  { %13569 = vmatpush3.bf16.msra.mxu1 %v14328_v46 }
 0x938   :  { %13576 = vmatprep.subr.bf16.mxu1 %v14329_v59 }
 0x9ed   :  { %v11888_v25 = vpop.f32.mrb[188].mxu1  ;;  %v12421_v5 = vpop.f32.mrb[224].mxu0 }
 0x9ee   :  { %v13994_v62 = vadd.f32 %v11888_v25, %v11342_v50  ;;  %v11890_v45 = vpop.f32.mrb[189].mxu1  ;;  %v12423_v49 = vpop.f32.mrb[225].mxu0  ;;  %v13996_v47 = vadd.f32 %v12421_v5, %v11350_v28 }
 0x9ef   :  { %v13995_v23 = vadd.f32 %v11890_v45, %v11346_v31  ;;  %v13997_v40 = vadd.f32 %v12423_v49, %v11354_v14  ;;  %v11892_v12 = vpop.f32.mrb[190].mxu1  ;;  %v12425_v29 = vpop.f32.mrb[226].mxu0 }
 0x9f0   :  { %v12428_v20 = vmax.f32 %v13994_v62, 0.0  ;;  %v11893_v60 = vpop.f32.mrb[191].mxu1  ;;  %v12426_v27 = vpop.f32.mrb[227].mxu0  ;;  %v12430_v38 = vmax.f32 %v13996_v47, 0.0 }
 0x9f1   :  { %v12429_v48 = vmax.f32 %v13995_v23, 0.0  ;;  %v12431_v32 = vmax.f32 %v13997_v40, 0.0 }
 0x9f2   :  { %v12432_v39 = vpack.c.bf16 %v12428_v20, %v12428_v20  ;;  %v12434_v58 = vpack.c.bf16 %v12430_v38, %v12430_v38 }
 0x9f3   :  { %v12433_v18 = vpack.c.bf16 %v12429_v48, %v12429_v48  ;;  %v12435_v9 = vpack.c.bf16 %v12431_v32, %v12431_v32 }
 0x9f5   :  { %12731 = vmatprep.mubr.bf16.mxu1 %v12433_v18 }
 0x9f6   :  { %12732 = vmatmul.mubr.bf16.vlgmr.msra.gmra.mrb[192].mxu1 %v12432_v39 }
 0x9f7   :  { %13577 = vmatpush3.bf16.msra.mxu1 %v14330_v1  ;;  %12771 = vmatprep.mubr.bf16.mxu1 %v12435_v9 }
 0x9f8   :  { %13578 = vmatprep.subr.bf16.mxu1 %v14331_v33 }
 0x9fb   :  { %13579 = vmatpush3.bf16.msra.mxu1 %v14332_v21 }
 0x9fc   :  { %13580 = vmatprep.subr.bf16.mxu1 %v14333_v30 }
 0x9ff   :  { %13581 = vmatpush3.bf16.msra.mxu1 %v14334_v63 }
 0xa00   :  { %13582 = vmatprep.subr.bf16.mxu1 %v14335_v17 }
 0xa03   :  { %13583 = vmatpush3.bf16.msra.mxu1 %v14336_v6 }
 0xa04   :  { %13584 = vmatprep.subr.bf16.mxu1 %v14337_v11 }
 0xa07   :  { %13585 = vmatpush3.bf16.msra.mxu1 %v14338_v19 }
 0xa08   :  { %13586 = vmatprep.subr.bf16.mxu1 %v14339_v34 }
 0xa0b   :  { %13587 = vmatpush3.bf16.msra.mxu1 %v14340_v41 }
 0xa0c   :  { %13588 = vmatprep.subr.bf16.mxu1 %v14341_v61 }
 0xa0f   :  { %13589 = vmatpush3.bf16.msra.mxu1 %v14342_v43 }
 0xa10   :  { %13590 = vmatprep.subr.bf16.mxu1 %v14343_v24 }
 0xa13   :  { %13591 = vmatpush3.bf16.msra.mxu1 %v14344_v10 }
 0xa16   :  { %12772 = vmatmul.mubr.bf16.vlgmr.msra.gmra.mrb[196].mxu1 %v12434_v58 }
 0xac9   :  { %v13570_v26 = vpop.f32.mrb[192].mxu1 }
 0xaca   :  { %v13571_v55 = vpop.f32.mrb[193].mxu1 }
 0xacb   :  { %v13572_v4 = vadd.f32 %v13571_v55, %v13570_v26  ;;  %v13573_v2 = vpop.f32.mrb[194].mxu1 }
 0xacc   :  { %v13574_v8 = vpop.f32.mrb[195].mxu1 }
 0xacd   :  { %v12734_v37 = vadd.f32 %v13572_v4, %v13218_v15 }
 0xae9   :  { %v13592_v42 = vpop.f32.mrb[196].mxu1 }
 0xaea   :  { %v13593_v0 = vpop.f32.mrb[197].mxu1 }
 0xaeb   :  { %v13594_v51 = vadd.f32 %v13593_v0, %v13592_v42  ;;  %v13595_v7 = vpop.f32.mrb[198].mxu1 }
 0xaec   :  { %v13596_v53 = vpop.f32.mrb[199].mxu1 }
 0xaed   :  { %v12774_v16 = vadd.f32 %v13594_v51, %v12734_v37 }
 0xaef   :  { %12779 = vst [vmem:[#allocation7] sm:$0x3] %v12774_v16 }
 0xaf0   :  { %14356 = shalt.err (!%p14353_p6)
}
 0xaf1   :  { %s14357_s24 = scalar_lea.hbm %s17718_s9, 32 }
 0xaf2   :  { %p14358_p7 = scmp.ne.s32.totalorder %s17718_s9, %s14357_s24  ;;  %p14361_p8 = scmp.lt.u32.totalorder %s14357_s24, %s17718_s9 }
 0xaf4   :  { %p14363_p9 = pnand %p14361_p8, %p14358_p7 }
 0xaf6   :  { %14366 = shalt.err (!%p14363_p9)
}
 0xaf7   :  { %12789 = dma.vmem_to_hbm [thread:$0]  %s12787_s22, 32, %s17718_s9, [#allocation8]  }
 0xaf8   :  { %14385 = dma.done.wait [#allocation8], 32  }
 0xaf9   :  { %14386 = vsyncadd [#allocation8], 4294967264 }
 0xafa   :  { %12793 = vsyncpa [#allocation8], 1 }
 0xafb   :  { %12794 = vsyncmov [#allocation6] }
 0xafe   :  { %s12795_s28 = vpop.sfrf %12794 }
 0xaff   :  { %p13251_p10 = scmp.ne.s32.totalorder %s12795_s28, 0 }
 0xb01   :  { %12799 = shalt.err (%p13251_p10)  }

</bundles_post_ra>
